<compile_context>
chip_gen: v6e
topology: v6e:2x2x1
jax: 0.10.0
libtpu: 0.0.40
codegen_flags: <defaults>
</compile_context>

<pallas_src>
import functools
import numpy as np
import jax
import jax.numpy as jnp
from jax.experimental import pallas as pl
from jax.experimental.pallas import tpu as pltpu


# exp(-60) ~ 9e-27: keeps a fully-shifted row finite (no 0/0) while being
# indistinguishable from 0 relative to any in-range key.
_NEG_CLAMP = -60.0


# ----------------------------------------------------------------------------
# Pallas kernel: one grid step = one group of WG windows (T = WG*N rows).
# ----------------------------------------------------------------------------
def window_attention_kernel(x_ref, wqkv_ref, bqkv_ref, scale_ref, relb_ref,
                            *rest, num_heads, seq_len, use_mask):
    if use_mask:
        mask_ref, wproj_ref, bproj_ref, o_ref, qkv_scr, out_scr = rest
    else:
        mask_ref = None
        wproj_ref, bproj_ref, o_ref, qkv_scr, out_scr = rest

    T, C = x_ref.shape
    N = seq_len
    WG = T // N
    d = C // num_heads

    # Fused QKV projection for every row in this step (bf16 MXU, f32 acc),
    # staged in VMEM scratch so only one head's slices are live at a time.
    qkv_scr[...] = (jnp.dot(x_ref[...], wqkv_ref[...],
                            preferred_element_type=jnp.float32)
                    + bqkv_ref[...])

    for h in range(num_heads):                       # static unroll over heads
        scale_h = scale_ref[h]                       # SMEM scalar (clamped, exp'd)

        q = qkv_scr[:, h * d:(h + 1) * d].reshape(WG, N, d)
        k = qkv_scr[:, C + h * d:C + (h + 1) * d].reshape(WG, N, d)

        # Cosine attention: F.normalize(x, dim=-1) == x * rsqrt(max(sum x^2, 1e-24)).
        # The per-head logit scale is folded into q's rsqrt factor (N*d work).
        qf = scale_h * jax.lax.rsqrt(
            jnp.maximum(jnp.sum(q * q, axis=-1, keepdims=True), 1e-24))
        kf = jax.lax.rsqrt(
            jnp.maximum(jnp.sum(k * k, axis=-1, keepdims=True), 1e-24))
        qb = (q * qf).astype(jnp.bfloat16)
        kb = (k * kf).astype(jnp.bfloat16)

        # Batched over all WG windows, contracting on d (bf16 MXU, f32 acc).
        attn = jax.lax.dot_general(
            qb, kb, (((2,), (2,)), ((0,), (0,))),
            preferred_element_type=jnp.float32)          # (WG, N, N) f32
        attn = attn + relb_ref[h]
        if use_mask:
            attn = attn + mask_ref[...]

        # Softmax along keys. Instead of a per-row max (extra XLU reduction),
        # subtract the exact per-head constant upper bound: cosine <= 1,
        # bias = 16*sigmoid <= 16, mask <= 0  =>  logit <= scale_h + 16.
        # Clamp from below so a pathological fully-shifted row stays finite.
        attn = jnp.maximum(attn - (scale_h + 16.0), _NEG_CLAMP)
        p = jnp.exp(attn)
        p = p * pl.reciprocal(jnp.sum(p, axis=-1, keepdims=True), approx=True)

        v = qkv_scr[:, 2 * C + h * d:2 * C + (h + 1) * d].reshape(WG, N, d)
        pv = jax.lax.dot_general(
            p.astype(jnp.bfloat16), v.astype(jnp.bfloat16),
            (((2,), (1,)), ((0,), (0,))),
            preferred_element_type=jnp.float32)          # (WG, N, d) f32
        # Write this head's result into its lane slice of the bf16 scratch.
        out_scr[:, h * d:(h + 1) * d] = pv.reshape(T, d).astype(out_scr.dtype)

    # Fused output projection over all rows in this step (bf16 MXU, f32 acc).
    out = jnp.dot(out_scr[...], wproj_ref[...],
                  preferred_element_type=jnp.float32) + bproj_ref[...]
    o_ref[...] = out.astype(o_ref.dtype)


# ----------------------------------------------------------------------------
# Generation-aware tiling helpers
# ----------------------------------------------------------------------------
def _vmem_capacity_bytes():
    try:
        return int(pltpu.get_tpu_info().vmem_capacity_bytes)
    except Exception:
        return 64 * 1024 * 1024          # conservative (v7x per-TensorCore)


def _estimate_step_vmem_bytes(WG, N, C, num_heads, use_mask, out_itemsize):
    T = WG * N
    x_blk = 2 * T * C * 2                      # bf16 input block, double-buffered
    o_blk = 2 * T * C * out_itemsize           # output block, double-buffered
    weights = (3 * C * C + C * C) * 2          # bf16 wqkv + wproj (single-buffered)
    biases = (4 * C + num_heads) * 4
    relb = num_heads * N * N * 4
    mask = WG * N * N * 4 if use_mask else 0
    scratch = T * 3 * C * 4 + T * C * 2        # f32 qkv + bf16 head-output scratch
    transient = 3 * WG * N * N * 4             # attention tiles for one head
    return x_blk + o_blk + weights + biases + relb + mask + scratch + transient


def _choose_windows_per_step(B_, N, C, num_heads, multiple_of, use_mask,
                             out_itemsize, vmem_budget,
                             min_steps=4, min_rows=256):
    # Candidate window-group sizes: divide B_, are whole images when masked,
    # and give an (8,128)-legal row block (rows % 8 == 0 or full extent).
    cands = [g for g in range(multiple_of, B_ + 1, multiple_of)
             if B_ % g == 0 and ((g * N) % 8 == 0 or g == B_)]
    if not cands:
        cands = [B_]
    fits = [g for g in cands
            if _estimate_step_vmem_bytes(g, N, C, num_heads, use_mask,
                                         out_itemsize) <= vmem_budget]
    if not fits:
        fits = [min(cands)]        # best effort; compiler may still spill
    # Prefer enough grid steps to hide the HBM DMAs behind compute, but only
    # while the MXU still sees a reasonably tall (>= min_rows) M dimension.
    for steps_wanted in (min_steps, 2):
        good = [g for g in fits if B_ // g >= steps_wanted and g * N >= min_rows]
        if good:
            return max(good)
    return max(fits)


# ----------------------------------------------------------------------------
# Wrapper
# ----------------------------------------------------------------------------
def window_attention_pallas(x, params, rel_bias, mask, num_heads):
    """x: (B_, N, C) windows; mask: (nW, N, N) additive (0 / -100) or None."""
    B_, N, C = x.shape
    assert C % num_heads == 0
    out_dtype = x.dtype
    out_itemsize = jnp.dtype(out_dtype).itemsize

    use_mask = mask is not None
    nW = mask.shape[0] if use_mask else 1
    if use_mask:
        assert B_ % nW == 0

    cap = _vmem_capacity_bytes()
    vmem_limit = max(32 * 2**20, min(int(cap * 7 // 8), 112 * 2**20))
    budget = vmem_limit * 3 // 4

    WG = _choose_windows_per_step(B_, N, C, num_heads,
                                  nW if use_mask else 1, use_mask,
                                  out_itemsize, budget)
    grid = (B_ // WG,)
    T = WG * N

    mask_arg = None
    if use_mask:
        # Windows are ordered image-major, so a group of WG windows is exactly
        # reps whole images; the tiled mask must stay aligned with that order.
        assert WG % nW == 0
        reps = WG // nW
        mask_arg = mask.astype(jnp.float32)
        if reps > 1:
            mask_arg = jnp.tile(mask_arg, (reps, 1, 1))

    # bf16 MXU operands prepared once in the wrapper; everything that is added
    # to an f32 accumulator stays f32.
    x2d = x.reshape(B_ * N, C).astype(jnp.bfloat16)
    wqkv = params["wqkv"].astype(jnp.bfloat16)
    wproj = params["wproj"].astype(jnp.bfloat16)
    qkv_bias = jnp.concatenate(
        [params["q_bias"], jnp.zeros_like(params["v_bias"]), params["v_bias"]]
    ).reshape(1, 3 * C).astype(jnp.float32)
    bproj = params["bproj"].reshape(1, C).astype(jnp.float32)
    scale = jnp.exp(jnp.minimum(params["logit_scale"].reshape(num_heads),
                                jnp.log(1.0 / 0.01))).astype(jnp.float32)
    relb = rel_bias.astype(jnp.float32)

    kernel = functools.partial(window_attention_kernel, num_heads=num_heads,
                               seq_len=N, use_mask=use_mask)

    def run(single_buffer_consts):
        const_kw = ({"pipeline_mode": pl.Buffered(1)}
                    if single_buffer_consts else {})
        in_specs = [
            pl.BlockSpec((T, C), lambda g: (g, 0)),                       # x rows
            pl.BlockSpec((C, 3 * C), lambda g: (0, 0), **const_kw),       # qkv W
            pl.BlockSpec((1, 3 * C), lambda g: (0, 0), **const_kw),       # qkv b
            pl.BlockSpec(memory_space=pltpu.MemorySpace.SMEM),            # scale
            pl.BlockSpec((num_heads, N, N), lambda g: (0, 0, 0), **const_kw),
        ]
        args = [x2d, wqkv, qkv_bias, scale, relb]
        if use_mask:
            in_specs.append(
                pl.BlockSpec((WG, N, N), lambda g: (0, 0, 0), **const_kw))
            args.append(mask_arg)
        in_specs += [
            pl.BlockSpec((C, C), lambda g: (0, 0), **const_kw),           # proj W
            pl.BlockSpec((1, C), lambda g: (0, 0), **const_kw),           # proj b
        ]
        args += [wproj, bproj]

        return pl.pallas_call(
            kernel,
            out_shape=jax.ShapeDtypeStruct((B_ * N, C), out_dtype),
            grid=grid,
            in_specs=in_specs,
            out_specs=pl.BlockSpec((T, C), lambda g: (g, 0)),
            scratch_shapes=[pltpu.VMEM((T, 3 * C), jnp.float32),   # staged QKV
                            pltpu.VMEM((T, C), jnp.bfloat16)],     # head outputs
            compiler_params=pltpu.CompilerParams(
                dimension_semantics=("parallel",),
                vmem_limit_bytes=vmem_limit),
        )(*args)

    try:
        out2d = run(True)
    except Exception:
        # Fallback if this JAX build rejects pipeline_mode=pl.Buffered(1).
        out2d = run(False)

    return out2d.reshape(B_, N, C)


# ----------------------------------------------------------------------------
# Plain-JAX / numpy glue (relative-position buffers, cpb_mlp, shift mask)
# ----------------------------------------------------------------------------
def make_relative_coords_table(ws):
    rch = np.arange(-(ws - 1), ws, dtype=np.float32)
    rcw = np.arange(-(ws - 1), ws, dtype=np.float32)
    tbl = np.stack(np.meshgrid(rch, rcw, indexing="ij"), axis=-1)
    tbl = tbl / (ws - 1)
    tbl = tbl * 8.0
    tbl = np.sign(tbl) * np.log2(np.abs(tbl) + 1.0) / np.log2(8.0)
    return jnp.asarray(tbl.reshape(-1, 2))


def make_relative_position_index(ws):
    coords = np.stack(np.meshgrid(np.arange(ws), np.arange(ws), indexing="ij"))
    cf = coords.reshape(2, -1)
    rel = cf[:, :, None] - cf[:, None, :]
    rel = rel.transpose(1, 2, 0).astype(np.int64)
    rel[:, :, 0] += ws - 1
    rel[:, :, 1] += ws - 1
    rel[:, :, 0] *= 2 * ws - 1
    return jnp.asarray(rel.sum(-1))          # (N, N)


def compute_rel_bias(params, coords_table, rpi, num_heads, N):
    h = jax.nn.relu(coords_table @ params["cpb_w1"] + params["cpb_b1"])
    tbl = h @ params["cpb_w2"]                # ((2ws-1)^2, H)
    rb = tbl[rpi.reshape(-1)].reshape(N, N, num_heads)
    rb = jnp.transpose(rb, (2, 0, 1))
    return 16.0 * jax.nn.sigmoid(rb)          # (H, N, N)


def create_shift_mask(H, W, ws, shift):
    img = np.zeros((H, W), np.float32)
    cnt = 0
    for hs in (slice(0, -ws), slice(-ws, -shift), slice(-shift, None)):
        for wsl in (slice(0, -ws), slice(-ws, -shift), slice(-shift, None)):
            img[hs, wsl] = cnt
            cnt += 1
    mw = img.reshape(H // ws, ws, W // ws, ws).transpose(0, 2, 1, 3)
    mw = mw.reshape(-1, ws * ws)
    am = mw[:, None, :] - mw[:, :, None]
    am = np.where(am != 0, -100.0, 0.0).astype(np.float32)
    return jnp.asarray(am)                    # (nW, N, N)


# ----------------------------------------------------------------------------
# Pure-JAX reference (mirrors the PyTorch forward) for validation.
# ----------------------------------------------------------------------------
def window_attention_reference(x, params, rel_bias, mask, num_heads):
    B_, N, C = x.shape
    d = C // num_heads
    qkv_bias = jnp.concatenate(
        [params["q_bias"], jnp.zeros_like(params["v_bias"]), params["v_bias"]])
    qkv = x @ params["wqkv"] + qkv_bias
    qkv = qkv.reshape(B_, N, 3, num_heads, d).transpose(2, 0, 3, 1, 4)
    q, k, v = qkv[0], qkv[1], qkv[2]
    qn = q / jnp.maximum(jnp.sqrt(jnp.sum(q * q, axis=-1, keepdims=True)), 1e-12)
    kn = k / jnp.maximum(jnp.sqrt(jnp.sum(k * k, axis=-1, keepdims=True)), 1e-12)
    attn = qn @ jnp.swapaxes(kn, -2, -1)
    scale = jnp.exp(jnp.minimum(params["logit_scale"].reshape(num_heads, 1, 1),
                                jnp.log(1.0 / 0.01)))
    attn = attn * scale[None]
    attn = attn + rel_bias[None]
    if mask is not None:
        nW = mask.shape[0]
        attn = attn.reshape(B_ // nW, nW, num_heads, N, N) + mask[None, :, None]
        attn = attn.reshape(B_, num_heads, N, N)
    attn = jax.nn.softmax(attn, axis=-1)
    out = (attn @ v).transpose(0, 2, 1, 3).reshape(B_, N, C)
    return out @ params["wproj"] + params["bproj"]


# ----------------------------------------------------------------------------
# Deterministic parameter init (shapes per WindowAttention.__init__)
# ----------------------------------------------------------------------------
def init_params(key, C, num_heads):
    ks = jax.random.split(key, 6)
    return {
        "wqkv": 0.02 * jax.random.normal(ks[0], (C, 3 * C), jnp.float32),
        "q_bias": 0.02 * jax.random.normal(ks[1], (C,), jnp.float32),
        "v_bias": 0.02 * jax.random.normal(ks[2], (C,), jnp.float32),
        "logit_scale": jnp.log(10.0 * jnp.ones((num_heads,), jnp.float32)),
        "cpb_w1": 0.02 * jax.random.normal(ks[3], (2, 512), jnp.float32),
        "cpb_b1": jnp.zeros((512,), jnp.float32),
        "cpb_w2": 0.02 * jax.random.normal(ks[4], (512, num_heads), jnp.float32),
        "wproj": 0.02 * jax.random.normal(ks[5], (C, C), jnp.float32),
        "bproj": jnp.zeros((C,), jnp.float32),
    }


if __name__ == "__main__":
    # Small config: dim=32, heads=4, window 4x4 -> N=16, image 8x8 -> nW=4, B=2.
    B, ws, C, num_heads = 2, 4, 32, 4
    Himg = Wimg = 8
    N = ws * ws
    nW = (Himg // ws) * (Wimg // ws)
    B_ = B * nW

    root = jax.random.PRNGKey(0)
    kx, kp = jax.random.split(root)
    x = jax.random.normal(kx, (B_, N, C), jnp.float32)
    params = init_params(kp, C, num_heads)

    coords_table = make_relative_coords_table(ws)
    rpi = make_relative_position_index(ws)
    rel_bias = compute_rel_bias(params, coords_table, rpi, num_heads, N)
    shift_mask = create_shift_mask(Himg, Wimg, ws, ws // 2)   # (nW, N, N)

    # Exercise both specialization paths: shifted (masked) and plain W-MSA.
    for mask in (shift_mask, None):
        out = window_attention_pallas(x, params, rel_bias, mask, num_heads)
        out = jax.block_until_ready(out)
        assert out.shape == (B_, N, C)
        ref = window_attention_reference(x, params, rel_bias, mask, num_heads)
        np.testing.assert_allclose(np.asarray(out), np.asarray(ref),
                                   rtol=2e-2, atol=2e-3)

    print("KERNEL_OK")
</pallas_src>

<mosaic_0001>
module attributes {stable_mosaic.version = 11 : i64} {
  func.func @window_attention_kernel(%arg0: i32, %arg1: memref<128x32xbf16, #tpu.memory_space<vmem>>, %arg2: memref<32x96xbf16, #tpu.memory_space<vmem>>, %arg3: memref<1x96xf32, #tpu.memory_space<vmem>>, %arg4: memref<4xf32, #tpu.memory_space<smem>>, %arg5: memref<4x16x16xf32, #tpu.memory_space<vmem>>, %arg6: memref<8x16x16xf32, #tpu.memory_space<vmem>>, %arg7: memref<32x32xbf16, #tpu.memory_space<vmem>>, %arg8: memref<1x32xf32, #tpu.memory_space<vmem>>, %arg9: memref<128x32xf32, #tpu.memory_space<vmem>>, %arg10: memref<128x96xf32, #tpu.memory_space<vmem>>, %arg11: memref<128x32xbf16, #tpu.memory_space<vmem>>) attributes {dimension_semantics = [#tpu.dimension_semantics<parallel>], iteration_bounds = array<i64: 1>, scalar_prefetch = 0 : i64, scratch_operands = 2 : i64, tpu.core_type = #tpu.core_type<tc>, window_params = [{transform_indices = @transform_0, window_bounds = array<i64: 128, 32>}, {pipeline_mode = #tpu.pipeline_mode<synchronous>, transform_indices = @transform_1, window_bounds = array<i64: 32, 96>}, {pipeline_mode = #tpu.pipeline_mode<synchronous>, transform_indices = @transform_2, window_bounds = array<i64: 1, 96>}, {transform_indices = @transform_3, window_bounds = array<i64: 4>}, {pipeline_mode = #tpu.pipeline_mode<synchronous>, transform_indices = @transform_4, window_bounds = array<i64: 4, 16, 16>}, {pipeline_mode = #tpu.pipeline_mode<synchronous>, transform_indices = @transform_5, window_bounds = array<i64: 8, 16, 16>}, {pipeline_mode = #tpu.pipeline_mode<synchronous>, transform_indices = @transform_6, window_bounds = array<i64: 32, 32>}, {pipeline_mode = #tpu.pipeline_mode<synchronous>, transform_indices = @transform_7, window_bounds = array<i64: 1, 32>}, {transform_indices = @transform_8, window_bounds = array<i64: 128, 32>}]} {
    %c0 = arith.constant 0 : index
    %c0_0 = arith.constant 0 : index
    %0 = vector.load %arg1[%c0, %c0_0] : memref<128x32xbf16, #tpu.memory_space<vmem>>, vector<128x32xbf16>
    %c0_1 = arith.constant 0 : index
    %c0_2 = arith.constant 0 : index
    %1 = vector.load %arg2[%c0_1, %c0_2] : memref<32x96xbf16, #tpu.memory_space<vmem>>, vector<32x96xbf16>
    %cst = arith.constant dense<0.000000e+00> : vector<128x96xf32>
    %2 = tpu.matmul %0, %1, %cst {dimension_numbers = #tpu.dot_dimension_numbers<[1], [0], [0], [1], [0, 0, 1, 1], [], []>} : vector<128x32xbf16>, vector<32x96xbf16>, vector<128x96xf32> -> vector<128x96xf32>
    %c0_3 = arith.constant 0 : index
    %c0_4 = arith.constant 0 : index
    %3 = vector.load %arg3[%c0_3, %c0_4] : memref<1x96xf32, #tpu.memory_space<vmem>>, vector<1x96xf32>
    %4 = vector.broadcast %3 : vector<1x96xf32> to vector<128x96xf32>
    %5 = arith.addf %2, %4 : vector<128x96xf32>
    %c0_5 = arith.constant 0 : index
    %c0_6 = arith.constant 0 : index
    %6 = vector.load %arg10[%c0_5, %c0_6] : memref<128x96xf32, #tpu.memory_space<vmem>>, vector<128x96xf32>
    tpu.vector_store %arg10[%c0_5, %c0_6], %5 {strides = array<i32>} : memref<128x96xf32, #tpu.memory_space<vmem>>, vector<128x96xf32>,
    %c0_7 = arith.constant 0 : index
    %7 = memref.load %arg4[%c0_7] : memref<4xf32, #tpu.memory_space<smem>>
    %c0_8 = arith.constant 0 : index
    %c0_9 = arith.constant 0 : index
    %8 = vector.load %arg10[%c0_8, %c0_9] : memref<128x96xf32, #tpu.memory_space<vmem>>, vector<128x8xf32>
    %9 = vector.shape_cast %8 : vector<128x8xf32> to vector<8x16x8xf32>
    %c0_10 = arith.constant 0 : index
    %c32 = arith.constant 32 : index
    %10 = vector.load %arg10[%c0_10, %c32] : memref<128x96xf32, #tpu.memory_space<vmem>>, vector<128x8xf32>
    %11 = vector.shape_cast %10 : vector<128x8xf32> to vector<8x16x8xf32>
    %12 = arith.mulf %9, %9 : vector<8x16x8xf32>
    %cst_11 = arith.constant dense<0.000000e+00> : vector<8x16xf32>
    %13 = vector.multi_reduction <add>, %12, %cst_11 [2] : vector<8x16x8xf32> to vector<8x16xf32>
    %14 = vector.shape_cast %13 : vector<8x16xf32> to vector<8x16x1xf32>
    %cst_12 = arith.constant 1.000000e-24 : f32
    %15 = vector.broadcast %cst_12 : f32 to vector<8x16x1xf32>
    %16 = arith.maximumf %14, %15 : vector<8x16x1xf32>
    %17 = math.rsqrt %16 : vector<8x16x1xf32>
    %18 = vector.broadcast %7 : f32 to vector<8x16x1xf32>
    %19 = arith.mulf %18, %17 : vector<8x16x1xf32>
    %20 = arith.mulf %11, %11 : vector<8x16x8xf32>
    %cst_13 = arith.constant dense<0.000000e+00> : vector<8x16xf32>
    %21 = vector.multi_reduction <add>, %20, %cst_13 [2] : vector<8x16x8xf32> to vector<8x16xf32>
    %22 = vector.shape_cast %21 : vector<8x16xf32> to vector<8x16x1xf32>
    %cst_14 = arith.constant 1.000000e-24 : f32
    %23 = vector.broadcast %cst_14 : f32 to vector<8x16x1xf32>
    %24 = arith.maximumf %22, %23 : vector<8x16x1xf32>
    %25 = math.rsqrt %24 : vector<8x16x1xf32>
    %26 = vector.broadcast %19 : vector<8x16x1xf32> to vector<8x16x8xf32>
    %27 = arith.mulf %9, %26 : vector<8x16x8xf32>
    %28 = arith.truncf %27 : vector<8x16x8xf32> to vector<8x16x8xbf16>
    %29 = vector.broadcast %25 : vector<8x16x1xf32> to vector<8x16x8xf32>
    %30 = arith.mulf %11, %29 : vector<8x16x8xf32>
    %31 = arith.truncf %30 : vector<8x16x8xf32> to vector<8x16x8xbf16>
    %cst_15 = arith.constant dense<0.000000e+00> : vector<8x16x16xf32>
    %32 = tpu.matmul %28, %31, %cst_15 {dimension_numbers = #tpu.dot_dimension_numbers<[2], [2], [1], [1], [0, 0, 0, 1, 1, 1], [0], [0]>} : vector<8x16x8xbf16>, vector<8x16x8xbf16>, vector<8x16x16xf32> -> vector<8x16x16xf32>
    %c0_16 = arith.constant 0 : index
    %c0_17 = arith.constant 0 : index
    %c0_18 = arith.constant 0 : index
    %33 = vector.load %arg5[%c0_16, %c0_17, %c0_18] : memref<4x16x16xf32, #tpu.memory_space<vmem>>, vector<1x16x16xf32>
    %34 = vector.shape_cast %33 : vector<1x16x16xf32> to vector<16x16xf32>
    %35 = vector.shape_cast %34 : vector<16x16xf32> to vector<1x16x16xf32>
    %36 = vector.broadcast %35 : vector<1x16x16xf32> to vector<8x16x16xf32>
    %37 = arith.addf %32, %36 : vector<8x16x16xf32>
    %c0_19 = arith.constant 0 : index
    %c0_20 = arith.constant 0 : index
    %c0_21 = arith.constant 0 : index
    %38 = vector.load %arg6[%c0_19, %c0_20, %c0_21] : memref<8x16x16xf32, #tpu.memory_space<vmem>>, vector<8x16x16xf32>
    %39 = arith.addf %37, %38 : vector<8x16x16xf32>
    %cst_22 = arith.constant 1.600000e+01 : f32
    %40 = arith.addf %7, %cst_22 : f32
    %41 = vector.broadcast %40 : f32 to vector<8x16x16xf32>
    %42 = arith.subf %39, %41 : vector<8x16x16xf32>
    %cst_23 = arith.constant -6.000000e+01 : f32
    %43 = vector.broadcast %cst_23 : f32 to vector<8x16x16xf32>
    %44 = arith.maximumf %42, %43 : vector<8x16x16xf32>
    %45 = math.exp %44 : vector<8x16x16xf32>
    %cst_24 = arith.constant dense<0.000000e+00> : vector<8x16xf32>
    %46 = vector.multi_reduction <add>, %45, %cst_24 [2] : vector<8x16x16xf32> to vector<8x16xf32>
    %47 = vector.shape_cast %46 : vector<8x16xf32> to vector<8x16x1xf32>
    %48 = tpu.reciprocal %47 {approx = true} : vector<8x16x1xf32> -> vector<8x16x1xf32>
    %49 = vector.broadcast %48 : vector<8x16x1xf32> to vector<8x16x16xf32>
    %50 = arith.mulf %45, %49 : vector<8x16x16xf32>
    %c0_25 = arith.constant 0 : index
    %c64 = arith.constant 64 : index
    %51 = vector.load %arg10[%c0_25, %c64] : memref<128x96xf32, #tpu.memory_space<vmem>>, vector<128x8xf32>
    %52 = vector.shape_cast %51 : vector<128x8xf32> to vector<8x16x8xf32>
    %53 = arith.truncf %50 : vector<8x16x16xf32> to vector<8x16x16xbf16>
    %54 = arith.truncf %52 : vector<8x16x8xf32> to vector<8x16x8xbf16>
    %cst_26 = arith.constant dense<0.000000e+00> : vector<8x16x8xf32>
    %55 = tpu.matmul %53, %54, %cst_26 {dimension_numbers = #tpu.dot_dimension_numbers<[2], [1], [1], [2], [0, 0, 0, 1, 1, 2], [0], [0]>} : vector<8x16x16xbf16>, vector<8x16x8xbf16>, vector<8x16x8xf32> -> vector<8x16x8xf32>
    %56 = vector.shape_cast %55 : vector<8x16x8xf32> to vector<128x8xf32>
    %57 = arith.truncf %56 : vector<128x8xf32> to vector<128x8xbf16>
    %c0_27 = arith.constant 0 : index
    %c0_28 = arith.constant 0 : index
    %58 = vector.load %arg11[%c0_27, %c0_28] : memref<128x32xbf16, #tpu.memory_space<vmem>>, vector<128x8xbf16>
    tpu.vector_store %arg11[%c0_27, %c0_28], %57 {strides = array<i32>} : memref<128x32xbf16, #tpu.memory_space<vmem>>, vector<128x8xbf16>,
    %c1 = arith.constant 1 : index
    %59 = memref.load %arg4[%c1] : memref<4xf32, #tpu.memory_space<smem>>
    %c0_29 = arith.constant 0 : index
    %c8 = arith.constant 8 : index
    %60 = vector.load %arg10[%c0_29, %c8] : memref<128x96xf32, #tpu.memory_space<vmem>>, vector<128x8xf32>
    %61 = vector.shape_cast %60 : vector<128x8xf32> to vector<8x16x8xf32>
    %c0_30 = arith.constant 0 : index
    %c40 = arith.constant 40 : index
    %62 = vector.load %arg10[%c0_30, %c40] : memref<128x96xf32, #tpu.memory_space<vmem>>, vector<128x8xf32>
    %63 = vector.shape_cast %62 : vector<128x8xf32> to vector<8x16x8xf32>
    %64 = arith.mulf %61, %61 : vector<8x16x8xf32>
    %cst_31 = arith.constant dense<0.000000e+00> : vector<8x16xf32>
    %65 = vector.multi_reduction <add>, %64, %cst_31 [2] : vector<8x16x8xf32> to vector<8x16xf32>
    %66 = vector.shape_cast %65 : vector<8x16xf32> to vector<8x16x1xf32>
    %cst_32 = arith.constant 1.000000e-24 : f32
    %67 = vector.broadcast %cst_32 : f32 to vector<8x16x1xf32>
    %68 = arith.maximumf %66, %67 : vector<8x16x1xf32>
    %69 = math.rsqrt %68 : vector<8x16x1xf32>
    %70 = vector.broadcast %59 : f32 to vector<8x16x1xf32>
    %71 = arith.mulf %70, %69 : vector<8x16x1xf32>
    %72 = arith.mulf %63, %63 : vector<8x16x8xf32>
    %cst_33 = arith.constant dense<0.000000e+00> : vector<8x16xf32>
    %73 = vector.multi_reduction <add>, %72, %cst_33 [2] : vector<8x16x8xf32> to vector<8x16xf32>
    %74 = vector.shape_cast %73 : vector<8x16xf32> to vector<8x16x1xf32>
    %cst_34 = arith.constant 1.000000e-24 : f32
    %75 = vector.broadcast %cst_34 : f32 to vector<8x16x1xf32>
    %76 = arith.maximumf %74, %75 : vector<8x16x1xf32>
    %77 = math.rsqrt %76 : vector<8x16x1xf32>
    %78 = vector.broadcast %71 : vector<8x16x1xf32> to vector<8x16x8xf32>
    %79 = arith.mulf %61, %78 : vector<8x16x8xf32>
    %80 = arith.truncf %79 : vector<8x16x8xf32> to vector<8x16x8xbf16>
    %81 = vector.broadcast %77 : vector<8x16x1xf32> to vector<8x16x8xf32>
    %82 = arith.mulf %63, %81 : vector<8x16x8xf32>
    %83 = arith.truncf %82 : vector<8x16x8xf32> to vector<8x16x8xbf16>
    %cst_35 = arith.constant dense<0.000000e+00> : vector<8x16x16xf32>
    %84 = tpu.matmul %80, %83, %cst_35 {dimension_numbers = #tpu.dot_dimension_numbers<[2], [2], [1], [1], [0, 0, 0, 1, 1, 1], [0], [0]>} : vector<8x16x8xbf16>, vector<8x16x8xbf16>, vector<8x16x16xf32> -> vector<8x16x16xf32>
    %c1_36 = arith.constant 1 : index
    %c0_37 = arith.constant 0 : index
    %c0_38 = arith.constant 0 : index
    %85 = vector.load %arg5[%c1_36, %c0_37, %c0_38] : memref<4x16x16xf32, #tpu.memory_space<vmem>>, vector<1x16x16xf32>
    %86 = vector.shape_cast %85 : vector<1x16x16xf32> to vector<16x16xf32>
    %87 = vector.shape_cast %86 : vector<16x16xf32> to vector<1x16x16xf32>
    %88 = vector.broadcast %87 : vector<1x16x16xf32> to vector<8x16x16xf32>
    %89 = arith.addf %84, %88 : vector<8x16x16xf32>
    %c0_39 = arith.constant 0 : index
    %c0_40 = arith.constant 0 : index
    %c0_41 = arith.constant 0 : index
    %90 = vector.load %arg6[%c0_39, %c0_40, %c0_41] : memref<8x16x16xf32, #tpu.memory_space<vmem>>, vector<8x16x16xf32>
    %91 = arith.addf %89, %90 : vector<8x16x16xf32>
    %cst_42 = arith.constant 1.600000e+01 : f32
    %92 = arith.addf %59, %cst_42 : f32
    %93 = vector.broadcast %92 : f32 to vector<8x16x16xf32>
    %94 = arith.subf %91, %93 : vector<8x16x16xf32>
    %cst_43 = arith.constant -6.000000e+01 : f32
    %95 = vector.broadcast %cst_43 : f32 to vector<8x16x16xf32>
    %96 = arith.maximumf %94, %95 : vector<8x16x16xf32>
    %97 = math.exp %96 : vector<8x16x16xf32>
    %cst_44 = arith.constant dense<0.000000e+00> : vector<8x16xf32>
    %98 = vector.multi_reduction <add>, %97, %cst_44 [2] : vector<8x16x16xf32> to vector<8x16xf32>
    %99 = vector.shape_cast %98 : vector<8x16xf32> to vector<8x16x1xf32>
    %100 = tpu.reciprocal %99 {approx = true} : vector<8x16x1xf32> -> vector<8x16x1xf32>
    %101 = vector.broadcast %100 : vector<8x16x1xf32> to vector<8x16x16xf32>
    %102 = arith.mulf %97, %101 : vector<8x16x16xf32>
    %c0_45 = arith.constant 0 : index
    %c72 = arith.constant 72 : index
    %103 = vector.load %arg10[%c0_45, %c72] : memref<128x96xf32, #tpu.memory_space<vmem>>, vector<128x8xf32>
    %104 = vector.shape_cast %103 : vector<128x8xf32> to vector<8x16x8xf32>
    %105 = arith.truncf %102 : vector<8x16x16xf32> to vector<8x16x16xbf16>
    %106 = arith.truncf %104 : vector<8x16x8xf32> to vector<8x16x8xbf16>
    %cst_46 = arith.constant dense<0.000000e+00> : vector<8x16x8xf32>
    %107 = tpu.matmul %105, %106, %cst_46 {dimension_numbers = #tpu.dot_dimension_numbers<[2], [1], [1], [2], [0, 0, 0, 1, 1, 2], [0], [0]>} : vector<8x16x16xbf16>, vector<8x16x8xbf16>, vector<8x16x8xf32> -> vector<8x16x8xf32>
    %108 = vector.shape_cast %107 : vector<8x16x8xf32> to vector<128x8xf32>
    %109 = arith.truncf %108 : vector<128x8xf32> to vector<128x8xbf16>
    %c0_47 = arith.constant 0 : index
    %c8_48 = arith.constant 8 : index
    %110 = vector.load %arg11[%c0_47, %c8_48] : memref<128x32xbf16, #tpu.memory_space<vmem>>, vector<128x8xbf16>
    tpu.vector_store %arg11[%c0_47, %c8_48], %109 {strides = array<i32>} : memref<128x32xbf16, #tpu.memory_space<vmem>>, vector<128x8xbf16>,
    %c2 = arith.constant 2 : index
    %111 = memref.load %arg4[%c2] : memref<4xf32, #tpu.memory_space<smem>>
    %c0_49 = arith.constant 0 : index
    %c16 = arith.constant 16 : index
    %112 = vector.load %arg10[%c0_49, %c16] : memref<128x96xf32, #tpu.memory_space<vmem>>, vector<128x8xf32>
    %113 = vector.shape_cast %112 : vector<128x8xf32> to vector<8x16x8xf32>
    %c0_50 = arith.constant 0 : index
    %c48 = arith.constant 48 : index
    %114 = vector.load %arg10[%c0_50, %c48] : memref<128x96xf32, #tpu.memory_space<vmem>>, vector<128x8xf32>
    %115 = vector.shape_cast %114 : vector<128x8xf32> to vector<8x16x8xf32>
    %116 = arith.mulf %113, %113 : vector<8x16x8xf32>
    %cst_51 = arith.constant dense<0.000000e+00> : vector<8x16xf32>
    %117 = vector.multi_reduction <add>, %116, %cst_51 [2] : vector<8x16x8xf32> to vector<8x16xf32>
    %118 = vector.shape_cast %117 : vector<8x16xf32> to vector<8x16x1xf32>
    %cst_52 = arith.constant 1.000000e-24 : f32
    %119 = vector.broadcast %cst_52 : f32 to vector<8x16x1xf32>
    %120 = arith.maximumf %118, %119 : vector<8x16x1xf32>
    %121 = math.rsqrt %120 : vector<8x16x1xf32>
    %122 = vector.broadcast %111 : f32 to vector<8x16x1xf32>
    %123 = arith.mulf %122, %121 : vector<8x16x1xf32>
    %124 = arith.mulf %115, %115 : vector<8x16x8xf32>
    %cst_53 = arith.constant dense<0.000000e+00> : vector<8x16xf32>
    %125 = vector.multi_reduction <add>, %124, %cst_53 [2] : vector<8x16x8xf32> to vector<8x16xf32>
    %126 = vector.shape_cast %125 : vector<8x16xf32> to vector<8x16x1xf32>
    %cst_54 = arith.constant 1.000000e-24 : f32
    %127 = vector.broadcast %cst_54 : f32 to vector<8x16x1xf32>
    %128 = arith.maximumf %126, %127 : vector<8x16x1xf32>
    %129 = math.rsqrt %128 : vector<8x16x1xf32>
    %130 = vector.broadcast %123 : vector<8x16x1xf32> to vector<8x16x8xf32>
    %131 = arith.mulf %113, %130 : vector<8x16x8xf32>
    %132 = arith.truncf %131 : vector<8x16x8xf32> to vector<8x16x8xbf16>
    %133 = vector.broadcast %129 : vector<8x16x1xf32> to vector<8x16x8xf32>
    %134 = arith.mulf %115, %133 : vector<8x16x8xf32>
    %135 = arith.truncf %134 : vector<8x16x8xf32> to vector<8x16x8xbf16>
    %cst_55 = arith.constant dense<0.000000e+00> : vector<8x16x16xf32>
    %136 = tpu.matmul %132, %135, %cst_55 {dimension_numbers = #tpu.dot_dimension_numbers<[2], [2], [1], [1], [0, 0, 0, 1, 1, 1], [0], [0]>} : vector<8x16x8xbf16>, vector<8x16x8xbf16>, vector<8x16x16xf32> -> vector<8x16x16xf32>
    %c2_56 = arith.constant 2 : index
    %c0_57 = arith.constant 0 : index
    %c0_58 = arith.constant 0 : index
    %137 = vector.load %arg5[%c2_56, %c0_57, %c0_58] : memref<4x16x16xf32, #tpu.memory_space<vmem>>, vector<1x16x16xf32>
    %138 = vector.shape_cast %137 : vector<1x16x16xf32> to vector<16x16xf32>
    %139 = vector.shape_cast %138 : vector<16x16xf32> to vector<1x16x16xf32>
    %140 = vector.broadcast %139 : vector<1x16x16xf32> to vector<8x16x16xf32>
    %141 = arith.addf %136, %140 : vector<8x16x16xf32>
    %c0_59 = arith.constant 0 : index
    %c0_60 = arith.constant 0 : index
    %c0_61 = arith.constant 0 : index
    %142 = vector.load %arg6[%c0_59, %c0_60, %c0_61] : memref<8x16x16xf32, #tpu.memory_space<vmem>>, vector<8x16x16xf32>
    %143 = arith.addf %141, %142 : vector<8x16x16xf32>
    %cst_62 = arith.constant 1.600000e+01 : f32
    %144 = arith.addf %111, %cst_62 : f32
    %145 = vector.broadcast %144 : f32 to vector<8x16x16xf32>
    %146 = arith.subf %143, %145 : vector<8x16x16xf32>
    %cst_63 = arith.constant -6.000000e+01 : f32
    %147 = vector.broadcast %cst_63 : f32 to vector<8x16x16xf32>
    %148 = arith.maximumf %146, %147 : vector<8x16x16xf32>
    %149 = math.exp %148 : vector<8x16x16xf32>
    %cst_64 = arith.constant dense<0.000000e+00> : vector<8x16xf32>
    %150 = vector.multi_reduction <add>, %149, %cst_64 [2] : vector<8x16x16xf32> to vector<8x16xf32>
    %151 = vector.shape_cast %150 : vector<8x16xf32> to vector<8x16x1xf32>
    %152 = tpu.reciprocal %151 {approx = true} : vector<8x16x1xf32> -> vector<8x16x1xf32>
    %153 = vector.broadcast %152 : vector<8x16x1xf32> to vector<8x16x16xf32>
    %154 = arith.mulf %149, %153 : vector<8x16x16xf32>
    %c0_65 = arith.constant 0 : index
    %c80 = arith.constant 80 : index
    %155 = vector.load %arg10[%c0_65, %c80] : memref<128x96xf32, #tpu.memory_space<vmem>>, vector<128x8xf32>
    %156 = vector.shape_cast %155 : vector<128x8xf32> to vector<8x16x8xf32>
    %157 = arith.truncf %154 : vector<8x16x16xf32> to vector<8x16x16xbf16>
    %158 = arith.truncf %156 : vector<8x16x8xf32> to vector<8x16x8xbf16>
    %cst_66 = arith.constant dense<0.000000e+00> : vector<8x16x8xf32>
    %159 = tpu.matmul %157, %158, %cst_66 {dimension_numbers = #tpu.dot_dimension_numbers<[2], [1], [1], [2], [0, 0, 0, 1, 1, 2], [0], [0]>} : vector<8x16x16xbf16>, vector<8x16x8xbf16>, vector<8x16x8xf32> -> vector<8x16x8xf32>
    %160 = vector.shape_cast %159 : vector<8x16x8xf32> to vector<128x8xf32>
    %161 = arith.truncf %160 : vector<128x8xf32> to vector<128x8xbf16>
    %c0_67 = arith.constant 0 : index
    %c16_68 = arith.constant 16 : index
    %162 = vector.load %arg11[%c0_67, %c16_68] : memref<128x32xbf16, #tpu.memory_space<vmem>>, vector<128x8xbf16>
    tpu.vector_store %arg11[%c0_67, %c16_68], %161 {strides = array<i32>} : memref<128x32xbf16, #tpu.memory_space<vmem>>, vector<128x8xbf16>,
    %c3 = arith.constant 3 : index
    %163 = memref.load %arg4[%c3] : memref<4xf32, #tpu.memory_space<smem>>
    %c0_69 = arith.constant 0 : index
    %c24 = arith.constant 24 : index
    %164 = vector.load %arg10[%c0_69, %c24] : memref<128x96xf32, #tpu.memory_space<vmem>>, vector<128x8xf32>
    %165 = vector.shape_cast %164 : vector<128x8xf32> to vector<8x16x8xf32>
    %c0_70 = arith.constant 0 : index
    %c56 = arith.constant 56 : index
    %166 = vector.load %arg10[%c0_70, %c56] : memref<128x96xf32, #tpu.memory_space<vmem>>, vector<128x8xf32>
    %167 = vector.shape_cast %166 : vector<128x8xf32> to vector<8x16x8xf32>
    %168 = arith.mulf %165, %165 : vector<8x16x8xf32>
    %cst_71 = arith.constant dense<0.000000e+00> : vector<8x16xf32>
    %169 = vector.multi_reduction <add>, %168, %cst_71 [2] : vector<8x16x8xf32> to vector<8x16xf32>
    %170 = vector.shape_cast %169 : vector<8x16xf32> to vector<8x16x1xf32>
    %cst_72 = arith.constant 1.000000e-24 : f32
    %171 = vector.broadcast %cst_72 : f32 to vector<8x16x1xf32>
    %172 = arith.maximumf %170, %171 : vector<8x16x1xf32>
    %173 = math.rsqrt %172 : vector<8x16x1xf32>
    %174 = vector.broadcast %163 : f32 to vector<8x16x1xf32>
    %175 = arith.mulf %174, %173 : vector<8x16x1xf32>
    %176 = arith.mulf %167, %167 : vector<8x16x8xf32>
    %cst_73 = arith.constant dense<0.000000e+00> : vector<8x16xf32>
    %177 = vector.multi_reduction <add>, %176, %cst_73 [2] : vector<8x16x8xf32> to vector<8x16xf32>
    %178 = vector.shape_cast %177 : vector<8x16xf32> to vector<8x16x1xf32>
    %cst_74 = arith.constant 1.000000e-24 : f32
    %179 = vector.broadcast %cst_74 : f32 to vector<8x16x1xf32>
    %180 = arith.maximumf %178, %179 : vector<8x16x1xf32>
    %181 = math.rsqrt %180 : vector<8x16x1xf32>
    %182 = vector.broadcast %175 : vector<8x16x1xf32> to vector<8x16x8xf32>
    %183 = arith.mulf %165, %182 : vector<8x16x8xf32>
    %184 = arith.truncf %183 : vector<8x16x8xf32> to vector<8x16x8xbf16>
    %185 = vector.broadcast %181 : vector<8x16x1xf32> to vector<8x16x8xf32>
    %186 = arith.mulf %167, %185 : vector<8x16x8xf32>
    %187 = arith.truncf %186 : vector<8x16x8xf32> to vector<8x16x8xbf16>
    %cst_75 = arith.constant dense<0.000000e+00> : vector<8x16x16xf32>
    %188 = tpu.matmul %184, %187, %cst_75 {dimension_numbers = #tpu.dot_dimension_numbers<[2], [2], [1], [1], [0, 0, 0, 1, 1, 1], [0], [0]>} : vector<8x16x8xbf16>, vector<8x16x8xbf16>, vector<8x16x16xf32> -> vector<8x16x16xf32>
    %c3_76 = arith.constant 3 : index
    %c0_77 = arith.constant 0 : index
    %c0_78 = arith.constant 0 : index
    %189 = vector.load %arg5[%c3_76, %c0_77, %c0_78] : memref<4x16x16xf32, #tpu.memory_space<vmem>>, vector<1x16x16xf32>
    %190 = vector.shape_cast %189 : vector<1x16x16xf32> to vector<16x16xf32>
    %191 = vector.shape_cast %190 : vector<16x16xf32> to vector<1x16x16xf32>
    %192 = vector.broadcast %191 : vector<1x16x16xf32> to vector<8x16x16xf32>
    %193 = arith.addf %188, %192 : vector<8x16x16xf32>
    %c0_79 = arith.constant 0 : index
    %c0_80 = arith.constant 0 : index
    %c0_81 = arith.constant 0 : index
    %194 = vector.load %arg6[%c0_79, %c0_80, %c0_81] : memref<8x16x16xf32, #tpu.memory_space<vmem>>, vector<8x16x16xf32>
    %195 = arith.addf %193, %194 : vector<8x16x16xf32>
    %cst_82 = arith.constant 1.600000e+01 : f32
    %196 = arith.addf %163, %cst_82 : f32
    %197 = vector.broadcast %196 : f32 to vector<8x16x16xf32>
    %198 = arith.subf %195, %197 : vector<8x16x16xf32>
    %cst_83 = arith.constant -6.000000e+01 : f32
    %199 = vector.broadcast %cst_83 : f32 to vector<8x16x16xf32>
    %200 = arith.maximumf %198, %199 : vector<8x16x16xf32>
    %201 = math.exp %200 : vector<8x16x16xf32>
    %cst_84 = arith.constant dense<0.000000e+00> : vector<8x16xf32>
    %202 = vector.multi_reduction <add>, %201, %cst_84 [2] : vector<8x16x16xf32> to vector<8x16xf32>
    %203 = vector.shape_cast %202 : vector<8x16xf32> to vector<8x16x1xf32>
    %204 = tpu.reciprocal %203 {approx = true} : vector<8x16x1xf32> -> vector<8x16x1xf32>
    %205 = vector.broadcast %204 : vector<8x16x1xf32> to vector<8x16x16xf32>
    %206 = arith.mulf %201, %205 : vector<8x16x16xf32>
    %c0_85 = arith.constant 0 : index
    %c88 = arith.constant 88 : index
    %207 = vector.load %arg10[%c0_85, %c88] : memref<128x96xf32, #tpu.memory_space<vmem>>, vector<128x8xf32>
    %208 = vector.shape_cast %207 : vector<128x8xf32> to vector<8x16x8xf32>
    %209 = arith.truncf %206 : vector<8x16x16xf32> to vector<8x16x16xbf16>
    %210 = arith.truncf %208 : vector<8x16x8xf32> to vector<8x16x8xbf16>
    %cst_86 = arith.constant dense<0.000000e+00> : vector<8x16x8xf32>
    %211 = tpu.matmul %209, %210, %cst_86 {dimension_numbers = #tpu.dot_dimension_numbers<[2], [1], [1], [2], [0, 0, 0, 1, 1, 2], [0], [0]>} : vector<8x16x16xbf16>, vector<8x16x8xbf16>, vector<8x16x8xf32> -> vector<8x16x8xf32>
    %212 = vector.shape_cast %211 : vector<8x16x8xf32> to vector<128x8xf32>
    %213 = arith.truncf %212 : vector<128x8xf32> to vector<128x8xbf16>
    %c0_87 = arith.constant 0 : index
    %c24_88 = arith.constant 24 : index
    %214 = vector.load %arg11[%c0_87, %c24_88] : memref<128x32xbf16, #tpu.memory_space<vmem>>, vector<128x8xbf16>
    tpu.vector_store %arg11[%c0_87, %c24_88], %213 {strides = array<i32>} : memref<128x32xbf16, #tpu.memory_space<vmem>>, vector<128x8xbf16>,
    %c0_89 = arith.constant 0 : index
    %c0_90 = arith.constant 0 : index
    %215 = vector.load %arg11[%c0_89, %c0_90] : memref<128x32xbf16, #tpu.memory_space<vmem>>, vector<128x32xbf16>
    %c0_91 = arith.constant 0 : index
    %c0_92 = arith.constant 0 : index
    %216 = vector.load %arg7[%c0_91, %c0_92] : memref<32x32xbf16, #tpu.memory_space<vmem>>, vector<32x32xbf16>
    %cst_93 = arith.constant dense<0.000000e+00> : vector<128x32xf32>
    %217 = tpu.matmul %215, %216, %cst_93 {dimension_numbers = #tpu.dot_dimension_numbers<[1], [0], [0], [1], [0, 0, 1, 1], [], []>} : vector<128x32xbf16>, vector<32x32xbf16>, vector<128x32xf32> -> vector<128x32xf32>
    %c0_94 = arith.constant 0 : index
    %c0_95 = arith.constant 0 : index
    %218 = vector.load %arg8[%c0_94, %c0_95] : memref<1x32xf32, #tpu.memory_space<vmem>>, vector<1x32xf32>
    %219 = vector.broadcast %218 : vector<1x32xf32> to vector<128x32xf32>
    %220 = arith.addf %217, %219 : vector<128x32xf32>
    %c0_96 = arith.constant 0 : index
    %c0_97 = arith.constant 0 : index
    %221 = vector.load %arg9[%c0_96, %c0_97] : memref<128x32xf32, #tpu.memory_space<vmem>>, vector<128x32xf32>
    tpu.vector_store %arg9[%c0_96, %c0_97], %220 {strides = array<i32>} : memref<128x32xf32, #tpu.memory_space<vmem>>, vector<128x32xf32>,
    return
  }
  func.func @transform_0(%arg0: i32) -> (i32, i32) {
    %c0_i32 = arith.constant 0 : i32
    %c0_i32_0 = arith.constant 0 : i32
    return %arg0, %c0_i32 : i32, i32
  }
  func.func @transform_1(%arg0: i32) -> (i32, i32) {
    %c0_i32 = arith.constant 0 : i32
    %c0_i32_0 = arith.constant 0 : i32
    %c0_i32_1 = arith.constant 0 : i32
    return %c0_i32, %c0_i32_0 : i32, i32
  }
  func.func @transform_2(%arg0: i32) -> (i32, i32) {
    %c0_i32 = arith.constant 0 : i32
    %c0_i32_0 = arith.constant 0 : i32
    %c0_i32_1 = arith.constant 0 : i32
    return %c0_i32, %c0_i32_0 : i32, i32
  }
  func.func @transform_3(%arg0: i32) -> i32 {
    %c0_i32 = arith.constant 0 : i32
    %c0_i32_0 = arith.constant 0 : i32
    return %c0_i32 : i32
  }
  func.func @transform_4(%arg0: i32) -> (i32, i32, i32) {
    %c0_i32 = arith.constant 0 : i32
    %c0_i32_0 = arith.constant 0 : i32
    %c0_i32_1 = arith.constant 0 : i32
    %c0_i32_2 = arith.constant 0 : i32
    return %c0_i32, %c0_i32_0, %c0_i32_1 : i32, i32, i32
  }
  func.func @transform_5(%arg0: i32) -> (i32, i32, i32) {
    %c0_i32 = arith.constant 0 : i32
    %c0_i32_0 = arith.constant 0 : i32
    %c0_i32_1 = arith.constant 0 : i32
    %c0_i32_2 = arith.constant 0 : i32
    return %c0_i32, %c0_i32_0, %c0_i32_1 : i32, i32, i32
  }
  func.func @transform_6(%arg0: i32) -> (i32, i32) {
    %c0_i32 = arith.constant 0 : i32
    %c0_i32_0 = arith.constant 0 : i32
    %c0_i32_1 = arith.constant 0 : i32
    return %c0_i32, %c0_i32_0 : i32, i32
  }
  func.func @transform_7(%arg0: i32) -> (i32, i32) {
    %c0_i32 = arith.constant 0 : i32
    %c0_i32_0 = arith.constant 0 : i32
    %c0_i32_1 = arith.constant 0 : i32
    return %c0_i32, %c0_i32_0 : i32, i32
  }
  func.func @transform_8(%arg0: i32) -> (i32, i32) {
    %c0_i32 = arith.constant 0 : i32
    %c0_i32_0 = arith.constant 0 : i32
    return %arg0, %c0_i32 : i32, i32
  }
}

module attributes {stable_mosaic.version = 11 : i64} {
  func.func @window_attention_kernel(%arg0: i32, %arg1: memref<128x32xbf16, #tpu.memory_space<vmem>>, %arg2: memref<32x96xbf16, #tpu.memory_space<vmem>>, %arg3: memref<1x96xf32, #tpu.memory_space<vmem>>, %arg4: memref<4xf32, #tpu.memory_space<smem>>, %arg5: memref<4x16x16xf32, #tpu.memory_space<vmem>>, %arg6: memref<8x16x16xf32, #tpu.memory_space<vmem>>, %arg7: memref<32x32xbf16, #tpu.memory_space<vmem>>, %arg8: memref<1x32xf32, #tpu.memory_space<vmem>>, %arg9: memref<128x32xf32, #tpu.memory_space<vmem>>, %arg10: memref<128x96xf32, #tpu.memory_space<vmem>>, %arg11: memref<128x32xbf16, #tpu.memory_space<vmem>>) attributes {dimension_semantics = [#tpu.dimension_semantics<parallel>], iteration_bounds = array<i64: 1>, scalar_prefetch = 0 : i64, scratch_operands = 2 : i64, tpu.core_type = #tpu.core_type<tc>, window_params = [{transform_indices = @transform_0, window_bounds = array<i64: 128, 32>}, {pipeline_mode = #tpu.pipeline_mode<synchronous>, transform_indices = @transform_1, window_bounds = array<i64: 32, 96>}, {pipeline_mode = #tpu.pipeline_mode<synchronous>, transform_indices = @transform_2, window_bounds = array<i64: 1, 96>}, {transform_indices = @transform_3, window_bounds = array<i64: 4>}, {pipeline_mode = #tpu.pipeline_mode<synchronous>, transform_indices = @transform_4, window_bounds = array<i64: 4, 16, 16>}, {pipeline_mode = #tpu.pipeline_mode<synchronous>, transform_indices = @transform_5, window_bounds = array<i64: 8, 16, 16>}, {pipeline_mode = #tpu.pipeline_mode<synchronous>, transform_indices = @transform_6, window_bounds = array<i64: 32, 32>}, {pipeline_mode = #tpu.pipeline_mode<synchronous>, transform_indices = @transform_7, window_bounds = array<i64: 1, 32>}, {transform_indices = @transform_8, window_bounds = array<i64: 128, 32>}]} {
    %c0 = arith.constant 0 : index
    %c0_0 = arith.constant 0 : index
    %0 = vector.load %arg1[%c0, %c0_0] : memref<128x32xbf16, #tpu.memory_space<vmem>>, vector<128x32xbf16>
    %c0_1 = arith.constant 0 : index
    %c0_2 = arith.constant 0 : index
    %1 = vector.load %arg2[%c0_1, %c0_2] : memref<32x96xbf16, #tpu.memory_space<vmem>>, vector<32x96xbf16>
    %cst = arith.constant dense<0.000000e+00> : vector<128x96xf32>
    %2 = tpu.matmul %0, %1, %cst {dimension_numbers = #tpu.dot_dimension_numbers<[1], [0], [0], [1], [0, 0, 1, 1], [], []>} : vector<128x32xbf16>, vector<32x96xbf16>, vector<128x96xf32> -> vector<128x96xf32>
    %c0_3 = arith.constant 0 : index
    %c0_4 = arith.constant 0 : index
    %3 = vector.load %arg3[%c0_3, %c0_4] : memref<1x96xf32, #tpu.memory_space<vmem>>, vector<1x96xf32>
    %4 = vector.broadcast %3 : vector<1x96xf32> to vector<128x96xf32>
    %5 = arith.addf %2, %4 : vector<128x96xf32>
    %c0_5 = arith.constant 0 : index
    %c0_6 = arith.constant 0 : index
    %6 = vector.load %arg10[%c0_5, %c0_6] : memref<128x96xf32, #tpu.memory_space<vmem>>, vector<128x96xf32>
    tpu.vector_store %arg10[%c0_5, %c0_6], %5 {strides = array<i32>} : memref<128x96xf32, #tpu.memory_space<vmem>>, vector<128x96xf32>,
    %c0_7 = arith.constant 0 : index
    %7 = memref.load %arg4[%c0_7] : memref<4xf32, #tpu.memory_space<smem>>
    %c0_8 = arith.constant 0 : index
    %c0_9 = arith.constant 0 : index
    %8 = vector.load %arg10[%c0_8, %c0_9] : memref<128x96xf32, #tpu.memory_space<vmem>>, vector<128x8xf32>
    %9 = vector.shape_cast %8 : vector<128x8xf32> to vector<8x16x8xf32>
    %c0_10 = arith.constant 0 : index
    %c32 = arith.constant 32 : index
    %10 = vector.load %arg10[%c0_10, %c32] : memref<128x96xf32, #tpu.memory_space<vmem>>, vector<128x8xf32>
    %11 = vector.shape_cast %10 : vector<128x8xf32> to vector<8x16x8xf32>
    %12 = arith.mulf %9, %9 : vector<8x16x8xf32>
    %cst_11 = arith.constant dense<0.000000e+00> : vector<8x16xf32>
    %13 = vector.multi_reduction <add>, %12, %cst_11 [2] : vector<8x16x8xf32> to vector<8x16xf32>
    %14 = vector.shape_cast %13 : vector<8x16xf32> to vector<8x16x1xf32>
    %cst_12 = arith.constant 1.000000e-24 : f32
    %15 = vector.broadcast %cst_12 : f32 to vector<8x16x1xf32>
    %16 = arith.maximumf %14, %15 : vector<8x16x1xf32>
    %17 = math.rsqrt %16 : vector<8x16x1xf32>
    %18 = vector.broadcast %7 : f32 to vector<8x16x1xf32>
    %19 = arith.mulf %18, %17 : vector<8x16x1xf32>
    %20 = arith.mulf %11, %11 : vector<8x16x8xf32>
    %cst_13 = arith.constant dense<0.000000e+00> : vector<8x16xf32>
    %21 = vector.multi_reduction <add>, %20, %cst_13 [2] : vector<8x16x8xf32> to vector<8x16xf32>
    %22 = vector.shape_cast %21 : vector<8x16xf32> to vector<8x16x1xf32>
    %cst_14 = arith.constant 1.000000e-24 : f32
    %23 = vector.broadcast %cst_14 : f32 to vector<8x16x1xf32>
    %24 = arith.maximumf %22, %23 : vector<8x16x1xf32>
    %25 = math.rsqrt %24 : vector<8x16x1xf32>
    %26 = vector.broadcast %19 : vector<8x16x1xf32> to vector<8x16x8xf32>
    %27 = arith.mulf %9, %26 : vector<8x16x8xf32>
    %28 = arith.truncf %27 : vector<8x16x8xf32> to vector<8x16x8xbf16>
    %29 = vector.broadcast %25 : vector<8x16x1xf32> to vector<8x16x8xf32>
    %30 = arith.mulf %11, %29 : vector<8x16x8xf32>
    %31 = arith.truncf %30 : vector<8x16x8xf32> to vector<8x16x8xbf16>
    %cst_15 = arith.constant dense<0.000000e+00> : vector<8x16x16xf32>
    %32 = tpu.matmul %28, %31, %cst_15 {dimension_numbers = #tpu.dot_dimension_numbers<[2], [2], [1], [1], [0, 0, 0, 1, 1, 1], [0], [0]>} : vector<8x16x8xbf16>, vector<8x16x8xbf16>, vector<8x16x16xf32> -> vector<8x16x16xf32>
    %c0_16 = arith.constant 0 : index
    %c0_17 = arith.constant 0 : index
    %c0_18 = arith.constant 0 : index
    %33 = vector.load %arg5[%c0_16, %c0_17, %c0_18] : memref<4x16x16xf32, #tpu.memory_space<vmem>>, vector<1x16x16xf32>
    %34 = vector.shape_cast %33 : vector<1x16x16xf32> to vector<16x16xf32>
    %35 = vector.shape_cast %34 : vector<16x16xf32> to vector<1x16x16xf32>
    %36 = vector.broadcast %35 : vector<1x16x16xf32> to vector<8x16x16xf32>
    %37 = arith.addf %32, %36 : vector<8x16x16xf32>
    %c0_19 = arith.constant 0 : index
    %c0_20 = arith.constant 0 : index
    %c0_21 = arith.constant 0 : index
    %38 = vector.load %arg6[%c0_19, %c0_20, %c0_21] : memref<8x16x16xf32, #tpu.memory_space<vmem>>, vector<8x16x16xf32>
    %39 = arith.addf %37, %38 : vector<8x16x16xf32>
    %cst_22 = arith.constant 1.600000e+01 : f32
    %40 = arith.addf %7, %cst_22 : f32
    %41 = vector.broadcast %40 : f32 to vector<8x16x16xf32>
    %42 = arith.subf %39, %41 : vector<8x16x16xf32>
    %cst_23 = arith.constant -6.000000e+01 : f32
    %43 = vector.broadcast %cst_23 : f32 to vector<8x16x16xf32>
    %44 = arith.maximumf %42, %43 : vector<8x16x16xf32>
    %45 = math.exp %44 : vector<8x16x16xf32>
    %cst_24 = arith.constant dense<0.000000e+00> : vector<8x16xf32>
    %46 = vector.multi_reduction <add>, %45, %cst_24 [2] : vector<8x16x16xf32> to vector<8x16xf32>
    %47 = vector.shape_cast %46 : vector<8x16xf32> to vector<8x16x1xf32>
    %48 = tpu.reciprocal %47 {approx = true} : vector<8x16x1xf32> -> vector<8x16x1xf32>
    %49 = vector.broadcast %48 : vector<8x16x1xf32> to vector<8x16x16xf32>
    %50 = arith.mulf %45, %49 : vector<8x16x16xf32>
    %c0_25 = arith.constant 0 : index
    %c64 = arith.constant 64 : index
    %51 = vector.load %arg10[%c0_25, %c64] : memref<128x96xf32, #tpu.memory_space<vmem>>, vector<128x8xf32>
    %52 = vector.shape_cast %51 : vector<128x8xf32> to vector<8x16x8xf32>
    %53 = arith.truncf %50 : vector<8x16x16xf32> to vector<8x16x16xbf16>
    %54 = arith.truncf %52 : vector<8x16x8xf32> to vector<8x16x8xbf16>
    %cst_26 = arith.constant dense<0.000000e+00> : vector<8x16x8xf32>
    %55 = tpu.matmul %53, %54, %cst_26 {dimension_numbers = #tpu.dot_dimension_numbers<[2], [1], [1], [2], [0, 0, 0, 1, 1, 2], [0], [0]>} : vector<8x16x16xbf16>, vector<8x16x8xbf16>, vector<8x16x8xf32> -> vector<8x16x8xf32>
    %56 = vector.shape_cast %55 : vector<8x16x8xf32> to vector<128x8xf32>
    %57 = arith.truncf %56 : vector<128x8xf32> to vector<128x8xbf16>
    %c0_27 = arith.constant 0 : index
    %c0_28 = arith.constant 0 : index
    %58 = vector.load %arg11[%c0_27, %c0_28] : memref<128x32xbf16, #tpu.memory_space<vmem>>, vector<128x8xbf16>
    tpu.vector_store %arg11[%c0_27, %c0_28], %57 {strides = array<i32>} : memref<128x32xbf16, #tpu.memory_space<vmem>>, vector<128x8xbf16>,
    %c1 = arith.constant 1 : index
    %59 = memref.load %arg4[%c1] : memref<4xf32, #tpu.memory_space<smem>>
    %c0_29 = arith.constant 0 : index
    %c8 = arith.constant 8 : index
    %60 = vector.load %arg10[%c0_29, %c8] : memref<128x96xf32, #tpu.memory_space<vmem>>, vector<128x8xf32>
    %61 = vector.shape_cast %60 : vector<128x8xf32> to vector<8x16x8xf32>
    %c0_30 = arith.constant 0 : index
    %c40 = arith.constant 40 : index
    %62 = vector.load %arg10[%c0_30, %c40] : memref<128x96xf32, #tpu.memory_space<vmem>>, vector<128x8xf32>
    %63 = vector.shape_cast %62 : vector<128x8xf32> to vector<8x16x8xf32>
    %64 = arith.mulf %61, %61 : vector<8x16x8xf32>
    %cst_31 = arith.constant dense<0.000000e+00> : vector<8x16xf32>
    %65 = vector.multi_reduction <add>, %64, %cst_31 [2] : vector<8x16x8xf32> to vector<8x16xf32>
    %66 = vector.shape_cast %65 : vector<8x16xf32> to vector<8x16x1xf32>
    %cst_32 = arith.constant 1.000000e-24 : f32
    %67 = vector.broadcast %cst_32 : f32 to vector<8x16x1xf32>
    %68 = arith.maximumf %66, %67 : vector<8x16x1xf32>
    %69 = math.rsqrt %68 : vector<8x16x1xf32>
    %70 = vector.broadcast %59 : f32 to vector<8x16x1xf32>
    %71 = arith.mulf %70, %69 : vector<8x16x1xf32>
    %72 = arith.mulf %63, %63 : vector<8x16x8xf32>
    %cst_33 = arith.constant dense<0.000000e+00> : vector<8x16xf32>
    %73 = vector.multi_reduction <add>, %72, %cst_33 [2] : vector<8x16x8xf32> to vector<8x16xf32>
    %74 = vector.shape_cast %73 : vector<8x16xf32> to vector<8x16x1xf32>
    %cst_34 = arith.constant 1.000000e-24 : f32
    %75 = vector.broadcast %cst_34 : f32 to vector<8x16x1xf32>
    %76 = arith.maximumf %74, %75 : vector<8x16x1xf32>
    %77 = math.rsqrt %76 : vector<8x16x1xf32>
    %78 = vector.broadcast %71 : vector<8x16x1xf32> to vector<8x16x8xf32>
    %79 = arith.mulf %61, %78 : vector<8x16x8xf32>
    %80 = arith.truncf %79 : vector<8x16x8xf32> to vector<8x16x8xbf16>
    %81 = vector.broadcast %77 : vector<8x16x1xf32> to vector<8x16x8xf32>
    %82 = arith.mulf %63, %81 : vector<8x16x8xf32>
    %83 = arith.truncf %82 : vector<8x16x8xf32> to vector<8x16x8xbf16>
    %cst_35 = arith.constant dense<0.000000e+00> : vector<8x16x16xf32>
    %84 = tpu.matmul %80, %83, %cst_35 {dimension_numbers = #tpu.dot_dimension_numbers<[2], [2], [1], [1], [0, 0, 0, 1, 1, 1], [0], [0]>} : vector<8x16x8xbf16>, vector<8x16x8xbf16>, vector<8x16x16xf32> -> vector<8x16x16xf32>
    %c1_36 = arith.constant 1 : index
    %c0_37 = arith.constant 0 : index
    %c0_38 = arith.constant 0 : index
    %85 = vector.load %arg5[%c1_36, %c0_37, %c0_38] : memref<4x16x16xf32, #tpu.memory_space<vmem>>, vector<1x16x16xf32>
    %86 = vector.shape_cast %85 : vector<1x16x16xf32> to vector<16x16xf32>
    %87 = vector.shape_cast %86 : vector<16x16xf32> to vector<1x16x16xf32>
    %88 = vector.broadcast %87 : vector<1x16x16xf32> to vector<8x16x16xf32>
    %89 = arith.addf %84, %88 : vector<8x16x16xf32>
    %c0_39 = arith.constant 0 : index
    %c0_40 = arith.constant 0 : index
    %c0_41 = arith.constant 0 : index
    %90 = vector.load %arg6[%c0_39, %c0_40, %c0_41] : memref<8x16x16xf32, #tpu.memory_space<vmem>>, vector<8x16x16xf32>
    %91 = arith.addf %89, %90 : vector<8x16x16xf32>
    %cst_42 = arith.constant 1.600000e+01 : f32
    %92 = arith.addf %59, %cst_42 : f32
    %93 = vector.broadcast %92 : f32 to vector<8x16x16xf32>
    %94 = arith.subf %91, %93 : vector<8x16x16xf32>
    %cst_43 = arith.constant -6.000000e+01 : f32
    %95 = vector.broadcast %cst_43 : f32 to vector<8x16x16xf32>
    %96 = arith.maximumf %94, %95 : vector<8x16x16xf32>
    %97 = math.exp %96 : vector<8x16x16xf32>
    %cst_44 = arith.constant dense<0.000000e+00> : vector<8x16xf32>
    %98 = vector.multi_reduction <add>, %97, %cst_44 [2] : vector<8x16x16xf32> to vector<8x16xf32>
    %99 = vector.shape_cast %98 : vector<8x16xf32> to vector<8x16x1xf32>
    %100 = tpu.reciprocal %99 {approx = true} : vector<8x16x1xf32> -> vector<8x16x1xf32>
    %101 = vector.broadcast %100 : vector<8x16x1xf32> to vector<8x16x16xf32>
    %102 = arith.mulf %97, %101 : vector<8x16x16xf32>
    %c0_45 = arith.constant 0 : index
    %c72 = arith.constant 72 : index
    %103 = vector.load %arg10[%c0_45, %c72] : memref<128x96xf32, #tpu.memory_space<vmem>>, vector<128x8xf32>
    %104 = vector.shape_cast %103 : vector<128x8xf32> to vector<8x16x8xf32>
    %105 = arith.truncf %102 : vector<8x16x16xf32> to vector<8x16x16xbf16>
    %106 = arith.truncf %104 : vector<8x16x8xf32> to vector<8x16x8xbf16>
    %cst_46 = arith.constant dense<0.000000e+00> : vector<8x16x8xf32>
    %107 = tpu.matmul %105, %106, %cst_46 {dimension_numbers = #tpu.dot_dimension_numbers<[2], [1], [1], [2], [0, 0, 0, 1, 1, 2], [0], [0]>} : vector<8x16x16xbf16>, vector<8x16x8xbf16>, vector<8x16x8xf32> -> vector<8x16x8xf32>
    %108 = vector.shape_cast %107 : vector<8x16x8xf32> to vector<128x8xf32>
    %109 = arith.truncf %108 : vector<128x8xf32> to vector<128x8xbf16>
    %c0_47 = arith.constant 0 : index
    %c8_48 = arith.constant 8 : index
    %110 = vector.load %arg11[%c0_47, %c8_48] : memref<128x32xbf16, #tpu.memory_space<vmem>>, vector<128x8xbf16>
    tpu.vector_store %arg11[%c0_47, %c8_48], %109 {strides = array<i32>} : memref<128x32xbf16, #tpu.memory_space<vmem>>, vector<128x8xbf16>,
    %c2 = arith.constant 2 : index
    %111 = memref.load %arg4[%c2] : memref<4xf32, #tpu.memory_space<smem>>
    %c0_49 = arith.constant 0 : index
    %c16 = arith.constant 16 : index
    %112 = vector.load %arg10[%c0_49, %c16] : memref<128x96xf32, #tpu.memory_space<vmem>>, vector<128x8xf32>
    %113 = vector.shape_cast %112 : vector<128x8xf32> to vector<8x16x8xf32>
    %c0_50 = arith.constant 0 : index
    %c48 = arith.constant 48 : index
    %114 = vector.load %arg10[%c0_50, %c48] : memref<128x96xf32, #tpu.memory_space<vmem>>, vector<128x8xf32>
    %115 = vector.shape_cast %114 : vector<128x8xf32> to vector<8x16x8xf32>
    %116 = arith.mulf %113, %113 : vector<8x16x8xf32>
    %cst_51 = arith.constant dense<0.000000e+00> : vector<8x16xf32>
    %117 = vector.multi_reduction <add>, %116, %cst_51 [2] : vector<8x16x8xf32> to vector<8x16xf32>
    %118 = vector.shape_cast %117 : vector<8x16xf32> to vector<8x16x1xf32>
    %cst_52 = arith.constant 1.000000e-24 : f32
    %119 = vector.broadcast %cst_52 : f32 to vector<8x16x1xf32>
    %120 = arith.maximumf %118, %119 : vector<8x16x1xf32>
    %121 = math.rsqrt %120 : vector<8x16x1xf32>
    %122 = vector.broadcast %111 : f32 to vector<8x16x1xf32>
    %123 = arith.mulf %122, %121 : vector<8x16x1xf32>
    %124 = arith.mulf %115, %115 : vector<8x16x8xf32>
    %cst_53 = arith.constant dense<0.000000e+00> : vector<8x16xf32>
    %125 = vector.multi_reduction <add>, %124, %cst_53 [2] : vector<8x16x8xf32> to vector<8x16xf32>
    %126 = vector.shape_cast %125 : vector<8x16xf32> to vector<8x16x1xf32>
    %cst_54 = arith.constant 1.000000e-24 : f32
    %127 = vector.broadcast %cst_54 : f32 to vector<8x16x1xf32>
    %128 = arith.maximumf %126, %127 : vector<8x16x1xf32>
    %129 = math.rsqrt %128 : vector<8x16x1xf32>
    %130 = vector.broadcast %123 : vector<8x16x1xf32> to vector<8x16x8xf32>
    %131 = arith.mulf %113, %130 : vector<8x16x8xf32>
    %132 = arith.truncf %131 : vector<8x16x8xf32> to vector<8x16x8xbf16>
    %133 = vector.broadcast %129 : vector<8x16x1xf32> to vector<8x16x8xf32>
    %134 = arith.mulf %115, %133 : vector<8x16x8xf32>
    %135 = arith.truncf %134 : vector<8x16x8xf32> to vector<8x16x8xbf16>
    %cst_55 = arith.constant dense<0.000000e+00> : vector<8x16x16xf32>
    %136 = tpu.matmul %132, %135, %cst_55 {dimension_numbers = #tpu.dot_dimension_numbers<[2], [2], [1], [1], [0, 0, 0, 1, 1, 1], [0], [0]>} : vector<8x16x8xbf16>, vector<8x16x8xbf16>, vector<8x16x16xf32> -> vector<8x16x16xf32>
    %c2_56 = arith.constant 2 : index
    %c0_57 = arith.constant 0 : index
    %c0_58 = arith.constant 0 : index
    %137 = vector.load %arg5[%c2_56, %c0_57, %c0_58] : memref<4x16x16xf32, #tpu.memory_space<vmem>>, vector<1x16x16xf32>
    %138 = vector.shape_cast %137 : vector<1x16x16xf32> to vector<16x16xf32>
    %139 = vector.shape_cast %138 : vector<16x16xf32> to vector<1x16x16xf32>
    %140 = vector.broadcast %139 : vector<1x16x16xf32> to vector<8x16x16xf32>
    %141 = arith.addf %136, %140 : vector<8x16x16xf32>
    %c0_59 = arith.constant 0 : index
    %c0_60 = arith.constant 0 : index
    %c0_61 = arith.constant 0 : index
    %142 = vector.load %arg6[%c0_59, %c0_60, %c0_61] : memref<8x16x16xf32, #tpu.memory_space<vmem>>, vector<8x16x16xf32>
    %143 = arith.addf %141, %142 : vector<8x16x16xf32>
    %cst_62 = arith.constant 1.600000e+01 : f32
    %144 = arith.addf %111, %cst_62 : f32
    %145 = vector.broadcast %144 : f32 to vector<8x16x16xf32>
    %146 = arith.subf %143, %145 : vector<8x16x16xf32>
    %cst_63 = arith.constant -6.000000e+01 : f32
    %147 = vector.broadcast %cst_63 : f32 to vector<8x16x16xf32>
    %148 = arith.maximumf %146, %147 : vector<8x16x16xf32>
    %149 = math.exp %148 : vector<8x16x16xf32>
    %cst_64 = arith.constant dense<0.000000e+00> : vector<8x16xf32>
    %150 = vector.multi_reduction <add>, %149, %cst_64 [2] : vector<8x16x16xf32> to vector<8x16xf32>
    %151 = vector.shape_cast %150 : vector<8x16xf32> to vector<8x16x1xf32>
    %152 = tpu.reciprocal %151 {approx = true} : vector<8x16x1xf32> -> vector<8x16x1xf32>
    %153 = vector.broadcast %152 : vector<8x16x1xf32> to vector<8x16x16xf32>
    %154 = arith.mulf %149, %153 : vector<8x16x16xf32>
    %c0_65 = arith.constant 0 : index
    %c80 = arith.constant 80 : index
    %155 = vector.load %arg10[%c0_65, %c80] : memref<128x96xf32, #tpu.memory_space<vmem>>, vector<128x8xf32>
    %156 = vector.shape_cast %155 : vector<128x8xf32> to vector<8x16x8xf32>
    %157 = arith.truncf %154 : vector<8x16x16xf32> to vector<8x16x16xbf16>
    %158 = arith.truncf %156 : vector<8x16x8xf32> to vector<8x16x8xbf16>
    %cst_66 = arith.constant dense<0.000000e+00> : vector<8x16x8xf32>
    %159 = tpu.matmul %157, %158, %cst_66 {dimension_numbers = #tpu.dot_dimension_numbers<[2], [1], [1], [2], [0, 0, 0, 1, 1, 2], [0], [0]>} : vector<8x16x16xbf16>, vector<8x16x8xbf16>, vector<8x16x8xf32> -> vector<8x16x8xf32>
    %160 = vector.shape_cast %159 : vector<8x16x8xf32> to vector<128x8xf32>
    %161 = arith.truncf %160 : vector<128x8xf32> to vector<128x8xbf16>
    %c0_67 = arith.constant 0 : index
    %c16_68 = arith.constant 16 : index
    %162 = vector.load %arg11[%c0_67, %c16_68] : memref<128x32xbf16, #tpu.memory_space<vmem>>, vector<128x8xbf16>
    tpu.vector_store %arg11[%c0_67, %c16_68], %161 {strides = array<i32>} : memref<128x32xbf16, #tpu.memory_space<vmem>>, vector<128x8xbf16>,
    %c3 = arith.constant 3 : index
    %163 = memref.load %arg4[%c3] : memref<4xf32, #tpu.memory_space<smem>>
    %c0_69 = arith.constant 0 : index
    %c24 = arith.constant 24 : index
    %164 = vector.load %arg10[%c0_69, %c24] : memref<128x96xf32, #tpu.memory_space<vmem>>, vector<128x8xf32>
    %165 = vector.shape_cast %164 : vector<128x8xf32> to vector<8x16x8xf32>
    %c0_70 = arith.constant 0 : index
    %c56 = arith.constant 56 : index
    %166 = vector.load %arg10[%c0_70, %c56] : memref<128x96xf32, #tpu.memory_space<vmem>>, vector<128x8xf32>
    %167 = vector.shape_cast %166 : vector<128x8xf32> to vector<8x16x8xf32>
    %168 = arith.mulf %165, %165 : vector<8x16x8xf32>
    %cst_71 = arith.constant dense<0.000000e+00> : vector<8x16xf32>
    %169 = vector.multi_reduction <add>, %168, %cst_71 [2] : vector<8x16x8xf32> to vector<8x16xf32>
    %170 = vector.shape_cast %169 : vector<8x16xf32> to vector<8x16x1xf32>
    %cst_72 = arith.constant 1.000000e-24 : f32
    %171 = vector.broadcast %cst_72 : f32 to vector<8x16x1xf32>
    %172 = arith.maximumf %170, %171 : vector<8x16x1xf32>
    %173 = math.rsqrt %172 : vector<8x16x1xf32>
    %174 = vector.broadcast %163 : f32 to vector<8x16x1xf32>
    %175 = arith.mulf %174, %173 : vector<8x16x1xf32>
    %176 = arith.mulf %167, %167 : vector<8x16x8xf32>
    %cst_73 = arith.constant dense<0.000000e+00> : vector<8x16xf32>
    %177 = vector.multi_reduction <add>, %176, %cst_73 [2] : vector<8x16x8xf32> to vector<8x16xf32>
    %178 = vector.shape_cast %177 : vector<8x16xf32> to vector<8x16x1xf32>
    %cst_74 = arith.constant 1.000000e-24 : f32
    %179 = vector.broadcast %cst_74 : f32 to vector<8x16x1xf32>
    %180 = arith.maximumf %178, %179 : vector<8x16x1xf32>
    %181 = math.rsqrt %180 : vector<8x16x1xf32>
    %182 = vector.broadcast %175 : vector<8x16x1xf32> to vector<8x16x8xf32>
    %183 = arith.mulf %165, %182 : vector<8x16x8xf32>
    %184 = arith.truncf %183 : vector<8x16x8xf32> to vector<8x16x8xbf16>
    %185 = vector.broadcast %181 : vector<8x16x1xf32> to vector<8x16x8xf32>
    %186 = arith.mulf %167, %185 : vector<8x16x8xf32>
    %187 = arith.truncf %186 : vector<8x16x8xf32> to vector<8x16x8xbf16>
    %cst_75 = arith.constant dense<0.000000e+00> : vector<8x16x16xf32>
    %188 = tpu.matmul %184, %187, %cst_75 {dimension_numbers = #tpu.dot_dimension_numbers<[2], [2], [1], [1], [0, 0, 0, 1, 1, 1], [0], [0]>} : vector<8x16x8xbf16>, vector<8x16x8xbf16>, vector<8x16x16xf32> -> vector<8x16x16xf32>
    %c3_76 = arith.constant 3 : index
    %c0_77 = arith.constant 0 : index
    %c0_78 = arith.constant 0 : index
    %189 = vector.load %arg5[%c3_76, %c0_77, %c0_78] : memref<4x16x16xf32, #tpu.memory_space<vmem>>, vector<1x16x16xf32>
    %190 = vector.shape_cast %189 : vector<1x16x16xf32> to vector<16x16xf32>
    %191 = vector.shape_cast %190 : vector<16x16xf32> to vector<1x16x16xf32>
    %192 = vector.broadcast %191 : vector<1x16x16xf32> to vector<8x16x16xf32>
    %193 = arith.addf %188, %192 : vector<8x16x16xf32>
    %c0_79 = arith.constant 0 : index
    %c0_80 = arith.constant 0 : index
    %c0_81 = arith.constant 0 : index
    %194 = vector.load %arg6[%c0_79, %c0_80, %c0_81] : memref<8x16x16xf32, #tpu.memory_space<vmem>>, vector<8x16x16xf32>
    %195 = arith.addf %193, %194 : vector<8x16x16xf32>
    %cst_82 = arith.constant 1.600000e+01 : f32
    %196 = arith.addf %163, %cst_82 : f32
    %197 = vector.broadcast %196 : f32 to vector<8x16x16xf32>
    %198 = arith.subf %195, %197 : vector<8x16x16xf32>
    %cst_83 = arith.constant -6.000000e+01 : f32
    %199 = vector.broadcast %cst_83 : f32 to vector<8x16x16xf32>
    %200 = arith.maximumf %198, %199 : vector<8x16x16xf32>
    %201 = math.exp %200 : vector<8x16x16xf32>
    %cst_84 = arith.constant dense<0.000000e+00> : vector<8x16xf32>
    %202 = vector.multi_reduction <add>, %201, %cst_84 [2] : vector<8x16x16xf32> to vector<8x16xf32>
    %203 = vector.shape_cast %202 : vector<8x16xf32> to vector<8x16x1xf32>
    %204 = tpu.reciprocal %203 {approx = true} : vector<8x16x1xf32> -> vector<8x16x1xf32>
    %205 = vector.broadcast %204 : vector<8x16x1xf32> to vector<8x16x16xf32>
    %206 = arith.mulf %201, %205 : vector<8x16x16xf32>
    %c0_85 = arith.constant 0 : index
    %c88 = arith.constant 88 : index
    %207 = vector.load %arg10[%c0_85, %c88] : memref<128x96xf32, #tpu.memory_space<vmem>>, vector<128x8xf32>
    %208 = vector.shape_cast %207 : vector<128x8xf32> to vector<8x16x8xf32>
    %209 = arith.truncf %206 : vector<8x16x16xf32> to vector<8x16x16xbf16>
    %210 = arith.truncf %208 : vector<8x16x8xf32> to vector<8x16x8xbf16>
    %cst_86 = arith.constant dense<0.000000e+00> : vector<8x16x8xf32>
    %211 = tpu.matmul %209, %210, %cst_86 {dimension_numbers = #tpu.dot_dimension_numbers<[2], [1], [1], [2], [0, 0, 0, 1, 1, 2], [0], [0]>} : vector<8x16x16xbf16>, vector<8x16x8xbf16>, vector<8x16x8xf32> -> vector<8x16x8xf32>
    %212 = vector.shape_cast %211 : vector<8x16x8xf32> to vector<128x8xf32>
    %213 = arith.truncf %212 : vector<128x8xf32> to vector<128x8xbf16>
    %c0_87 = arith.constant 0 : index
    %c24_88 = arith.constant 24 : index
    %214 = vector.load %arg11[%c0_87, %c24_88] : memref<128x32xbf16, #tpu.memory_space<vmem>>, vector<128x8xbf16>
    tpu.vector_store %arg11[%c0_87, %c24_88], %213 {strides = array<i32>} : memref<128x32xbf16, #tpu.memory_space<vmem>>, vector<128x8xbf16>,
    %c0_89 = arith.constant 0 : index
    %c0_90 = arith.constant 0 : index
    %215 = vector.load %arg11[%c0_89, %c0_90] : memref<128x32xbf16, #tpu.memory_space<vmem>>, vector<128x32xbf16>
    %c0_91 = arith.constant 0 : index
    %c0_92 = arith.constant 0 : index
    %216 = vector.load %arg7[%c0_91, %c0_92] : memref<32x32xbf16, #tpu.memory_space<vmem>>, vector<32x32xbf16>
    %cst_93 = arith.constant dense<0.000000e+00> : vector<128x32xf32>
    %217 = tpu.matmul %215, %216, %cst_93 {dimension_numbers = #tpu.dot_dimension_numbers<[1], [0], [0], [1], [0, 0, 1, 1], [], []>} : vector<128x32xbf16>, vector<32x32xbf16>, vector<128x32xf32> -> vector<128x32xf32>
    %c0_94 = arith.constant 0 : index
    %c0_95 = arith.constant 0 : index
    %218 = vector.load %arg8[%c0_94, %c0_95] : memref<1x32xf32, #tpu.memory_space<vmem>>, vector<1x32xf32>
    %219 = vector.broadcast %218 : vector<1x32xf32> to vector<128x32xf32>
    %220 = arith.addf %217, %219 : vector<128x32xf32>
    %c0_96 = arith.constant 0 : index
    %c0_97 = arith.constant 0 : index
    %221 = vector.load %arg9[%c0_96, %c0_97] : memref<128x32xf32, #tpu.memory_space<vmem>>, vector<128x32xf32>
    tpu.vector_store %arg9[%c0_96, %c0_97], %220 {strides = array<i32>} : memref<128x32xf32, #tpu.memory_space<vmem>>, vector<128x32xf32>,
    return
  }
  func.func @transform_0(%arg0: i32) -> (i32, i32) {
    %c0_i32 = arith.constant 0 : i32
    %c0_i32_0 = arith.constant 0 : i32
    return %arg0, %c0_i32 : i32, i32
  }
  func.func @transform_1(%arg0: i32) -> (i32, i32) {
    %c0_i32 = arith.constant 0 : i32
    %c0_i32_0 = arith.constant 0 : i32
    %c0_i32_1 = arith.constant 0 : i32
    return %c0_i32, %c0_i32_0 : i32, i32
  }
  func.func @transform_2(%arg0: i32) -> (i32, i32) {
    %c0_i32 = arith.constant 0 : i32
    %c0_i32_0 = arith.constant 0 : i32
    %c0_i32_1 = arith.constant 0 : i32
    return %c0_i32, %c0_i32_0 : i32, i32
  }
  func.func @transform_3(%arg0: i32) -> i32 {
    %c0_i32 = arith.constant 0 : i32
    %c0_i32_0 = arith.constant 0 : i32
    return %c0_i32 : i32
  }
  func.func @transform_4(%arg0: i32) -> (i32, i32, i32) {
    %c0_i32 = arith.constant 0 : i32
    %c0_i32_0 = arith.constant 0 : i32
    %c0_i32_1 = arith.constant 0 : i32
    %c0_i32_2 = arith.constant 0 : i32
    return %c0_i32, %c0_i32_0, %c0_i32_1 : i32, i32, i32
  }
  func.func @transform_5(%arg0: i32) -> (i32, i32, i32) {
    %c0_i32 = arith.constant 0 : i32
    %c0_i32_0 = arith.constant 0 : i32
    %c0_i32_1 = arith.constant 0 : i32
    %c0_i32_2 = arith.constant 0 : i32
    return %c0_i32, %c0_i32_0, %c0_i32_1 : i32, i32, i32
  }
  func.func @transform_6(%arg0: i32) -> (i32, i32) {
    %c0_i32 = arith.constant 0 : i32
    %c0_i32_0 = arith.constant 0 : i32
    %c0_i32_1 = arith.constant 0 : i32
    return %c0_i32, %c0_i32_0 : i32, i32
  }
  func.func @transform_7(%arg0: i32) -> (i32, i32) {
    %c0_i32 = arith.constant 0 : i32
    %c0_i32_0 = arith.constant 0 : i32
    %c0_i32_1 = arith.constant 0 : i32
    return %c0_i32, %c0_i32_0 : i32, i32
  }
  func.func @transform_8(%arg0: i32) -> (i32, i32) {
    %c0_i32 = arith.constant 0 : i32
    %c0_i32_0 = arith.constant 0 : i32
    return %arg0, %c0_i32 : i32, i32
  }
}

</mosaic_0001>

<bundles_post_ra>
// kernel: tpu_custom_call.1
= control target key start
LH: loop header
LB: loop body
LE: loop exit
PB: predicated region body
PF: predicated region fallthrough
CT: control target
= control target key end

     0   :  { %13 = vsyncpa [#allocation6], 0  ;;  %s10319_s0 = inlined_call_operand.vmem [shape: bf16[128,32], index: 0, kind: input, shape index: {}]   ;;  %s10320_s1 = inlined_call_operand.vmem [shape: bf16[32,96], index: 1, kind: input, shape index: {}]   ;;  %s10321_s2 = inlined_call_operand.vmem [shape: f32[1,96], index: 2, kind: input, shape index: {}]   ;;  %s10322_s3 = inlined_call_operand.vmem [shape: f32[4], index: 3, kind: input, shape index: {}]   ;;  %s10323_s4 = inlined_call_operand.vmem [shape: f32[4,16,16], index: 4, kind: input, shape index: {}]   ;;  %s10324_s5 = inlined_call_operand.hbm [shape: f32[8,16,16], index: 5, kind: input, shape index: {}]   ;;  %s10325_s6 = inlined_call_operand.hbm [shape: bf16[32,32], index: 6, kind: input, shape index: {}]   ;;  %s10326_s7 = inlined_call_operand.vmem [shape: f32[1,32], index: 7, kind: input, shape index: {}]   ;;  %s10327_s8 = inlined_call_operand.vmem [shape: f32[128,32], index: 8, kind: output, shape index: {}]  }
   0x1   :  { %14 = vsyncpa [#allocation5], 0  ;;  %s28_s29 = sshll.u32 %s10322_s3, 4  ;;  %s29_s29 = int_to_ptr.vmem [resolvable:$true] %s28_s29 }
   0x2   :  { %15 = vsyncpa [#allocation9], 0  ;;  %s7796_s30 = scalar_lea.vmem %s29_s29, 16  ;;  %p7801_p1 = scmp.lt.s32.totalorder %s29_s29, %s29_s29 }
   0x3   :  { %p7797_p0 = scmp.ne.s32.totalorder %s29_s29, %s7796_s30  ;;  %p7802_p2 = scmp.lt.s32.totalorder %s7796_s30, %s7796_s30 }
   0x5   :  { %p7803_p3 = por %p7802_p2, %p7801_p1 }
   0x7   :  { %p7804_p4 = pnand %p7803_p3, %p7797_p0 }
   0x9   :  { %7807 = shalt.err (!%p7804_p4)
}
   0xa   :  { %s7854_s9 = smov [#allocation4]   ;;  %s7855_s10 = smov [#allocation7]  }
   0xb   :  { %31 = dma.vmem_to_smem %s29_s29, 16, %s7854_s9, [#allocation6]  }
   0xc   :  { %s39_s11 = sshll.u32 %s7855_s10, 4  ;;  %s40_s11 = int_to_ptr.vmem [resolvable:$true] %s39_s11 }
   0xd   :  { %s7816_s12 = scalar_lea.vmem %s40_s11, 2048  ;;  %p7821_p6 = scmp.lt.s32.totalorder %s40_s11, %s40_s11 }
   0xe   :  { %p7817_p5 = scmp.ne.s32.totalorder %s40_s11, %s7816_s12  ;;  %p7822_p7 = scmp.lt.s32.totalorder %s7816_s12, %s7816_s12 }
  0x10   :  { %p7823_p8 = por %p7822_p7, %p7821_p6 }
  0x12   :  { %p7824_p9 = pnand %p7823_p8, %p7817_p5 }
  0x14   :  { %7827 = shalt.err (!%p7824_p9)
}
  0x15   :  { %s7856_s3 = smov 128   ;;  %s7857_s13 = smov 8  }
  0x16   :  { %45 = dma.hbm_to_vmem [thread:$0]  %s10324_s5, 2048, %s40_s11, [#allocation5], %s7856_s3, %s7856_s3, %s7857_s13  }
  0x17   :  { %s7858_s16 = smov [#allocation8]  }
  0x18   :  { %s51_s17 = sshll.u32 %s7858_s16, 4  ;;  %s52_s17 = int_to_ptr.vmem [resolvable:$true] %s51_s17 }
  0x19   :  { %s7836_s18 = scalar_lea.vmem %s52_s17, 256  ;;  %p7841_p11 = scmp.lt.s32.totalorder %s52_s17, %s52_s17 }
  0x1a   :  { %p7837_p10 = scmp.ne.s32.totalorder %s52_s17, %s7836_s18  ;;  %p7842_p12 = scmp.lt.s32.totalorder %s7836_s18, %s7836_s18 }
  0x1c   :  { %p7843_p13 = por %p7842_p12, %p7841_p11 }
  0x1e   :  { %p7844_p0 = pnand %p7843_p13, %p7837_p10 }
  0x20   :  { %7847 = shalt.err (!%p7844_p0)
}
  0x21   :  { %s7859_s19 = smov 64   ;;  %s7860_s20 = smov 4  }
  0x22   :  { %57 = dma.hbm_to_vmem [thread:$0]  %s10325_s6, 256, %s52_s17, [#allocation9], %s7859_s19, %s7859_s19, %s7860_s20  }
  0x23   :  { %7848 = dma.done.wait [#allocation6], 16  }
  0x24   :  { %7849 = vsyncadd [#allocation6], 4294967280 }
  0x25   :  { %7850 = dma.done.wait [#allocation5], 2048  }
  0x26   :  { %7851 = vsyncadd [#allocation5], 4294965248 }
  0x27   :  { %7852 = dma.done.wait [#allocation9], 256  }
  0x28   :  { %7853 = vsyncadd [#allocation9], 4294967040 }
  0x29   :  { %69 = sfence }
  0x2a   :  { %v7197_v0 = vld [vmem:[%s10320_s1 + $0x8] sm:$0xff]   ;;  %v7198_v1 = vld [vmem:[%s10320_s1] sm:$0xff]   ;;  %vm150_vm0 = vcmask 261120   ;;  %v7201_v4 = vld [vmem:[%s10319_s0 + $0x10] sm:$0xff]   ;;  %vm272_vm1 = vcmask 785408   ;;  %vm322_vm2 = vcmask 64512  }
  0x2b   :  { %6748 = vmatprep.subr.bf16.mxu0 %v7197_v0  ;;  %v7199_v2 = vld [vmem:[%s10319_s0] sm:$0xff]   ;;  %7172 = vmatprep.subr.bf16.mxu1 %v7197_v0  ;;  %v7200_v3 = vld [vmem:[%s10319_s0 + $0x8] sm:$0xff]   ;;  %v7205_v7 = vld [vmem:[%s10319_s0 + $0x30] sm:$0xff]   ;;  %vm7863_vm3 = vmmov 0   ;;  %s7865_s21 = smov 120   ;;  %s8268_s22 = sld [smem:[#allocation4]] }
  0x2c   :  { %6749 = vmatpush3.bf16.msra.mxu0 %v7197_v0  ;;  %7174 = vmatpush3.bf16.msra.mxu1 %v7197_v0  ;;  %v7203_v5 = vld [vmem:[%s10319_s0 + $0x20] sm:$0xff]   ;;  %v7204_v6 = vld [vmem:[%s10319_s0 + $0x28] sm:$0xff]   ;;  %v7202_v8 = vld [vmem:[%s10319_s0 + $0x18] sm:$0xff]   ;;  %vm1112_vm4 = vcmask 130048   ;;  %s7866_s27 = smov 80   ;;  %s7867_s6 = smov 112  }
  0x2d   :  { %6750 = vmatprep.subr.bf16.mxu0 %v7198_v1  ;;  %6752 = vmatprep.mubr.msk.bf16.mxu0 %vm150_vm0, %v7199_v2  ;;  %v7206_v9 = vld [vmem:[%s10319_s0 + $0x38] sm:$0xff]   ;;  %v6361_v10 = vld [vmem:[%s10321_s2] ss:$0 sm:$0xff]  ;;  %s7861_s0 = smov 96   ;;  %s7864_s2 = smov 88   ;;  %vm1657_vm5 = vcmask 60416  }
  0x2e   :  { %7173 = vmatprep.subr.bf16.mxu1 %v7198_v1  ;;  %6760 = vmatprep.mubr.msk.bf16.mxu1 %vm150_vm0, %v7203_v5  ;;  %s7868_s28 = smov 56   ;;  %s9135_s11 = sld [smem:[#allocation4 + $0x2]]  ;;  %vm3145_vm6 = vcmask 126016   ;;  %vm4633_vm7 = vcmask 191616   ;;  %vm6121_vm8 = vcmask 257216  }
  0x2f   :  { %s7869_s12 = smov 72   ;;  %s7870_s3 = smov 104  }
  0x30   :  { %6751 = vmatpush3.bf16.msra.mxu0 %v7198_v1  ;;  %7175 = vmatpush3.bf16.msra.mxu1 %v7198_v1  ;;  %s7871_s14 = smov 48  }
  0x31   :  { %s1046_s24 = sadd.f32 16.0, %s8268_s22 }
  0x33   :  { %6753 = vmatmul.mubr.msk.bf16.vlgmr.msra.gmra.mxu0 %vm150_vm0, %v7200_v3  ;;  %6761 = vmatmul.mubr.msk.bf16.vlgmr.msra.gmra.mxu1 %vm150_vm0, %v7204_v6 }
  0x34   :  { %6756 = vmatprep.mubr.msk.bf16.mxu0 %vm150_vm0, %v7201_v4  ;;  %6764 = vmatprep.mubr.msk.bf16.mxu1 %vm150_vm0, %v7205_v7  ;;  %s3991_s17 = sadd.f32 16.0, %s9135_s11 }
  0x3b   :  { %6757 = vmatmul.mubr.msk.bf16.gmra.mxu0 %vm150_vm0, %v7202_v8  ;;  %6765 = vmatmul.mubr.msk.bf16.gmra.mxu1 %vm150_vm0, %v7206_v9 }
  0xf3   :  { %v6754_v11 = vpop.f32.mrf.mxu0  ;;  %v6762_v12 = vpop.f32.mrf.mxu1 }
  0xf4   :  { %v218_v13 = vadd.f32 %v6754_v11, %v6361_v10  ;;  %v250_v14 = vadd.f32 %v6762_v12, %v6361_v10 }
  0xf5   :  { %v209_v15 = vpop.f32.mrf.mxu0  ;;  %v241_v16 = vpop.f32.mrf.mxu1 }
  0xf6   :  { %275 = vst.msk [vmem:[#allocation2 + $0x10] sm:$0xff] %vm272_vm1, %v218_v13  ;;  %v210_v17 = vadd.f32 %v6361_v10, %v209_v15  ;;  %283 = vst.msk [vmem:[#allocation2 + $0x50] sm:$0xff] %vm272_vm1, %v250_v14  ;;  %v242_v18 = vadd.f32 %v6361_v10, %v241_v16 }
  0xf7   :  { %v6755_v19 = vpop.f32.mrf.mxu0  ;;  %v6763_v20 = vpop.f32.mrf.mxu1 }
  0xf8   :  { %273 = vst.msk [vmem:[#allocation2] sm:$0xff] %vm272_vm1, %v210_v17  ;;  %v221_v21 = vadd.f32 %v6755_v19, %v6361_v10  ;;  %281 = vst.msk [vmem:[#allocation2 + $0x40] sm:$0xff] %vm272_vm1, %v242_v18  ;;  %v253_v22 = vadd.f32 %v6763_v20, %v6361_v10 }
  0xf9   :  { %v212_v23 = vpop.f32.mrf.mxu0  ;;  %v244_v24 = vpop.f32.mrf.mxu1 }
  0xfa   :  { %276 = vst.msk [vmem:[#allocation2 + $0x18] sm:$0xff] %vm272_vm1, %v221_v21  ;;  %v213_v25 = vadd.f32 %v6361_v10, %v212_v23  ;;  %284 = vst.msk [vmem:[#allocation2 + $0x58] sm:$0xff] %vm272_vm1, %v253_v22  ;;  %v245_v26 = vadd.f32 %v6361_v10, %v244_v24 }
  0xfb   :  { %v6758_v27 = vpop.f32.mrf.mxu0  ;;  %v6766_v28 = vpop.f32.mrf.mxu1 }
  0xfc   :  { %274 = vst.msk [vmem:[#allocation2 + $0x8] sm:$0xff] %vm272_vm1, %v213_v25  ;;  %v234_v29 = vadd.f32 %v6758_v27, %v6361_v10  ;;  %282 = vst.msk [vmem:[#allocation2 + $0x48] sm:$0xff] %vm272_vm1, %v245_v26  ;;  %v266_v30 = vadd.f32 %v6766_v28, %v6361_v10 }
  0xfd   :  { %v225_v31 = vpop.f32.mrf.mxu0  ;;  %v7981_v32 = vld [vmem:[#allocation2 + $0x10] sm:$0xff]  ;;  %v257_v33 = vpop.f32.mrf.mxu1 }
  0xfe   :  { %279 = vst.msk [vmem:[#allocation2 + $0x30] sm:$0xff] %vm272_vm1, %v234_v29  ;;  %v226_v34 = vadd.f32 %v6361_v10, %v225_v31  ;;  %v7986_v35 = vmul.f32 %v7981_v32, %v7981_v32  ;;  %287 = vst.msk [vmem:[#allocation2 + $0x70] sm:$0xff] %vm272_vm1, %v266_v30  ;;  %v258_v36 = vadd.f32 %v6361_v10, %v257_v33  ;;  %v8061_v62 = vld [vmem:[#allocation2 + $0x50] sm:$0xff] }
  0xff   :  { %v6759_v37 = vpop.f32.mrf.mxu0  ;;  %v7989_v38 = vld [vmem:[#allocation2] sm:$0xff]  ;;  %v6767_v39 = vpop.f32.mrf.mxu1  ;;  %v8077_v2 = vmul.f32 %v8061_v62, %v8061_v62 }
 0x100   :  { %277 = vst.msk [vmem:[#allocation2 + $0x20] sm:$0xff] %vm272_vm1, %v226_v34  ;;  %v237_v40 = vadd.f32 %v6759_v37, %v6361_v10  ;;  %440 = vrot.lane.b32.xlu1 %v7986_v35, %s7861_s0  ;;  %v7996_v41 = vmul.f32 %v7989_v38, %v7989_v38  ;;  %285 = vst.msk [vmem:[#allocation2 + $0x60] sm:$0xff] %vm272_vm1, %v258_v36  ;;  %v269_v42 = vadd.f32 %v6767_v39, %v6361_v10  ;;  %v8045_v58 = vld [vmem:[#allocation2 + $0x40] sm:$0xff] }
 0x101   :  { %v228_v43 = vpop.f32.mrf.mxu0  ;;  %v7999_v44 = vld [vmem:[#allocation2 + $0x18] sm:$0xff]  ;;  %v260_v45 = vpop.f32.mrf.mxu1  ;;  %v8059_v61 = vmul.f32 %v8045_v58, %v8045_v58 }
 0x102   :  { %280 = vst.msk [vmem:[#allocation2 + $0x38] sm:$0xff] %vm272_vm1, %v237_v40  ;;  %v229_v46 = vadd.f32 %v6361_v10, %v228_v43  ;;  %436 = vrot.lane.b32.xlu0 %v7996_v41, %s7861_s0  ;;  %v8006_v47 = vmul.f32 %v7999_v44, %v7999_v44  ;;  %288 = vst.msk [vmem:[#allocation2 + $0x78] sm:$0xff] %vm272_vm1, %v269_v42  ;;  %v261_v48 = vadd.f32 %v6361_v10, %v260_v45  ;;  %v8069_v0 = vld [vmem:[#allocation2 + $0x58] sm:$0xff] }
 0x103   :  { %v8009_v49 = vld [vmem:[#allocation2 + $0x8] sm:$0xff]  ;;  %v8085_v4 = vmul.f32 %v8069_v0, %v8069_v0 }
 0x104   :  { %278 = vst.msk [vmem:[#allocation2 + $0x28] sm:$0xff] %vm272_vm1, %v229_v46  ;;  %442 = vrot.lane.b32.xlu1 %v8006_v47, %s7861_s0  ;;  %v8016_v50 = vmul.f32 %v8009_v49, %v8009_v49  ;;  %286 = vst.msk [vmem:[#allocation2 + $0x68] sm:$0xff] %vm272_vm1, %v261_v48  ;;  %v8053_v60 = vld [vmem:[#allocation2 + $0x48] sm:$0xff]  ;;  %v332_v48 = vsel %vm322_vm2, %v8006_v47, 0.0 }
 0x105   :  { %v8029_v54 = vld [vmem:[#allocation2 + $0x30] sm:$0xff]  ;;  %v8067_v63 = vmul.f32 %v8053_v60, %v8053_v60 }
 0x106   :  { %438 = vrot.lane.b32.xlu0 %v8016_v50, %s7861_s0  ;;  %v8043_v57 = vmul.f32 %v8029_v54, %v8029_v54  ;;  %v8091_v6 = vld [vmem:[#allocation2 + $0x70] sm:$0xff]  ;;  %v326_v40 = vsel %vm322_vm2, %v8016_v50, 0.0 }
 0x107   :  { %v8021_v51 = vld [vmem:[#allocation2 + $0x20] sm:$0xff]  ;;  %v8105_v9 = vmul.f32 %v8091_v6, %v8091_v6 }
 0x108   :  { %v8025_v52 = vmul.f32 %v8021_v51, %v8021_v51  ;;  %v8071_v1 = vld [vmem:[#allocation2 + $0x60] sm:$0xff] }
 0x109   :  { %v8027_v53 = vld [vmem:[#allocation2 + $0x38] sm:$0xff]  ;;  %v8089_v5 = vmul.f32 %v8071_v1, %v8071_v1 }
 0x10a   :  { %444 = vrot.lane.b32.xlu0 %v8025_v52, %s7861_s0  ;;  %v8035_v55 = vmul.f32 %v8027_v53, %v8027_v53  ;;  %v8079_v3 = vld [vmem:[#allocation2 + $0x78] sm:$0xff] }
 0x10b   :  { %v8037_v56 = vld [vmem:[#allocation2 + $0x28] sm:$0xff]  ;;  %v8097_v7 = vmul.f32 %v8079_v3, %v8079_v3 }
 0x10c   :  { %450 = vrot.lane.b32.xlu1 %v8035_v55, %s7861_s0  ;;  %v8051_v59 = vmul.f32 %v8037_v56, %v8037_v56  ;;  %v8099_v8 = vld [vmem:[#allocation2 + $0x68] sm:$0xff] }
 0x10d   :  { %v8111_v10 = vmul.f32 %v8099_v8, %v8099_v8 }
 0x10e   :  { %448 = vrot.lane.b32.xlu0 %v8043_v57, %s7861_s0 }
 0x110   :  { %446 = vrot.lane.b32.xlu1 %v8051_v59, %s7861_s0 }
 0x112   :  { %452 = vrot.lane.b32.xlu0 %v8059_v61, %s7861_s0 }
 0x114   :  { %454 = vrot.lane.b32.xlu1 %v8067_v63, %s7861_s0 }
 0x116   :  { %456 = vrot.lane.b32.xlu0 %v8077_v2, %s7861_s0 }
 0x118   :  { %458 = vrot.lane.b32.xlu1 %v8085_v4, %s7861_s0 }
 0x11a   :  { %460 = vrot.lane.b32.xlu0 %v8089_v5, %s7861_s0 }
 0x11c   :  { %466 = vrot.lane.b32.xlu1 %v8097_v7, %s7861_s0 }
 0x11e   :  { %464 = vrot.lane.b32.xlu0 %v8105_v9, %s7861_s0 }
 0x120   :  { %462 = vrot.lane.b32.xlu1 %v8111_v10, %s7861_s0 }
 0x172   :  { %v441_v11 = vpop.permute.xlu1 %440 }
 0x173   :  { %v490_v15 = vsel %vm322_vm2, %v441_v11, 0.0 }
 0x174   :  { %v437_v12 = vpop.permute.xlu0 %436 }
 0x175   :  { %v484_v13 = vsel %vm322_vm2, %v437_v12, 0.0 }
 0x176   :  { %485 = vadd.xlane.f32.xlu0 %v484_v13  ;;  %v443_v16 = vpop.permute.xlu1 %442  ;;  %v338_v13 = vsel %vm322_vm2, %v8051_v59, 0.0 }
 0x177   :  { %v493_v18 = vsel %vm322_vm2, %v443_v16, 0.0  ;;  %v329_v16 = vsel %vm322_vm2, %v7986_v35, 0.0 }
 0x178   :  { %v439_v14 = vpop.permute.xlu0 %438 }
 0x179   :  { %v487_v28 = vsel %vm322_vm2, %v439_v14, 0.0  ;;  %v323_v14 = vsel %vm322_vm2, %v7996_v41, 0.0 }
 0x17a   :  { %491 = vadd.xlane.f32.xlu0 %v490_v15  ;;  %v344_v15 = vsel %vm322_vm2, %v8035_v55, 0.0 }
 0x17c   :  { %v445_v17 = vpop.permute.xlu0 %444 }
 0x17d   :  { %v496_v37 = vsel %vm322_vm2, %v445_v17, 0.0  ;;  %v347_v17 = vsel %vm322_vm2, %v8059_v61, 0.0 }
 0x17e   :  { %v451_v19 = vpop.permute.xlu1 %450  ;;  %494 = vadd.xlane.f32.xlu0 %v493_v18  ;;  %v335_v18 = vsel %vm322_vm2, %v8025_v52, 0.0 }
 0x17f   :  { %v505_v21 = vsel %vm322_vm2, %v451_v19, 0.0  ;;  %v350_v19 = vsel %vm322_vm2, %v8067_v63, 0.0 }
 0x180   :  { %v449_v20 = vpop.permute.xlu0 %448 }
 0x181   :  { %v502_v31 = vsel %vm322_vm2, %v449_v20, 0.0  ;;  %v341_v20 = vsel %vm322_vm2, %v8043_v57, 0.0 }
 0x182   :  { %v447_v22 = vpop.permute.xlu1 %446  ;;  %506 = vadd.xlane.f32.xlu0 %v505_v21  ;;  %v353_v21 = vsel %vm322_vm2, %v8077_v2, 0.0 }
 0x183   :  { %v499_v24 = vsel %vm322_vm2, %v447_v22, 0.0  ;;  %v356_v22 = vsel %vm322_vm2, %v8085_v4, 0.0 }
 0x184   :  { %v453_v23 = vpop.permute.xlu0 %452 }
 0x185   :  { %v508_v25 = vsel %vm322_vm2, %v453_v23, 0.0  ;;  %v359_v23 = vsel %vm322_vm2, %v8089_v5, 0.0 }
 0x186   :  { %v455_v26 = vpop.permute.xlu1 %454  ;;  %500 = vadd.xlane.f32.xlu0 %v499_v24  ;;  %509 = vadd.xlane.f32.xlu1 %v508_v25  ;;  %v365_v24 = vsel %vm322_vm2, %v8105_v9, 0.0  ;;  %v368_v25 = vsel %vm322_vm2, %v8097_v7, 0.0 }
 0x187   :  { %v511_v27 = vsel %vm322_vm2, %v455_v26, 0.0 }
 0x188   :  { %v457_v33 = vpop.permute.xlu0 %456 }
 0x189   :  { %v514_v42 = vsel %vm322_vm2, %v457_v33, 0.0 }
 0x18a   :  { %v459_v29 = vpop.permute.xlu1 %458  ;;  %512 = vadd.xlane.f32.xlu0 %v511_v27  ;;  %488 = vadd.xlane.f32.xlu1 %v487_v28 }
 0x18b   :  { %v517_v30 = vsel %vm322_vm2, %v459_v29, 0.0 }
 0x18c   :  { %v461_v39 = vpop.permute.xlu0 %460 }
 0x18d   :  { %v520_v43 = vsel %vm322_vm2, %v461_v39, 0.0 }
 0x18e   :  { %518 = vadd.xlane.f32.xlu0 %v517_v30  ;;  %503 = vadd.xlane.f32.xlu1 %v502_v31  ;;  %v467_v34 = vpop.permute.xlu1 %466 }
 0x18f   :  { %v529_v36 = vsel %vm322_vm2, %v467_v34, 0.0 }
 0x190   :  { %v465_v46 = vpop.permute.xlu0 %464 }
 0x191   :  { %v526_v12 = vsel %vm322_vm2, %v465_v46, 0.0 }
 0x192   :  { %530 = vadd.xlane.f32.xlu0 %v529_v36  ;;  %497 = vadd.xlane.f32.xlu1 %v496_v37  ;;  %v463_v45 = vpop.permute.xlu1 %462 }
 0x193   :  { %v523_v11 = vsel %vm322_vm2, %v463_v45, 0.0 }
 0x196   :  { %327 = vadd.xlane.f32.xlu0 %v326_v40  ;;  %515 = vadd.xlane.f32.xlu1 %v514_v42 }
 0x19a   :  { %333 = vadd.xlane.f32.xlu0 %v332_v48  ;;  %521 = vadd.xlane.f32.xlu1 %v520_v43 }
 0x19e   :  { %524 = vadd.xlane.f32.xlu0 %v523_v11  ;;  %527 = vadd.xlane.f32.xlu1 %v526_v12 }
 0x1a2   :  { %339 = vadd.xlane.f32.xlu0 %v338_v13  ;;  %324 = vadd.xlane.f32.xlu1 %v323_v14 }
 0x1a6   :  { %345 = vadd.xlane.f32.xlu0 %v344_v15  ;;  %330 = vadd.xlane.f32.xlu1 %v329_v16 }
 0x1aa   :  { %348 = vadd.xlane.f32.xlu0 %v347_v17  ;;  %336 = vadd.xlane.f32.xlu1 %v335_v18 }
 0x1ae   :  { %351 = vadd.xlane.f32.xlu0 %v350_v19  ;;  %342 = vadd.xlane.f32.xlu1 %v341_v20  ;;  %v10329_v19 = vmov 0.0  }
 0x1af   :  { %6768 = vmatprep.subr.bf16.mxu1 %v10329_v19  ;;  %6770 = vmatprep.mubr.msk.bf16.mxu1 %vm7863_vm3, %v10329_v19 }
 0x1b0   :  { %6792 = vmatprep.subr.bf16.mxu0 %v10329_v19  ;;  %6794 = vmatprep.mubr.msk.bf16.mxu0 %vm7863_vm3, %v10329_v19 }
 0x1b2   :  { %354 = vadd.xlane.f32.xlu0 %v353_v21 }
 0x1b6   :  { %357 = vadd.xlane.f32.xlu0 %v356_v22 }
 0x1ba   :  { %360 = vadd.xlane.f32.xlu0 %v359_v23 }
 0x1be   :  { %366 = vadd.xlane.f32.xlu0 %v365_v24 }
 0x1c2   :  { %369 = vadd.xlane.f32.xlu0 %v368_v25 }
 0x1ff   :  { %v486_v26 = vpop.xlane.xlu0 %485 }
 0x200   :  { %v532_v36 = vmax.f32 %v486_v26, 1e-24 }
 0x203   :  { %v492_v27 = vpop.xlane.xlu0 %491 }
 0x204   :  { %v534_v28 = vmax.f32 %v492_v27, 1e-24 }
 0x206   :  { %7217 = vrsqrt.f32 %v534_v28 }
 0x207   :  { %v495_v29 = vpop.xlane.xlu0 %494 }
 0x208   :  { %v535_v30 = vmax.f32 %v495_v29, 1e-24 }
 0x20a   :  { %7219 = vrsqrt.f32 %v535_v30 }
 0x20b   :  { %v507_v31 = vpop.xlane.xlu0 %506  ;;  %7221 = vrsqrt.f32 %v532_v36 }
 0x20c   :  { %v539_v17 = vmax.f32 %v507_v31, 1e-24 }
 0x20f   :  { %v510_v33 = vpop.xlane.xlu1 %509  ;;  %v501_v34 = vpop.xlane.xlu0 %500 }
 0x210   :  { %v537_v48 = vmax.f32 %v501_v34, 1e-24  ;;  %v540_v23 = vmax.f32 %v510_v33, 1e-24 }
 0x213   :  { %v489_v37 = vpop.xlane.xlu1 %488  ;;  %v513_v39 = vpop.xlane.xlu0 %512 }
 0x214   :  { %v533_v40 = vmax.f32 %v489_v37, 1e-24  ;;  %v7218_v42 = vpop.eup %7217  ;;  %v541_v20 = vmax.f32 %v513_v39, 1e-24 }
 0x215   :  { %v590_v11 = vmul.f32 %v7218_v42, %v7981_v32 }
 0x216   :  { %7223 = vrsqrt.f32 %v533_v40 }
 0x217   :  { %v7220_v43 = vpop.eup %7219  ;;  %v504_v45 = vpop.xlane.xlu1 %503  ;;  %7225 = vrsqrt.f32 %v537_v48 }
 0x218   :  { %v8163_v46 = vpop.xlane.xlu0 %518  ;;  %v591_v12 = vmul.f32 %v7220_v43, %v7999_v44  ;;  %v538_v13 = vmax.f32 %v504_v45, 1e-24  ;;  %v7222_v24 = vpop.eup %7221 }
 0x219   :  { %v588_v29 = vmul.f32 %v7222_v24, %v7989_v38 }
 0x21a   :  { %v605_v14 = vpack.c.bf16 %v591_v12, %v590_v11  ;;  %7227 = vrsqrt.f32 %v538_v13 }
 0x21b   :  { %v498_v15 = vpop.xlane.xlu1 %497 }
 0x21c   :  { %v531_v16 = vpop.xlane.xlu0 %530  ;;  %v536_v18 = vmax.f32 %v498_v15, 1e-24  ;;  %665 = vrot.lane.b32.xlu1 %v605_v14, %s7861_s0 }
 0x21d   :  { %v547_v28 = vmax.f32 %v531_v16, 1e-24 }
 0x21e   :  { %7229 = vrsqrt.f32 %v536_v18 }
 0x21f   :  { %v516_v21 = vpop.xlane.xlu1 %515  ;;  %7231 = vrsqrt.f32 %v539_v17 }
 0x220   :  { %v8174_v22 = vpop.xlane.xlu0 %327  ;;  %7233 = vrsqrt.f32 %v541_v20 }
 0x221   :  { %7235 = vrsqrt.f32 %v540_v23 }
 0x222   :  { %7237 = vrsqrt.f32 %v547_v28 }
 0x223   :  { %v7224_v25 = vpop.eup %7223  ;;  %v522_v26 = vpop.xlane.xlu1 %521 }
 0x224   :  { %v8176_v27 = vpop.xlane.xlu0 %333  ;;  %v589_v30 = vmul.f32 %v7224_v25, %v8009_v49  ;;  %v544_v37 = vmax.f32 %v522_v26, 1e-24  ;;  %v7226_v33 = vpop.eup %7225 }
 0x225   :  { %v593_v48 = vmul.f32 %v7226_v33, %v8037_v56  ;;  %v362_v33 = vsel %vm322_vm2, %v8111_v10, 0.0 }
 0x226   :  { %v604_v31 = vpack.c.bf16 %v589_v30, %v588_v29 }
 0x227   :  { %v528_v34 = vpop.xlane.xlu1 %527  ;;  %v7228_v42 = vpop.eup %7227 }
 0x228   :  { %v525_v36 = vpop.xlane.xlu0 %524  ;;  %v546_v39 = vmax.f32 %v528_v34, 1e-24  ;;  %615 = vrot.lane.b32.xlu1 %v604_v31, %s7861_s0  ;;  %v594_v13 = vmul.f32 %v7228_v42, %v8029_v54 }
 0x229   :  { %v545_v40 = vmax.f32 %v525_v36, 1e-24 }
 0x22a   :  { %7239 = vrsqrt.f32 %v546_v39  ;;  %v542_v39 = vmax.f32 %v516_v21, 1e-24 }
 0x22b   :  { %v7230_v43 = vpop.eup %7229  ;;  %7241 = vrsqrt.f32 %v545_v40  ;;  %v543_v40 = vmax.f32 %v8163_v46, 1e-24 }
 0x22c   :  { %7243 = vrsqrt.f32 %v544_v37  ;;  %v592_v45 = vmul.f32 %v7230_v43, %v8021_v51  ;;  %v7232_v11 = vpop.eup %7231 }
 0x22d   :  { %v7234_v14 = vpop.eup %7233  ;;  %v595_v15 = vmul.f32 %v7232_v11, %v8027_v53  ;;  %7245 = vrsqrt.f32 %v542_v39 }
 0x22e   :  { %v606_v12 = vpack.c.bf16 %v593_v48, %v592_v45  ;;  %v7236_v16 = vpop.eup %7235  ;;  %v597_v18 = vmul.f32 %v7234_v14, %v8053_v60  ;;  %7247 = vrsqrt.f32 %v543_v40 }
 0x22f   :  { %v607_v17 = vpack.c.bf16 %v595_v15, %v594_v13  ;;  %v596_v20 = vmul.f32 %v7236_v16, %v8045_v58  ;;  %v7238_v23 = vpop.eup %7237  ;;  %v8277_v16 = vstv %s8268_s22 }
 0x230   :  { %715 = vrot.lane.b32.xlu0 %v606_v12, %s7861_s0  ;;  %v603_v29 = vmul.f32 %v7238_v23, %v8079_v3 }
 0x231   :  { %v608_v24 = vpack.c.bf16 %v597_v18, %v596_v20 }
 0x234   :  { %765 = vrot.lane.b32.xlu0 %v607_v17, %s7861_s0 }
 0x237   :  { %v7240_v25 = vpop.eup %7239 }
 0x238   :  { %v7242_v26 = vpop.eup %7241  ;;  %815 = vrot.lane.b32.xlu0 %v608_v24, %s7861_s0  ;;  %v602_v28 = vmul.f32 %v7240_v25, %v8091_v6 }
 0x239   :  { %v7244_v30 = vpop.eup %7243  ;;  %v601_v34 = vmul.f32 %v7242_v26, %v8099_v8 }
 0x23a   :  { %v611_v31 = vpack.c.bf16 %v603_v29, %v602_v28  ;;  %v600_v36 = vmul.f32 %v7244_v30, %v8071_v1  ;;  %v7246_v21 = vpop.eup %7245 }
 0x23b   :  { %v7248_v46 = vpop.eup %7247  ;;  %v598_v42 = vmul.f32 %v7246_v21, %v8061_v62 }
 0x23c   :  { %965 = vrot.lane.b32.xlu0 %v611_v31, %s7861_s0  ;;  %v610_v37 = vpack.c.bf16 %v601_v34, %v600_v36  ;;  %v599_v43 = vmul.f32 %v7248_v46, %v8069_v0 }
 0x23e   :  { %v609_v45 = vpack.c.bf16 %v599_v43, %v598_v42 }
 0x240   :  { %915 = vrot.lane.b32.xlu0 %v610_v37, %s7861_s0 }
 0x244   :  { %1868 = vrot.lane.b32.xlu0 %v7996_v41, %s7864_s2 }
 0x248   :  { %1870 = vrot.lane.b32.xlu0 %v8016_v50, %s7864_s2 }
 0x24c   :  { %1874 = vrot.lane.b32.xlu0 %v8006_v47, %s7864_s2  ;;  %363 = vadd.xlane.f32.xlu1 %v362_v33 }
 0x250   :  { %1725 = vrot.lane.b32.xlu0 %v8016_v50, %s7865_s21  ;;  %v325_v50 = vpop.xlane.xlu1 %324 }
 0x254   :  { %1729 = vrot.lane.b32.xlu0 %v8006_v47, %s7865_s21  ;;  %v340_v47 = vpop.xlane.xlu0 %339 }
 0x255   :  { %v376_v13 = vmax.f32 %v340_v47, 1e-24 }
 0x258   :  { %1878 = vrot.lane.b32.xlu0 %v8051_v59, %s7864_s2 }
 0x25c   :  { %1882 = vrot.lane.b32.xlu0 %v8035_v55, %s7864_s2 }
 0x25d   :  { %865 = vrot.lane.b32.xlu1 %v609_v45, %s7861_s0  ;;  %s9662_s0 = sld [smem:[#allocation4 + $0x3]] }
 0x260   :  { %1733 = vrot.lane.b32.xlu0 %v8051_v59, %s7865_s21 }
 0x261   :  { %1872 = vrot.lane.b32.xlu1 %v7986_v35, %s7864_s2 }
 0x263   :  { %s5479_s5 = sadd.f32 16.0, %s9662_s0 }
 0x264   :  { %1737 = vrot.lane.b32.xlu0 %v8035_v55, %s7865_s21 }
 0x265   :  { %1723 = vrot.lane.b32.xlu1 %v7996_v41, %s7865_s21  ;;  %v8236_v41 = vpop.xlane.xlu0 %345 }
 0x268   :  { %1886 = vrot.lane.b32.xlu0 %v8067_v63, %s7864_s2 }
 0x269   :  { %1727 = vrot.lane.b32.xlu1 %v7986_v35, %s7865_s21  ;;  %v349_v35 = vpop.xlane.xlu0 %348 }
 0x26c   :  { %1890 = vrot.lane.b32.xlu0 %v8085_v4, %s7864_s2 }
 0x26d   :  { %1876 = vrot.lane.b32.xlu1 %v8025_v52, %s7864_s2  ;;  %v352_v55 = vpop.xlane.xlu0 %351 }
 0x26e   :  { %v380_v11 = vmax.f32 %v352_v55, 1e-24 }
 0x270   :  { %1741 = vrot.lane.b32.xlu0 %v8067_v63, %s7865_s21  ;;  %v372_v63 = vmax.f32 %v8174_v22, 1e-24 }
 0x271   :  { %1880 = vrot.lane.b32.xlu1 %v8043_v57, %s7864_s2  ;;  %v8258_v59 = vpop.xlane.xlu0 %354 }
 0x274   :  { %1745 = vrot.lane.b32.xlu0 %v8085_v4, %s7865_s21 }
 0x275   :  { %1731 = vrot.lane.b32.xlu1 %v8025_v52, %s7865_s21  ;;  %v371_v52 = vmax.f32 %v325_v50, 1e-24 }
 0x277   :  { %7249 = vrsqrt.f32 %v371_v52 }
 0x278   :  { %1894 = vrot.lane.b32.xlu0 %v8111_v10, %s7864_s2  ;;  %7251 = vrsqrt.f32 %v372_v63 }
 0x279   :  { %1735 = vrot.lane.b32.xlu1 %v8043_v57, %s7865_s21  ;;  %v331_v57 = vpop.xlane.xlu1 %330 }
 0x27a   :  { %v373_v48 = vmax.f32 %v331_v57, 1e-24 }
 0x27c   :  { %1898 = vrot.lane.b32.xlu0 %v8097_v7, %s7864_s2  ;;  %7253 = vrsqrt.f32 %v373_v48 }
 0x27d   :  { %1884 = vrot.lane.b32.xlu1 %v8059_v61, %s7864_s2  ;;  %v337_v4 = vpop.xlane.xlu1 %336 }
 0x280   :  { %1749 = vrot.lane.b32.xlu0 %v8111_v10, %s7865_s21  ;;  %v8263_v10 = vpop.xlane.xlu0 %357 }
 0x281   :  { %1888 = vrot.lane.b32.xlu1 %v8077_v2, %s7864_s2 }
 0x284   :  { %1753 = vrot.lane.b32.xlu0 %v8097_v7, %s7865_s21  ;;  %v374_v7 = vmax.f32 %v8176_v27, 1e-24  ;;  %v8272_v22 = vpop.xlane.xlu0 %360  ;;  %v7250_v12 = vpop.eup %7249  ;;  %v379_v27 = vmax.f32 %v349_v35, 1e-24 }
 0x285   :  { %1739 = vrot.lane.b32.xlu1 %v8059_v61, %s7865_s21  ;;  %v343_v61 = vpop.xlane.xlu1 %342  ;;  %v7252_v15 = vpop.eup %7251  ;;  %v404_v18 = vmul.f32 %v7250_v12, %v8277_v16 }
 0x286   :  { %7255 = vrsqrt.f32 %v374_v7  ;;  %v377_v25 = vmax.f32 %v343_v61, 1e-24 }
 0x287   :  { %v564_v24 = vmul.f32 %v404_v18, %v7989_v38 }
 0x288   :  { %v8279_v17 = vpop.xlane.xlu0 %366 }
 0x289   :  { %1743 = vrot.lane.b32.xlu1 %v8077_v2, %s7865_s21  ;;  %v375_v2 = vmax.f32 %v337_v4, 1e-24  ;;  %v7254_v26 = vpop.eup %7253 }
 0x28a   :  { %v406_v34 = vmul.f32 %v7254_v26, %v8277_v16 }
 0x28b   :  { %7257 = vrsqrt.f32 %v375_v2 }
 0x28c   :  { %7259 = vrsqrt.f32 %v380_v11  ;;  %v8288_v28 = vpop.xlane.xlu0 %369  ;;  %v566_v39 = vmul.f32 %v406_v34, %v7981_v32  ;;  %v382_v34 = vmax.f32 %v8263_v10, 1e-24 }
 0x28d   :  { %1892 = vrot.lane.b32.xlu1 %v8089_v5, %s7864_s2  ;;  %7261 = vrsqrt.f32 %v376_v13 }
 0x28e   :  { %v666_v14 = vpop.permute.xlu1 %665  ;;  %7263 = vrsqrt.f32 %v379_v27 }
 0x28f   :  { %7265 = vrsqrt.f32 %v377_v25  ;;  %v671_v37 = vsel %vm322_vm2, %v666_v14, 0 }
 0x291   :  { %1896 = vrot.lane.b32.xlu1 %v8105_v9, %s7864_s2 }
 0x293   :  { %v7256_v30 = vpop.eup %7255 }
 0x294   :  { %v407_v38 = vmul.f32 %v7256_v30, %v8277_v16 }
 0x295   :  { %1747 = vrot.lane.b32.xlu1 %v8089_v5, %s7865_s21  ;;  %v405_v5 = vmul.f32 %v7252_v15, %v8277_v16 }
 0x296   :  { %v567_v46 = vmul.f32 %v407_v38, %v7999_v44 }
 0x297   :  { %v565_v29 = vmul.f32 %v405_v5, %v8009_v49 }
 0x298   :  { %v7258_v49 = vpop.eup %7257  ;;  %v581_v45 = vpack.c.bf16 %v567_v46, %v566_v39  ;;  %v383_v46 = vmax.f32 %v8272_v22, 1e-24 }
 0x299   :  { %1751 = vrot.lane.b32.xlu1 %v8105_v9, %s7865_s21  ;;  %v378_v9 = vmax.f32 %v8236_v41, 1e-24  ;;  %v580_v31 = vpack.c.bf16 %v565_v29, %v564_v24  ;;  %v7260_v40 = vpop.eup %7259  ;;  %v408_v47 = vmul.f32 %v7258_v49, %v8277_v16 }
 0x29a   :  { %v616_v20 = vpop.permute.xlu1 %615  ;;  %v7262_v21 = vpop.eup %7261  ;;  %v413_v43 = vmul.f32 %v7260_v40, %v8277_v16  ;;  %v386_v40 = vmax.f32 %v8288_v28, 1e-24 }
 0x29b   :  { %v621_v23 = vsel %vm322_vm2, %v616_v20, 0  ;;  %7267 = vrsqrt.f32 %v378_v9  ;;  %v7264_v42 = vpop.eup %7263  ;;  %v409_v55 = vmul.f32 %v7262_v21, %v8277_v16  ;;  %v568_v57 = vmul.f32 %v408_v47, %v8021_v51 }
 0x29c   :  { %6769 = vmatpush3.bf16.xpose.msra.mxu1 %v621_v23  ;;  %v412_v35 = vmul.f32 %v7264_v42, %v8277_v16  ;;  %v573_v52 = vmul.f32 %v413_v43, %v8053_v60  ;;  %v7266_v63 = vpop.eup %7265  ;;  %7269 = vrsqrt.f32 %v382_v34 }
 0x29d   :  { %6774 = vmatprep.subr.bf16.mxu1 %v10329_v19  ;;  %v569_v7 = vmul.f32 %v409_v55, %v8037_v56  ;;  %v410_v12 = vmul.f32 %v7266_v63, %v8277_v16 }
 0x29e   :  { %v572_v48 = vmul.f32 %v412_v35, %v8045_v58 }
 0x29f   :  { %v582_v2 = vpack.c.bf16 %v569_v7, %v568_v57  ;;  %v570_v18 = vmul.f32 %v410_v12, %v8029_v54 }
 0x2a0   :  { %v584_v11 = vpack.c.bf16 %v573_v52, %v572_v48 }
 0x2a2   :  { %v716_v36 = vpop.permute.xlu0 %715 }
 0x2a3   :  { %6771 = vmatmul.mubr.msk.bf16.vlgmr.msra.gmra.mxu1 %vm322_vm2, %v580_v31  ;;  %v721_v50 = vsel %vm322_vm2, %v716_v36, 0  ;;  %v381_v36 = vmax.f32 %v8258_v59, 1e-24 }
 0x2a4   :  { %6775 = vmatpush3.bf16.xpose.msra.mxu1 %v671_v37  ;;  %6776 = vmatprep.mubr.msk.bf16.mxu1 %vm7863_vm3, %v10329_v19 }
 0x2a5   :  { %6780 = vmatprep.subr.bf16.mxu1 %v10329_v19  ;;  %7271 = vrsqrt.f32 %v381_v36 }
 0x2a6   :  { %v766_v33 = vpop.permute.xlu0 %765  ;;  %7273 = vrsqrt.f32 %v386_v40 }
 0x2a7   :  { %v771_v14 = vsel %vm322_vm2, %v766_v33, 0  ;;  %v385_v33 = vmax.f32 %v8279_v17, 1e-24 }
 0x2a8   :  { %v7268_v61 = vpop.eup %7267 }
 0x2a9   :  { %v411_v15 = vmul.f32 %v7268_v61, %v8277_v16  ;;  %7275 = vrsqrt.f32 %v385_v33  ;;  %v7270_v43 = vpop.eup %7269 }
 0x2aa   :  { %v816_v41 = vpop.permute.xlu0 %815  ;;  %7277 = vrsqrt.f32 %v383_v46  ;;  %v415_v35 = vmul.f32 %v7270_v43, %v8277_v16 }
 0x2ab   :  { %v821_v32 = vsel %vm322_vm2, %v816_v41, 0  ;;  %6777 = vmatmul.mubr.msk.bf16.vlgmr.msra.gmra.mxu1 %vm322_vm2, %v581_v45  ;;  %v571_v5 = vmul.f32 %v411_v15, %v8027_v53 }
 0x2ac   :  { %6781 = vmatpush3.bf16.xpose.msra.mxu1 %v721_v50  ;;  %6793 = vmatpush3.bf16.xpose.msra.mxu0 %v821_v32  ;;  %v575_v57 = vmul.f32 %v415_v35, %v8069_v0 }
 0x2ad   :  { %6782 = vmatprep.mubr.msk.bf16.mxu1 %vm7863_vm3, %v10329_v19  ;;  %6786 = vmatprep.subr.bf16.mxu1 %v10329_v19  ;;  %v583_v23 = vpack.c.bf16 %v571_v5, %v570_v18 }
 0x2ae   :  { %v8313_v4 = vpop.permute.xlu0 %965  ;;  %6804 = vmatprep.subr.bf16.mxu0 %v10329_v19 }
 0x2af   :  { %v971_v18 = vsel %vm322_vm2, %v8313_v4, 0 }
 0x2b2   :  { %v916_v13 = vpop.permute.xlu0 %915  ;;  %v7272_v41 = vpop.eup %7271 }
 0x2b3   :  { %v921_v27 = vsel %vm322_vm2, %v916_v13, 0  ;;  %6783 = vmatmul.mubr.msk.bf16.vlgmr.msra.gmra.mxu1 %vm322_vm2, %v582_v2  ;;  %6795 = vmatmul.mubr.msk.bf16.vlgmr.msra.gmra.mxu0 %vm322_vm2, %v584_v11  ;;  %v414_v55 = vmul.f32 %v7272_v41, %v8277_v16  ;;  %v7274_v63 = vpop.eup %7273 }
 0x2b4   :  { %6787 = vmatpush3.bf16.xpose.msra.mxu1 %v771_v14  ;;  %6805 = vmatpush3.bf16.xpose.msra.mxu0 %v921_v27  ;;  %v419_v14 = vmul.f32 %v7274_v63, %v8277_v16 }
 0x2b5   :  { %6788 = vmatprep.mubr.msk.bf16.mxu1 %vm7863_vm3, %v10329_v19  ;;  %6798 = vmatprep.subr.bf16.mxu1 %v10329_v19  ;;  %v574_v2 = vmul.f32 %v414_v55, %v8061_v62 }
 0x2b6   :  { %v1869_v20 = vpop.permute.xlu0 %1868  ;;  %6806 = vmatprep.mubr.msk.bf16.mxu0 %vm7863_vm3, %v10329_v19  ;;  %6816 = vmatprep.subr.bf16.mxu0 %v10329_v19  ;;  %v7276_v11 = vpop.eup %7275 }
 0x2b7   :  { %v1916_v26 = vsel %vm322_vm2, %v1869_v20, 0.0  ;;  %v585_v13 = vpack.c.bf16 %v575_v57, %v574_v2  ;;  %v7278_v27 = vpop.eup %7277 }
 0x2ba   :  { %v1871_v24 = vpop.permute.xlu0 %1870 }
 0x2bb   :  { %6789 = vmatmul.mubr.msk.bf16.vlgmr.msra.gmra.mxu1 %vm322_vm2, %v583_v23  ;;  %v1919_v25 = vsel %vm322_vm2, %v1871_v24, 0.0  ;;  %v418_v23 = vmul.f32 %v7276_v11, %v8277_v16  ;;  %v1203_v11 = vpack.c.bf16 %v8037_v56, %v8021_v51  ;;  %v8412_v56 = vld [vmem:[#allocation2] sm:$0xff] }
 0x2bc   :  { %1920 = vadd.xlane.f32.xlu0 %v1919_v25  ;;  %6800 = vmatprep.mubr.msk.bf16.mxu1 %vm7863_vm3, %v10329_v19  ;;  %v579_v25 = vmul.f32 %v419_v14, %v8079_v3  ;;  %v1205_v14 = vpack.c.bf16 %v8053_v60, %v8045_v58  ;;  %v1204_v60 = vpack.c.bf16 %v8027_v53, %v8029_v54  ;;  %v8442_v54 = vld [vmem:[%s10323_s4] sm:$0xff] }
 0x2bd   :  { %1917 = vadd.xlane.f32.xlu1 %v1916_v26  ;;  %v416_v26 = vmul.f32 %v7278_v27, %v8277_v16 }
 0x2be   :  { %v1875_v29 = vpop.permute.xlu0 %1874 }
 0x2bf   :  { %v1925_v9 = vsel %vm322_vm2, %v1875_v29, 0.0  ;;  %v576_v3 = vmul.f32 %v416_v26, %v8071_v1 }
 0x2c1   :  { %1926 = vadd.xlane.f32.xlu1 %v1925_v9 }
 0x2c2   :  { %v1726_v30 = vpop.permute.xlu0 %1725 }
 0x2c3   :  { %v1774_v31 = vsel %vm322_vm2, %v1726_v30, 0.0 }
 0x2c5   :  { %1775 = vadd.xlane.f32.xlu1 %v1774_v31  ;;  %v578_v31 = vmul.f32 %v418_v23, %v8091_v6 }
 0x2c6   :  { %v1730_v37 = vpop.permute.xlu0 %1729 }
 0x2c7   :  { %v1780_v38 = vsel %vm322_vm2, %v1730_v37, 0.0  ;;  %v587_v37 = vpack.c.bf16 %v579_v25, %v578_v31 }
 0x2c9   :  { %1781 = vadd.xlane.f32.xlu1 %v1780_v38 }
 0x2ca   :  { %v1879_v49 = vpop.permute.xlu0 %1878 }
 0x2cb   :  { %v1931_v39 = vsel %vm322_vm2, %v1879_v49, 0.0 }
 0x2cd   :  { %1932 = vadd.xlane.f32.xlu1 %v1931_v39 }
 0x2ce   :  { %v1883_v21 = vpop.permute.xlu0 %1882 }
 0x2cf   :  { %v1937_v10 = vsel %vm322_vm2, %v1883_v21, 0.0 }
 0x2d1   :  { %1938 = vadd.xlane.f32.xlu1 %v1937_v10 }
 0x2d2   :  { %v1734_v59 = vpop.permute.xlu0 %1733 }
 0x2d3   :  { %v1786_v42 = vsel %vm322_vm2, %v1734_v59, 0.0 }
 0x2d5   :  { %1787 = vadd.xlane.f32.xlu1 %v1786_v42  ;;  %v364_v45 = vpop.xlane.xlu1 %363 }
 0x2d6   :  { %v384_v47 = vmax.f32 %v364_v45, 1e-24  ;;  %v1738_v28 = vpop.permute.xlu0 %1737 }
 0x2d7   :  { %v1792_v17 = vsel %vm322_vm2, %v1738_v28, 0.0 }
 0x2d8   :  { %7279 = vrsqrt.f32 %v384_v47 }
 0x2d9   :  { %1793 = vadd.xlane.f32.xlu1 %v1792_v17  ;;  %v866_v22 = vpop.permute.xlu1 %865 }
 0x2da   :  { %v871_v50 = vsel %vm322_vm2, %v866_v22, 0  ;;  %v1887_v32 = vpop.permute.xlu0 %1886 }
 0x2db   :  { %6799 = vmatpush3.bf16.xpose.msra.mxu1 %v871_v50  ;;  %v1943_v52 = vsel %vm322_vm2, %v1887_v32, 0.0 }
 0x2dc   :  { %6810 = vmatprep.subr.bf16.mxu1 %v10329_v19 }
 0x2dd   :  { %1944 = vadd.xlane.f32.xlu1 %v1943_v52  ;;  %v1873_v48 = vpop.permute.xlu1 %1872 }
 0x2de   :  { %v1891_v7 = vpop.permute.xlu0 %1890  ;;  %v1922_v61 = vsel %vm322_vm2, %v1873_v48, 0.0  ;;  %v8394_v48 = vld [vmem:[#allocation2 + $0x10] sm:$0xff] }
 0x2df   :  { %1923 = vadd.xlane.f32.xlu0 %v1922_v61  ;;  %v1949_v12 = vsel %vm322_vm2, %v1891_v7, 0.0  ;;  %v1202_v7 = vpack.c.bf16 %v7999_v44, %v8394_v48 }
 0x2e1   :  { %1950 = vadd.xlane.f32.xlu1 %v1949_v12  ;;  %v1724_v15 = vpop.permute.xlu1 %1723 }
 0x2e2   :  { %v1742_v20 = vpop.permute.xlu0 %1741  ;;  %6801 = vmatmul.mubr.msk.bf16.vlgmr.msra.gmra.mxu1 %vm322_vm2, %v585_v13  ;;  %v1771_v5 = vsel %vm322_vm2, %v1724_v15, 0.0  ;;  %v1207_v15 = vpack.c.bf16 %v8099_v8, %v8071_v1  ;;  %v1206_v1 = vpack.c.bf16 %v8069_v0, %v8061_v62 }
 0x2e3   :  { %6811 = vmatpush3.bf16.xpose.msra.mxu1 %v971_v18  ;;  %1772 = vadd.xlane.f32.xlu0 %v1771_v5  ;;  %v1798_v24 = vsel %vm322_vm2, %v1742_v20, 0.0  ;;  %v8414_v20 = vld [vmem:[#allocation2 + $0x8] sm:$0xff] }
 0x2e4   :  { %6812 = vmatprep.mubr.msk.bf16.mxu1 %vm7863_vm3, %v10329_v19  ;;  %6822 = vmatprep.subr.bf16.mxu1 %v10329_v19  ;;  %v1201_v58 = vpack.c.bf16 %v8414_v20, %v8412_v56 }
 0x2e5   :  { %v7280_v4 = vpop.eup %7279  ;;  %1799 = vadd.xlane.f32.xlu1 %v1798_v24  ;;  %v1728_v29 = vpop.permute.xlu1 %1727 }
 0x2e6   :  { %v1746_v9 = vpop.permute.xlu0 %1745  ;;  %v1777_v30 = vsel %vm322_vm2, %v1728_v29, 0.0  ;;  %v417_v34 = vmul.f32 %v7280_v4, %v8277_v16  ;;  %v1014_v4 = vld [vmem:[#allocation7] sm:$0xff] }
 0x2e7   :  { %1778 = vadd.xlane.f32.xlu0 %v1777_v30  ;;  %v1804_v36 = vsel %vm322_vm2, %v1746_v9, 0.0  ;;  %v8450_v30 = vstv %s1046_s24 }
 0x2e8   :  { %v577_v38 = vmul.f32 %v417_v34, %v8099_v8  ;;  %v8455_v34 = vld [vmem:[%s10323_s4 + $0x8] sm:$0xff] }
 0x2e9   :  { %1805 = vadd.xlane.f32.xlu1 %v1804_v36  ;;  %v1877_v49 = vpop.permute.xlu1 %1876 }
 0x2ea   :  { %v1895_v39 = vpop.permute.xlu0 %1894  ;;  %6813 = vmatmul.mubr.msk.bf16.vlgmr.msra.gmra.mxu1 %vm322_vm2, %v587_v37  ;;  %v1928_v40 = vsel %vm322_vm2, %v1877_v49, 0.0  ;;  %v586_v33 = vpack.c.bf16 %v577_v38, %v576_v3  ;;  %v1015_v38 = vld [vmem:[#allocation7 + $0x8] sm:$0xff] }
 0x2eb   :  { %1929 = vadd.xlane.f32.xlu0 %v1928_v40  ;;  %v1955_v6 = vsel %vm322_vm2, %v1895_v39, 0.0  ;;  %6824 = vmatprep.mubr.msk.bf16.mxu1 %vm7863_vm3, %v10329_v19 }
 0x2ec   :  { %6807 = vmatmul.mubr.msk.bf16.vlgmr.msra.gmra.mxu0 %vm322_vm2, %v586_v33 }
 0x2ed   :  { %1956 = vadd.xlane.f32.xlu1 %v1955_v6  ;;  %v1881_v16 = vpop.permute.xlu1 %1880  ;;  %6818 = vmatprep.mubr.msk.bf16.mxu0 %vm7863_vm3, %v10329_v19 }
 0x2ee   :  { %v1899_v21 = vpop.permute.xlu0 %1898  ;;  %v1934_v10 = vsel %vm322_vm2, %v1881_v16, 0.0 }
 0x2ef   :  { %1935 = vadd.xlane.f32.xlu0 %v1934_v10  ;;  %v1961_v46 = vsel %vm322_vm2, %v1899_v21, 0.0 }
 0x2f1   :  { %1962 = vadd.xlane.f32.xlu1 %v1961_v46  ;;  %v1732_v59 = vpop.permute.xlu1 %1731 }
 0x2f2   :  { %v1750_v42 = vpop.permute.xlu0 %1749  ;;  %v1783_v43 = vsel %vm322_vm2, %v1732_v59, 0.0 }
 0x2f3   :  { %1784 = vadd.xlane.f32.xlu0 %v1783_v43  ;;  %v1810_v45 = vsel %vm322_vm2, %v1750_v42, 0.0 }
 0x2f5   :  { %1811 = vadd.xlane.f32.xlu1 %v1810_v45  ;;  %v1736_v47 = vpop.permute.xlu1 %1735 }
 0x2f6   :  { %v1754_v28 = vpop.permute.xlu0 %1753  ;;  %v1789_v41 = vsel %vm322_vm2, %v1736_v47, 0.0 }
 0x2f7   :  { %1790 = vadd.xlane.f32.xlu0 %v1789_v41  ;;  %v1816_v17 = vsel %vm322_vm2, %v1754_v28, 0.0  ;;  %v1016_v28 = vld [vmem:[#allocation7 + $0x10] sm:$0xff] }
 0x2f9   :  { %1817 = vadd.xlane.f32.xlu1 %v1816_v17  ;;  %v1885_v35 = vpop.permute.xlu1 %1884 }
 0x2fa   :  { %v1940_v22 = vsel %vm322_vm2, %v1885_v35, 0.0 }
 0x2fb   :  { %1941 = vadd.xlane.f32.xlu0 %v1940_v22 }
 0x2fd   :  { %v1889_v50 = vpop.permute.xlu1 %1888 }
 0x2fe   :  { %v1946_v32 = vsel %vm322_vm2, %v1889_v50, 0.0 }
 0x2ff   :  { %1947 = vadd.xlane.f32.xlu0 %v1946_v32 }
 0x301   :  { %v1740_v55 = vpop.permute.xlu1 %1739 }
 0x302   :  { %v1795_v52 = vsel %vm322_vm2, %v1740_v55, 0.0 }
 0x303   :  { %1796 = vadd.xlane.f32.xlu0 %v1795_v52  ;;  %v1017_v52 = vld [vmem:[#allocation7 + $0x18] sm:$0xff] }
 0x305   :  { %v1744_v57 = vpop.permute.xlu1 %1743 }
 0x306   :  { %v1801_v63 = vsel %vm322_vm2, %v1744_v57, 0.0 }
 0x307   :  { %1802 = vadd.xlane.f32.xlu0 %v1801_v63 }
 0x309   :  { %v1893_v61 = vpop.permute.xlu1 %1892 }
 0x30a   :  { %1258 = vrot.lane.b32.xlu1 %v1202_v7, %s7859_s19  ;;  %v1952_v2 = vsel %vm322_vm2, %v1893_v61, 0.0  ;;  %v1022_v61 = vld [vmem:[#allocation7 + $0x40] sm:$0xff] }
 0x30b   :  { %1953 = vadd.xlane.f32.xlu0 %v1952_v2 }
 0x30d   :  { %v1897_v12 = vpop.permute.xlu1 %1896 }
 0x30e   :  { %1306 = vrot.lane.b32.xlu1 %v1203_v11, %s7859_s19  ;;  %v1958_v13 = vsel %vm322_vm2, %v1897_v12, 0.0 }
 0x30f   :  { %1959 = vadd.xlane.f32.xlu0 %v1958_v13 }
 0x311   :  { %v1748_v27 = vpop.permute.xlu1 %1747 }
 0x312   :  { %1402 = vrot.lane.b32.xlu1 %v1205_v14, %s7859_s19  ;;  %v1807_v44 = vsel %vm322_vm2, %v1748_v27, 0.0 }
 0x313   :  { %1808 = vadd.xlane.f32.xlu0 %v1807_v44 }
 0x315   :  { %v1752_v18 = vpop.permute.xlu1 %1751 }
 0x316   :  { %1498 = vrot.lane.b32.xlu1 %v1207_v15, %s7859_s19  ;;  %v1813_v51 = vsel %vm322_vm2, %v1752_v18, 0.0 }
 0x317   :  { %1814 = vadd.xlane.f32.xlu0 %v1813_v51 }
 0x32d   :  { %1210 = vrot.lane.b32.xlu0 %v1201_v58, %s7859_s19 }
 0x331   :  { %1354 = vrot.lane.b32.xlu0 %v1204_v60, %s7859_s19  ;;  %v1023_v60 = vld [vmem:[#allocation7 + $0x48] sm:$0xff] }
 0x335   :  { %1450 = vrot.lane.b32.xlu0 %v1206_v1, %s7859_s19 }
 0x345   :  { %v8447_v29 = vpop.xlane.xlu0 %1920 }
 0x346   :  { %v8425_v8 = vpop.xlane.xlu1 %1917 }
 0x34a   :  { %v8427_v5 = vpop.xlane.xlu1 %1926 }
 0x34e   :  { %v8429_v23 = vpop.xlane.xlu1 %1775 }
 0x352   :  { %v8431_v24 = vpop.xlane.xlu1 %1781 }
 0x356   :  { %v8433_v25 = vpop.xlane.xlu1 %1932 }
 0x35a   :  { %v8435_v26 = vpop.xlane.xlu1 %1938 }
 0x35e   :  { %v8437_v53 = vpop.xlane.xlu1 %1787 }
 0x362   :  { %v8445_v62 = vpop.xlane.xlu1 %1793 }
 0x363   :  { %v657_v0 = vpop.f32.mrf.mxu1 }
 0x364   :  { %v658_v9 = vadd.f32 %v657_v0, %v8442_v54 }
 0x365   :  { %v6772_v31 = vpop.f32.mrf.mxu1 }
 0x366   :  { %v1030_v36 = vadd.f32 %v1014_v4, %v658_v9  ;;  %v8457_v37 = vpop.xlane.xlu1 %1944 }
 0x367   :  { %v660_v3 = vpop.f32.mrf.mxu1 }
 0x368   :  { %v1048_v49 = vsub.f32 %v1030_v36, %v8450_v30  ;;  %v661_v39 = vadd.f32 %v660_v3, %v8455_v34  ;;  %v8461_v40 = vpop.xlane.xlu0 %1923 }
 0x369   :  { %v6773_v33 = vpop.f32.mrf.mxu1 }
 0x36a   :  { %v1064_v6 = vmax.f32 %v1048_v49, -60.0  ;;  %v1031_v16 = vadd.f32 %v1015_v38, %v661_v39  ;;  %v8463_v21 = vpop.xlane.xlu1 %1950 }
 0x36b   :  { %v707_v10 = vpop.f32.mrf.mxu1 }
 0x36c   :  { %v1080_v46 = vmul.f32 1.442695, %v1064_v6  ;;  %v1049_v59 = vsub.f32 %v1031_v16, %v8450_v30  ;;  %v8466_v42 = vpop.xlane.xlu0 %1772  ;;  %v708_v43 = vadd.f32 %v707_v10, %v8442_v54 }
 0x36d   :  { %v6778_v45 = vpop.f32.mrf.mxu1 }
 0x36e   :  { %7281 = vpow2.f32 %v1080_v46  ;;  %v1065_v47 = vmax.f32 %v1049_v59, -60.0  ;;  %v8469_v41 = vpop.xlane.xlu1 %1799  ;;  %v1032_v50 = vadd.f32 %v1016_v28, %v708_v43 }
 0x36f   :  { %v710_v17 = vpop.f32.mrf.mxu1 }
 0x370   :  { %v1082_v35 = vmul.f32 1.442695, %v1065_v47  ;;  %v8471_v22 = vpop.xlane.xlu0 %1778  ;;  %v711_v32 = vadd.f32 %v710_v17, %v8455_v34  ;;  %v1050_v12 = vsub.f32 %v1032_v50, %v8450_v30 }
 0x371   :  { %v6779_v55 = vpop.f32.mrf.mxu1 }
 0x372   :  { %7283 = vpow2.f32 %v1082_v35  ;;  %v8474_v57 = vpop.xlane.xlu1 %1805  ;;  %v1033_v13 = vadd.f32 %v1017_v52, %v711_v32  ;;  %v1066_v0 = vmax.f32 %v1050_v12, -60.0 }
 0x373   :  { %v8476_v63 = vpop.f32.mrf.mxu1  ;;  %v857_v7 = vpop.f32.mrf.mxu0 }
 0x374   :  { %v858_v2 = vadd.f32 %v857_v7, %v8442_v54  ;;  %v8479_v11 = vpop.xlane.xlu0 %1929  ;;  %v1051_v4 = vsub.f32 %v1033_v13, %v8450_v30  ;;  %v1084_v10 = vmul.f32 1.442695, %v1066_v0 }
 0x375   :  { %v6784_v14 = vpop.f32.mrf.mxu1  ;;  %v6796_v27 = vpop.f32.mrf.mxu0 }
 0x376   :  { %v1038_v44 = vadd.f32 %v1022_v61, %v858_v2  ;;  %v8482_v15 = vpop.xlane.xlu1 %1956  ;;  %v1067_v46 = vmax.f32 %v1051_v4, -60.0 }
 0x377   :  { %v8484_v18 = vpop.f32.mrf.mxu1  ;;  %v860_v51 = vpop.f32.mrf.mxu0 }
 0x378   :  { %v1056_v58 = vsub.f32 %v1038_v44, %v8450_v30  ;;  %v8487_v1 = vpop.xlane.xlu0 %1935  ;;  %v861_v9 = vadd.f32 %v860_v51, %v8455_v34  ;;  %v1086_v32 = vmul.f32 1.442695, %v1067_v46 }
 0x379   :  { %v6785_v31 = vpop.f32.mrf.mxu1  ;;  %v6797_v36 = vpop.f32.mrf.mxu0 }
 0x37a   :  { %v1072_v3 = vmax.f32 %v1056_v58, -60.0  ;;  %v8491_v38 = vpop.xlane.xlu1 %1962  ;;  %v1039_v39 = vadd.f32 %v1023_v60, %v861_v9 }
 0x37b   :  { %v8493_v49 = vpop.eup %7281  ;;  %v807_v33 = vpop.f32.mrf.mxu1 }
 0x37c   :  { %v1096_v6 = vmul.f32 1.442695, %v1072_v3  ;;  %v8495_v16 = vpop.xlane.xlu0 %1784  ;;  %v1057_v59 = vsub.f32 %v1039_v39, %v8450_v30  ;;  %v1113_v45 = vsel %vm1112_vm4, %v8493_v49, 0.0 }
 0x37d   :  { %v6790_v43 = vpop.f32.mrf.mxu1  ;;  %1114 = vadd.xlane.f32.xlu0 %v1113_v45  ;;  %v1018_v45 = vld [vmem:[#allocation7 + $0x20] sm:$0xff] }
 0x37e   :  { %v8500_v47 = vpop.xlane.xlu1 %1811  ;;  %7285 = vpow2.f32 %v1096_v6  ;;  %v1073_v17 = vmax.f32 %v1057_v59, -60.0  ;;  %v758_v43 = vadd.f32 %v8476_v63, %v8442_v54 }
 0x37f   :  { %v8502_v28 = vpop.eup %7283  ;;  %v810_v35 = vpop.f32.mrf.mxu1  ;;  %7287 = vpow2.f32 %v1084_v10 }
 0x380   :  { %10335 = vst [vmem:[#allocation13_spill] sm:$0xff] %v8502_v28  ;;  %v8504_v50 = vpop.xlane.xlu0 %1790  ;;  %v1098_v55 = vmul.f32 1.442695, %v1073_v17  ;;  %v1116_v52 = vsel %vm1112_vm4, %v8502_v28, 0.0 }
 0x381   :  { %v6791_v7 = vpop.f32.mrf.mxu1  ;;  %1117 = vadd.xlane.f32.xlu1 %v1116_v52  ;;  %v808_v52 = vadd.f32 %v807_v33, %v8442_v54  ;;  %v811_v33 = vadd.f32 %v810_v35, %v8455_v34 }
 0x382   :  { %v8508_v61 = vpop.xlane.xlu1 %1817  ;;  %7289 = vpow2.f32 %v1098_v55  ;;  %v1034_v55 = vadd.f32 %v1018_v45, %v758_v43  ;;  %v761_v7 = vadd.f32 %v8484_v18, %v8455_v34  ;;  %v1024_v45 = vld [vmem:[#allocation7 + $0x50] sm:$0xff] }
 0x383   :  { %10336 = vst [vmem:[#allocation14_spill] sm:$0xff] %v8508_v61  ;;  %7291 = vpow2.f32 %v1086_v32 }
 0x384   :  { %v8510_v2 = vpop.xlane.xlu0 %1941  ;;  %v1052_v63 = vsub.f32 %v1034_v55, %v8450_v30 }
 0x386   :  { %v1259_v12 = vpop.permute.xlu1 %1258 }
 0x387   :  { %6823 = vmatpush3.bf16.msra.mxu1 %v1259_v12  ;;  %v1020_v12 = vld [vmem:[#allocation7 + $0x30] sm:$0xff] }
 0x388   :  { %v8512_v13 = vpop.xlane.xlu0 %1947  ;;  %6834 = vmatprep.subr.bf16.mxu1 %v10329_v19 }
 0x38b   :  { %v8515_v14 = vpop.eup %7285 }
 0x38c   :  { %10337 = vst [vmem:[#allocation15_spill] sm:$0xff] %v8515_v14  ;;  %v8517_v27 = vpop.xlane.xlu0 %1796  ;;  %v1137_v44 = vsel %vm1112_vm4, %v8515_v14, 0.0  ;;  %v8521_v51 = vpop.eup %7287 }
 0x38d   :  { %10338 = vst [vmem:[#allocation16_spill] sm:$0xff] %v8521_v51  ;;  %1138 = vadd.xlane.f32.xlu0 %v1137_v44  ;;  %v1119_v4 = vsel %vm1112_vm4, %v8521_v51, 0.0 }
 0x38f   :  { %v8523_v58 = vpop.eup %7289 }
 0x390   :  { %10339 = vst [vmem:[#allocation17_spill] sm:$0xff] %v8523_v58  ;;  %v8525_v60 = vpop.xlane.xlu0 %1802  ;;  %v1140_v0 = vsel %vm1112_vm4, %v8523_v58, 0.0  ;;  %v8531_v9 = vpop.eup %7291  ;;  %v1021_v58 = vld [vmem:[#allocation7 + $0x38] sm:$0xff] }
 0x391   :  { %10340 = vst [vmem:[#allocation18_spill] sm:$0xff] %v8531_v9  ;;  %1141 = vadd.xlane.f32.xlu1 %v1140_v0  ;;  %1120 = vadd.xlane.f32.xlu0 %v1119_v4  ;;  %v1122_v36 = vsel %vm1112_vm4, %v8531_v9, 0.0  ;;  %v1019_v0 = vld [vmem:[#allocation7 + $0x28] sm:$0xff] }
 0x392   :  { %v1035_v43 = vadd.f32 %v1019_v0, %v761_v7  ;;  %v1037_v7 = vadd.f32 %v1021_v58, %v811_v33 }
 0x394   :  { %v8533_v31 = vpop.xlane.xlu0 %1953 }
 0x395   :  { %1123 = vadd.xlane.f32.xlu1 %v1122_v36  ;;  %v1026_v36 = vld [vmem:[#allocation7 + $0x60] sm:$0xff] }
 0x398   :  { %v8537_v3 = vpop.xlane.xlu0 %1959 }
 0x39c   :  { %v8539_v39 = vpop.xlane.xlu0 %1808 }
 0x3a0   :  { %v8541_v6 = vpop.xlane.xlu0 %1814 }
 0x3a1   :  { %10341 = vst [vmem:[#allocation19_spill] sm:$0xff] %v8541_v6  ;;  %v1068_v6 = vmax.f32 %v1052_v63, -60.0 }
 0x3a2   :  { %v907_v10 = vpop.f32.mrf.mxu1 }
 0x3a3   :  { %v908_v14 = vadd.f32 %v907_v10, %v8442_v54  ;;  %v1027_v10 = vld [vmem:[#allocation7 + $0x68] sm:$0xff] }
 0x3a4   :  { %v6802_v46 = vpop.f32.mrf.mxu1  ;;  %v1211_v59 = vpop.permute.xlu0 %1210 }
 0x3a5   :  { %6817 = vmatpush3.bf16.msra.mxu0 %v1211_v59  ;;  %v1036_v59 = vadd.f32 %v1020_v12, %v808_v52  ;;  %v1040_v55 = vadd.f32 %v1024_v45, %v908_v14  ;;  %v1053_v12 = vsub.f32 %v1035_v43, %v8450_v30 }
 0x3a6   :  { %v910_v17 = vpop.f32.mrf.mxu1  ;;  %6828 = vmatprep.subr.bf16.mxu0 %v10329_v19 }
 0x3a7   :  { %v911_v35 = vadd.f32 %v910_v17, %v8455_v34  ;;  %v1058_v63 = vsub.f32 %v1040_v55, %v8450_v30  ;;  %v1069_v14 = vmax.f32 %v1053_v12, -60.0 }
 0x3a8   :  { %v6803_v32 = vpop.f32.mrf.mxu1 }
 0x3a9   :  { %v1090_v33 = vmul.f32 1.442695, %v1069_v14 }
 0x3aa   :  { %v8549_v44 = vpop.f32.mrf.mxu1 }
 0x3ac   :  { %v957_v4 = vpop.f32.mrf.mxu0  ;;  %v6814_v46 = vpop.f32.mrf.mxu1 }
 0x3ad   :  { %v958_v32 = vadd.f32 %v957_v4, %v8442_v54  ;;  %v1054_v46 = vsub.f32 %v1036_v59, %v8450_v30  ;;  %v1025_v4 = vld [vmem:[#allocation7 + $0x58] sm:$0xff] }
 0x3ae   :  { %v6808_v19 = vpop.f32.mrf.mxu0  ;;  %v8555_v18 = vpop.f32.mrf.mxu1  ;;  %v1041_v45 = vadd.f32 %v1025_v4, %v911_v35 }
 0x3af   :  { %v1042_v9 = vadd.f32 %v1026_v36, %v958_v32  ;;  %v1088_v32 = vmul.f32 1.442695, %v1068_v6 }
 0x3b0   :  { %v960_v51 = vpop.f32.mrf.mxu0  ;;  %v6815_v61 = vpop.f32.mrf.mxu1 }
 0x3b1   :  { %v1060_v52 = vsub.f32 %v1042_v9, %v8450_v30  ;;  %v961_v19 = vadd.f32 %v960_v51, %v8455_v34  ;;  %v1070_v61 = vmax.f32 %v1054_v46, -60.0  ;;  %v1055_v9 = vsub.f32 %v1037_v7, %v8450_v30 }
 0x3b2   :  { %v6809_v0 = vpop.f32.mrf.mxu0  ;;  %v1074_v51 = vmax.f32 %v1058_v63, -60.0  ;;  %v1965_v63 = vmax.f32 %v8447_v29, 1e-24 }
 0x3b3   :  { %v1076_v28 = vmax.f32 %v1060_v52, -60.0  ;;  %v1043_v36 = vadd.f32 %v1027_v10, %v961_v19  ;;  %v1092_v17 = vmul.f32 1.442695, %v1070_v61  ;;  %v1071_v0 = vmax.f32 %v1055_v9, -60.0 }
 0x3b4   :  { %v1059_v52 = vsub.f32 %v1041_v45, %v8450_v30  ;;  %v1100_v46 = vmul.f32 1.442695, %v1074_v51  ;;  %v1964_v9 = vmax.f32 %v8425_v8, 1e-24 }
 0x3b5   :  { %v1104_v59 = vmul.f32 1.442695, %v1076_v28  ;;  %v1061_v43 = vsub.f32 %v1043_v36, %v8450_v30  ;;  %v1094_v28 = vmul.f32 1.442695, %v1071_v0  ;;  %v1008_v0 = vadd.f32 %v8549_v44, %v8442_v54 }
 0x3b6   :  { %v1075_v55 = vmax.f32 %v1059_v52, -60.0 }
 0x3b7   :  { %7293 = vpow2.f32 %v1104_v59  ;;  %v1077_v58 = vmax.f32 %v1061_v43, -60.0 }
 0x3b8   :  { %7295 = vpow2.f32 %v1088_v32  ;;  %v1102_v10 = vmul.f32 1.442695, %v1075_v55 }
 0x3b9   :  { %v1106_v6 = vmul.f32 1.442695, %v1077_v58 }
 0x3bb   :  { %7297 = vpow2.f32 %v1106_v6 }
 0x3bc   :  { %7299 = vpow2.f32 %v1092_v17 }
 0x3bd   :  { %7301 = vpow2.f32 %v1090_v33 }
 0x3be   :  { %7303 = vpow2.f32 %v1100_v46  ;;  %v1028_v46 = vld [vmem:[#allocation7 + $0x70] sm:$0xff] }
 0x3bf   :  { %7305 = vpow2.f32 %v1094_v28  ;;  %v1044_v28 = vadd.f32 %v1028_v46, %v1008_v0  ;;  %v1822_v0 = vmax.f32 %v8431_v24, 1e-24  ;;  %v1821_v46 = vmax.f32 %v8471_v22, 1e-24 }
 0x3c0   :  { %7307 = vpow2.f32 %v1102_v10  ;;  %v8604_v10 = vld [vmem:[#allocation2 + $0x78] sm:$0xff]  ;;  %v1968_v24 = vmax.f32 %v8479_v11, 1e-24  ;;  %v1970_v11 = vmax.f32 %v8487_v1, 1e-24 }
 0x3c1   :  { %7309 = vrsqrt.f32 %v1965_v63  ;;  %v1029_v63 = vld [vmem:[#allocation7 + $0x78] sm:$0xff]  ;;  %v1062_v54 = vsub.f32 %v1044_v28, %v8450_v30  ;;  %v1972_v1 = vmax.f32 %v8510_v2, 1e-24  ;;  %v1829_v2 = vmax.f32 %v8525_v60, 1e-24 }
 0x3c2   :  { %7311 = vrsqrt.f32 %v1964_v9 }
 0x3c4   :  { %v8566_v12 = vpop.eup %7293 }
 0x3c5   :  { %v1149_v7 = vsel %vm1112_vm4, %v8566_v12, 0.0  ;;  %v8570_v35 = vpop.eup %7295 }
 0x3c6   :  { %1150 = vadd.xlane.f32.xlu0 %v1149_v7  ;;  %v1125_v4 = vsel %vm1112_vm4, %v8570_v35, 0.0  ;;  %v8606_v7 = vld [vmem:[#allocation2 + $0x70] sm:$0xff] }
 0x3c8   :  { %v8572_v19 = vpop.eup %7297 }
 0x3c9   :  { %v8576_v36 = vpop.eup %7299  ;;  %v1152_v32 = vsel %vm1112_vm4, %v8572_v19, 0.0 }
 0x3ca   :  { %1126 = vadd.xlane.f32.xlu0 %v1125_v4  ;;  %v8580_v61 = vpop.eup %7301  ;;  %1153 = vadd.xlane.f32.xlu1 %v1152_v32  ;;  %v1131_v59 = vsel %vm1112_vm4, %v8576_v36, 0.0  ;;  %v8610_v4 = vpack.c.bf16 %v8604_v10, %v8606_v7  ;;  %v1011_v32 = vadd.f32 %v8555_v18, %v8455_v34  ;;  %v1967_v34 = vmax.f32 %v8427_v5, 1e-24 }
 0x3cb   :  { %v8585_v14 = vpop.eup %7303  ;;  %v1128_v45 = vsel %vm1112_vm4, %v8580_v61, 0.0  ;;  %v1819_v18 = vmax.f32 %v8466_v42, 1e-24  ;;  %v1971_v42 = vmax.f32 %v8435_v26, 1e-24 }
 0x3cc   :  { %v8590_v43 = vpop.eup %7305  ;;  %v1143_v58 = vsel %vm1112_vm4, %v8585_v14, 0.0  ;;  %v1045_v44 = vadd.f32 %v1029_v63, %v1011_v32  ;;  %v1825_v32 = vmax.f32 %v8504_v50, 1e-24  ;;  %v1827_v50 = vmax.f32 %v8517_v27, 1e-24 }
 0x3cd   :  { %v1134_v29 = vsel %vm1112_vm4, %v8590_v43, 0.0  ;;  %v8596_v17 = vpop.eup %7307 }
 0x3ce   :  { %1132 = vadd.xlane.f32.xlu0 %v1131_v59  ;;  %1129 = vadd.xlane.f32.xlu1 %v1128_v45  ;;  %v1146_v8 = vsel %vm1112_vm4, %v8596_v17, 0.0  ;;  %v7310_v51 = vpop.eup %7309  ;;  %v1078_v59 = vmax.f32 %v1062_v54, -60.0  ;;  %v1063_v9 = vsub.f32 %v1045_v44, %v8450_v30  ;;  %v1969_v30 = vmax.f32 %v8433_v25, 1e-24 }
 0x3cf   :  { %v7312_v33 = vpop.eup %7311  ;;  %v2021_v6 = vmul.f32 %v8414_v20, %v7310_v51  ;;  %v8623_v51 = vpop.permute.xlu0 %1354  ;;  %v1973_v54 = vmax.f32 %v8457_v37, 1e-24 }
 0x3d0   :  { %v2020_v52 = vmul.f32 %v8412_v56, %v7312_v33  ;;  %v1108_v45 = vmul.f32 1.442695, %v1078_v59  ;;  %v1820_v33 = vmax.f32 %v8429_v23, 1e-24  ;;  %v1824_v23 = vmax.f32 %v8437_v53, 1e-24 }
 0x3d1   :  { %v1826_v53 = vmax.f32 %v8445_v62, 1e-24  ;;  %v1975_v62 = vmax.f32 %v8463_v21, 1e-24 }
 0x3d2   :  { %1144 = vadd.xlane.f32.xlu0 %v1143_v58  ;;  %1135 = vadd.xlane.f32.xlu1 %v1134_v29  ;;  %v2036_v55 = vpack.c.bf16 %v2021_v6, %v2020_v52  ;;  %v1079_v58 = vmax.f32 %v1063_v9, -60.0  ;;  %7313 = vpow2.f32 %v1108_v45  ;;  %v1966_v52 = vmax.f32 %v8461_v40, 1e-24 }
 0x3d3   :  { %v8635_v28 = vpop.permute.xlu0 %1450  ;;  %v1823_v40 = vmax.f32 %v8495_v16, 1e-24 }
 0x3d4   :  { %v1110_v29 = vmul.f32 1.442695, %v1079_v58  ;;  %v1828_v58 = vmax.f32 %v8469_v41, 1e-24  ;;  %v1977_v41 = vmax.f32 %v8482_v15, 1e-24 }
 0x3d6   :  { %1147 = vadd.xlane.f32.xlu1 %v1146_v8  ;;  %v8619_v8 = vpop.permute.xlu1 %1306  ;;  %7315 = vpow2.f32 %v1110_v29 }
 0x3d7   :  { %7317 = vrsqrt.f32 %v1967_v34  ;;  %v1830_v34 = vmax.f32 %v8474_v57, 1e-24  ;;  %v1979_v57 = vmax.f32 %v8491_v38, 1e-24 }
 0x3d8   :  { %7319 = vrsqrt.f32 %v1819_v18 }
 0x3d9   :  { %7321 = vrsqrt.f32 %v1820_v33 }
 0x3da   :  { %v8629_v6 = vpop.permute.xlu1 %1402  ;;  %7323 = vrsqrt.f32 %v1822_v0  ;;  %v1974_v0 = vmax.f32 %v8512_v13, 1e-24  ;;  %v1976_v13 = vmax.f32 %v8533_v31, 1e-24 }
 0x3db   :  { %7325 = vrsqrt.f32 %v1969_v30 }
 0x3dc   :  { %7327 = vrsqrt.f32 %v1966_v52 }
 0x3dd   :  { %7329 = vrsqrt.f32 %v1821_v46 }
 0x3de   :  { %7331 = vrsqrt.f32 %v1971_v42  ;;  %v8642_v22 = vpop.permute.xlu1 %1498 }
 0x3df   :  { %v8632_v5 = vpop.eup %7313  ;;  %7333 = vrsqrt.f32 %v1824_v23 }
 0x3e0   :  { %v1155_v25 = vsel %vm1112_vm4, %v8632_v5, 0.0  ;;  %7335 = vrsqrt.f32 %v1968_v24 }
 0x3e3   :  { %v8644_v26 = vpop.eup %7315 }
 0x3e4   :  { %v1158_v16 = vsel %vm1112_vm4, %v8644_v26, 0.0  ;;  %v7318_v44 = vpop.eup %7317 }
 0x3e5   :  { %v7320_v59 = vpop.eup %7319 }
 0x3e6   :  { %v7322_v9 = vpop.eup %7321 }
 0x3e7   :  { %2051 = vrot.lane.b32.xlu1 %v2036_v55, %s7864_s2  ;;  %v7324_v45 = vpop.eup %7323 }
 0x3e8   :  { %1546 = vrot.lane.b32.xlu0 %v8610_v4, %s7859_s19  ;;  %s8646_s19 = sld [smem:[#allocation4 + $0x1]]  ;;  %v7326_v37 = vpop.eup %7325 }
 0x3e9   :  { %v7328_v18 = vpop.eup %7327 }
 0x3ea   :  { %v7330_v33 = vpop.eup %7329  ;;  %v2022_v42 = vmul.f32 %v8394_v48, %v7328_v18 }
 0x3eb   :  { %v8666_v30 = vpop.eup %7331 }
 0x3ec   :  { %v7334_v52 = vpop.eup %7333 }
 0x3ed   :  { %v7336_v60 = vpop.eup %7335 }
 0x3ee   :  { %v8659_v29 = vstv %s8646_s19  ;;  %s2503_s1 = sadd.f32 16.0, %s8646_s19 }
 0x3ef   :  { %v1852_v21 = vmul.f32 %v7320_v59, %v8659_v29  ;;  %v1853_v27 = vmul.f32 %v7322_v9, %v8659_v29  ;;  %v1854_v23 = vmul.f32 %v7330_v33, %v8659_v29  ;;  %v1855_v31 = vmul.f32 %v7324_v45, %v8659_v29  ;;  %v8690_v45 = vld [vmem:[#allocation2 + $0x20] sm:$0xff]  ;;  %v8698_v33 = vld [vmem:[#allocation2 + $0x28] sm:$0xff] }
 0x3f1   :  { %v1996_v46 = vmul.f32 %v8412_v56, %v1852_v21  ;;  %v1997_v15 = vmul.f32 %v8414_v20, %v1853_v27  ;;  %v1857_v27 = vmul.f32 %v7334_v52, %v8659_v29  ;;  %v10345_v52 = vmov 0.0  }
 0x406   :  { %v1115_v55 = vpop.xlane.xlu0 %1114 }
 0x407   :  { %1156 = vadd.xlane.f32.xlu0 %v1155_v25  ;;  %7337 = vrcp.f32 %v1115_v55  ;;  %v1831_v25 = vmax.f32 %v8539_v39, 1e-24  ;;  %v8678_v55 = vld [vmem:[#allocation2 + $0x18] sm:$0xff] }
 0x408   :  { %7339 = vrsqrt.f32 %v1823_v40  ;;  %v2023_v56 = vmul.f32 %v8678_v55, %v7318_v44  ;;  %v1998_v44 = vmul.f32 %v8394_v48, %v1854_v23  ;;  %v1999_v21 = vmul.f32 %v8678_v55, %v1855_v31  ;;  %v10344_v48 = vld [vmem:[#allocation14_spill] sm:$0xff] }
 0x40a   :  { %v1118_v63 = vpop.xlane.xlu1 %1117  ;;  %v2037_v39 = vpack.c.bf16 %v2023_v56, %v2022_v42 }
 0x40b   :  { %7341 = vrcp.f32 %v1118_v63  ;;  %1159 = vadd.xlane.f32.xlu1 %v1158_v16  ;;  %v2012_v63 = vpack.c.bf16 %v1997_v15, %v1996_v46  ;;  %v8703_v46 = vld [vmem:[#allocation2 + $0x30] sm:$0xff]  ;;  %v8711_v15 = vld [vmem:[#allocation2 + $0x38] sm:$0xff] }
 0x40c   :  { %7343 = vrsqrt.f32 %v1826_v53  ;;  %v1832_v53 = vmax.f32 %v8500_v47, 1e-24  ;;  %v2027_v56 = vmul.f32 %v8711_v15, %v8666_v30 }
 0x40d   :  { %7345 = vrsqrt.f32 %v1970_v11 }
 0x40e   :  { %7347 = vrsqrt.f32 %v1825_v32  ;;  %v1978_v32 = vmax.f32 %v8537_v3, 1e-24  ;;  %v2024_v3 = vmul.f32 %v8690_v45, %v7336_v60 }
 0x40f   :  { %7349 = vrsqrt.f32 %v1973_v54  ;;  %v10342_v54 = vld [vmem:[#allocation13_spill] sm:$0xff] }
 0x410   :  { %7351 = vrsqrt.f32 %v1975_v62 }
 0x411   :  { %7353 = vrsqrt.f32 %v1972_v1  ;;  %v10343_v1 = vld [vmem:[#allocation19_spill] sm:$0xff] }
 0x412   :  { %7355 = vrsqrt.f32 %v1827_v50  ;;  %v1833_v47 = vmax.f32 %v10343_v1, 1e-24 }
 0x413   :  { %7357 = vrsqrt.f32 %v1828_v58 }
 0x414   :  { %7359 = vrsqrt.f32 %v1830_v34  ;;  %v7338_v24 = vpop.eup %7337 }
 0x415   :  { %7361 = vrsqrt.f32 %v1829_v2  ;;  %v7340_v38 = vpop.eup %7339  ;;  %v1177_v20 = vmul.f32 %v7338_v24, %v8493_v49  ;;  %v1834_v2 = vmax.f32 %v10344_v48, 1e-24  ;;  %v8734_v48 = vld [vmem:[#allocation2 + $0x50] sm:$0xff] }
 0x416   :  { %7363 = vrsqrt.f32 %v1974_v0  ;;  %v8675_v40 = vpop.xlane.xlu0 %1138  ;;  %v1856_v58 = vmul.f32 %v7340_v38, %v8659_v29  ;;  %v2025_v0 = vmul.f32 %v8698_v33, %v7326_v37 }
 0x417   :  { %7365 = vrsqrt.f32 %v1977_v41 }
 0x418   :  { %v7342_v11 = vpop.eup %7341  ;;  %7367 = vrsqrt.f32 %v1979_v57  ;;  %v2013_v57 = vpack.c.bf16 %v1999_v21, %v1998_v44  ;;  %v2038_v23 = vpack.c.bf16 %v2025_v0, %v2024_v3  ;;  %v2000_v24 = vmul.f32 %v8690_v45, %v1856_v58 }
 0x419   :  { %v7344_v16 = vpop.eup %7343  ;;  %7369 = vrsqrt.f32 %v1976_v13  ;;  %v1178_v62 = vmul.f32 %v7342_v11, %v10342_v54 }
 0x41a   :  { %v7346_v59 = vpop.eup %7345  ;;  %7371 = vrsqrt.f32 %v1831_v25  ;;  %v1121_v9 = vpop.xlane.xlu0 %1120 }
 0x41b   :  { %v8688_v50 = vpop.xlane.xlu1 %1141  ;;  %v7348_v34 = vpop.eup %7347  ;;  %7373 = vrsqrt.f32 %v1832_v53  ;;  %v1193_v49 = vpack.c.bf16 %v1178_v62, %v1177_v20  ;;  %v2026_v42 = vmul.f32 %v8703_v46, %v7346_v59  ;;  %v1859_v53 = vmul.f32 %v7344_v16, %v8659_v29  ;;  %v8721_v20 = vld [vmem:[#allocation2 + $0x40] sm:$0xff]  ;;  %v8728_v59 = vld [vmem:[#allocation2 + $0x48] sm:$0xff] }
 0x41c   :  { %v7350_v18 = vpop.eup %7349  ;;  %7375 = vrsqrt.f32 %v1978_v32  ;;  %2048 = vrot.lane.b32.xlu1 %v2012_v63, %s7865_s21  ;;  %v1858_v37 = vmul.f32 %v7348_v34, %v8659_v29 }
 0x41d   :  { %2104 = vrot.lane.b32.xlu0 %v2037_v39, %s7864_s2  ;;  %v7352_v41 = vpop.eup %7351  ;;  %7377 = vrcp.f32 %v1121_v9  ;;  %6819 = vmatmul.mubr.msk.bf16.vlgmr.msra.gmra.mxu0 %vm1112_vm4, %v1193_v49  ;;  %v2039_v11 = vpack.c.bf16 %v2027_v56, %v2026_v42  ;;  %v2003_v16 = vmul.f32 %v8711_v15, %v1859_v53  ;;  %v2029_v1 = vmul.f32 %v8728_v59, %v7350_v18  ;;  %v8741_v42 = vld [vmem:[#allocation2 + $0x58] sm:$0xff]  ;;  %v8745_v56 = vld [vmem:[#allocation2 + $0x60] sm:$0xff] }
 0x41e   :  { %v7354_v60 = vpop.eup %7353  ;;  %7379 = vrsqrt.f32 %v1833_v47  ;;  %6829 = vmatpush3.bf16.msra.mxu0 %v8619_v8  ;;  %6830 = vmatprep.mubr.msk.bf16.mxu0 %vm7863_vm3, %v10345_v52  ;;  %v2001_v8 = vmul.f32 %v8698_v33, %v1857_v27  ;;  %v2002_v39 = vmul.f32 %v8703_v46, %v1858_v37 }
 0x41f   :  { %v1124_v13 = vpop.xlane.xlu1 %1123  ;;  %v7356_v25 = vpop.eup %7355  ;;  %6840 = vmatprep.subr.bf16.mxu0 %v10345_v52  ;;  %v2028_v30 = vmul.f32 %v8721_v20, %v7354_v60  ;;  %v2031_v60 = vmul.f32 %v8741_v42, %v7352_v41  ;;  %v8752_v41 = vld [vmem:[#allocation2 + $0x68] sm:$0xff] }
 0x420   :  { %7381 = vrcp.f32 %v1124_v13  ;;  %v7358_v38 = vpop.eup %7357  ;;  %2101 = vrot.lane.b32.xlu1 %v2013_v57, %s7865_s21  ;;  %v2014_v63 = vpack.c.bf16 %v2001_v8, %v2000_v24  ;;  %v1860_v54 = vmul.f32 %v7356_v25, %v8659_v29  ;;  %v2015_v34 = vpack.c.bf16 %v2003_v16, %v2002_v39  ;;  %v10347_v16 = vld [vmem:[#allocation18_spill] sm:$0xff] }
 0x421   :  { %7383 = vrsqrt.f32 %v1834_v2  ;;  %2157 = vrot.lane.b32.xlu0 %v2038_v23, %s7864_s2  ;;  %v7360_v31 = vpop.eup %7359  ;;  %v1861_v47 = vmul.f32 %v7358_v38, %v8659_v29  ;;  %v2040_v49 = vpack.c.bf16 %v2029_v1, %v2028_v30 }
 0x422   :  { %v7362_v32 = vpop.eup %7361  ;;  %v2004_v21 = vmul.f32 %v8721_v20, %v1860_v54  ;;  %v1863_v27 = vmul.f32 %v7360_v31, %v8659_v29  ;;  %v10346_v54 = vld [vmem:[#allocation16_spill] sm:$0xff] }
 0x423   :  { %v7364_v62 = vpop.eup %7363  ;;  %v1862_v3 = vmul.f32 %v7362_v32, %v8659_v29  ;;  %v2005_v18 = vmul.f32 %v8728_v59, %v1861_v47 }
 0x424   :  { %v7366_v44 = vpop.eup %7365  ;;  %2154 = vrot.lane.b32.xlu1 %v2014_v63, %s7865_s21  ;;  %v2030_v2 = vmul.f32 %v8734_v48, %v7364_v62  ;;  %v2007_v31 = vmul.f32 %v8741_v42, %v1863_v27 }
 0x425   :  { %2210 = vrot.lane.b32.xlu0 %v2039_v11, %s7864_s2  ;;  %v7368_v9 = vpop.eup %7367  ;;  %v2006_v23 = vmul.f32 %v8734_v48, %v1862_v3  ;;  %v2016_v37 = vpack.c.bf16 %v2005_v18, %v2004_v21  ;;  %v2033_v32 = vmul.f32 %v8752_v41, %v7366_v44  ;;  %v8771_v18 = vld [vmem:[#allocation2] sm:$0xff] }
 0x426   :  { %v7370_v58 = vpop.eup %7369  ;;  %v2041_v25 = vpack.c.bf16 %v2031_v60, %v2030_v2  ;;  %v2035_v21 = vmul.f32 %v8604_v10, %v7368_v9  ;;  %v3165_v60 = vld [vmem:[#allocation2 + $0x10] sm:$0xff] }
 0x427   :  { %v7372_v0 = vpop.eup %7371  ;;  %v2032_v38 = vmul.f32 %v8745_v56, %v7370_v58  ;;  %v2017_v30 = vpack.c.bf16 %v2007_v31, %v2006_v23 }
 0x428   :  { %v7374_v57 = vpop.eup %7373  ;;  %2207 = vrot.lane.b32.xlu1 %v2015_v34, %s7865_s21  ;;  %v1864_v8 = vmul.f32 %v7372_v0, %v8659_v29 }
 0x429   :  { %2263 = vrot.lane.b32.xlu0 %v2040_v49, %s7864_s2  ;;  %v7376_v13 = vpop.eup %7375  ;;  %v1865_v63 = vmul.f32 %v7374_v57, %v8659_v29  ;;  %v2042_v47 = vpack.c.bf16 %v2033_v32, %v2032_v38  ;;  %v3169_v38 = vld [vmem:[#allocation2 + $0x30] sm:$0xff] }
 0x42a   :  { %v7378_v24 = vpop.eup %7377  ;;  %v2008_v3 = vmul.f32 %v8745_v56, %v1864_v8  ;;  %v2034_v58 = vmul.f32 %v8606_v7, %v7376_v13  ;;  %v8779_v13 = vld [vmem:[#allocation2 + $0x8] sm:$0xff] }
 0x42b   :  { %v7380_v53 = vpop.eup %7379  ;;  %v1179_v62 = vmul.f32 %v7378_v24, %v10346_v54  ;;  %v2009_v44 = vmul.f32 %v8752_v41, %v1865_v63  ;;  %v3180_v23 = vmul.f32 %v8779_v13, %v8779_v13  ;;  %v3166_v24 = vld [vmem:[#allocation2 + $0x18] sm:$0xff]  ;;  %v3168_v8 = vld [vmem:[#allocation2 + $0x28] sm:$0xff]  ;;  %v3171_v54 = vld [vmem:[#allocation2 + $0x40] sm:$0xff] }
 0x42c   :  { %2260 = vrot.lane.b32.xlu1 %v2016_v37, %s7865_s21  ;;  %v1866_v34 = vmul.f32 %v7380_v53, %v8659_v29  ;;  %v2043_v27 = vpack.c.bf16 %v2035_v21, %v2034_v58  ;;  %v3167_v37 = vld [vmem:[#allocation2 + $0x20] sm:$0xff]  ;;  %v3185_v53 = vmul.f32 %v3169_v38, %v3169_v38  ;;  %v3184_v31 = vmul.f32 %v3168_v8, %v3168_v8 }
 0x42d   :  { %v7382_v11 = vpop.eup %7381  ;;  %2316 = vrot.lane.b32.xlu0 %v2041_v25, %s7864_s2  ;;  %v2018_v0 = vpack.c.bf16 %v2009_v44, %v2008_v3  ;;  %v3183_v25 = vmul.f32 %v3167_v37, %v3167_v37  ;;  %v3172_v3 = vld [vmem:[#allocation2 + $0x48] sm:$0xff]  ;;  %v3174_v44 = vld [vmem:[#allocation2 + $0x58] sm:$0xff] }
 0x42e   :  { %v7384_v39 = vpop.eup %7383  ;;  %v1180_v1 = vmul.f32 %v7382_v11, %v10347_v16  ;;  %v2010_v57 = vmul.f32 %v8606_v7, %v1866_v34  ;;  %v3181_v7 = vmul.f32 %v3165_v60, %v3165_v60  ;;  %v3170_v11 = vld [vmem:[#allocation2 + $0x38] sm:$0xff]  ;;  %v3188_v34 = vmul.f32 %v3172_v3, %v3172_v3  ;;  %v3177_v60 = vld [vmem:[#allocation2 + $0x70] sm:$0xff] }
 0x42f   :  { %v1867_v2 = vmul.f32 %v7384_v39, %v8659_v29  ;;  %v3186_v63 = vmul.f32 %v3170_v11, %v3170_v11  ;;  %v3190_v21 = vmul.f32 %v3174_v44, %v3174_v44  ;;  %v3193_v37 = vmul.f32 %v3177_v60, %v3177_v60 }
 0x430   :  { %v1194_v49 = vpack.c.bf16 %v1180_v1, %v1179_v62  ;;  %2313 = vrot.lane.b32.xlu1 %v2017_v30, %s7865_s21  ;;  %v3187_v62 = vmul.f32 %v3171_v54, %v3171_v54 }
 0x431   :  { %2369 = vrot.lane.b32.xlu0 %v2042_v47, %s7864_s2  ;;  %v2011_v29 = vmul.f32 %v8604_v10, %v1867_v2  ;;  %v3182_v10 = vmul.f32 %v3166_v24, %v3166_v24  ;;  %v3173_v47 = vld [vmem:[#allocation2 + $0x50] sm:$0xff] }
 0x432   :  { %6825 = vmatmul.mubr.msk.bf16.vlgmr.msra.gmra.mxu1 %vm1112_vm4, %v1194_v49  ;;  %v3189_v58 = vmul.f32 %v3173_v47, %v3173_v47 }
 0x433   :  { %6835 = vmatpush3.bf16.msra.mxu1 %v8623_v51  ;;  %6836 = vmatprep.mubr.msk.bf16.mxu1 %vm7863_vm3, %v10345_v52  ;;  %v3179_v51 = vmul.f32 %v8771_v18, %v8771_v18  ;;  %v2019_v9 = vpack.c.bf16 %v2011_v29, %v2010_v57 }
 0x434   :  { %6846 = vmatprep.subr.bf16.mxu1 %v10345_v52  ;;  %2366 = vrot.lane.b32.xlu1 %v2018_v0, %s7865_s21 }
 0x435   :  { %2422 = vrot.lane.b32.xlu0 %v2043_v27, %s7864_s2  ;;  %s7872_s2 = smov 40  }
 0x438   :  { %3356 = vrot.lane.b32.xlu1 %v3179_v51, %s7866_s27 }
 0x439   :  { %2419 = vrot.lane.b32.xlu0 %v2019_v9, %s7865_s21 }
 0x43c   :  { %3360 = vrot.lane.b32.xlu1 %v3181_v7, %s7866_s27 }
 0x43d   :  { %3358 = vrot.lane.b32.xlu0 %v3180_v23, %s7866_s27 }
 0x440   :  { %3211 = vrot.lane.b32.xlu1 %v3179_v51, %s7867_s6 }
 0x441   :  { %3362 = vrot.lane.b32.xlu0 %v3182_v10, %s7866_s27 }
 0x444   :  { %3215 = vrot.lane.b32.xlu1 %v3181_v7, %s7867_s6  ;;  %v3176_v7 = vld [vmem:[#allocation2 + $0x68] sm:$0xff] }
 0x445   :  { %3213 = vrot.lane.b32.xlu0 %v3180_v23, %s7867_s6 }
 0x448   :  { %3364 = vrot.lane.b32.xlu1 %v3183_v25, %s7866_s27 }
 0x449   :  { %3217 = vrot.lane.b32.xlu0 %v3182_v10, %s7867_s6 }
 0x44c   :  { %3368 = vrot.lane.b32.xlu1 %v3185_v53, %s7866_s27 }
 0x44d   :  { %3366 = vrot.lane.b32.xlu0 %v3184_v31, %s7866_s27 }
 0x44f   :  { %v1151_v32 = vpop.xlane.xlu0 %1150 }
 0x450   :  { %3219 = vrot.lane.b32.xlu1 %v3183_v25, %s7867_s6  ;;  %v3192_v25 = vmul.f32 %v3176_v7, %v3176_v7 }
 0x451   :  { %3370 = vrot.lane.b32.xlu0 %v3186_v63, %s7866_s27 }
 0x453   :  { %v1127_v39 = vpop.xlane.xlu0 %1126  ;;  %v1154_v30 = vpop.xlane.xlu1 %1153 }
 0x454   :  { %3223 = vrot.lane.b32.xlu1 %v3185_v53, %s7867_s6  ;;  %7385 = vrcp.f32 %v1127_v39 }
 0x455   :  { %3221 = vrot.lane.b32.xlu0 %v3184_v31, %s7867_s6  ;;  %v10348_v31 = vld [vmem:[#allocation17_spill] sm:$0xff] }
 0x457   :  { %v1133_v16 = vpop.xlane.xlu0 %1132  ;;  %v1130_v1 = vpop.xlane.xlu1 %1129 }
 0x458   :  { %7387 = vrcp.f32 %v1130_v1  ;;  %3372 = vrot.lane.b32.xlu1 %v3187_v62, %s7866_s27 }
 0x459   :  { %3225 = vrot.lane.b32.xlu0 %v3186_v63, %s7867_s6  ;;  %7389 = vrcp.f32 %v1133_v16 }
 0x45a   :  { %7391 = vrcp.f32 %v8688_v50  ;;  %v3175_v50 = vld [vmem:[#allocation2 + $0x60] sm:$0xff] }
 0x45b   :  { %v1136_v49 = vpop.xlane.xlu1 %1135  ;;  %v1145_v2 = vpop.xlane.xlu0 %1144  ;;  %v3191_v29 = vmul.f32 %v3175_v50, %v3175_v50 }
 0x45c   :  { %7393 = vrcp.f32 %v1136_v49  ;;  %3376 = vrot.lane.b32.xlu1 %v3189_v58, %s7866_s27 }
 0x45d   :  { %3374 = vrot.lane.b32.xlu0 %v3188_v34, %s7866_s27  ;;  %7395 = vrcp.f32 %v8675_v40 }
 0x45f   :  { %v1148_v0 = vpop.xlane.xlu1 %1147  ;;  %v1547_v1 = vpop.permute.xlu0 %1546 }
 0x460   :  { %7397 = vrcp.f32 %v1148_v0  ;;  %3227 = vrot.lane.b32.xlu1 %v3187_v62, %s7867_s6 }
 0x461   :  { %3378 = vrot.lane.b32.xlu0 %v3190_v21, %s7866_s27  ;;  %7399 = vrcp.f32 %v1145_v2  ;;  %v7386_v27 = vpop.eup %7385 }
 0x462   :  { %7401 = vrcp.f32 %v1154_v30  ;;  %v1181_v40 = vmul.f32 %v7386_v27, %v8570_v35 }
 0x463   :  { %7403 = vrcp.f32 %v1151_v32  ;;  %v2052_v47 = vpop.permute.xlu1 %2051 }
 0x464   :  { %3231 = vrot.lane.b32.xlu1 %v3189_v58, %s7867_s6  ;;  %v2057_v3 = vsel %vm322_vm2, %v2052_v47, 0 }
 0x465   :  { %3229 = vrot.lane.b32.xlu0 %v3188_v34, %s7867_s6  ;;  %v7388_v57 = vpop.eup %7387 }
 0x466   :  { %v1182_v51 = vmul.f32 %v7388_v57, %v8580_v61  ;;  %v7390_v9 = vpop.eup %7389  ;;  %v3178_v61 = vld [vmem:[#allocation2 + $0x78] sm:$0xff] }
 0x467   :  { %v7392_v23 = vpop.eup %7391  ;;  %v1183_v38 = vmul.f32 %v7390_v9, %v8576_v36  ;;  %v3194_v36 = vmul.f32 %v3178_v61, %v3178_v61 }
 0x468   :  { %3380 = vrot.lane.b32.xlu1 %v3191_v29, %s7866_s27  ;;  %v1195_v24 = vpack.c.bf16 %v1182_v51, %v1181_v40  ;;  %v1186_v11 = vmul.f32 %v7392_v23, %v10348_v31 }
 0x469   :  { %3233 = vrot.lane.b32.xlu0 %v3190_v21, %s7867_s6  ;;  %v7394_v10 = vpop.eup %7393 }
 0x46a   :  { %6831 = vmatmul.mubr.msk.bf16.vlgmr.msra.gmra.mxu0 %vm1112_vm4, %v1195_v24  ;;  %v1184_v35 = vmul.f32 %v7394_v10, %v8590_v43  ;;  %v7396_v8 = vpop.eup %7395  ;;  %v10349_v43 = vld [vmem:[#allocation15_spill] sm:$0xff] }
 0x46b   :  { %6841 = vmatpush3.bf16.msra.mxu0 %v8629_v6  ;;  %6842 = vmatprep.mubr.msk.bf16.mxu0 %vm7863_vm3, %v10345_v52  ;;  %v1185_v63 = vmul.f32 %v7396_v8, %v10349_v43 }
 0x46c   :  { %3384 = vrot.lane.b32.xlu1 %v3193_v37, %s7866_s27  ;;  %v1196_v53 = vpack.c.bf16 %v1184_v35, %v1183_v38  ;;  %6852 = vmatprep.subr.bf16.mxu0 %v10345_v52 }
 0x46d   :  { %3382 = vrot.lane.b32.xlu0 %v3192_v25, %s7866_s27  ;;  %v7398_v32 = vpop.eup %7397  ;;  %v1197_v39 = vpack.c.bf16 %v1186_v11, %v1185_v63 }
 0x46e   :  { %6837 = vmatmul.mubr.msk.bf16.vlgmr.msra.gmra.mxu1 %vm1112_vm4, %v1196_v53  ;;  %v7400_v6 = vpop.eup %7399  ;;  %v1188_v30 = vmul.f32 %v7398_v32, %v8596_v17 }
 0x46f   :  { %6847 = vmatpush3.bf16.msra.mxu1 %v8635_v28  ;;  %6848 = vmatprep.mubr.msk.bf16.mxu1 %vm7863_vm3, %v10345_v52  ;;  %v7402_v54 = vpop.eup %7401  ;;  %v1187_v62 = vmul.f32 %v7400_v6, %v8585_v14 }
 0x470   :  { %3235 = vrot.lane.b32.xlu1 %v3191_v29, %s7867_s6  ;;  %6858 = vmatprep.subr.bf16.mxu1 %v10345_v52  ;;  %v7404_v16 = vpop.eup %7403  ;;  %v1190_v17 = vmul.f32 %v7402_v54, %v8572_v19 }
 0x471   :  { %3386 = vrot.lane.b32.xlu0 %v3194_v36, %s7866_s27  ;;  %v1198_v28 = vpack.c.bf16 %v1188_v30, %v1187_v62  ;;  %v1189_v14 = vmul.f32 %v7404_v16, %v8566_v12 }
 0x472   :  { %6843 = vmatmul.mubr.msk.bf16.vlgmr.msra.gmra.mxu0 %vm1112_vm4, %v1197_v39 }
 0x473   :  { %6853 = vmatpush3.bf16.msra.mxu0 %v8642_v22  ;;  %6854 = vmatprep.mubr.msk.bf16.mxu0 %vm7863_vm3, %v10345_v52  ;;  %v1199_v22 = vpack.c.bf16 %v1190_v17, %v1189_v14 }
 0x474   :  { %3239 = vrot.lane.b32.xlu1 %v3193_v37, %s7867_s6  ;;  %6864 = vmatprep.subr.bf16.mxu0 %v10345_v52 }
 0x475   :  { %3237 = vrot.lane.b32.xlu0 %v3192_v25, %s7867_s6 }
 0x476   :  { %6849 = vmatmul.mubr.msk.bf16.vlgmr.msra.gmra.mxu1 %vm1112_vm4, %v1198_v28 }
 0x477   :  { %6859 = vmatpush3.bf16.msra.mxu1 %v1547_v1  ;;  %6860 = vmatprep.mubr.msk.bf16.mxu1 %vm7863_vm3, %v10345_v52 }
 0x478   :  { %6870 = vmatprep.subr.bf16.mxu1 %v10345_v52 }
 0x479   :  { %3241 = vrot.lane.b32.xlu0 %v3194_v36, %s7867_s6 }
 0x47a   :  { %6855 = vmatmul.mubr.msk.bf16.vlgmr.msra.gmra.mxu0 %vm1112_vm4, %v1199_v22 }
 0x47b   :  { %6865 = vmatpush3.bf16.xpose.msra.mxu0 %v2057_v3  ;;  %6866 = vmatprep.mubr.msk.bf16.mxu0 %vm7863_vm3, %v10345_v52 }
 0x47c   :  { %6876 = vmatprep.subr.bf16.mxu0 %v10345_v52 }
 0x490   :  { %v1157_v12 = vpop.xlane.xlu0 %1156 }
 0x491   :  { %7405 = vrcp.f32 %v1157_v12 }
 0x494   :  { %v2105_v19 = vpop.permute.xlu0 %2104  ;;  %v1160_v58 = vpop.xlane.xlu1 %1159 }
 0x495   :  { %7407 = vrcp.f32 %v1160_v58  ;;  %v2110_v23 = vsel %vm322_vm2, %v2105_v19, 0 }
 0x498   :  { %v2158_v34 = vpop.permute.xlu0 %2157  ;;  %v2049_v44 = vpop.permute.xlu1 %2048 }
 0x499   :  { %v2163_v49 = vsel %vm322_vm2, %v2158_v34, 0  ;;  %6867 = vmatmul.mubr.msk.bf16.vlgmr.msra.gmra.mxu0 %vm322_vm2, %v2049_v44 }
 0x49a   :  { %6877 = vmatpush3.bf16.xpose.msra.mxu0 %v2163_v49  ;;  %6878 = vmatprep.mubr.msk.bf16.mxu0 %vm7863_vm3, %v10345_v52 }
 0x49b   :  { %6888 = vmatprep.subr.bf16.mxu0 %v10345_v52 }
 0x49c   :  { %v2211_v21 = vpop.permute.xlu0 %2210  ;;  %v2102_v2 = vpop.permute.xlu1 %2101 }
 0x49d   :  { %v2216_v25 = vsel %vm322_vm2, %v2211_v21, 0 }
 0x49e   :  { %v7406_v27 = vpop.eup %7405 }
 0x49f   :  { %v1191_v51 = vmul.f32 %v7406_v27, %v8632_v5 }
 0x4a0   :  { %v2264_v0 = vpop.permute.xlu0 %2263  ;;  %v2155_v57 = vpop.permute.xlu1 %2154 }
 0x4a1   :  { %v2269_v50 = vsel %vm322_vm2, %v2264_v0, 0  ;;  %6879 = vmatmul.mubr.msk.bf16.vlgmr.msra.gmra.mxu0 %vm322_vm2, %v2155_v57 }
 0x4a2   :  { %v7408_v29 = vpop.eup %7407  ;;  %6889 = vmatpush3.bf16.xpose.msra.mxu0 %v2269_v50  ;;  %6890 = vmatprep.mubr.msk.bf16.mxu0 %vm7863_vm3, %v10345_v52 }
 0x4a3   :  { %v1192_v9 = vmul.f32 %v7408_v29, %v8644_v26  ;;  %6900 = vmatprep.subr.bf16.mxu0 %v10345_v52 }
 0x4a4   :  { %v2317_v40 = vpop.permute.xlu0 %2316  ;;  %v2208_v60 = vpop.permute.xlu1 %2207 }
 0x4a5   :  { %v1200_v7 = vpack.c.bf16 %v1192_v9, %v1191_v51  ;;  %v2322_v11 = vsel %vm322_vm2, %v2317_v40, 0 }
 0x4a7   :  { %6861 = vmatmul.mubr.msk.bf16.vlgmr.msra.gmra.mxu1 %vm1112_vm4, %v1200_v7 }
 0x4a8   :  { %v2370_v24 = vpop.permute.xlu0 %2369  ;;  %6871 = vmatpush3.bf16.xpose.msra.mxu1 %v2110_v23  ;;  %v2261_v37 = vpop.permute.xlu1 %2260  ;;  %6872 = vmatprep.mubr.msk.bf16.mxu1 %vm7863_vm3, %v10345_v52 }
 0x4a9   :  { %v2375_v10 = vsel %vm322_vm2, %v2370_v24, 0  ;;  %6891 = vmatmul.mubr.msk.bf16.vlgmr.msra.gmra.mxu0 %vm322_vm2, %v2261_v37  ;;  %6882 = vmatprep.subr.bf16.mxu1 %v10345_v52 }
 0x4aa   :  { %6901 = vmatpush3.bf16.xpose.msra.mxu0 %v2375_v10  ;;  %6902 = vmatprep.mubr.msk.bf16.mxu0 %vm7863_vm3, %v10345_v52 }
 0x4ab   :  { %6912 = vmatprep.subr.bf16.mxu0 %v10345_v52 }
 0x4ac   :  { %v2423_v5 = vpop.permute.xlu0 %2422  ;;  %v2314_v26 = vpop.permute.xlu1 %2313 }
 0x4ad   :  { %v2428_v62 = vsel %vm322_vm2, %v2423_v5, 0 }
 0x4af   :  { %6873 = vmatmul.mubr.msk.bf16.vlgmr.msra.gmra.mxu1 %vm322_vm2, %v2102_v2 }
 0x4b0   :  { %v2420_v38 = vpop.permute.xlu0 %2419  ;;  %6883 = vmatpush3.bf16.xpose.msra.mxu1 %v2216_v25  ;;  %v2367_v35 = vpop.permute.xlu1 %2366  ;;  %6884 = vmatprep.mubr.msk.bf16.mxu1 %vm7863_vm3, %v10345_v52 }
 0x4b1   :  { %6903 = vmatmul.mubr.msk.bf16.vlgmr.msra.gmra.mxu0 %vm322_vm2, %v2367_v35  ;;  %6894 = vmatprep.subr.bf16.mxu1 %v10345_v52 }
 0x4b2   :  { %6914 = vmatprep.mubr.msk.bf16.mxu0 %vm7863_vm3, %v10345_v52 }
 0x4b4   :  { %v3359_v8 = vpop.permute.xlu0 %3358  ;;  %v3357_v61 = vpop.permute.xlu1 %3356 }
 0x4b5   :  { %v3407_v53 = vsel %vm322_vm2, %v3359_v8, 0.0  ;;  %v3404_v31 = vsel %vm322_vm2, %v3357_v61, 0.0 }
 0x4b6   :  { %3408 = vadd.xlane.f32.xlu0 %v3407_v53  ;;  %3405 = vadd.xlane.f32.xlu1 %v3404_v31 }
 0x4b7   :  { %6885 = vmatmul.mubr.msk.bf16.vlgmr.msra.gmra.mxu1 %vm322_vm2, %v2208_v60 }
 0x4b8   :  { %v3363_v32 = vpop.permute.xlu0 %3362  ;;  %6895 = vmatpush3.bf16.xpose.msra.mxu1 %v2322_v11  ;;  %v3361_v36 = vpop.permute.xlu1 %3360  ;;  %6896 = vmatprep.mubr.msk.bf16.mxu1 %vm7863_vm3, %v10345_v52 }
 0x4b9   :  { %v3413_v43 = vsel %vm322_vm2, %v3363_v32, 0.0  ;;  %v3410_v63 = vsel %vm322_vm2, %v3361_v36, 0.0  ;;  %6906 = vmatprep.subr.bf16.mxu1 %v10345_v52 }
 0x4ba   :  { %3414 = vadd.xlane.f32.xlu1 %v3413_v43  ;;  %3411 = vadd.xlane.f32.xlu0 %v3410_v63 }
 0x4bc   :  { %v3214_v6 = vpop.permute.xlu0 %3213  ;;  %v3212_v39 = vpop.permute.xlu1 %3211 }
 0x4bd   :  { %v3262_v30 = vsel %vm322_vm2, %v3214_v6, 0.0  ;;  %v3259_v54 = vsel %vm322_vm2, %v3212_v39, 0.0 }
 0x4be   :  { %3263 = vadd.xlane.f32.xlu1 %v3262_v30  ;;  %3260 = vadd.xlane.f32.xlu0 %v3259_v54 }
 0x4bf   :  { %6897 = vmatmul.mubr.msk.bf16.vlgmr.msra.gmra.mxu1 %vm322_vm2, %v2314_v26 }
 0x4c0   :  { %v3218_v16 = vpop.permute.xlu0 %3217  ;;  %6907 = vmatpush3.bf16.xpose.msra.mxu1 %v2428_v62  ;;  %v3216_v28 = vpop.permute.xlu1 %3215  ;;  %6908 = vmatprep.mubr.msk.bf16.mxu1 %vm7863_vm3, %v10345_v52 }
 0x4c1   :  { %v3268_v17 = vsel %vm322_vm2, %v3218_v16, 0.0  ;;  %v3265_v1 = vsel %vm322_vm2, %v3216_v28, 0.0  ;;  %6918 = vmatprep.subr.bf16.mxu1 %v10345_v52 }
 0x4c2   :  { %3269 = vadd.xlane.f32.xlu1 %v3268_v17  ;;  %3266 = vadd.xlane.f32.xlu0 %v3265_v1 }
 0x4c4   :  { %v3367_v14 = vpop.permute.xlu0 %3366  ;;  %v3365_v47 = vpop.permute.xlu1 %3364 }
 0x4c5   :  { %v3419_v22 = vsel %vm322_vm2, %v3367_v14, 0.0  ;;  %v3416_v3 = vsel %vm322_vm2, %v3365_v47, 0.0 }
 0x4c6   :  { %3420 = vadd.xlane.f32.xlu1 %v3419_v22  ;;  %3417 = vadd.xlane.f32.xlu0 %v3416_v3 }
 0x4c7   :  { %6909 = vmatmul.mubr.msk.bf16.vlgmr.msra.gmra.mxu1 %vm322_vm2, %v2420_v38 }
 0x4c8   :  { %v3371_v12 = vpop.permute.xlu0 %3370  ;;  %v3369_v19 = vpop.permute.xlu1 %3368  ;;  %6920 = vmatprep.mubr.msk.bf16.mxu1 %vm7863_vm3, %v10345_v52 }
 0x4c9   :  { %v3425_v58 = vsel %vm322_vm2, %v3371_v12, 0.0  ;;  %v3422_v34 = vsel %vm322_vm2, %v3369_v19, 0.0 }
 0x4ca   :  { %3426 = vadd.xlane.f32.xlu1 %v3425_v58  ;;  %3423 = vadd.xlane.f32.xlu0 %v3422_v34 }
 0x4cc   :  { %v3222_v49 = vpop.permute.xlu0 %3221  ;;  %v3220_v44 = vpop.permute.xlu1 %3219 }
 0x4cd   :  { %v3274_v21 = vsel %vm322_vm2, %v3222_v49, 0.0  ;;  %v3271_v2 = vsel %vm322_vm2, %v3220_v44, 0.0 }
 0x4ce   :  { %3275 = vadd.xlane.f32.xlu1 %v3274_v21  ;;  %3272 = vadd.xlane.f32.xlu0 %v3271_v2  ;;  %v7745_v2 = vld [vmem:[#allocation2 + $0x10] sm:$0xff] }
 0x4d0   :  { %v3226_v0 = vpop.permute.xlu0 %3225  ;;  %v3224_v27 = vpop.permute.xlu1 %3223 }
 0x4d1   :  { %v3280_v50 = vsel %vm322_vm2, %v3226_v0, 0.0  ;;  %v3277_v57 = vsel %vm322_vm2, %v3224_v27, 0.0  ;;  %v2658_v0 = vpack.c.bf16 %v8678_v55, %v7745_v2  ;;  %v2659_v27 = vpack.c.bf16 %v8698_v33, %v8690_v45  ;;  %v8983_v2 = vld [vmem:[%s10323_s4 + $0x10] sm:$0xff] }
 0x4d2   :  { %3281 = vadd.xlane.f32.xlu1 %v3280_v50  ;;  %3278 = vadd.xlane.f32.xlu0 %v3277_v57  ;;  %v7746_v50 = vld [vmem:[#allocation2] sm:$0xff]  ;;  %v7747_v57 = vld [vmem:[#allocation2 + $0x8] sm:$0xff]  ;;  %v2663_v55 = vpack.c.bf16 %v8752_v41, %v8745_v56 }
 0x4d4   :  { %v3375_v29 = vpop.permute.xlu0 %3374  ;;  %v3373_v40 = vpop.permute.xlu1 %3372 }
 0x4d5   :  { %v3431_v51 = vsel %vm322_vm2, %v3375_v29, 0.0  ;;  %v3428_v9 = vsel %vm322_vm2, %v3373_v40, 0.0  ;;  %v2657_v29 = vpack.c.bf16 %v7747_v57, %v7746_v50  ;;  %v2661_v40 = vpack.c.bf16 %v8728_v59, %v8721_v20 }
 0x4d6   :  { %3432 = vadd.xlane.f32.xlu1 %v3431_v51  ;;  %3429 = vadd.xlane.f32.xlu0 %v3428_v9  ;;  %v2660_v51 = vpack.c.bf16 %v8711_v15, %v8703_v46  ;;  %v2662_v9 = vpack.c.bf16 %v8741_v42, %v8734_v48 }
 0x4d8   :  { %v3379_v60 = vpop.permute.xlu0 %3378  ;;  %v3377_v7 = vpop.permute.xlu1 %3376 }
 0x4d9   :  { %v3437_v23 = vsel %vm322_vm2, %v3379_v60, 0.0  ;;  %v3434_v24 = vsel %vm322_vm2, %v3377_v7, 0.0 }
 0x4da   :  { %3438 = vadd.xlane.f32.xlu1 %v3437_v23  ;;  %3435 = vadd.xlane.f32.xlu0 %v3434_v24 }
 0x4dc   :  { %v3230_v10 = vpop.permute.xlu0 %3229  ;;  %v3228_v37 = vpop.permute.xlu1 %3227 }
 0x4dd   :  { %v3286_v5 = vsel %vm322_vm2, %v3230_v10, 0.0  ;;  %v1250_v26 = vpop.f32.mrf.mxu0  ;;  %v3283_v25 = vsel %vm322_vm2, %v3228_v37, 0.0 }
 0x4de   :  { %v6536_v38 = vpack.c.bf16 %v1250_v26, %v1250_v26  ;;  %3287 = vadd.xlane.f32.xlu1 %v3286_v5  ;;  %3284 = vadd.xlane.f32.xlu0 %v3283_v25 }
 0x4df   :  { %v6820_v35 = vpop.f32.mrf.mxu0 }
 0x4e0   :  { %v3234_v8 = vpop.permute.xlu0 %3233  ;;  %1658 = vst.msk [vmem:[#allocation3] sm:$0xf] %vm1657_vm5, %v6536_v38  ;;  %v3232_v61 = vpop.permute.xlu1 %3231 }
 0x4e1   :  { %v3292_v53 = vsel %vm322_vm2, %v3234_v8, 0.0  ;;  %v1253_v31 = vpop.f32.mrf.mxu0  ;;  %v3289_v11 = vsel %vm322_vm2, %v3232_v61, 0.0 }
 0x4e2   :  { %v6537_v32 = vpack.c.bf16 %v1253_v31, %v1253_v31  ;;  %3293 = vadd.xlane.f32.xlu1 %v3292_v53  ;;  %3290 = vadd.xlane.f32.xlu0 %v3289_v11 }
 0x4e3   :  { %v6821_v36 = vpop.f32.mrf.mxu0 }
 0x4e4   :  { %v3383_v43 = vpop.permute.xlu0 %3382  ;;  %1659 = vst.msk [vmem:[#allocation3 + $0x4] sm:$0xf] %vm1657_vm5, %v6537_v32  ;;  %v3381_v63 = vpop.permute.xlu1 %3380 }
 0x4e5   :  { %v3443_v6 = vsel %vm322_vm2, %v3383_v43, 0.0  ;;  %v3440_v39 = vsel %vm322_vm2, %v3381_v63, 0.0 }
 0x4e6   :  { %3444 = vadd.xlane.f32.xlu1 %v3443_v6  ;;  %3441 = vadd.xlane.f32.xlu0 %v3440_v39 }
 0x4e8   :  { %v3387_v30 = vpop.permute.xlu0 %3386  ;;  %v3385_v54 = vpop.permute.xlu1 %3384 }
 0x4e9   :  { %v3449_v62 = vsel %vm322_vm2, %v3387_v30, 0.0  ;;  %v3446_v16 = vsel %vm322_vm2, %v3385_v54, 0.0 }
 0x4ea   :  { %3450 = vadd.xlane.f32.xlu1 %v3449_v62  ;;  %3447 = vadd.xlane.f32.xlu0 %v3446_v16 }
 0x4ec   :  { %v3238_v28 = vpop.permute.xlu0 %3237  ;;  %v3236_v17 = vpop.permute.xlu1 %3235 }
 0x4ed   :  { %v3298_v1 = vsel %vm322_vm2, %v3238_v28, 0.0  ;;  %v3295_v14 = vsel %vm322_vm2, %v3236_v17, 0.0 }
 0x4ee   :  { %3299 = vadd.xlane.f32.xlu1 %v3298_v1  ;;  %3296 = vadd.xlane.f32.xlu0 %v3295_v14 }
 0x4f0   :  { %v3242_v47 = vpop.permute.xlu0 %3241  ;;  %v3240_v22 = vpop.permute.xlu1 %3239 }
 0x4f1   :  { %v3304_v3 = vsel %vm322_vm2, %v3242_v47, 0.0  ;;  %v3301_v19 = vsel %vm322_vm2, %v3240_v22, 0.0 }
 0x4f2   :  { %v1298_v12 = vpop.f32.mrf.mxu1  ;;  %3305 = vadd.xlane.f32.xlu1 %v3304_v3  ;;  %3302 = vadd.xlane.f32.xlu0 %v3301_v19 }
 0x4f3   :  { %v6538_v58 = vpack.c.bf16 %v1298_v12, %v1298_v12 }
 0x4f4   :  { %v6826_v34 = vpop.f32.mrf.mxu1 }
 0x4f5   :  { %1660 = vst.msk [vmem:[#allocation3 + $0x8] sm:$0xf] %vm1657_vm5, %v6538_v58 }
 0x4f6   :  { %v1301_v49 = vpop.f32.mrf.mxu1 }
 0x4f7   :  { %v6539_v44 = vpack.c.bf16 %v1301_v49, %v1301_v49 }
 0x4f8   :  { %v6827_v21 = vpop.f32.mrf.mxu1 }
 0x4f9   :  { %1661 = vst.msk [vmem:[#allocation3 + $0xc] sm:$0xf] %vm1657_vm5, %v6539_v44 }
 0x503   :  { %2714 = vrot.lane.b32.xlu1 %v2658_v0, %s7868_s28  ;;  %v2471_v0 = vld [vmem:[#allocation7] sm:$0xff] }
 0x507   :  { %2762 = vrot.lane.b32.xlu1 %v2659_v27, %s7868_s28  ;;  %v8987_v27 = vstv %s2503_s1 }
 0x508   :  { %2666 = vrot.lane.b32.xlu0 %v2657_v29, %s7868_s28  ;;  %v8994_v29 = vld [vmem:[%s10323_s4 + $0x18] sm:$0xff] }
 0x50b   :  { %2858 = vrot.lane.b32.xlu1 %v2661_v40, %s7868_s28 }
 0x50c   :  { %2810 = vrot.lane.b32.xlu0 %v2660_v51, %s7868_s28 }
 0x50f   :  { %2954 = vrot.lane.b32.xlu1 %v2663_v55, %s7868_s28 }
 0x510   :  { %2906 = vrot.lane.b32.xlu0 %v2662_v9, %s7868_s28  ;;  %v2472_v9 = vld [vmem:[#allocation7 + $0x8] sm:$0xff] }
 0x514   :  { %3002 = vrot.lane.b32.xlu0 %v8610_v4, %s7868_s28 }
 0x52a   :  { %v1346_v45 = vpop.f32.mrf.mxu0 }
 0x52b   :  { %v6540_v33 = vpack.c.bf16 %v1346_v45, %v1346_v45 }
 0x52c   :  { %v6832_v60 = vpop.f32.mrf.mxu0 }
 0x52d   :  { %1662 = vst.msk [vmem:[#allocation3 + $0x10] sm:$0xf] %vm1657_vm5, %v6540_v33 }
 0x52e   :  { %v1349_v20 = vpop.f32.mrf.mxu0  ;;  %v1394_v59 = vpop.f32.mrf.mxu1 }
 0x52f   :  { %v6541_v46 = vpack.c.bf16 %v1349_v20, %v1349_v20  ;;  %v6542_v15 = vpack.c.bf16 %v1394_v59, %v1394_v59 }
 0x530   :  { %v6833_v7 = vpop.f32.mrf.mxu0  ;;  %v6838_v23 = vpop.f32.mrf.mxu1 }
 0x531   :  { %1663 = vst.msk [vmem:[#allocation3 + $0x14] sm:$0xf] %vm1657_vm5, %v6541_v46  ;;  %1664 = vst.msk [vmem:[#allocation3 + $0x18] sm:$0xf] %vm1657_vm5, %v6542_v15 }
 0x532   :  { %v1397_v48 = vpop.f32.mrf.mxu1  ;;  %v1442_v42 = vpop.f32.mrf.mxu0 }
 0x533   :  { %v6543_v56 = vpack.c.bf16 %v1397_v48, %v1397_v48  ;;  %v6544_v41 = vpack.c.bf16 %v1442_v42, %v1442_v42 }
 0x534   :  { %v6839_v4 = vpop.f32.mrf.mxu1  ;;  %v6844_v24 = vpop.f32.mrf.mxu0 }
 0x535   :  { %1665 = vst.msk [vmem:[#allocation3 + $0x1c] sm:$0xf] %vm1657_vm5, %v6543_v56  ;;  %1666 = vst.msk [vmem:[#allocation3 + $0x20] sm:$0xf] %vm1657_vm5, %v6544_v41 }
 0x536   :  { %v1445_v10 = vpop.f32.mrf.mxu0  ;;  %v1490_v37 = vpop.f32.mrf.mxu1 }
 0x537   :  { %v6545_v5 = vpack.c.bf16 %v1445_v10, %v1445_v10  ;;  %v6546_v26 = vpack.c.bf16 %v1490_v37, %v1490_v37 }
 0x538   :  { %v6845_v25 = vpop.f32.mrf.mxu0  ;;  %v6850_v38 = vpop.f32.mrf.mxu1 }
 0x539   :  { %1667 = vst.msk [vmem:[#allocation3 + $0x24] sm:$0xf] %vm1657_vm5, %v6545_v5  ;;  %1668 = vst.msk [vmem:[#allocation3 + $0x28] sm:$0xf] %vm1657_vm5, %v6546_v26  ;;  %v2475_v25 = vld [vmem:[#allocation7 + $0x20] sm:$0xff] }
 0x53a   :  { %v1493_v35 = vpop.f32.mrf.mxu1  ;;  %v1538_v8 = vpop.f32.mrf.mxu0 }
 0x53b   :  { %v6547_v61 = vpack.c.bf16 %v1493_v35, %v1493_v35  ;;  %v6548_v53 = vpack.c.bf16 %v1538_v8, %v1538_v8 }
 0x53c   :  { %v6851_v31 = vpop.f32.mrf.mxu1  ;;  %v6856_v11 = vpop.f32.mrf.mxu0 }
 0x53d   :  { %1669 = vst.msk [vmem:[#allocation3 + $0x2c] sm:$0xf] %vm1657_vm5, %v6547_v61  ;;  %1670 = vst.msk [vmem:[#allocation3 + $0x30] sm:$0xf] %vm1657_vm5, %v6548_v53 }
 0x53e   :  { %v1541_v32 = vpop.f32.mrf.mxu0 }
 0x53f   :  { %v3409_v36 = vpop.xlane.xlu0 %3408  ;;  %v6549_v43 = vpack.c.bf16 %v1541_v32, %v1541_v32  ;;  %v3406_v6 = vpop.xlane.xlu1 %3405 }
 0x540   :  { %v3453_v63 = vmax.f32 %v3409_v36, 1e-24  ;;  %v3452_v39 = vmax.f32 %v3406_v6, 1e-24  ;;  %v6857_v30 = vpop.f32.mrf.mxu0 }
 0x541   :  { %1671 = vst.msk [vmem:[#allocation3 + $0x34] sm:$0xf] %vm1657_vm5, %v6549_v43 }
 0x542   :  { %7409 = vrsqrt.f32 %v3453_v63 }
 0x543   :  { %7411 = vrsqrt.f32 %v3452_v39  ;;  %v8953_v54 = vpop.xlane.xlu0 %3411  ;;  %v8955_v62 = vpop.xlane.xlu1 %3414  ;;  %v2476_v39 = vld [vmem:[#allocation7 + $0x28] sm:$0xff] }
 0x547   :  { %v8957_v16 = vpop.xlane.xlu0 %3260  ;;  %v8959_v28 = vpop.xlane.xlu1 %3263 }
 0x54b   :  { %v8961_v17 = vpop.xlane.xlu0 %3266  ;;  %v8963_v1 = vpop.xlane.xlu1 %3269 }
 0x54f   :  { %v7410_v14 = vpop.eup %7409  ;;  %v8965_v22 = vpop.xlane.xlu0 %3417 }
 0x550   :  { %v7412_v47 = vpop.eup %7411  ;;  %v8967_v3 = vpop.xlane.xlu1 %3420  ;;  %v3509_v12 = vmul.f32 %v7410_v14, %v8779_v13 }
 0x551   :  { %v3508_v19 = vmul.f32 %v7412_v47, %v8771_v18 }
 0x553   :  { %v3524_v58 = vpack.c.bf16 %v3509_v12, %v3508_v19  ;;  %v8971_v34 = vpop.xlane.xlu0 %3423  ;;  %v2473_v19 = vld [vmem:[#allocation7 + $0x10] sm:$0xff] }
 0x554   :  { %v8973_v49 = vpop.xlane.xlu1 %3426 }
 0x555   :  { %3539 = vrot.lane.b32.xlu1 %v3524_v58, %s7866_s27 }
 0x557   :  { %v8976_v44 = vpop.xlane.xlu0 %3272 }
 0x558   :  { %v8978_v21 = vpop.xlane.xlu1 %3275 }
 0x559   :  { %v2093_v13 = vpop.f32.mrf.mxu0 }
 0x55a   :  { %v2094_v18 = vadd.f32 %v8983_v2, %v2093_v13 }
 0x55b   :  { %v6868_v50 = vpop.f32.mrf.mxu0  ;;  %v8989_v57 = vpop.xlane.xlu0 %3278 }
 0x55c   :  { %v2487_v40 = vadd.f32 %v2471_v0, %v2094_v18  ;;  %v8996_v51 = vpop.xlane.xlu1 %3281 }
 0x55d   :  { %v2096_v55 = vpop.f32.mrf.mxu0 }
 0x55e   :  { %v2505_v45 = vsub.f32 %v2487_v40, %v8987_v27  ;;  %v2097_v33 = vadd.f32 %v8994_v29, %v2096_v55 }
 0x55f   :  { %v6869_v60 = vpop.f32.mrf.mxu0  ;;  %v9000_v20 = vpop.xlane.xlu0 %3429 }
 0x560   :  { %v2521_v59 = vmax.f32 %v2505_v45, -60.0  ;;  %v2488_v46 = vadd.f32 %v2472_v9, %v2097_v33  ;;  %v9002_v15 = vpop.xlane.xlu1 %3432  ;;  %v2479_v9 = vld [vmem:[#allocation7 + $0x40] sm:$0xff] }
 0x561   :  { %v2199_v7 = vpop.f32.mrf.mxu0 }
 0x562   :  { %v2537_v23 = vmul.f32 1.442695, %v2521_v59  ;;  %v2506_v48 = vsub.f32 %v2488_v46, %v8987_v27  ;;  %v2200_v37 = vadd.f32 %v8983_v2, %v2199_v7 }
 0x563   :  { %v6880_v42 = vpop.f32.mrf.mxu0  ;;  %v9005_v56 = vpop.xlane.xlu0 %3435 }
 0x564   :  { %7413 = vpow2.f32 %v2537_v23  ;;  %v2522_v41 = vmax.f32 %v2506_v48, -60.0  ;;  %v9007_v4 = vpop.xlane.xlu1 %3438  ;;  %v2491_v31 = vadd.f32 %v2475_v25, %v2200_v37  ;;  %v2480_v25 = vld [vmem:[#allocation7 + $0x48] sm:$0xff] }
 0x565   :  { %v2202_v24 = vpop.f32.mrf.mxu0 }
 0x566   :  { %v2539_v10 = vmul.f32 1.442695, %v2522_v41  ;;  %v2203_v36 = vadd.f32 %v8994_v29, %v2202_v24  ;;  %v2509_v47 = vsub.f32 %v2491_v31, %v8987_v27 }
 0x567   :  { %v1586_v5 = vpop.f32.mrf.mxu1  ;;  %v6881_v26 = vpop.f32.mrf.mxu0 }
 0x568   :  { %7415 = vpow2.f32 %v2539_v10  ;;  %v6550_v38 = vpack.c.bf16 %v1586_v5, %v1586_v5  ;;  %v9010_v35 = vpop.xlane.xlu0 %3284  ;;  %v9012_v8 = vpop.xlane.xlu1 %3287  ;;  %v2492_v13 = vadd.f32 %v2476_v39, %v2203_v36  ;;  %v2525_v59 = vmax.f32 %v2509_v47, -60.0  ;;  %v2474_v10 = vld [vmem:[#allocation7 + $0x18] sm:$0xff] }
 0x569   :  { %v6862_v61 = vpop.f32.mrf.mxu1  ;;  %v2305_v53 = vpop.f32.mrf.mxu0 }
 0x56a   :  { %1672 = vst.msk [vmem:[#allocation3 + $0x38] sm:$0xf] %vm1657_vm5, %v6550_v38  ;;  %v2306_v0 = vadd.f32 %v8983_v2, %v2305_v53  ;;  %v2510_v48 = vsub.f32 %v2492_v13, %v8987_v27 }
 0x56b   :  { %v1589_v11 = vpop.f32.mrf.mxu1  ;;  %v6892_v32 = vpop.f32.mrf.mxu0 }
 0x56c   :  { %v6551_v43 = vpack.c.bf16 %v1589_v11, %v1589_v11  ;;  %v9016_v63 = vpop.xlane.xlu0 %3290  ;;  %v9018_v6 = vpop.xlane.xlu1 %3293  ;;  %v2495_v42 = vadd.f32 %v2479_v9, %v2306_v0  ;;  %v2545_v11 = vmul.f32 1.442695, %v2525_v59 }
 0x56d   :  { %v6863_v30 = vpop.f32.mrf.mxu1  ;;  %v2308_v14 = vpop.f32.mrf.mxu0 }
 0x56e   :  { %1673 = vst.msk [vmem:[#allocation3 + $0x3c] sm:$0xf] %vm1657_vm5, %v6551_v43  ;;  %v2309_v41 = vadd.f32 %v8994_v29, %v2308_v14  ;;  %v2526_v30 = vmax.f32 %v2510_v48, -60.0  ;;  %v2513_v14 = vsub.f32 %v2495_v42, %v8987_v27 }
 0x56f   :  { %v2146_v12 = vpop.f32.mrf.mxu1  ;;  %v6893_v58 = vpop.f32.mrf.mxu0 }
 0x570   :  { %v2147_v18 = vadd.f32 %v8983_v2, %v2146_v12  ;;  %v9024_v50 = vpop.xlane.xlu0 %3441  ;;  %v9026_v40 = vpop.xlane.xlu1 %3444  ;;  %v2496_v47 = vadd.f32 %v2480_v25, %v2309_v41  ;;  %v2547_v48 = vmul.f32 1.442695, %v2526_v30  ;;  %v2529_v42 = vmax.f32 %v2513_v14, -60.0  ;;  %v2481_v30 = vld [vmem:[#allocation7 + $0x50] sm:$0xff] }
 0x571   :  { %v9028_v55 = vpop.eup %7413  ;;  %v6874_v45 = vpop.f32.mrf.mxu1 }
 0x572   :  { %v2411_v33 = vpop.f32.mrf.mxu0  ;;  %v2489_v60 = vadd.f32 %v2473_v19, %v2147_v18  ;;  %v2569_v23 = vsel %vm1112_vm4, %v9028_v55, 0.0  ;;  %v2477_v19 = vld [vmem:[#allocation7 + $0x30] sm:$0xff]  ;;  %v2514_v41 = vsub.f32 %v2496_v47, %v8987_v27  ;;  %v2553_v14 = vmul.f32 1.442695, %v2529_v42 }
 0x573   :  { %v2149_v46 = vpop.f32.mrf.mxu1  ;;  %2570 = vadd.xlane.f32.xlu0 %v2569_v23  ;;  %v2412_v0 = vadd.f32 %v8983_v2, %v2411_v33  ;;  %v2478_v23 = vld [vmem:[#allocation7 + $0x38] sm:$0xff] }
 0x574   :  { %v6904_v7 = vpop.f32.mrf.mxu0  ;;  %v2507_v24 = vsub.f32 %v2489_v60, %v8987_v27  ;;  %v9035_v37 = vpop.xlane.xlu0 %3447  ;;  %v2150_v38 = vadd.f32 %v8994_v29, %v2149_v46  ;;  %v2483_v60 = vld [vmem:[#allocation7 + $0x60] sm:$0xff] }
 0x575   :  { %v9037_v5 = vpop.xlane.xlu1 %3450  ;;  %v9039_v26 = vpop.eup %7415  ;;  %v2499_v25 = vadd.f32 %v2483_v60, %v2412_v0 }
 0x576   :  { %v6875_v61 = vpop.f32.mrf.mxu1  ;;  %v2414_v53 = vpop.f32.mrf.mxu0  ;;  %v2523_v31 = vmax.f32 %v2507_v24, -60.0  ;;  %v2490_v32 = vadd.f32 %v2474_v10, %v2150_v38  ;;  %v2572_v39 = vsel %vm1112_vm4, %v9039_v26, 0.0 }
 0x577   :  { %v2415_v61 = vadd.f32 %v8994_v29, %v2414_v53  ;;  %v2517_v53 = vsub.f32 %v2499_v25, %v8987_v27 }
 0x578   :  { %v2252_v36 = vpop.f32.mrf.mxu1  ;;  %v6905_v43 = vpop.f32.mrf.mxu0  ;;  %v2541_v12 = vmul.f32 1.442695, %v2523_v31  ;;  %v2508_v18 = vsub.f32 %v2490_v32, %v8987_v27  ;;  %v2484_v32 = vld [vmem:[#allocation7 + $0x68] sm:$0xff] }
 0x579   :  { %v9045_v58 = vpop.xlane.xlu0 %3296  ;;  %v9047_v13 = vpop.xlane.xlu1 %3299  ;;  %2573 = vadd.xlane.f32.xlu1 %v2572_v39  ;;  %v2253_v9 = vadd.f32 %v8983_v2, %v2252_v36  ;;  %v2533_v25 = vmax.f32 %v2517_v53, -60.0 }
 0x57a   :  { %v6886_v45 = vpop.f32.mrf.mxu1  ;;  %7417 = vpow2.f32 %v2541_v12  ;;  %v2524_v59 = vmax.f32 %v2508_v18, -60.0  ;;  %v2530_v18 = vmax.f32 %v2514_v41, -60.0 }
 0x57b   :  { %7419 = vpow2.f32 %v2545_v11  ;;  %v2493_v46 = vadd.f32 %v2477_v19, %v2253_v9  ;;  %v2500_v9 = vadd.f32 %v2484_v32, %v2415_v61 }
 0x57c   :  { %v2255_v7 = vpop.f32.mrf.mxu1  ;;  %v2543_v38 = vmul.f32 1.442695, %v2524_v59 }
 0x57d   :  { %v2256_v24 = vadd.f32 %v8994_v29, %v2255_v7  ;;  %v9054_v10 = vpop.xlane.xlu0 %3302  ;;  %v9056_v33 = vpop.xlane.xlu1 %3305  ;;  %v2511_v31 = vsub.f32 %v2493_v46, %v8987_v27 }
 0x57e   :  { %v6887_v11 = vpop.f32.mrf.mxu1  ;;  %7421 = vpow2.f32 %v2543_v38  ;;  %v2518_v38 = vsub.f32 %v2500_v9, %v8987_v27 }
 0x57f   :  { %v2494_v36 = vadd.f32 %v2478_v23, %v2256_v24  ;;  %v2527_v43 = vmax.f32 %v2511_v31, -60.0  ;;  %7423 = vpow2.f32 %v2547_v48  ;;  %v2482_v23 = vld [vmem:[#allocation7 + $0x58] sm:$0xff]  ;;  %v2555_v24 = vmul.f32 1.442695, %v2530_v18 }
 0x580   :  { %v2358_v39 = vpop.f32.mrf.mxu1 }
 0x581   :  { %v2512_v47 = vsub.f32 %v2494_v36, %v8987_v27  ;;  %v2359_v12 = vadd.f32 %v8983_v2, %v2358_v39  ;;  %v2667_v19 = vpop.permute.xlu0 %2666  ;;  %v2715_v0 = vpop.permute.xlu1 %2714  ;;  %v2549_v45 = vmul.f32 1.442695, %v2527_v43  ;;  %v2485_v43 = vld [vmem:[#allocation7 + $0x70] sm:$0xff] }
 0x582   :  { %6913 = vmatpush3.bf16.msra.mxu0 %v2667_v19  ;;  %6919 = vmatpush3.bf16.msra.mxu1 %v2715_v0  ;;  %v6898_v60 = vpop.f32.mrf.mxu1  ;;  %v2561_v19 = vmul.f32 1.442695, %v2533_v25  ;;  %v2534_v0 = vmax.f32 %v2518_v38, -60.0 }
 0x583   :  { %v2528_v59 = vmax.f32 %v2512_v47, -60.0  ;;  %v2497_v46 = vadd.f32 %v2481_v30, %v2359_v12  ;;  %6924 = vmatprep.subr.bf16.mxu0 %v10345_v52  ;;  %6930 = vmatprep.subr.bf16.mxu1 %v10345_v52  ;;  %7425 = vpow2.f32 %v2549_v45  ;;  %v2486_v60 = vld [vmem:[#allocation7 + $0x78] sm:$0xff] }
 0x584   :  { %v2361_v7 = vpop.f32.mrf.mxu1  ;;  %7427 = vpow2.f32 %v2553_v14 }
 0x585   :  { %v2551_v48 = vmul.f32 1.442695, %v2528_v59  ;;  %v2515_v42 = vsub.f32 %v2497_v46, %v8987_v27  ;;  %v2362_v41 = vadd.f32 %v8994_v29, %v2361_v7 }
 0x586   :  { %v6899_v61 = vpop.f32.mrf.mxu1 }
 0x587   :  { %7429 = vpow2.f32 %v2551_v48  ;;  %v2531_v31 = vmax.f32 %v2515_v42, -60.0  ;;  %v2498_v11 = vadd.f32 %v2482_v23, %v2362_v41  ;;  %v9068_v32 = vpop.eup %7417  ;;  %v2563_v42 = vmul.f32 1.442695, %v2534_v0 }
 0x588   :  { %v2464_v36 = vpop.f32.mrf.mxu1  ;;  %v9070_v39 = vpop.eup %7419  ;;  %v2575_v14 = vsel %vm1112_vm4, %v9068_v32, 0.0  ;;  %7431 = vpow2.f32 %v2555_v24 }
 0x589   :  { %v2557_v30 = vmul.f32 1.442695, %v2531_v31  ;;  %v2516_v47 = vsub.f32 %v2498_v11, %v8987_v27  ;;  %v2465_v12 = vadd.f32 %v8983_v2, %v2464_v36  ;;  %2576 = vadd.xlane.f32.xlu0 %v2575_v14  ;;  %v2581_v23 = vsel %vm1112_vm4, %v9070_v39, 0.0 }
 0x58a   :  { %v6910_v18 = vpop.f32.mrf.mxu1 }
 0x58b   :  { %7433 = vpow2.f32 %v2557_v30  ;;  %v2532_v53 = vmax.f32 %v2516_v47, -60.0  ;;  %v2501_v9 = vadd.f32 %v2485_v43, %v2465_v12  ;;  %v9076_v59 = vpop.eup %7421  ;;  %v3454_v18 = vmax.f32 %v8953_v54, 1e-24 }
 0x58c   :  { %v2467_v45 = vpop.f32.mrf.mxu1  ;;  %v9082_v48 = vpop.eup %7423  ;;  %7435 = vpow2.f32 %v2561_v19  ;;  %v2578_v24 = vsel %vm1112_vm4, %v9076_v59, 0.0  ;;  %v3309_v54 = vmax.f32 %v8961_v17, 1e-24  ;;  %v3456_v17 = vmax.f32 %v8965_v22, 1e-24 }
 0x58d   :  { %v2559_v46 = vmul.f32 1.442695, %v2532_v53  ;;  %v2519_v7 = vsub.f32 %v2501_v9, %v8987_v27  ;;  %v2468_v2 = vadd.f32 %v8994_v29, %v2467_v45  ;;  %2582 = vadd.xlane.f32.xlu0 %v2581_v23  ;;  %2579 = vadd.xlane.f32.xlu1 %v2578_v24  ;;  %v2584_v36 = vsel %vm1112_vm4, %v9082_v48, 0.0 }
 0x58e   :  { %v6911_v41 = vpop.f32.mrf.mxu1  ;;  %v3307_v53 = vmax.f32 %v8957_v16, 1e-24  ;;  %v3308_v45 = vmax.f32 %v8959_v28, 1e-24  ;;  %v3310_v16 = vmax.f32 %v8963_v1, 1e-24 }
 0x58f   :  { %7437 = vpow2.f32 %v2559_v46  ;;  %v2535_v25 = vmax.f32 %v2519_v7, -60.0  ;;  %v2502_v38 = vadd.f32 %v2486_v60, %v2468_v2  ;;  %v3455_v7 = vmax.f32 %v8955_v62, 1e-24 }
 0x590   :  { %v9086_v61 = vpop.eup %7425  ;;  %7439 = vpow2.f32 %v2563_v42  ;;  %v3311_v1 = vmax.f32 %v8976_v44, 1e-24  ;;  %v3312_v24 = vmax.f32 %v8978_v21, 1e-24  ;;  %v3458_v22 = vmax.f32 %v8971_v34, 1e-24 }
 0x591   :  { %v2565_v31 = vmul.f32 1.442695, %v2535_v25  ;;  %v2520_v29 = vsub.f32 %v2502_v38, %v8987_v27  ;;  %v2587_v11 = vsel %vm1112_vm4, %v9086_v61, 0.0  ;;  %v9093_v43 = vpop.eup %7427  ;;  %2585 = vadd.xlane.f32.xlu1 %v2584_v36  ;;  %v3457_v38 = vmax.f32 %v8967_v3, 1e-24 }
 0x592   :  { %2588 = vadd.xlane.f32.xlu0 %v2587_v11  ;;  %v2593_v27 = vsel %vm1112_vm4, %v9093_v43, 0.0  ;;  %v3313_v44 = vmax.f32 %v8989_v57, 1e-24  ;;  %v3459_v3 = vmax.f32 %v8973_v49, 1e-24 }
 0x593   :  { %7441 = vpow2.f32 %v2565_v31  ;;  %v2536_v30 = vmax.f32 %v2520_v29, -60.0  ;;  %v3314_v29 = vmax.f32 %v8996_v51, 1e-24  ;;  %v3315_v11 = vmax.f32 %v9010_v35, 1e-24 }
 0x594   :  { %v9095_v47 = vpop.eup %7429  ;;  %v3316_v34 = vmax.f32 %v9012_v8, 1e-24  ;;  %v3460_v57 = vmax.f32 %v9000_v20, 1e-24  ;;  %v9150_v51 = vstv %s9135_s11  ;;  %v3462_v49 = vmax.f32 %v9005_v56, 1e-24 }
 0x595   :  { %v2567_v12 = vmul.f32 1.442695, %v2536_v30  ;;  %v2590_v14 = vsel %vm1112_vm4, %v9095_v47, 0.0  ;;  %v9101_v19 = vpop.eup %7431  ;;  %v3317_v35 = vmax.f32 %v9016_v63, 1e-24 }
 0x596   :  { %2594 = vadd.xlane.f32.xlu0 %v2593_v27  ;;  %2591 = vadd.xlane.f32.xlu1 %v2590_v14  ;;  %v2596_v60 = vsel %vm1112_vm4, %v9101_v19, 0.0  ;;  %v3461_v14 = vmax.f32 %v9002_v15, 1e-24  ;;  %v3318_v8 = vmax.f32 %v9018_v6, 1e-24 }
 0x597   :  { %7443 = vpow2.f32 %v2567_v12  ;;  %v3463_v15 = vmax.f32 %v9007_v4, 1e-24 }
 0x598   :  { %v9103_v0 = vpop.eup %7433  ;;  %7445 = vrsqrt.f32 %v3454_v18 }
 0x599   :  { %v2599_v9 = vsel %vm1112_vm4, %v9103_v0, 0.0  ;;  %v9112_v46 = vpop.eup %7435  ;;  %7447 = vrsqrt.f32 %v3307_v53 }
 0x59a   :  { %2600 = vadd.xlane.f32.xlu0 %v2599_v9  ;;  %2597 = vadd.xlane.f32.xlu1 %v2596_v60  ;;  %7449 = vrsqrt.f32 %v3308_v45  ;;  %v2605_v23 = vsel %vm1112_vm4, %v9112_v46, 0.0  ;;  %v9158_v45 = vld [vmem:[#allocation2 + $0x10] sm:$0xff]  ;;  %v3464_v60 = vmax.f32 %v9024_v50, 1e-24 }
 0x59b   :  { %7451 = vrsqrt.f32 %v3455_v7  ;;  %v9162_v7 = vld [vmem:[#allocation2 + $0x18] sm:$0xff] }
 0x59c   :  { %v9115_v2 = vpop.eup %7437  ;;  %7453 = vrsqrt.f32 %v3309_v54 }
 0x59d   :  { %v2602_v28 = vsel %vm1112_vm4, %v9115_v2, 0.0  ;;  %v9123_v42 = vpop.eup %7439  ;;  %7455 = vrsqrt.f32 %v3310_v16  ;;  %v3319_v16 = vmax.f32 %v9045_v58, 1e-24  ;;  %v3466_v58 = vmax.f32 %v9035_v37, 1e-24 }
 0x59e   :  { %2606 = vadd.xlane.f32.xlu0 %v2605_v23  ;;  %2603 = vadd.xlane.f32.xlu1 %v2602_v28  ;;  %v2608_v25 = vsel %vm1112_vm4, %v9123_v42, 0.0  ;;  %7457 = vrsqrt.f32 %v3456_v17  ;;  %v3320_v23 = vmax.f32 %v9047_v13, 1e-24  ;;  %v9169_v17 = vld [vmem:[#allocation2] sm:$0xff]  ;;  %v3322_v37 = vmax.f32 %v9056_v33, 1e-24 }
 0x59f   :  { %7459 = vrsqrt.f32 %v3311_v1  ;;  %v9172_v1 = vld [vmem:[#allocation2 + $0x8] sm:$0xff] }
 0x5a0   :  { %v9125_v62 = vpop.eup %7441  ;;  %7461 = vrsqrt.f32 %v3312_v24 }
 0x5a1   :  { %v2611_v41 = vsel %vm1112_vm4, %v9125_v62, 0.0  ;;  %7463 = vrsqrt.f32 %v3457_v38 }
 0x5a2   :  { %2612 = vadd.xlane.f32.xlu0 %v2611_v41  ;;  %2609 = vadd.xlane.f32.xlu1 %v2608_v25  ;;  %7465 = vrsqrt.f32 %v3458_v22  ;;  %v3465_v25 = vmax.f32 %v9026_v40, 1e-24 }
 0x5a3   :  { %7467 = vrsqrt.f32 %v3313_v44 }
 0x5a4   :  { %v9137_v31 = vpop.eup %7443  ;;  %7469 = vrsqrt.f32 %v3314_v29 }
 0x5a5   :  { %v2614_v21 = vsel %vm1112_vm4, %v9137_v31, 0.0  ;;  %v7446_v36 = vpop.eup %7445  ;;  %7471 = vrsqrt.f32 %v3459_v3 }
 0x5a6   :  { %2615 = vadd.xlane.f32.xlu1 %v2614_v21  ;;  %v7448_v30 = vpop.eup %7447  ;;  %7473 = vrsqrt.f32 %v3315_v11  ;;  %v3510_v56 = vmul.f32 %v9158_v45, %v7446_v36  ;;  %v3467_v21 = vmax.f32 %v9037_v5, 1e-24  ;;  %v3321_v36 = vmax.f32 %v9054_v10, 1e-24 }
 0x5a7   :  { %v7450_v12 = vpop.eup %7449  ;;  %7475 = vrsqrt.f32 %v3316_v34  ;;  %v3340_v20 = vmul.f32 %v7448_v30, %v9150_v51 }
 0x5a8   :  { %v7452_v27 = vpop.eup %7451  ;;  %7477 = vrsqrt.f32 %v3460_v57  ;;  %v3341_v9 = vmul.f32 %v7450_v12, %v9150_v51  ;;  %v9184_v57 = vld [vmem:[#allocation2 + $0x20] sm:$0xff]  ;;  %v9187_v12 = vld [vmem:[#allocation2 + $0x28] sm:$0xff] }
 0x5a9   :  { %v7454_v18 = vpop.eup %7453  ;;  %7479 = vrsqrt.f32 %v3461_v14  ;;  %v3511_v63 = vmul.f32 %v9162_v7, %v7452_v27  ;;  %v3484_v50 = vmul.f32 %v9169_v17, %v3340_v20 }
 0x5aa   :  { %v7456_v53 = vpop.eup %7455  ;;  %7481 = vrsqrt.f32 %v3462_v49  ;;  %v3342_v6 = vmul.f32 %v7454_v18, %v9150_v51  ;;  %v3485_v41 = vmul.f32 %v9172_v1, %v3341_v9 }
 0x5ab   :  { %v7458_v54 = vpop.eup %7457  ;;  %7483 = vrsqrt.f32 %v3317_v35  ;;  %v3343_v28 = vmul.f32 %v7456_v53, %v9150_v51  ;;  %v3525_v22 = vpack.c.bf16 %v3511_v63, %v3510_v56 }
 0x5ac   :  { %v7460_v4 = vpop.eup %7459  ;;  %7485 = vrsqrt.f32 %v3318_v8  ;;  %v3486_v44 = vmul.f32 %v9158_v45, %v3342_v6  ;;  %v3500_v40 = vpack.c.bf16 %v3485_v41, %v3484_v50  ;;  %v3512_v5 = vmul.f32 %v9184_v57, %v7458_v54 }
 0x5ad   :  { %v7462_v24 = vpop.eup %7461  ;;  %7487 = vrsqrt.f32 %v3463_v15  ;;  %v3487_v29 = vmul.f32 %v9162_v7, %v3343_v28  ;;  %v3344_v3 = vmul.f32 %v7460_v4, %v9150_v51  ;;  %v9196_v15 = vld [vmem:[#allocation2 + $0x30] sm:$0xff] }
 0x5ae   :  { %v7464_v38 = vpop.eup %7463  ;;  %7489 = vrsqrt.f32 %v3464_v60  ;;  %v3345_v34 = vmul.f32 %v7462_v24, %v9150_v51  ;;  %v9199_v60 = vld [vmem:[#allocation2 + $0x38] sm:$0xff] }
 0x5af   :  { %v7466_v13 = vpop.eup %7465  ;;  %7491 = vrsqrt.f32 %v3319_v16  ;;  %v3513_v14 = vmul.f32 %v9187_v12, %v7464_v38  ;;  %v3501_v49 = vpack.c.bf16 %v3487_v29, %v3486_v44  ;;  %v3488_v18 = vmul.f32 %v9184_v57, %v3344_v3  ;;  %v9208_v38 = vld [vmem:[#allocation2 + $0x40] sm:$0xff] }
 0x5b0   :  { %v7468_v11 = vpop.eup %7467  ;;  %7493 = vrsqrt.f32 %v3320_v23  ;;  %v3489_v35 = vmul.f32 %v9187_v12, %v3345_v34  ;;  %v3514_v56 = vmul.f32 %v9196_v15, %v7466_v13 }
 0x5b1   :  { %v7470_v30 = vpop.eup %7469  ;;  %7495 = vrsqrt.f32 %v3465_v25  ;;  %v3346_v53 = vmul.f32 %v7468_v11, %v9150_v51  ;;  %v3526_v9 = vpack.c.bf16 %v3513_v14, %v3512_v5  ;;  %v9220_v5 = vld [vmem:[#allocation2 + $0x50] sm:$0xff] }
 0x5b2   :  { %v7472_v27 = vpop.eup %7471  ;;  %7497 = vrsqrt.f32 %v3466_v58  ;;  %v3347_v8 = vmul.f32 %v7470_v30, %v9150_v51  ;;  %v3502_v23 = vpack.c.bf16 %v3489_v35, %v3488_v18 }
 0x5b3   :  { %v7474_v10 = vpop.eup %7473  ;;  %7499 = vrsqrt.f32 %v3467_v21  ;;  %v3515_v63 = vmul.f32 %v9199_v60, %v7472_v27  ;;  %v3490_v50 = vmul.f32 %v9196_v15, %v3346_v53  ;;  %v9223_v27 = vld [vmem:[#allocation2 + $0x58] sm:$0xff] }
 0x5b4   :  { %v7476_v33 = vpop.eup %7475  ;;  %7501 = vrsqrt.f32 %v3321_v36  ;;  %v3348_v16 = vmul.f32 %v7474_v10, %v9150_v51  ;;  %v3491_v41 = vmul.f32 %v9199_v60, %v3347_v8 }
 0x5b5   :  { %v7478_v20 = vpop.eup %7477  ;;  %7503 = vrsqrt.f32 %v3322_v37  ;;  %v3349_v28 = vmul.f32 %v7476_v33, %v9150_v51  ;;  %v3527_v25 = vpack.c.bf16 %v3515_v63, %v3514_v56 }
 0x5b6   :  { %v7480_v6 = vpop.eup %7479  ;;  %v3516_v58 = vmul.f32 %v9208_v38, %v7478_v20  ;;  %v3492_v29 = vmul.f32 %v9208_v38, %v3348_v16  ;;  %v3503_v36 = vpack.c.bf16 %v3491_v41, %v3490_v50  ;;  %v9235_v16 = vld [vmem:[#allocation2 + $0x68] sm:$0xff] }
 0x5b7   :  { %3536 = vrot.lane.b32.xlu1 %v3500_v40, %s7867_s6  ;;  %v7482_v54 = vpop.eup %7481 }
 0x5b8   :  { %3592 = vrot.lane.b32.xlu0 %v3525_v22, %s7866_s27  ;;  %v7484_v4 = vpop.eup %7483  ;;  %v9211_v22 = vld [vmem:[#allocation2 + $0x48] sm:$0xff]  ;;  %v3518_v14 = vmul.f32 %v9220_v5, %v7482_v54 }
 0x5b9   :  { %v7486_v24 = vpop.eup %7485  ;;  %v3517_v44 = vmul.f32 %v9211_v22, %v7480_v6  ;;  %v3493_v3 = vmul.f32 %v9211_v22, %v3349_v28  ;;  %v3350_v40 = vmul.f32 %v7484_v4, %v9150_v51  ;;  %v9232_v6 = vld [vmem:[#allocation2 + $0x60] sm:$0xff] }
 0x5ba   :  { %v7488_v13 = vpop.eup %7487  ;;  %v3351_v34 = vmul.f32 %v7486_v24, %v9150_v51  ;;  %v9242_v24 = vld [vmem:[#allocation2 + $0x70] sm:$0xff] }
 0x5bb   :  { %3589 = vrot.lane.b32.xlu1 %v3501_v49, %s7867_s6  ;;  %v7490_v21 = vpop.eup %7489  ;;  %v3528_v37 = vpack.c.bf16 %v3517_v44, %v3516_v58  ;;  %v3519_v10 = vmul.f32 %v9223_v27, %v7488_v13  ;;  %v3504_v33 = vpack.c.bf16 %v3493_v3, %v3492_v29  ;;  %v3494_v53 = vmul.f32 %v9220_v5, %v3350_v40  ;;  %v9245_v44 = vld [vmem:[#allocation2 + $0x78] sm:$0xff] }
 0x5bc   :  { %3645 = vrot.lane.b32.xlu0 %v3526_v9, %s7866_s27  ;;  %v7492_v11 = vpop.eup %7491  ;;  %v3495_v8 = vmul.f32 %v9223_v27, %v3351_v34  ;;  %v3520_v54 = vmul.f32 %v9232_v6, %v7490_v21 }
 0x5bd   :  { %v7494_v30 = vpop.eup %7493  ;;  %v3352_v20 = vmul.f32 %v7492_v11, %v9150_v51  ;;  %v3529_v63 = vpack.c.bf16 %v3519_v10, %v3518_v14  ;;  %v9261_v14 = vld [vmem:[#allocation2 + $0x8] sm:$0xff] }
 0x5be   :  { %v7496_v49 = vpop.eup %7495  ;;  %v3353_v9 = vmul.f32 %v7494_v30, %v9150_v51 }
 0x5bf   :  { %3642 = vrot.lane.b32.xlu1 %v3502_v23, %s7867_s6  ;;  %v7498_v18 = vpop.eup %7497  ;;  %v3521_v28 = vmul.f32 %v9235_v16, %v7496_v49  ;;  %v3505_v23 = vpack.c.bf16 %v3495_v8, %v3494_v53  ;;  %v3496_v50 = vmul.f32 %v9232_v6, %v3352_v20  ;;  %v4668_v49 = vmul.f32 %v9261_v14, %v9261_v14  ;;  %v4657_v8 = vld [vmem:[#allocation2 + $0x30] sm:$0xff]  ;;  %v4656_v20 = vld [vmem:[#allocation2 + $0x28] sm:$0xff] }
 0x5c0   :  { %3698 = vrot.lane.b32.xlu0 %v3527_v25, %s7866_s27  ;;  %v7500_v35 = vpop.eup %7499  ;;  %v3497_v41 = vmul.f32 %v9235_v16, %v3353_v9  ;;  %v3522_v25 = vmul.f32 %v9242_v24, %v7498_v18  ;;  %v4654_v18 = vld [vmem:[#allocation2 + $0x18] sm:$0xff]  ;;  %v4673_v9 = vmul.f32 %v4657_v8, %v4657_v8 }
 0x5c1   :  { %v7502_v56 = vpop.eup %7501  ;;  %v3530_v58 = vpack.c.bf16 %v3521_v28, %v3520_v54  ;;  %v3523_v13 = vmul.f32 %v9245_v44, %v7500_v35  ;;  %v4655_v35 = vld [vmem:[#allocation2 + $0x20] sm:$0xff]  ;;  %v9278_v28 = vpop.permute.xlu0 %2810  ;;  %v4666_v8 = vld [vmem:[#allocation2 + $0x78] sm:$0xff] }
 0x5c2   :  { %v7504_v4 = vpop.eup %7503  ;;  %v3354_v21 = vmul.f32 %v7502_v56, %v9150_v51  ;;  %v3506_v3 = vpack.c.bf16 %v3497_v41, %v3496_v50  ;;  %v4671_v53 = vmul.f32 %v4655_v35, %v4655_v35  ;;  %v4672_v56 = vmul.f32 %v4656_v20, %v4656_v20  ;;  %v4661_v41 = vld [vmem:[#allocation2 + $0x50] sm:$0xff] }
 0x5c3   :  { %3695 = vrot.lane.b32.xlu1 %v3503_v36, %s7867_s6  ;;  %v3355_v29 = vmul.f32 %v7504_v4, %v9150_v51  ;;  %v3531_v11 = vpack.c.bf16 %v3523_v13, %v3522_v25  ;;  %v9252_v36 = vld [vmem:[#allocation2] sm:$0xff]  ;;  %v2763_v4 = vpop.permute.xlu1 %2762  ;;  %v4660_v13 = vld [vmem:[#allocation2 + $0x48] sm:$0xff]  ;;  %v4682_v20 = vmul.f32 %v4666_v8, %v4666_v8 }
 0x5c4   :  { %3751 = vrot.lane.b32.xlu0 %v3528_v37, %s7866_s27  ;;  %v3498_v40 = vmul.f32 %v9242_v24, %v3354_v21  ;;  %v4667_v30 = vmul.f32 %v9252_v36, %v9252_v36  ;;  %v4653_v37 = vld [vmem:[#allocation2 + $0x10] sm:$0xff]  ;;  %v4677_v21 = vmul.f32 %v4661_v41, %v4661_v41 }
 0x5c5   :  { %v3499_v34 = vmul.f32 %v9245_v44, %v3355_v29  ;;  %v4669_v10 = vmul.f32 %v4653_v37, %v4653_v37  ;;  %v9282_v25 = vpop.permute.xlu0 %2906  ;;  %v4676_v29 = vmul.f32 %v4660_v13, %v4660_v13  ;;  %v4663_v37 = vld [vmem:[#allocation2 + $0x60] sm:$0xff] }
 0x5c7   :  { %3748 = vrot.lane.b32.xlu1 %v3504_v33, %s7867_s6  ;;  %v3507_v51 = vpack.c.bf16 %v3499_v34, %v3498_v40  ;;  %v4670_v33 = vmul.f32 %v4654_v18, %v4654_v18  ;;  %v4665_v18 = vld [vmem:[#allocation2 + $0x70] sm:$0xff] }
 0x5c8   :  { %3804 = vrot.lane.b32.xlu0 %v3529_v63, %s7866_s27  ;;  %v4658_v63 = vld [vmem:[#allocation2 + $0x38] sm:$0xff]  ;;  %v4681_v35 = vmul.f32 %v4665_v18, %v4665_v18 }
 0x5c9   :  { %v4674_v54 = vmul.f32 %v4658_v63, %v4658_v63 }
 0x5cb   :  { %3801 = vrot.lane.b32.xlu1 %v3505_v23, %s7867_s6  ;;  %v4659_v23 = vld [vmem:[#allocation2 + $0x40] sm:$0xff] }
 0x5cc   :  { %3857 = vrot.lane.b32.xlu0 %v3530_v58, %s7866_s27  ;;  %v4675_v50 = vmul.f32 %v4659_v23, %v4659_v23  ;;  %v9284_v58 = vpop.permute.xlu1 %2858 }
 0x5cf   :  { %3854 = vrot.lane.b32.xlu1 %v3506_v3, %s7867_s6  ;;  %v4662_v3 = vld [vmem:[#allocation2 + $0x58] sm:$0xff] }
 0x5d0   :  { %3910 = vrot.lane.b32.xlu0 %v3531_v11, %s7866_s27  ;;  %v9290_v11 = vpop.permute.xlu0 %3002  ;;  %v9292_v40 = vpop.permute.xlu1 %2954  ;;  %v4678_v34 = vmul.f32 %v4662_v3, %v4662_v3 }
 0x5d3   :  { %4844 = vrot.lane.b32.xlu1 %v4667_v30, %s7869_s12 }
 0x5d4   :  { %3907 = vrot.lane.b32.xlu0 %v3507_v51, %s7867_s6 }
 0x5d7   :  { %4848 = vrot.lane.b32.xlu1 %v4669_v10, %s7869_s12 }
 0x5d8   :  { %4846 = vrot.lane.b32.xlu0 %v4668_v49, %s7869_s12 }
 0x5db   :  { %4699 = vrot.lane.b32.xlu1 %v4667_v30, %s7870_s3  ;;  %v9296_v30 = vpop.permute.xlu1 %3539 }
 0x5dc   :  { %4850 = vrot.lane.b32.xlu0 %v4670_v33, %s7869_s12 }
 0x5df   :  { %4703 = vrot.lane.b32.xlu1 %v4669_v10, %s7870_s3 }
 0x5e0   :  { %4701 = vrot.lane.b32.xlu0 %v4668_v49, %s7870_s3  ;;  %v4679_v49 = vmul.f32 %v4663_v37, %v4663_v37 }
 0x5e3   :  { %4852 = vrot.lane.b32.xlu1 %v4671_v53, %s7869_s12 }
 0x5e4   :  { %4705 = vrot.lane.b32.xlu0 %v4670_v33, %s7870_s3  ;;  %v4664_v33 = vld [vmem:[#allocation2 + $0x68] sm:$0xff] }
 0x5e7   :  { %4856 = vrot.lane.b32.xlu1 %v4673_v9, %s7869_s12 }
 0x5e8   :  { %4854 = vrot.lane.b32.xlu0 %v4672_v56, %s7869_s12 }
 0x5eb   :  { %4707 = vrot.lane.b32.xlu1 %v4671_v53, %s7870_s3  ;;  %v4680_v53 = vmul.f32 %v4664_v33, %v4664_v33 }
 0x5ec   :  { %4858 = vrot.lane.b32.xlu0 %v4674_v54, %s7869_s12 }
 0x5ef   :  { %4711 = vrot.lane.b32.xlu1 %v4673_v9, %s7870_s3 }
 0x5f0   :  { %4709 = vrot.lane.b32.xlu0 %v4672_v56, %s7870_s3 }
 0x5f3   :  { %4860 = vrot.lane.b32.xlu1 %v4675_v50, %s7869_s12 }
 0x5f4   :  { %4713 = vrot.lane.b32.xlu0 %v4674_v54, %s7870_s3 }
 0x5f7   :  { %4864 = vrot.lane.b32.xlu1 %v4677_v21, %s7869_s12 }
 0x5f8   :  { %4862 = vrot.lane.b32.xlu0 %v4676_v29, %s7869_s12 }
 0x5fb   :  { %4715 = vrot.lane.b32.xlu1 %v4675_v50, %s7870_s3 }
 0x5fc   :  { %4866 = vrot.lane.b32.xlu0 %v4678_v34, %s7869_s12  ;;  %v2571_v51 = vpop.xlane.xlu0 %2570 }
 0x5fd   :  { %7505 = vrcp.f32 %v2571_v51 }
 0x5ff   :  { %4719 = vrot.lane.b32.xlu1 %v4677_v21, %s7870_s3 }
 0x600   :  { %4717 = vrot.lane.b32.xlu0 %v4676_v29, %s7870_s3 }
 0x602   :  { %v2574_v10 = vpop.xlane.xlu1 %2573 }
 0x603   :  { %7507 = vrcp.f32 %v2574_v10  ;;  %4868 = vrot.lane.b32.xlu1 %v4679_v49, %s7869_s12 }
 0x604   :  { %4721 = vrot.lane.b32.xlu0 %v4678_v34, %s7870_s3 }
 0x607   :  { %4872 = vrot.lane.b32.xlu1 %v4681_v35, %s7869_s12 }
 0x608   :  { %4870 = vrot.lane.b32.xlu0 %v4680_v53, %s7869_s12 }
 0x60a   :  { %v7506_v9 = vpop.eup %7505 }
 0x60b   :  { %4723 = vrot.lane.b32.xlu1 %v4679_v49, %s7870_s3  ;;  %v2633_v63 = vmul.f32 %v7506_v9, %v9028_v55 }
 0x60c   :  { %4874 = vrot.lane.b32.xlu0 %v4682_v20, %s7869_s12 }
 0x60f   :  { %4727 = vrot.lane.b32.xlu1 %v4681_v35, %s7870_s3 }
 0x610   :  { %v7508_v56 = vpop.eup %7507  ;;  %4725 = vrot.lane.b32.xlu0 %v4680_v53, %s7870_s3 }
 0x611   :  { %v2634_v54 = vmul.f32 %v7508_v56, %v9039_v26 }
 0x612   :  { %v2577_v23 = vpop.xlane.xlu0 %2576 }
 0x613   :  { %v2649_v50 = vpack.c.bf16 %v2634_v54, %v2633_v63  ;;  %7509 = vrcp.f32 %v2577_v23 }
 0x614   :  { %4729 = vrot.lane.b32.xlu0 %v4682_v20, %s7870_s3 }
 0x615   :  { %6915 = vmatmul.mubr.msk.bf16.vlgmr.msra.gmra.mxu0 %vm1112_vm4, %v2649_v50 }
 0x616   :  { %6925 = vmatpush3.bf16.msra.mxu0 %v2763_v4  ;;  %6926 = vmatprep.mubr.msk.bf16.mxu0 %vm7863_vm3, %v10345_v52  ;;  %v2583_v41 = vpop.xlane.xlu0 %2582  ;;  %v2580_v13 = vpop.xlane.xlu1 %2579 }
 0x617   :  { %6936 = vmatprep.subr.bf16.mxu0 %v10345_v52  ;;  %7511 = vrcp.f32 %v2580_v13 }
 0x618   :  { %7513 = vrcp.f32 %v2583_v41 }
 0x61a   :  { %v2586_v21 = vpop.xlane.xlu1 %2585 }
 0x61b   :  { %v2589_v55 = vpop.xlane.xlu0 %2588  ;;  %7515 = vrcp.f32 %v2586_v21 }
 0x61c   :  { %7517 = vrcp.f32 %v2589_v55 }
 0x61f   :  { %v2595_v26 = vpop.xlane.xlu0 %2594  ;;  %v2592_v29 = vpop.xlane.xlu1 %2591 }
 0x620   :  { %7519 = vrcp.f32 %v2592_v29  ;;  %v7510_v3 = vpop.eup %7509 }
 0x621   :  { %7521 = vrcp.f32 %v2595_v26  ;;  %v2635_v37 = vmul.f32 %v7510_v3, %v9068_v32 }
 0x623   :  { %v2601_v4 = vpop.xlane.xlu0 %2600  ;;  %v2598_v34 = vpop.xlane.xlu1 %2597 }
 0x624   :  { %v7512_v51 = vpop.eup %7511  ;;  %7523 = vrcp.f32 %v2598_v34 }
 0x625   :  { %v2636_v10 = vmul.f32 %v7512_v51, %v9076_v59  ;;  %7525 = vrcp.f32 %v2601_v4  ;;  %v7514_v33 = vpop.eup %7513 }
 0x626   :  { %v2637_v9 = vmul.f32 %v7514_v33, %v9070_v39 }
 0x627   :  { %v2607_v49 = vpop.xlane.xlu0 %2606  ;;  %v2604_v18 = vpop.xlane.xlu1 %2603  ;;  %v2650_v35 = vpack.c.bf16 %v2636_v10, %v2635_v37 }
 0x628   :  { %7527 = vrcp.f32 %v2604_v18  ;;  %v7516_v53 = vpop.eup %7515 }
 0x629   :  { %6921 = vmatmul.mubr.msk.bf16.vlgmr.msra.gmra.mxu1 %vm1112_vm4, %v2650_v35  ;;  %7529 = vrcp.f32 %v2607_v49  ;;  %v2638_v32 = vmul.f32 %v7516_v53, %v9082_v48  ;;  %v7518_v59 = vpop.eup %7517  ;;  %v3545_v35 = vsel %vm322_vm2, %v9296_v30, 0 }
 0x62a   :  { %6931 = vmatpush3.bf16.msra.mxu1 %v9278_v28  ;;  %6932 = vmatprep.mubr.msk.bf16.mxu1 %vm7863_vm3, %v10345_v52  ;;  %v2639_v23 = vmul.f32 %v7518_v59, %v9086_v61 }
 0x62b   :  { %v2613_v8 = vpop.xlane.xlu0 %2612  ;;  %v2610_v20 = vpop.xlane.xlu1 %2609  ;;  %6942 = vmatprep.subr.bf16.mxu1 %v10345_v52  ;;  %v2651_v56 = vpack.c.bf16 %v2638_v32, %v2637_v9 }
 0x62c   :  { %7531 = vrcp.f32 %v2610_v20 }
 0x62d   :  { %v7520_v63 = vpop.eup %7519  ;;  %7533 = vrcp.f32 %v2613_v8  ;;  %6927 = vmatmul.mubr.msk.bf16.vlgmr.msra.gmra.mxu0 %vm1112_vm4, %v2651_v56 }
 0x62e   :  { %v2640_v39 = vmul.f32 %v7520_v63, %v9095_v47  ;;  %v7522_v50 = vpop.eup %7521  ;;  %6937 = vmatpush3.bf16.msra.mxu0 %v9284_v58  ;;  %6938 = vmatprep.mubr.msk.bf16.mxu0 %vm7863_vm3, %v10345_v52 }
 0x62f   :  { %v3593_v54 = vpop.permute.xlu0 %3592  ;;  %v2616_v28 = vpop.xlane.xlu1 %2615  ;;  %6948 = vmatprep.subr.bf16.mxu0 %v10345_v52  ;;  %v2641_v21 = vmul.f32 %v7522_v50, %v9093_v43 }
 0x630   :  { %7535 = vrcp.f32 %v2616_v28  ;;  %v2652_v48 = vpack.c.bf16 %v2640_v39, %v2639_v23  ;;  %v3598_v53 = vsel %vm322_vm2, %v3593_v54, 0 }
 0x631   :  { %v7524_v41 = vpop.eup %7523 }
 0x632   :  { %6933 = vmatmul.mubr.msk.bf16.vlgmr.msra.gmra.mxu1 %vm1112_vm4, %v2652_v48  ;;  %v2642_v61 = vmul.f32 %v7524_v41, %v9101_v19  ;;  %v7526_v47 = vpop.eup %7525 }
 0x633   :  { %v3646_v13 = vpop.permute.xlu0 %3645  ;;  %v3537_v55 = vpop.permute.xlu1 %3536  ;;  %6943 = vmatpush3.bf16.msra.mxu1 %v9282_v25  ;;  %6944 = vmatprep.mubr.msk.bf16.mxu1 %vm7863_vm3, %v10345_v52  ;;  %v2643_v4 = vmul.f32 %v7526_v47, %v9103_v0 }
 0x634   :  { %v2653_v58 = vpack.c.bf16 %v2642_v61, %v2641_v21  ;;  %6954 = vmatprep.subr.bf16.mxu1 %v10345_v52  ;;  %v3651_v30 = vsel %vm322_vm2, %v3646_v13, 0 }
 0x635   :  { %v7528_v26 = vpop.eup %7527 }
 0x636   :  { %6939 = vmatmul.mubr.msk.bf16.vlgmr.msra.gmra.mxu0 %vm1112_vm4, %v2653_v58  ;;  %v2644_v43 = vmul.f32 %v7528_v26, %v9115_v2  ;;  %v7530_v34 = vpop.eup %7529 }
 0x637   :  { %v3699_v29 = vpop.permute.xlu0 %3698  ;;  %v3590_v3 = vpop.permute.xlu1 %3589  ;;  %6949 = vmatpush3.bf16.msra.mxu0 %v9292_v40  ;;  %6950 = vmatprep.mubr.msk.bf16.mxu0 %vm7863_vm3, %v10345_v52  ;;  %v2645_v49 = vmul.f32 %v7530_v34, %v9112_v46 }
 0x638   :  { %v2654_v19 = vpack.c.bf16 %v2644_v43, %v2643_v4  ;;  %6960 = vmatprep.subr.bf16.mxu0 %v10345_v52  ;;  %v3704_v9 = vsel %vm322_vm2, %v3699_v29, 0 }
 0x639   :  { %v7532_v25 = vpop.eup %7531 }
 0x63a   :  { %v7534_v51 = vpop.eup %7533  ;;  %6945 = vmatmul.mubr.msk.bf16.vlgmr.msra.gmra.mxu1 %vm1112_vm4, %v2654_v19  ;;  %v2646_v0 = vmul.f32 %v7532_v25, %v9123_v42 }
 0x63b   :  { %v3752_v37 = vpop.permute.xlu0 %3751  ;;  %v3643_v10 = vpop.permute.xlu1 %3642  ;;  %6955 = vmatpush3.bf16.msra.mxu1 %v9290_v11  ;;  %6956 = vmatprep.mubr.msk.bf16.mxu1 %vm7863_vm3, %v10345_v52  ;;  %v2647_v18 = vmul.f32 %v7534_v51, %v9125_v62 }
 0x63c   :  { %v2655_v40 = vpack.c.bf16 %v2646_v0, %v2645_v49  ;;  %6966 = vmatprep.subr.bf16.mxu1 %v10345_v52  ;;  %v3757_v56 = vsel %vm322_vm2, %v3752_v37, 0 }
 0x63d   :  { %v7536_v2 = vpop.eup %7535 }
 0x63e   :  { %v2648_v33 = vmul.f32 %v7536_v2, %v9137_v31  ;;  %6951 = vmatmul.mubr.msk.bf16.vlgmr.msra.gmra.mxu0 %vm1112_vm4, %v2655_v40 }
 0x63f   :  { %v3805_v46 = vpop.permute.xlu0 %3804  ;;  %v3696_v42 = vpop.permute.xlu1 %3695  ;;  %6961 = vmatpush3.bf16.xpose.msra.mxu0 %v3545_v35  ;;  %6962 = vmatprep.mubr.msk.bf16.mxu0 %vm7863_vm3, %v10345_v52 }
 0x640   :  { %v2656_v11 = vpack.c.bf16 %v2648_v33, %v2647_v18  ;;  %6972 = vmatprep.subr.bf16.mxu0 %v10345_v52  ;;  %v3810_v39 = vsel %vm322_vm2, %v3805_v46, 0 }
 0x642   :  { %6957 = vmatmul.mubr.msk.bf16.vlgmr.msra.gmra.mxu1 %vm1112_vm4, %v2656_v11 }
 0x643   :  { %v3858_v62 = vpop.permute.xlu0 %3857  ;;  %v3749_v31 = vpop.permute.xlu1 %3748  ;;  %6967 = vmatpush3.bf16.xpose.msra.mxu1 %v3598_v53  ;;  %6968 = vmatprep.mubr.msk.bf16.mxu1 %vm7863_vm3, %v10345_v52 }
 0x644   :  { %6978 = vmatprep.subr.bf16.mxu1 %v10345_v52 }
 0x646   :  { %6963 = vmatmul.mubr.msk.bf16.vlgmr.msra.gmra.mxu0 %vm322_vm2, %v3537_v55  ;;  %v3863_v55 = vsel %vm322_vm2, %v3858_v62, 0 }
 0x647   :  { %v3911_v8 = vpop.permute.xlu0 %3910  ;;  %v3802_v20 = vpop.permute.xlu1 %3801  ;;  %6973 = vmatpush3.bf16.xpose.msra.mxu0 %v3651_v30  ;;  %6974 = vmatprep.mubr.msk.bf16.mxu0 %vm7863_vm3, %v10345_v52 }
 0x648   :  { %6984 = vmatprep.subr.bf16.mxu0 %v10345_v52  ;;  %v3916_v26 = vsel %vm322_vm2, %v3911_v8, 0 }
 0x64a   :  { %6969 = vmatmul.mubr.msk.bf16.vlgmr.msra.gmra.mxu1 %vm322_vm2, %v3590_v3 }
 0x64b   :  { %v3908_v32 = vpop.permute.xlu0 %3907  ;;  %v3855_v59 = vpop.permute.xlu1 %3854  ;;  %6979 = vmatpush3.bf16.xpose.msra.mxu1 %v3704_v9  ;;  %6980 = vmatprep.mubr.msk.bf16.mxu1 %vm7863_vm3, %v10345_v52 }
 0x64c   :  { %6990 = vmatprep.subr.bf16.mxu1 %v10345_v52 }
 0x64e   :  { %6975 = vmatmul.mubr.msk.bf16.vlgmr.msra.gmra.mxu0 %vm322_vm2, %v3643_v10 }
 0x64f   :  { %v4847_v63 = vpop.permute.xlu0 %4846  ;;  %v4845_v54 = vpop.permute.xlu1 %4844  ;;  %6985 = vmatpush3.bf16.xpose.msra.mxu0 %v3757_v56  ;;  %6986 = vmatprep.mubr.msk.bf16.mxu0 %vm7863_vm3, %v10345_v52 }
 0x650   :  { %v4895_v28 = vsel %vm322_vm2, %v4847_v63, 0.0  ;;  %v4892_v23 = vsel %vm322_vm2, %v4845_v54, 0.0  ;;  %6996 = vmatprep.subr.bf16.mxu0 %v10345_v52 }
 0x651   :  { %4896 = vadd.xlane.f32.xlu0 %v4895_v28  ;;  %4893 = vadd.xlane.f32.xlu1 %v4892_v23 }
 0x652   :  { %6981 = vmatmul.mubr.msk.bf16.vlgmr.msra.gmra.mxu1 %vm322_vm2, %v3696_v42 }
 0x653   :  { %v4851_v50 = vpop.permute.xlu0 %4850  ;;  %v4849_v48 = vpop.permute.xlu1 %4848  ;;  %6991 = vmatpush3.bf16.xpose.msra.mxu1 %v3810_v39  ;;  %6992 = vmatprep.mubr.msk.bf16.mxu1 %vm7863_vm3, %v10345_v52 }
 0x654   :  { %v4901_v41 = vsel %vm322_vm2, %v4851_v50, 0.0  ;;  %v4898_v13 = vsel %vm322_vm2, %v4849_v48, 0.0  ;;  %7002 = vmatprep.subr.bf16.mxu1 %v10345_v52 }
 0x655   :  { %4902 = vadd.xlane.f32.xlu1 %v4901_v41  ;;  %4899 = vadd.xlane.f32.xlu0 %v4898_v13 }
 0x656   :  { %6987 = vmatmul.mubr.msk.bf16.vlgmr.msra.gmra.mxu0 %vm322_vm2, %v3749_v31 }
 0x657   :  { %v4702_v21 = vpop.permute.xlu0 %4701  ;;  %v4700_v61 = vpop.permute.xlu1 %4699  ;;  %6997 = vmatpush3.bf16.xpose.msra.mxu0 %v3863_v55  ;;  %6998 = vmatprep.mubr.msk.bf16.mxu0 %vm7863_vm3, %v10345_v52 }
 0x658   :  { %v4750_v47 = vsel %vm322_vm2, %v4702_v21, 0.0  ;;  %v4747_v58 = vsel %vm322_vm2, %v4700_v61, 0.0  ;;  %7008 = vmatprep.subr.bf16.mxu0 %v10345_v52 }
 0x659   :  { %4751 = vadd.xlane.f32.xlu1 %v4750_v47  ;;  %4748 = vadd.xlane.f32.xlu0 %v4747_v58 }
 0x65a   :  { %6993 = vmatmul.mubr.msk.bf16.vlgmr.msra.gmra.mxu1 %vm322_vm2, %v3802_v20 }
 0x65b   :  { %v4706_v29 = vpop.permute.xlu0 %4705  ;;  %v4704_v3 = vpop.permute.xlu1 %4703  ;;  %7003 = vmatpush3.bf16.xpose.msra.mxu1 %v3916_v26  ;;  %7004 = vmatprep.mubr.msk.bf16.mxu1 %vm7863_vm3, %v10345_v52 }
 0x65c   :  { %v4756_v4 = vsel %vm322_vm2, %v4706_v29, 0.0  ;;  %v4753_v43 = vsel %vm322_vm2, %v4704_v3, 0.0  ;;  %7014 = vmatprep.subr.bf16.mxu1 %v10345_v52 }
 0x65d   :  { %4757 = vadd.xlane.f32.xlu1 %v4756_v4  ;;  %4754 = vadd.xlane.f32.xlu0 %v4753_v43 }
 0x65e   :  { %6999 = vmatmul.mubr.msk.bf16.vlgmr.msra.gmra.mxu0 %vm322_vm2, %v3855_v59 }
 0x65f   :  { %v4855_v34 = vpop.permute.xlu0 %4854  ;;  %v4853_v19 = vpop.permute.xlu1 %4852  ;;  %7010 = vmatprep.mubr.msk.bf16.mxu0 %vm7863_vm3, %v10345_v52 }
 0x660   :  { %v4907_v25 = vsel %vm322_vm2, %v4855_v34, 0.0  ;;  %v4904_v51 = vsel %vm322_vm2, %v4853_v19, 0.0 }
 0x661   :  { %4908 = vadd.xlane.f32.xlu1 %v4907_v25  ;;  %4905 = vadd.xlane.f32.xlu0 %v4904_v51  ;;  %v4146_v51 = vpack.c.bf16 %v9162_v7, %v9158_v45  ;;  %v4151_v45 = vpack.c.bf16 %v9235_v16, %v9232_v6  ;;  %v4150_v7 = vpack.c.bf16 %v9223_v27, %v9220_v5 }
 0x662   :  { %7005 = vmatmul.mubr.msk.bf16.vlgmr.msra.gmra.mxu1 %vm322_vm2, %v3908_v32 }
 0x663   :  { %v4859_v37 = vpop.permute.xlu0 %4858  ;;  %v4857_v10 = vpop.permute.xlu1 %4856  ;;  %7016 = vmatprep.mubr.msk.bf16.mxu1 %vm7863_vm3, %v10345_v52 }
 0x664   :  { %v4913_v49 = vsel %vm322_vm2, %v4859_v37, 0.0  ;;  %v4910_v0 = vsel %vm322_vm2, %v4857_v10, 0.0  ;;  %v4147_v37 = vpack.c.bf16 %v9187_v12, %v9184_v57  ;;  %v4145_v10 = vpack.c.bf16 %v9172_v1, %v9169_v17 }
 0x665   :  { %4914 = vadd.xlane.f32.xlu1 %v4913_v49  ;;  %4911 = vadd.xlane.f32.xlu0 %v4910_v0  ;;  %v4149_v49 = vpack.c.bf16 %v9211_v22, %v9208_v38  ;;  %v4148_v0 = vpack.c.bf16 %v9199_v60, %v9196_v15  ;;  %v4152_v17 = vpack.c.bf16 %v9245_v44, %v9242_v24 }
 0x667   :  { %v4710_v2 = vpop.permute.xlu0 %4709  ;;  %v4708_v40 = vpop.permute.xlu1 %4707 }
 0x668   :  { %v4762_v18 = vsel %vm322_vm2, %v4710_v2, 0.0  ;;  %v4759_v33 = vsel %vm322_vm2, %v4708_v40, 0.0 }
 0x669   :  { %4763 = vadd.xlane.f32.xlu1 %v4762_v18  ;;  %4760 = vadd.xlane.f32.xlu0 %v4759_v33 }
 0x66b   :  { %v4714_v35 = vpop.permute.xlu0 %4713  ;;  %v4712_v46 = vpop.permute.xlu1 %4711 }
 0x66c   :  { %v4768_v42 = vsel %vm322_vm2, %v4714_v35, 0.0  ;;  %v4765_v11 = vsel %vm322_vm2, %v4712_v46, 0.0 }
 0x66d   :  { %4769 = vadd.xlane.f32.xlu1 %v4768_v42  ;;  %4766 = vadd.xlane.f32.xlu0 %v4765_v11 }
 0x66f   :  { %v4863_v53 = vpop.permute.xlu0 %4862  ;;  %v4861_v62 = vpop.permute.xlu1 %4860 }
 0x670   :  { %v4919_v31 = vsel %vm322_vm2, %v4863_v53, 0.0  ;;  %v4916_v30 = vsel %vm322_vm2, %v4861_v62, 0.0 }
 0x671   :  { %4920 = vadd.xlane.f32.xlu1 %v4919_v31  ;;  %4917 = vadd.xlane.f32.xlu0 %v4916_v30 }
 0x673   :  { %v4867_v8 = vpop.permute.xlu0 %4866  ;;  %v4865_v20 = vpop.permute.xlu1 %4864 }
 0x674   :  { %v4925_v9 = vsel %vm322_vm2, %v4867_v8, 0.0  ;;  %v4922_v32 = vsel %vm322_vm2, %v4865_v20, 0.0 }
 0x675   :  { %4926 = vadd.xlane.f32.xlu1 %v4925_v9  ;;  %4923 = vadd.xlane.f32.xlu0 %v4922_v32 }
 0x677   :  { %v4718_v59 = vpop.permute.xlu0 %4717  ;;  %v4716_v56 = vpop.permute.xlu1 %4715 }
 0x678   :  { %v4774_v63 = vsel %vm322_vm2, %v4718_v59, 0.0  ;;  %v4771_v54 = vsel %vm322_vm2, %v4716_v56, 0.0 }
 0x679   :  { %4775 = vadd.xlane.f32.xlu1 %v4774_v63  ;;  %4772 = vadd.xlane.f32.xlu0 %v4771_v54 }
 0x67b   :  { %v4722_v28 = vpop.permute.xlu0 %4721  ;;  %v4720_v23 = vpop.permute.xlu1 %4719 }
 0x67c   :  { %v4780_v39 = vsel %vm322_vm2, %v4722_v28, 0.0  ;;  %v4777_v50 = vsel %vm322_vm2, %v4720_v23, 0.0 }
 0x67d   :  { %4781 = vadd.xlane.f32.xlu1 %v4780_v39  ;;  %4778 = vadd.xlane.f32.xlu0 %v4777_v50 }
 0x67f   :  { %v4871_v48 = vpop.permute.xlu0 %4870  ;;  %v4869_v41 = vpop.permute.xlu1 %4868 }
 0x680   :  { %v4931_v13 = vsel %vm322_vm2, %v4871_v48, 0.0  ;;  %v4928_v55 = vsel %vm322_vm2, %v4869_v41, 0.0 }
 0x681   :  { %4932 = vadd.xlane.f32.xlu1 %v4931_v13  ;;  %4929 = vadd.xlane.f32.xlu0 %v4928_v55 }
 0x683   :  { %v4875_v21 = vpop.permute.xlu0 %4874  ;;  %v4873_v61 = vpop.permute.xlu1 %4872 }
 0x684   :  { %v4937_v47 = vsel %vm322_vm2, %v4875_v21, 0.0  ;;  %v4934_v58 = vsel %vm322_vm2, %v4873_v61, 0.0 }
 0x685   :  { %4938 = vadd.xlane.f32.xlu1 %v4937_v47  ;;  %4935 = vadd.xlane.f32.xlu0 %v4934_v58 }
 0x687   :  { %v4726_v26 = vpop.permute.xlu0 %4725  ;;  %v4724_v29 = vpop.permute.xlu1 %4723 }
 0x688   :  { %v4786_v3 = vsel %vm322_vm2, %v4726_v26, 0.0  ;;  %v4783_v4 = vsel %vm322_vm2, %v4724_v29, 0.0 }
 0x689   :  { %4787 = vadd.xlane.f32.xlu1 %v4786_v3  ;;  %4784 = vadd.xlane.f32.xlu0 %v4783_v4 }
 0x68b   :  { %v4730_v43 = vpop.permute.xlu0 %4729  ;;  %v4728_v34 = vpop.permute.xlu1 %4727 }
 0x68c   :  { %v4792_v19 = vsel %vm322_vm2, %v4730_v43, 0.0  ;;  %v4789_v25 = vsel %vm322_vm2, %v4728_v34, 0.0 }
 0x68d   :  { %4793 = vadd.xlane.f32.xlu1 %v4792_v19  ;;  %4790 = vadd.xlane.f32.xlu0 %v4789_v25 }
 0x69e   :  { %4202 = vrot.lane.b32.xlu1 %v4146_v51, %s7871_s14 }
 0x6a2   :  { %4250 = vrot.lane.b32.xlu1 %v4147_v37, %s7871_s14 }
 0x6a3   :  { %4154 = vrot.lane.b32.xlu0 %v4145_v10, %s7871_s14 }
 0x6a6   :  { %4346 = vrot.lane.b32.xlu1 %v4149_v49, %s7871_s14 }
 0x6a7   :  { %4298 = vrot.lane.b32.xlu0 %v4148_v0, %s7871_s14  ;;  %v9525_v0 = vld [vmem:[%s10323_s4 + $0x20] sm:$0xff] }
 0x6aa   :  { %4442 = vrot.lane.b32.xlu1 %v4151_v45, %s7871_s14 }
 0x6ab   :  { %4394 = vrot.lane.b32.xlu0 %v4150_v7, %s7871_s14 }
 0x6af   :  { %4490 = vrot.lane.b32.xlu0 %v4152_v17, %s7871_s14 }
 0x6d5   :  { %v9449_v1 = vpop.f32.mrf.mxu0 }
 0x6d7   :  { %v6916_v57 = vpop.f32.mrf.mxu0 }
 0x6d8   :  { %v3959_v57 = vld [vmem:[#allocation7] sm:$0xff] }
 0x6d9   :  { %v9451_v12 = vpop.f32.mrf.mxu0 }
 0x6da   :  { %v4897_v15 = vpop.xlane.xlu0 %4896  ;;  %v4894_v60 = vpop.xlane.xlu1 %4893 }
 0x6db   :  { %v4941_v38 = vmax.f32 %v4897_v15, 1e-24  ;;  %v4940_v22 = vmax.f32 %v4894_v60, 1e-24  ;;  %v6917_v2 = vpop.f32.mrf.mxu0 }
 0x6dd   :  { %7537 = vrsqrt.f32 %v4941_v38  ;;  %v9535_v38 = vstv %s3991_s17 }
 0x6de   :  { %7539 = vrsqrt.f32 %v4940_v22  ;;  %v9453_v6 = vpop.xlane.xlu0 %4899  ;;  %v9455_v5 = vpop.xlane.xlu1 %4902 }
 0x6e2   :  { %v9457_v27 = vpop.xlane.xlu0 %4748  ;;  %v9459_v16 = vpop.xlane.xlu1 %4751 }
 0x6e6   :  { %v9461_v24 = vpop.xlane.xlu0 %4754  ;;  %v9463_v44 = vpop.xlane.xlu1 %4757 }
 0x6e9   :  { %v9465_v18 = vpop.f32.mrf.mxu1 }
 0x6ea   :  { %v7538_v40 = vpop.eup %7537  ;;  %v9467_v33 = vpop.xlane.xlu0 %4905 }
 0x6eb   :  { %v7540_v35 = vpop.eup %7539  ;;  %v9469_v46 = vpop.xlane.xlu1 %4908  ;;  %v4997_v42 = vmul.f32 %v7538_v40, %v9261_v14  ;;  %v9540_v40 = vld [vmem:[%s10323_s4 + $0x28] sm:$0xff] }
 0x6ec   :  { %v6922_v11 = vpop.f32.mrf.mxu1  ;;  %v4996_v53 = vmul.f32 %v7540_v35, %v9252_v36 }
 0x6ed   :  { %v9477_v8 = vpop.f32.mrf.mxu0 }
 0x6ee   :  { %v9473_v62 = vpop.f32.mrf.mxu1  ;;  %v9475_v31 = vpop.xlane.xlu0 %4911  ;;  %v5012_v30 = vpack.c.bf16 %v4997_v42, %v4996_v53  ;;  %v3960_v53 = vld [vmem:[#allocation7 + $0x8] sm:$0xff] }
 0x6ef   :  { %v9479_v20 = vpop.xlane.xlu1 %4914  ;;  %v6928_v32 = vpop.f32.mrf.mxu0 }
 0x6f0   :  { %5027 = vrot.lane.b32.xlu1 %v5012_v30, %s7869_s12  ;;  %v6923_v9 = vpop.f32.mrf.mxu1 }
 0x6f1   :  { %v9484_v56 = vpop.f32.mrf.mxu0  ;;  %v3961_v9 = vld [vmem:[#allocation7 + $0x10] sm:$0xff] }
 0x6f2   :  { %v9482_v59 = vpop.xlane.xlu0 %4760  ;;  %10350 = vst [vmem:[#allocation13_spill] sm:$0xff] %v9484_v56  ;;  %v9486_v14 = vpop.f32.mrf.mxu1 }
 0x6f3   :  { %v9488_v36 = vpop.xlane.xlu1 %4763  ;;  %v6929_v63 = vpop.f32.mrf.mxu0 }
 0x6f4   :  { %v6934_v54 = vpop.f32.mrf.mxu1 }
 0x6f6   :  { %v9490_v28 = vpop.xlane.xlu0 %4766  ;;  %v9492_v23 = vpop.f32.mrf.mxu1 }
 0x6f7   :  { %10351 = vst [vmem:[#allocation19_spill] sm:$0xff] %v9492_v23  ;;  %v9494_v39 = vpop.f32.mrf.mxu0  ;;  %v9496_v50 = vpop.xlane.xlu1 %4769  ;;  %v3969_v23 = vld [vmem:[#allocation7 + $0x50] sm:$0xff] }
 0x6f8   :  { %10352 = vst [vmem:[#allocation14_spill] sm:$0xff] %v9494_v39  ;;  %v6935_v48 = vpop.f32.mrf.mxu1 }
 0x6f9   :  { %v6940_v41 = vpop.f32.mrf.mxu0 }
 0x6fa   :  { %v9498_v13 = vpop.xlane.xlu0 %4917  ;;  %v9502_v21 = vpop.f32.mrf.mxu1 }
 0x6fb   :  { %v9500_v55 = vpop.f32.mrf.mxu0  ;;  %10354 = vst [vmem:[#allocation18_spill] sm:$0xff] %v9502_v21  ;;  %v9504_v61 = vpop.xlane.xlu1 %4920  ;;  %v3967_v21 = vld [vmem:[#allocation7 + $0x40] sm:$0xff] }
 0x6fc   :  { %10353 = vst [vmem:[#allocation16_spill] sm:$0xff] %v9500_v55  ;;  %v6946_v58 = vpop.f32.mrf.mxu1 }
 0x6fd   :  { %v6941_v47 = vpop.f32.mrf.mxu0 }
 0x6fe   :  { %v9506_v26 = vpop.xlane.xlu0 %4923  ;;  %v9508_v29 = vpop.f32.mrf.mxu1 }
 0x6ff   :  { %10355 = vst [vmem:[#allocation17_spill] sm:$0xff] %v9508_v29  ;;  %v9510_v3 = vpop.f32.mrf.mxu0  ;;  %v9512_v4 = vpop.xlane.xlu1 %4926  ;;  %v3965_v29 = vld [vmem:[#allocation7 + $0x30] sm:$0xff] }
 0x700   :  { %10356 = vst [vmem:[#allocation15_spill] sm:$0xff] %v9510_v3  ;;  %v6947_v43 = vpop.f32.mrf.mxu1 }
 0x701   :  { %v6952_v34 = vpop.f32.mrf.mxu0 }
 0x702   :  { %v9514_v19 = vpop.xlane.xlu0 %4772  ;;  %v9518_v51 = vpop.f32.mrf.mxu1 }
 0x703   :  { %v9516_v25 = vpop.f32.mrf.mxu0  ;;  %10358 = vst [vmem:[#allocation21_spill] sm:$0xff] %v9518_v51  ;;  %v9520_v37 = vpop.xlane.xlu1 %4775 }
 0x704   :  { %10357 = vst [vmem:[#allocation20_spill] sm:$0xff] %v9516_v25  ;;  %v6958_v49 = vpop.f32.mrf.mxu1 }
 0x705   :  { %v6953_v10 = vpop.f32.mrf.mxu0 }
 0x706   :  { %v9528_v45 = vpop.xlane.xlu0 %4778  ;;  %v9530_v7 = vpop.f32.mrf.mxu1 }
 0x707   :  { %10359 = vst [vmem:[#allocation22_spill] sm:$0xff] %v9530_v7  ;;  %v3581_v17 = vpop.f32.mrf.mxu0  ;;  %v9533_v60 = vpop.xlane.xlu1 %4781 }
 0x708   :  { %v3582_v15 = vadd.f32 %v9525_v0, %v3581_v17  ;;  %v6959_v22 = vpop.f32.mrf.mxu1  ;;  %v3962_v17 = vld [vmem:[#allocation7 + $0x18] sm:$0xff] }
 0x709   :  { %v6964_v2 = vpop.f32.mrf.mxu0 }
 0x70a   :  { %v3975_v35 = vadd.f32 %v3959_v57, %v3582_v15  ;;  %v9542_v42 = vpop.xlane.xlu0 %4929  ;;  %v3634_v30 = vpop.f32.mrf.mxu1 }
 0x70b   :  { %v3584_v11 = vpop.f32.mrf.mxu0  ;;  %v3635_v54 = vadd.f32 %v9525_v0, %v3634_v30  ;;  %v9547_v48 = vpop.xlane.xlu1 %4932 }
 0x70c   :  { %v3993_v32 = vsub.f32 %v3975_v35, %v9535_v38  ;;  %v3585_v63 = vadd.f32 %v9540_v40, %v3584_v11  ;;  %v6970_v47 = vpop.f32.mrf.mxu1  ;;  %v3963_v11 = vld [vmem:[#allocation7 + $0x20] sm:$0xff] }
 0x70d   :  { %v6965_v41 = vpop.f32.mrf.mxu0  ;;  %v3977_v34 = vadd.f32 %v3961_v9, %v3635_v54 }
 0x70e   :  { %v4009_v58 = vmax.f32 %v3993_v32, -60.0  ;;  %v3976_v43 = vadd.f32 %v3960_v53, %v3585_v63  ;;  %v9549_v10 = vpop.xlane.xlu0 %4935  ;;  %v3637_v49 = vpop.f32.mrf.mxu1 }
 0x70f   :  { %v3687_v57 = vpop.f32.mrf.mxu0  ;;  %v3995_v2 = vsub.f32 %v3977_v34, %v9535_v38  ;;  %v3638_v35 = vadd.f32 %v9540_v40, %v3637_v49  ;;  %v9554_v30 = vpop.xlane.xlu1 %4938 }
 0x710   :  { %v4025_v15 = vmul.f32 1.442695, %v4009_v58  ;;  %v3994_v22 = vsub.f32 %v3976_v43, %v9535_v38  ;;  %v3688_v41 = vadd.f32 %v9525_v0, %v3687_v57  ;;  %v6971_v32 = vpop.f32.mrf.mxu1  ;;  %v3964_v43 = vld [vmem:[#allocation7 + $0x28] sm:$0xff] }
 0x711   :  { %v6976_v53 = vpop.f32.mrf.mxu0  ;;  %v4011_v63 = vmax.f32 %v3995_v2, -60.0  ;;  %v3978_v54 = vadd.f32 %v3962_v17, %v3638_v35 }
 0x712   :  { %7541 = vpow2.f32 %v4025_v15  ;;  %v4010_v9 = vmax.f32 %v3994_v22, -60.0  ;;  %v9557_v47 = vpop.xlane.xlu0 %4784  ;;  %v3979_v58 = vadd.f32 %v3963_v11, %v3688_v41  ;;  %v3740_v25 = vpop.f32.mrf.mxu1 }
 0x713   :  { %v3690_v7 = vpop.f32.mrf.mxu0  ;;  %v4029_v51 = vmul.f32 1.442695, %v4011_v63  ;;  %v3996_v49 = vsub.f32 %v3978_v54, %v9535_v38  ;;  %v9561_v57 = vpop.xlane.xlu1 %4787  ;;  %v3741_v22 = vadd.f32 %v9525_v0, %v3740_v25  ;;  %v3966_v63 = vld [vmem:[#allocation7 + $0x38] sm:$0xff] }
 0x714   :  { %v4027_v34 = vmul.f32 1.442695, %v4010_v9  ;;  %v3691_v3 = vadd.f32 %v9540_v40, %v3690_v7  ;;  %v3997_v15 = vsub.f32 %v3979_v58, %v9535_v38  ;;  %v6982_v2 = vpop.f32.mrf.mxu1 }
 0x715   :  { %v6977_v17 = vpop.f32.mrf.mxu0  ;;  %v4012_v35 = vmax.f32 %v3996_v49, -60.0  ;;  %v3981_v53 = vadd.f32 %v3965_v29, %v3741_v22 }
 0x716   :  { %7543 = vpow2.f32 %v4027_v34  ;;  %v3980_v11 = vadd.f32 %v3964_v43, %v3691_v3  ;;  %v9565_v41 = vpop.xlane.xlu0 %4790  ;;  %v4013_v32 = vmax.f32 %v3997_v15, -60.0  ;;  %v3743_v9 = vpop.f32.mrf.mxu1 }
 0x717   :  { %7545 = vpow2.f32 %v4029_v51  ;;  %v3793_v7 = vpop.f32.mrf.mxu0  ;;  %v4031_v54 = vmul.f32 1.442695, %v4012_v35  ;;  %v3744_v58 = vadd.f32 %v9540_v40, %v3743_v9  ;;  %v9569_v25 = vpop.xlane.xlu1 %4793  ;;  %v3999_v34 = vsub.f32 %v3981_v53, %v9535_v38 }
 0x718   :  { %v3998_v55 = vsub.f32 %v3980_v11, %v9535_v38  ;;  %v4033_v17 = vmul.f32 1.442695, %v4013_v32  ;;  %v3794_v3 = vadd.f32 %v9525_v0, %v3793_v7  ;;  %v6983_v43 = vpop.f32.mrf.mxu1  ;;  %v3968_v11 = vld [vmem:[#allocation7 + $0x48] sm:$0xff] }
 0x719   :  { %v6988_v51 = vpop.f32.mrf.mxu0  ;;  %7547 = vpow2.f32 %v4031_v54  ;;  %v3982_v49 = vadd.f32 %v3966_v63, %v3744_v58  ;;  %v4015_v22 = vmax.f32 %v3999_v34, -60.0 }
 0x71a   :  { %v4014_v29 = vmax.f32 %v3998_v55, -60.0  ;;  %v4155_v15 = vpop.permute.xlu0 %4154  ;;  %7549 = vpow2.f32 %v4033_v17  ;;  %v3983_v2 = vadd.f32 %v3967_v21, %v3794_v3  ;;  %v3846_v9 = vpop.f32.mrf.mxu1 }
 0x71b   :  { %v3796_v35 = vpop.f32.mrf.mxu0  ;;  %7009 = vmatpush3.bf16.msra.mxu0 %v4155_v15  ;;  %v4000_v32 = vsub.f32 %v3982_v49, %v9535_v38  ;;  %v4203_v7 = vpop.permute.xlu1 %4202  ;;  %v4037_v54 = vmul.f32 1.442695, %v4015_v22  ;;  %v3847_v63 = vadd.f32 %v9525_v0, %v3846_v9  ;;  %v3970_v49 = vld [vmem:[#allocation7 + $0x58] sm:$0xff]  ;;  %v3971_v22 = vld [vmem:[#allocation7 + $0x60] sm:$0xff] }
 0x71c   :  { %v4035_v39 = vmul.f32 1.442695, %v4014_v29  ;;  %v3797_v53 = vadd.f32 %v9540_v40, %v3796_v35  ;;  %7020 = vmatprep.subr.bf16.mxu0 %v10345_v52  ;;  %v4001_v55 = vsub.f32 %v3983_v2, %v9535_v38  ;;  %7015 = vmatpush3.bf16.msra.mxu1 %v4203_v7  ;;  %v6994_v58 = vpop.f32.mrf.mxu1 }
 0x71d   :  { %v6989_v21 = vpop.f32.mrf.mxu0  ;;  %v4016_v17 = vmax.f32 %v4000_v32, -60.0  ;;  %7026 = vmatprep.subr.bf16.mxu1 %v10345_v52  ;;  %v3985_v51 = vadd.f32 %v3969_v23, %v3847_v63 }
 0x71e   :  { %7551 = vpow2.f32 %v4035_v39  ;;  %v3984_v34 = vadd.f32 %v3968_v11, %v3797_v53  ;;  %v4017_v43 = vmax.f32 %v4001_v55, -60.0  ;;  %v3849_v29 = vpop.f32.mrf.mxu1 }
 0x71f   :  { %v9579_v3 = vpop.eup %7541  ;;  %7553 = vpow2.f32 %v4037_v54  ;;  %v3899_v15 = vpop.f32.mrf.mxu0  ;;  %v4039_v2 = vmul.f32 1.442695, %v4016_v17  ;;  %v3850_v9 = vadd.f32 %v9540_v40, %v3849_v29  ;;  %v4003_v11 = vsub.f32 %v3985_v51, %v9535_v38 }
 0x720   :  { %v4002_v35 = vsub.f32 %v3984_v34, %v9535_v38  ;;  %v3900_v39 = vadd.f32 %v9525_v0, %v3899_v15  ;;  %v4041_v32 = vmul.f32 1.442695, %v4017_v43  ;;  %v6995_v53 = vpop.f32.mrf.mxu1  ;;  %v4057_v54 = vsel %vm1112_vm4, %v9579_v3, 0.0  ;;  %v3972_v34 = vld [vmem:[#allocation7 + $0x68] sm:$0xff] }
 0x721   :  { %v7000_v7 = vpop.f32.mrf.mxu0  ;;  %7555 = vpow2.f32 %v4039_v2  ;;  %v3986_v55 = vadd.f32 %v3970_v49, %v3850_v9  ;;  %4058 = vadd.xlane.f32.xlu0 %v4057_v54  ;;  %v4019_v58 = vmax.f32 %v4003_v11, -60.0 }
 0x722   :  { %v4018_v23 = vmax.f32 %v4002_v35, -60.0  ;;  %v3987_v63 = vadd.f32 %v3971_v22, %v3900_v39  ;;  %7557 = vpow2.f32 %v4041_v32  ;;  %v3952_v29 = vpop.f32.mrf.mxu1  ;;  %v3973_v35 = vld [vmem:[#allocation7 + $0x70] sm:$0xff] }
 0x723   :  { %v9587_v21 = vpop.eup %7543  ;;  %v3902_v17 = vpop.f32.mrf.mxu0  ;;  %v4004_v15 = vsub.f32 %v3986_v55, %v9535_v38  ;;  %v4045_v49 = vmul.f32 1.442695, %v4019_v58  ;;  %v3953_v22 = vadd.f32 %v9525_v0, %v3952_v29  ;;  %v3974_v0 = vld [vmem:[#allocation7 + $0x78] sm:$0xff] }
 0x724   :  { %v9589_v43 = vpop.eup %7545  ;;  %v4043_v51 = vmul.f32 1.442695, %v4018_v23  ;;  %v4005_v53 = vsub.f32 %v3987_v63, %v9535_v38  ;;  %v3903_v2 = vadd.f32 %v9540_v40, %v3902_v17  ;;  %v7006_v39 = vpop.f32.mrf.mxu1  ;;  %v4060_v11 = vsel %vm1112_vm4, %v9587_v21, 0.0 }
 0x725   :  { %v7001_v9 = vpop.f32.mrf.mxu0  ;;  %v4063_v32 = vsel %vm1112_vm4, %v9589_v43, 0.0  ;;  %v4020_v7 = vmax.f32 %v4004_v15, -60.0  ;;  %4061 = vadd.xlane.f32.xlu1 %v4060_v11  ;;  %v3989_v63 = vadd.f32 %v3973_v35, %v3953_v22 }
 0x726   :  { %7559 = vpow2.f32 %v4043_v51  ;;  %v4021_v54 = vmax.f32 %v4005_v53, -60.0  ;;  %v3988_v23 = vadd.f32 %v3972_v34, %v3903_v2  ;;  %4064 = vadd.xlane.f32.xlu0 %v4063_v32  ;;  %v9599_v55 = vpop.eup %7547  ;;  %v3955_v58 = vpop.f32.mrf.mxu1 }
 0x727   :  { %7561 = vpow2.f32 %v4045_v49  ;;  %v9601_v17 = vpop.eup %7549  ;;  %v4047_v29 = vmul.f32 1.442695, %v4020_v7  ;;  %v3956_v56 = vadd.f32 %v9540_v40, %v3955_v58  ;;  %v4007_v51 = vsub.f32 %v3989_v63, %v9535_v38 }
 0x728   :  { %v4049_v9 = vmul.f32 1.442695, %v4021_v54  ;;  %v4006_v39 = vsub.f32 %v3988_v23, %v9535_v38  ;;  %v7007_v15 = vpop.f32.mrf.mxu1  ;;  %v4069_v34 = vsel %vm1112_vm4, %v9601_v17, 0.0  ;;  %v4066_v53 = vsel %vm1112_vm4, %v9599_v55, 0.0 }
 0x729   :  { %7563 = vpow2.f32 %v4047_v29  ;;  %v3990_v35 = vadd.f32 %v3974_v0, %v3956_v56  ;;  %4067 = vadd.xlane.f32.xlu1 %v4066_v53  ;;  %v4023_v22 = vmax.f32 %v4007_v51, -60.0  ;;  %v4795_v51 = vmax.f32 %v9457_v27, 1e-24 }
 0x72a   :  { %v4022_v2 = vmax.f32 %v4006_v39, -60.0  ;;  %4070 = vadd.xlane.f32.xlu0 %v4069_v34  ;;  %7565 = vpow2.f32 %v4049_v9  ;;  %v4796_v34 = vmax.f32 %v9459_v16, 1e-24  ;;  %v4798_v27 = vmax.f32 %v9463_v44, 1e-24 }
 0x72b   :  { %v9610_v49 = vpop.eup %7551  ;;  %v4008_v11 = vsub.f32 %v3990_v35, %v9535_v38  ;;  %v4053_v54 = vmul.f32 1.442695, %v4023_v22  ;;  %v4797_v22 = vmax.f32 %v9461_v24, 1e-24  ;;  %v4943_v16 = vmax.f32 %v9455_v5, 1e-24 }
 0x72c   :  { %v9612_v32 = vpop.eup %7553  ;;  %v4051_v40 = vmul.f32 1.442695, %v4022_v2  ;;  %v4072_v7 = vsel %vm1112_vm4, %v9610_v49, 0.0  ;;  %v4942_v2 = vmax.f32 %v9453_v6, 1e-24 }
 0x72d   :  { %v4075_v23 = vsel %vm1112_vm4, %v9612_v32, 0.0  ;;  %v4024_v56 = vmax.f32 %v4008_v11, -60.0  ;;  %4073 = vadd.xlane.f32.xlu1 %v4072_v7  ;;  %v4944_v7 = vmax.f32 %v9467_v33, 1e-24 }
 0x72e   :  { %7567 = vpow2.f32 %v4051_v40  ;;  %4076 = vadd.xlane.f32.xlu0 %v4075_v23  ;;  %v9619_v63 = vpop.eup %7555  ;;  %v4799_v23 = vmax.f32 %v9482_v59, 1e-24  ;;  %v4947_v59 = vmax.f32 %v9479_v20, 1e-24  ;;  %v4804_v20 = vmax.f32 %v9520_v37, 1e-24 }
 0x72f   :  { %7569 = vpow2.f32 %v4053_v54  ;;  %v9621_v58 = vpop.eup %7557  ;;  %v4055_v0 = vmul.f32 1.442695, %v4024_v56  ;;  %v4078_v38 = vsel %vm1112_vm4, %v9619_v63, 0.0  ;;  %v4945_v54 = vmax.f32 %v9469_v46, 1e-24 }
 0x730   :  { %v4081_v29 = vsel %vm1112_vm4, %v9621_v58, 0.0  ;;  %v4800_v56 = vmax.f32 %v9488_v36, 1e-24  ;;  %v4951_v37 = vmax.f32 %v9512_v4, 1e-24 }
 0x731   :  { %7571 = vpow2.f32 %v4055_v0  ;;  %4079 = vadd.xlane.f32.xlu1 %v4078_v38  ;;  %v4946_v0 = vmax.f32 %v9475_v31, 1e-24  ;;  %v4801_v38 = vmax.f32 %v9490_v28, 1e-24  ;;  %v4948_v31 = vmax.f32 %v9498_v13, 1e-24 }
 0x732   :  { %4082 = vadd.xlane.f32.xlu0 %v4081_v29  ;;  %7573 = vrsqrt.f32 %v4795_v51  ;;  %v4802_v29 = vmax.f32 %v9496_v50, 1e-24  ;;  %v4803_v51 = vmax.f32 %v9514_v19, 1e-24  ;;  %v4949_v28 = vmax.f32 %v9504_v61, 1e-24 }
 0x733   :  { %v9627_v9 = vpop.eup %7559  ;;  %7575 = vrsqrt.f32 %v4796_v34  ;;  %v4805_v13 = vmax.f32 %v9528_v45, 1e-24  ;;  %v4806_v19 = vmax.f32 %v9533_v60, 1e-24  ;;  %v4953_v45 = vmax.f32 %v9547_v48, 1e-24 }
 0x734   :  { %v9629_v39 = vpop.eup %7561  ;;  %v4084_v15 = vsel %vm1112_vm4, %v9627_v9, 0.0  ;;  %7577 = vrsqrt.f32 %v4942_v2  ;;  %v9677_v2 = vstv %s9662_s0  ;;  %v4807_v60 = vmax.f32 %v9557_v47, 1e-24 }
 0x735   :  { %v4087_v53 = vsel %vm1112_vm4, %v9629_v39, 0.0  ;;  %4085 = vadd.xlane.f32.xlu1 %v4084_v15  ;;  %7579 = vrsqrt.f32 %v4797_v22 }
 0x736   :  { %4088 = vadd.xlane.f32.xlu0 %v4087_v53  ;;  %v9638_v35 = vpop.eup %7563  ;;  %7581 = vrsqrt.f32 %v4798_v27  ;;  %v4950_v53 = vmax.f32 %v9506_v26, 1e-24  ;;  %v4952_v26 = vmax.f32 %v9542_v42, 1e-24 }
 0x737   :  { %v9641_v40 = vpop.eup %7565  ;;  %v4090_v11 = vsel %vm1112_vm4, %v9638_v35, 0.0  ;;  %7583 = vrsqrt.f32 %v4943_v16 }
 0x738   :  { %v4093_v6 = vsel %vm1112_vm4, %v9641_v40, 0.0  ;;  %7585 = vrsqrt.f32 %v4944_v7 }
 0x739   :  { %4091 = vadd.xlane.f32.xlu1 %v4090_v11  ;;  %7587 = vrsqrt.f32 %v4945_v54 }
 0x73a   :  { %4094 = vadd.xlane.f32.xlu0 %v4093_v6  ;;  %7589 = vrsqrt.f32 %v4799_v23 }
 0x73b   :  { %v9650_v24 = vpop.eup %7567  ;;  %7591 = vrsqrt.f32 %v4800_v56  ;;  %v9690_v56 = vld [vmem:[#allocation2] sm:$0xff] }
 0x73c   :  { %v9653_v44 = vpop.eup %7569  ;;  %v4096_v5 = vsel %vm1112_vm4, %v9650_v24, 0.0  ;;  %7593 = vrsqrt.f32 %v4946_v0 }
 0x73d   :  { %v4099_v33 = vsel %vm1112_vm4, %v9653_v44, 0.0  ;;  %4097 = vadd.xlane.f32.xlu1 %v4096_v5  ;;  %7595 = vrsqrt.f32 %v4947_v59  ;;  %v4808_v5 = vmax.f32 %v9561_v57, 1e-24  ;;  %v9696_v59 = vld [vmem:[#allocation2 + $0x10] sm:$0xff]  ;;  %v4954_v57 = vmax.f32 %v9549_v10, 1e-24 }
 0x73e   :  { %4100 = vadd.xlane.f32.xlu0 %v4099_v33  ;;  %v9664_v46 = vpop.eup %7571  ;;  %7597 = vrsqrt.f32 %v4801_v38  ;;  %v9693_v33 = vld [vmem:[#allocation2 + $0x8] sm:$0xff]  ;;  %v9699_v38 = vld [vmem:[#allocation2 + $0x18] sm:$0xff]  ;;  %v4810_v10 = vmax.f32 %v9569_v25, 1e-24 }
 0x73f   :  { %v4102_v36 = vsel %vm1112_vm4, %v9664_v46, 0.0  ;;  %v7574_v15 = vpop.eup %7573  ;;  %7599 = vrsqrt.f32 %v4802_v29 }
 0x740   :  { %v7576_v34 = vpop.eup %7575  ;;  %7601 = vrsqrt.f32 %v4948_v31  ;;  %v4828_v61 = vmul.f32 %v7574_v15, %v9677_v2 }
 0x741   :  { %4103 = vadd.xlane.f32.xlu1 %v4102_v36  ;;  %v7578_v50 = vpop.eup %7577  ;;  %7603 = vrsqrt.f32 %v4803_v51  ;;  %v4829_v11 = vmul.f32 %v7576_v34, %v9677_v2 }
 0x742   :  { %v7580_v22 = vpop.eup %7579  ;;  %7605 = vrsqrt.f32 %v4804_v20  ;;  %v4972_v42 = vmul.f32 %v9690_v56, %v4828_v61  ;;  %v4998_v47 = vmul.f32 %v9696_v59, %v7578_v50  ;;  %v4955_v20 = vmax.f32 %v9554_v30, 1e-24 }
 0x743   :  { %v7582_v27 = vpop.eup %7581  ;;  %7607 = vrsqrt.f32 %v4949_v28  ;;  %v4830_v7 = vmul.f32 %v7580_v22, %v9677_v2  ;;  %v4973_v48 = vmul.f32 %v9693_v33, %v4829_v11 }
 0x744   :  { %v7584_v16 = vpop.eup %7583  ;;  %7609 = vrsqrt.f32 %v4950_v53  ;;  %v4831_v4 = vmul.f32 %v7582_v27, %v9677_v2  ;;  %v4809_v53 = vmax.f32 %v9565_v41, 1e-24  ;;  %v9710_v27 = vld [vmem:[#allocation2 + $0x20] sm:$0xff] }
 0x745   :  { %v7586_v6 = vpop.eup %7585  ;;  %7611 = vrsqrt.f32 %v4805_v13  ;;  %v4999_v36 = vmul.f32 %v9699_v38, %v7584_v16  ;;  %v4974_v31 = vmul.f32 %v9696_v59, %v4830_v7  ;;  %v4988_v50 = vpack.c.bf16 %v4973_v48, %v4972_v42 }
 0x746   :  { %v7588_v54 = vpop.eup %7587  ;;  %7613 = vrsqrt.f32 %v4806_v19  ;;  %v4975_v15 = vmul.f32 %v9699_v38, %v4831_v4  ;;  %v5000_v30 = vmul.f32 %v9710_v27, %v7586_v6  ;;  %v9722_v4 = vld [vmem:[#allocation2 + $0x30] sm:$0xff] }
 0x747   :  { %v7590_v23 = vpop.eup %7589  ;;  %7615 = vrsqrt.f32 %v4951_v37  ;;  %v5013_v19 = vpack.c.bf16 %v4999_v36, %v4998_v47  ;;  %v9713_v37 = vld [vmem:[#allocation2 + $0x28] sm:$0xff] }
 0x748   :  { %v7592_v0 = vpop.eup %7591  ;;  %7617 = vrsqrt.f32 %v4952_v26  ;;  %v4832_v28 = vmul.f32 %v7590_v23, %v9677_v2  ;;  %v5001_v61 = vmul.f32 %v9713_v37, %v7588_v54  ;;  %v4989_v16 = vpack.c.bf16 %v4975_v15, %v4974_v31 }
 0x749   :  { %v7594_v29 = vpop.eup %7593  ;;  %7619 = vrsqrt.f32 %v4953_v45  ;;  %v4833_v13 = vmul.f32 %v7592_v0, %v9677_v2 }
 0x74a   :  { %v7596_v51 = vpop.eup %7595  ;;  %7621 = vrsqrt.f32 %v4807_v60  ;;  %v4976_v25 = vmul.f32 %v9710_v27, %v4832_v28  ;;  %v5014_v60 = vpack.c.bf16 %v5001_v61, %v5000_v30  ;;  %v5002_v23 = vmul.f32 %v9722_v4, %v7594_v29 }
 0x74b   :  { %v7598_v34 = vpop.eup %7597  ;;  %7623 = vrsqrt.f32 %v4808_v5  ;;  %v4977_v45 = vmul.f32 %v9713_v37, %v4833_v13  ;;  %v9725_v5 = vld [vmem:[#allocation2 + $0x38] sm:$0xff] }
 0x74c   :  { %v7600_v22 = vpop.eup %7599  ;;  %7625 = vrsqrt.f32 %v4954_v57  ;;  %v4834_v6 = vmul.f32 %v7598_v34, %v9677_v2  ;;  %v5003_v42 = vmul.f32 %v9725_v5, %v7596_v51  ;;  %v9734_v34 = vld [vmem:[#allocation2 + $0x40] sm:$0xff] }
 0x74d   :  { %v7602_v11 = vpop.eup %7601  ;;  %7627 = vrsqrt.f32 %v4955_v20  ;;  %v4835_v7 = vmul.f32 %v7600_v22, %v9677_v2  ;;  %v4990_v31 = vpack.c.bf16 %v4977_v45, %v4976_v25 }
 0x74e   :  { %v7604_v41 = vpop.eup %7603  ;;  %7629 = vrsqrt.f32 %v4809_v53  ;;  %v4978_v20 = vmul.f32 %v9722_v4, %v4834_v6  ;;  %v5015_v28 = vpack.c.bf16 %v5003_v42, %v5002_v23  ;;  %v5004_v51 = vmul.f32 %v9734_v34, %v7602_v11  ;;  %v9737_v53 = vld [vmem:[#allocation2 + $0x48] sm:$0xff]  ;;  %v7775_v6 = vld [vmem:[#allocation2 + $0x58] sm:$0xff] }
 0x74f   :  { %v7606_v26 = vpop.eup %7605  ;;  %7631 = vrsqrt.f32 %v4810_v10  ;;  %v4836_v47 = vmul.f32 %v7604_v41, %v9677_v2  ;;  %v4979_v29 = vmul.f32 %v9725_v5, %v4835_v7 }
 0x750   :  { %v7608_v54 = vpop.eup %7607  ;;  %v4837_v36 = vmul.f32 %v7606_v26, %v9677_v2  ;;  %v7774_v26 = vld [vmem:[#allocation2 + $0x50] sm:$0xff] }
 0x751   :  { %v7610_v48 = vpop.eup %7609  ;;  %v4980_v10 = vmul.f32 %v9734_v34, %v4836_v47  ;;  %v4991_v11 = vpack.c.bf16 %v4979_v29, %v4978_v20 }
 0x752   :  { %5024 = vrot.lane.b32.xlu1 %v4988_v50, %s7870_s3  ;;  %v7612_v0 = vpop.eup %7611  ;;  %v5005_v50 = vmul.f32 %v9737_v53, %v7608_v54  ;;  %v5006_v45 = vmul.f32 %v7774_v26, %v7610_v48 }
 0x753   :  { %v7614_v57 = vpop.eup %7613  ;;  %v4838_v30 = vmul.f32 %v7612_v0, %v9677_v2  ;;  %v9748_v0 = vld [vmem:[#allocation2 + $0x60] sm:$0xff] }
 0x754   :  { %5080 = vrot.lane.b32.xlu0 %v5013_v19, %s7869_s12  ;;  %v7616_v15 = vpop.eup %7615  ;;  %v4981_v19 = vmul.f32 %v9737_v53, %v4837_v36  ;;  %v4839_v61 = vmul.f32 %v7614_v57, %v9677_v2  ;;  %v5016_v25 = vpack.c.bf16 %v5005_v50, %v5004_v51  ;;  %v9751_v57 = vld [vmem:[#allocation2 + $0x68] sm:$0xff] }
 0x755   :  { %v7618_v13 = vpop.eup %7617  ;;  %v5007_v7 = vmul.f32 %v7775_v6, %v7616_v15  ;;  %v4982_v23 = vmul.f32 %v7774_v26, %v4838_v30  ;;  %v9763_v30 = vld [vmem:[#allocation2 + $0x78] sm:$0xff] }
 0x756   :  { %5077 = vrot.lane.b32.xlu1 %v4989_v16, %s7870_s3  ;;  %v7620_v22 = vpop.eup %7619  ;;  %v4983_v42 = vmul.f32 %v7775_v6, %v4839_v61  ;;  %v5008_v36 = vmul.f32 %v9748_v0, %v7618_v13 }
 0x757   :  { %v7622_v41 = vpop.eup %7621  ;;  %v5017_v15 = vpack.c.bf16 %v5007_v7, %v5006_v45 }
 0x758   :  { %5133 = vrot.lane.b32.xlu0 %v5014_v60, %s7869_s12  ;;  %v7624_v16 = vpop.eup %7623  ;;  %v4992_v60 = vpack.c.bf16 %v4981_v19, %v4980_v10  ;;  %v4840_v48 = vmul.f32 %v7622_v41, %v9677_v2  ;;  %v4993_v51 = vpack.c.bf16 %v4983_v42, %v4982_v23  ;;  %v9760_v19 = vld [vmem:[#allocation2 + $0x70] sm:$0xff]  ;;  %v5633_v23 = vpack.c.bf16 %v9693_v33, %v9690_v56 }
 0x759   :  { %v7626_v54 = vpop.eup %7625  ;;  %v4841_v20 = vmul.f32 %v7624_v16, %v9677_v2  ;;  %v5637_v42 = vpack.c.bf16 %v9737_v53, %v9734_v34 }
 0x75a   :  { %5130 = vrot.lane.b32.xlu1 %v4990_v31, %s7870_s3  ;;  %v7628_v47 = vpop.eup %7627  ;;  %v5009_v31 = vmul.f32 %v9751_v57, %v7620_v22  ;;  %v4984_v10 = vmul.f32 %v9748_v0, %v4840_v48  ;;  %v5010_v22 = vmul.f32 %v9760_v19, %v7626_v54  ;;  %v5634_v54 = vpack.c.bf16 %v9699_v38, %v9696_v59 }
 0x75b   :  { %v7630_v29 = vpop.eup %7629  ;;  %v4985_v13 = vmul.f32 %v9751_v57, %v4841_v20  ;;  %v5011_v61 = vmul.f32 %v9763_v30, %v7628_v47  ;;  %v5636_v59 = vpack.c.bf16 %v9725_v5, %v9722_v4  ;;  %v5638_v38 = vpack.c.bf16 %v7775_v6, %v7774_v26 }
 0x75c   :  { %5186 = vrot.lane.b32.xlu0 %v5015_v28, %s7869_s12  ;;  %v7632_v28 = vpop.eup %7631  ;;  %v5018_v50 = vpack.c.bf16 %v5009_v31, %v5008_v36  ;;  %v4842_v41 = vmul.f32 %v7630_v29, %v9677_v2 }
 0x75d   :  { %v4994_v16 = vpack.c.bf16 %v4985_v13, %v4984_v10 }
 0x75e   :  { %5183 = vrot.lane.b32.xlu1 %v4991_v11, %s7870_s3  ;;  %v4843_v11 = vmul.f32 %v7632_v28, %v9677_v2  ;;  %v4986_v45 = vmul.f32 %v9760_v19, %v4842_v41  ;;  %v5635_v2 = vpack.c.bf16 %v9713_v37, %v9710_v27  ;;  %v4299_v27 = vpop.permute.xlu0 %4298  ;;  %v4251_v37 = vpop.permute.xlu1 %4250 }
 0x760   :  { %5239 = vrot.lane.b32.xlu0 %v5016_v25, %s7869_s12  ;;  %v5019_v25 = vpack.c.bf16 %v5011_v61, %v5010_v22  ;;  %v4987_v7 = vmul.f32 %v9763_v30, %v4843_v11 }
 0x762   :  { %5236 = vrot.lane.b32.xlu1 %v4992_v60, %s7870_s3  ;;  %v4995_v60 = vpack.c.bf16 %v4987_v7, %v4986_v45  ;;  %v9791_v56 = vpop.permute.xlu0 %4394  ;;  %v9793_v33 = vpop.permute.xlu1 %4346 }
 0x764   :  { %5292 = vrot.lane.b32.xlu0 %v5017_v15, %s7869_s12 }
 0x766   :  { %5289 = vrot.lane.b32.xlu1 %v4993_v51, %s7870_s3  ;;  %v9795_v47 = vpop.permute.xlu0 %4490  ;;  %v9797_v36 = vpop.permute.xlu1 %4442 }
 0x768   :  { %5345 = vrot.lane.b32.xlu0 %v5018_v50, %s7869_s12 }
 0x76a   :  { %5342 = vrot.lane.b32.xlu1 %v4994_v16, %s7870_s3  ;;  %v9799_v34 = vpop.permute.xlu1 %5027 }
 0x76c   :  { %5398 = vrot.lane.b32.xlu0 %v5019_v25, %s7869_s12 }
 0x76e   :  { %5690 = vrot.lane.b32.xlu1 %v5634_v54, %s7872_s2 }
 0x770   :  { %5395 = vrot.lane.b32.xlu0 %v4995_v60, %s7870_s3 }
 0x772   :  { %5738 = vrot.lane.b32.xlu1 %v5635_v2, %s7872_s2 }
 0x774   :  { %5642 = vrot.lane.b32.xlu0 %v5633_v23, %s7872_s2 }
 0x776   :  { %5834 = vrot.lane.b32.xlu1 %v5637_v42, %s7872_s2 }
 0x778   :  { %5786 = vrot.lane.b32.xlu0 %v5636_v59, %s7872_s2 }
 0x77c   :  { %5882 = vrot.lane.b32.xlu0 %v5638_v38, %s7872_s2 }
 0x7aa   :  { %v4059_v4 = vpop.xlane.xlu0 %4058 }
 0x7ab   :  { %7633 = vrcp.f32 %v4059_v4 }
 0x7ae   :  { %v4062_v53 = vpop.xlane.xlu1 %4061 }
 0x7af   :  { %v4065_v5 = vpop.xlane.xlu0 %4064  ;;  %7635 = vrcp.f32 %v4062_v53 }
 0x7b0   :  { %7637 = vrcp.f32 %v4065_v5 }
 0x7b2   :  { %v4068_v6 = vpop.xlane.xlu1 %4067 }
 0x7b3   :  { %v4071_v26 = vpop.xlane.xlu0 %4070  ;;  %7639 = vrcp.f32 %v4068_v6 }
 0x7b4   :  { %7641 = vrcp.f32 %v4071_v26 }
 0x7b6   :  { %v4074_v48 = vpop.xlane.xlu1 %4073 }
 0x7b7   :  { %v4077_v31 = vpop.xlane.xlu0 %4076  ;;  %7643 = vrcp.f32 %v4074_v48 }
 0x7b8   :  { %7645 = vrcp.f32 %v4077_v31  ;;  %v7634_v15 = vpop.eup %7633 }
 0x7b9   :  { %v4121_v10 = vmul.f32 %v7634_v15, %v9579_v3 }
 0x7ba   :  { %v4080_v29 = vpop.xlane.xlu1 %4079 }
 0x7bb   :  { %v4083_v20 = vpop.xlane.xlu0 %4082  ;;  %7647 = vrcp.f32 %v4080_v29 }
 0x7bc   :  { %v7636_v28 = vpop.eup %7635  ;;  %7649 = vrcp.f32 %v4083_v20 }
 0x7bd   :  { %v4122_v13 = vmul.f32 %v7636_v28, %v9587_v21  ;;  %v7638_v22 = vpop.eup %7637 }
 0x7be   :  { %v4086_v50 = vpop.xlane.xlu1 %4085  ;;  %v4123_v25 = vmul.f32 %v7638_v22, %v9589_v43 }
 0x7bf   :  { %v4089_v51 = vpop.xlane.xlu0 %4088  ;;  %7651 = vrcp.f32 %v4086_v50  ;;  %v4137_v61 = vpack.c.bf16 %v4122_v13, %v4121_v10  ;;  %v5033_v50 = vsel %vm322_vm2, %v9799_v34, 0 }
 0x7c0   :  { %v7640_v41 = vpop.eup %7639  ;;  %7653 = vrcp.f32 %v4089_v51 }
 0x7c1   :  { %7011 = vmatmul.mubr.msk.bf16.vlgmr.msra.gmra.mxu0 %vm1112_vm4, %v4137_v61  ;;  %v4124_v45 = vmul.f32 %v7640_v41, %v9599_v55  ;;  %v7642_v7 = vpop.eup %7641 }
 0x7c2   :  { %v4092_v16 = vpop.xlane.xlu1 %4091  ;;  %7021 = vmatpush3.bf16.msra.mxu0 %v4251_v37  ;;  %7022 = vmatprep.mubr.msk.bf16.mxu0 %vm7863_vm3, %v10345_v52  ;;  %v4125_v2 = vmul.f32 %v7642_v7, %v9601_v17 }
 0x7c3   :  { %v4095_v11 = vpop.xlane.xlu0 %4094  ;;  %7655 = vrcp.f32 %v4092_v16  ;;  %v4138_v3 = vpack.c.bf16 %v4124_v45, %v4123_v25  ;;  %7032 = vmatprep.subr.bf16.mxu0 %v10345_v52 }
 0x7c4   :  { %v7644_v21 = vpop.eup %7643  ;;  %7657 = vrcp.f32 %v4095_v11 }
 0x7c5   :  { %7017 = vmatmul.mubr.msk.bf16.vlgmr.msra.gmra.mxu1 %vm1112_vm4, %v4138_v3  ;;  %v4126_v43 = vmul.f32 %v7644_v21, %v9610_v49  ;;  %v7646_v55 = vpop.eup %7645 }
 0x7c6   :  { %v4098_v60 = vpop.xlane.xlu1 %4097  ;;  %7027 = vmatpush3.bf16.msra.mxu1 %v4299_v27  ;;  %7028 = vmatprep.mubr.msk.bf16.mxu1 %vm7863_vm3, %v10345_v52  ;;  %v4127_v37 = vmul.f32 %v7646_v55, %v9612_v32 }
 0x7c7   :  { %v4101_v54 = vpop.xlane.xlu0 %4100  ;;  %7659 = vrcp.f32 %v4098_v60  ;;  %v4139_v23 = vpack.c.bf16 %v4126_v43, %v4125_v2  ;;  %7038 = vmatprep.subr.bf16.mxu1 %v10345_v52 }
 0x7c8   :  { %v7648_v42 = vpop.eup %7647  ;;  %7661 = vrcp.f32 %v4101_v54 }
 0x7c9   :  { %7023 = vmatmul.mubr.msk.bf16.vlgmr.msra.gmra.mxu0 %vm1112_vm4, %v4139_v23  ;;  %v4128_v17 = vmul.f32 %v7648_v42, %v9619_v63  ;;  %v7650_v49 = vpop.eup %7649 }
 0x7ca   :  { %v4104_v38 = vpop.xlane.xlu1 %4103  ;;  %7033 = vmatpush3.bf16.msra.mxu0 %v9793_v33  ;;  %7034 = vmatprep.mubr.msk.bf16.mxu0 %vm7863_vm3, %v10345_v52  ;;  %v4129_v5 = vmul.f32 %v7650_v49, %v9621_v58 }
 0x7cb   :  { %v5081_v59 = vpop.permute.xlu0 %5080  ;;  %7663 = vrcp.f32 %v4104_v38  ;;  %v4140_v27 = vpack.c.bf16 %v4128_v17, %v4127_v37  ;;  %7044 = vmatprep.subr.bf16.mxu0 %v10345_v52 }
 0x7cc   :  { %v7652_v4 = vpop.eup %7651 }
 0x7cd   :  { %7029 = vmatmul.mubr.msk.bf16.vlgmr.msra.gmra.mxu1 %vm1112_vm4, %v4140_v27  ;;  %v4130_v53 = vmul.f32 %v7652_v4, %v9627_v9  ;;  %v7654_v32 = vpop.eup %7653 }
 0x7ce   :  { %7039 = vmatpush3.bf16.msra.mxu1 %v9791_v56  ;;  %7040 = vmatprep.mubr.msk.bf16.mxu1 %vm7863_vm3, %v10345_v52  ;;  %v4131_v6 = vmul.f32 %v7654_v32, %v9629_v39  ;;  %v5025_v9 = vpop.permute.xlu1 %5024 }
 0x7cf   :  { %v5134_v63 = vpop.permute.xlu0 %5133  ;;  %v4141_v33 = vpack.c.bf16 %v4130_v53, %v4129_v5  ;;  %7050 = vmatprep.subr.bf16.mxu1 %v10345_v52 }
 0x7d0   :  { %v7656_v26 = vpop.eup %7655 }
 0x7d1   :  { %7035 = vmatmul.mubr.msk.bf16.vlgmr.msra.gmra.mxu0 %vm1112_vm4, %v4141_v33  ;;  %v4132_v31 = vmul.f32 %v7656_v26, %v9638_v35  ;;  %v7658_v58 = vpop.eup %7657 }
 0x7d2   :  { %7045 = vmatpush3.bf16.msra.mxu0 %v9797_v36  ;;  %7046 = vmatprep.mubr.msk.bf16.mxu0 %vm7863_vm3, %v10345_v52  ;;  %v4133_v15 = vmul.f32 %v7658_v58, %v9641_v40  ;;  %v5078_v10 = vpop.permute.xlu1 %5077 }
 0x7d3   :  { %v4142_v56 = vpack.c.bf16 %v4132_v31, %v4131_v6  ;;  %7056 = vmatprep.subr.bf16.mxu0 %v10345_v52  ;;  %v5187_v29 = vpop.permute.xlu0 %5186 }
 0x7d4   :  { %v7660_v48 = vpop.eup %7659  ;;  %v5192_v13 = vsel %vm322_vm2, %v5187_v29, 0 }
 0x7d5   :  { %v7662_v20 = vpop.eup %7661  ;;  %7041 = vmatmul.mubr.msk.bf16.vlgmr.msra.gmra.mxu1 %vm1112_vm4, %v4142_v56  ;;  %v4134_v39 = vmul.f32 %v7660_v48, %v9650_v24 }
 0x7d6   :  { %7051 = vmatpush3.bf16.msra.mxu1 %v9795_v47  ;;  %7052 = vmatprep.mubr.msk.bf16.mxu1 %vm7863_vm3, %v10345_v52  ;;  %v4135_v28 = vmul.f32 %v7662_v20, %v9653_v44  ;;  %v5086_v47 = vsel %vm322_vm2, %v5081_v59, 0  ;;  %v5131_v44 = vpop.permute.xlu1 %5130 }
 0x7d7   :  { %v4143_v36 = vpack.c.bf16 %v4134_v39, %v4133_v15  ;;  %7062 = vmatprep.subr.bf16.mxu1 %v10345_v52  ;;  %v5240_v24 = vpop.permute.xlu0 %5239 }
 0x7d8   :  { %v7664_v35 = vpop.eup %7663  ;;  %v5245_v41 = vsel %vm322_vm2, %v5240_v24, 0  ;;  %v9933_v24 = vstv %s5479_s5 }
 0x7d9   :  { %v4136_v51 = vmul.f32 %v7664_v35, %v9664_v46  ;;  %7047 = vmatmul.mubr.msk.bf16.vlgmr.msra.gmra.mxu0 %vm1112_vm4, %v4143_v36  ;;  %v5139_v46 = vsel %vm322_vm2, %v5134_v63, 0 }
 0x7da   :  { %7057 = vmatpush3.bf16.xpose.msra.mxu0 %v5033_v50  ;;  %7058 = vmatprep.mubr.msk.bf16.mxu0 %vm7863_vm3, %v10345_v52  ;;  %v5184_v22 = vpop.permute.xlu1 %5183 }
 0x7db   :  { %v4144_v40 = vpack.c.bf16 %v4136_v51, %v4135_v28  ;;  %7068 = vmatprep.subr.bf16.mxu0 %v10345_v52  ;;  %v5293_v34 = vpop.permute.xlu0 %5292  ;;  %v9927_v51 = vld [vmem:[%s10323_s4 + $0x30] sm:$0xff] }
 0x7dc   :  { %v5298_v16 = vsel %vm322_vm2, %v5293_v34, 0  ;;  %v7780_v34 = vld [vmem:[#allocation7] sm:$0xff] }
 0x7dd   :  { %7053 = vmatmul.mubr.msk.bf16.vlgmr.msra.gmra.mxu1 %vm1112_vm4, %v4144_v40 }
 0x7de   :  { %7063 = vmatpush3.bf16.xpose.msra.mxu1 %v5086_v47  ;;  %7064 = vmatprep.mubr.msk.bf16.mxu1 %vm7863_vm3, %v10345_v52  ;;  %v5237_v11 = vpop.permute.xlu1 %5236 }
 0x7df   :  { %7074 = vmatprep.subr.bf16.mxu1 %v10345_v52  ;;  %v5346_v61 = vpop.permute.xlu0 %5345 }
 0x7e0   :  { %v5351_v45 = vsel %vm322_vm2, %v5346_v61, 0 }
 0x7e1   :  { %7059 = vmatmul.mubr.msk.bf16.vlgmr.msra.gmra.mxu0 %vm322_vm2, %v5025_v9 }
 0x7e2   :  { %7069 = vmatpush3.bf16.xpose.msra.mxu0 %v5139_v46  ;;  %7070 = vmatprep.mubr.msk.bf16.mxu0 %vm7863_vm3, %v10345_v52  ;;  %v5290_v7 = vpop.permute.xlu1 %5289  ;;  %v9938_v46 = vld [vmem:[%s10323_s4 + $0x38] sm:$0xff]  ;;  %s7873_s4 = smov 16  }
 0x7e3   :  { %7080 = vmatprep.subr.bf16.mxu0 %v10345_v52  ;;  %v5399_v25 = vpop.permute.xlu0 %5398 }
 0x7e4   :  { %v5404_v21 = vsel %vm322_vm2, %v5399_v25, 0 }
 0x7e5   :  { %7065 = vmatmul.mubr.msk.bf16.vlgmr.msra.gmra.mxu1 %vm322_vm2, %v5078_v10 }
 0x7e6   :  { %7075 = vmatpush3.bf16.xpose.msra.mxu1 %v5192_v13  ;;  %7076 = vmatprep.mubr.msk.bf16.mxu1 %vm7863_vm3, %v10345_v52  ;;  %v5343_v54 = vpop.permute.xlu1 %5342 }
 0x7e7   :  { %7086 = vmatprep.subr.bf16.mxu1 %v10345_v52  ;;  %v5396_v3 = vpop.permute.xlu0 %5395 }
 0x7e9   :  { %7071 = vmatmul.mubr.msk.bf16.vlgmr.msra.gmra.mxu0 %vm322_vm2, %v5131_v44 }
 0x7ea   :  { %7081 = vmatpush3.bf16.xpose.msra.mxu0 %v5245_v41  ;;  %7082 = vmatprep.mubr.msk.bf16.mxu0 %vm7863_vm3, %v10345_v52  ;;  %v5691_v2 = vpop.permute.xlu1 %5690 }
 0x7eb   :  { %7092 = vmatprep.subr.bf16.mxu0 %v10345_v52  ;;  %v5643_v60 = vpop.permute.xlu0 %5642 }
 0x7ed   :  { %7077 = vmatmul.mubr.msk.bf16.vlgmr.msra.gmra.mxu1 %vm322_vm2, %v5184_v22 }
 0x7ee   :  { %7087 = vmatpush3.bf16.xpose.msra.mxu1 %v5298_v16  ;;  %7088 = vmatprep.mubr.msk.bf16.mxu1 %vm7863_vm3, %v10345_v52 }
 0x7ef   :  { %7098 = vmatprep.subr.bf16.mxu1 %v10345_v52 }
 0x7f1   :  { %7083 = vmatmul.mubr.msk.bf16.vlgmr.msra.gmra.mxu0 %vm322_vm2, %v5237_v11 }
 0x7f2   :  { %7093 = vmatpush3.bf16.xpose.msra.mxu0 %v5351_v45  ;;  %7094 = vmatprep.mubr.msk.bf16.mxu0 %vm7863_vm3, %v10345_v52 }
 0x7f3   :  { %7104 = vmatprep.subr.bf16.mxu0 %v10345_v52 }
 0x7f5   :  { %7089 = vmatmul.mubr.msk.bf16.vlgmr.msra.gmra.mxu1 %vm322_vm2, %v5290_v7 }
 0x7f6   :  { %7099 = vmatpush3.bf16.xpose.msra.mxu1 %v5404_v21  ;;  %7100 = vmatprep.mubr.msk.bf16.mxu1 %vm7863_vm3, %v10345_v52 }
 0x7f7   :  { %7110 = vmatprep.subr.bf16.mxu1 %v10345_v52 }
 0x7f9   :  { %7095 = vmatmul.mubr.msk.bf16.vlgmr.msra.gmra.mxu0 %vm322_vm2, %v5343_v54  ;;  %v7782_v54 = vld [vmem:[#allocation7 + $0x10] sm:$0xff] }
 0x7fa   :  { %7105 = vmatpush3.bf16.msra.mxu0 %v5643_v60  ;;  %7106 = vmatprep.mubr.msk.bf16.mxu0 %vm7863_vm3, %v10345_v52 }
 0x7fb   :  { %7116 = vmatprep.subr.bf16.mxu0 %v10345_v52 }
 0x7fd   :  { %7101 = vmatmul.mubr.msk.bf16.vlgmr.msra.gmra.mxu1 %vm322_vm2, %v5396_v3  ;;  %v7781_v3 = vld [vmem:[#allocation7 + $0x8] sm:$0xff] }
 0x7fe   :  { %7111 = vmatpush3.bf16.msra.mxu1 %v5691_v2  ;;  %7112 = vmatprep.mubr.msk.bf16.mxu1 %vm7863_vm3, %v10345_v52 }
 0x7ff   :  { %7122 = vmatprep.subr.bf16.mxu1 %v10345_v52 }
 0x881   :  { %v9894_v43 = vpop.f32.mrf.mxu0 }
 0x883   :  { %v7012_v55 = vpop.f32.mrf.mxu0 }
 0x885   :  { %v9896_v23 = vpop.f32.mrf.mxu0  ;;  %v9898_v42 = vpop.f32.mrf.mxu1 }
 0x887   :  { %v7013_v59 = vpop.f32.mrf.mxu0  ;;  %v7018_v38 = vpop.f32.mrf.mxu1 }
 0x889   :  { %v9900_v37 = vpop.f32.mrf.mxu1  ;;  %v9902_v17 = vpop.f32.mrf.mxu0 }
 0x88b   :  { %v7019_v49 = vpop.f32.mrf.mxu1  ;;  %v7024_v27 = vpop.f32.mrf.mxu0 }
 0x88d   :  { %v9904_v4 = vpop.f32.mrf.mxu0  ;;  %v9906_v5 = vpop.f32.mrf.mxu1 }
 0x88f   :  { %v7025_v53 = vpop.f32.mrf.mxu0  ;;  %v7030_v32 = vpop.f32.mrf.mxu1 }
 0x891   :  { %v9908_v63 = vpop.f32.mrf.mxu1  ;;  %v9910_v33 = vpop.f32.mrf.mxu0 }
 0x893   :  { %v7031_v26 = vpop.f32.mrf.mxu1  ;;  %v7036_v6 = vpop.f32.mrf.mxu0 }
 0x895   :  { %v9912_v31 = vpop.f32.mrf.mxu0  ;;  %v9914_v58 = vpop.f32.mrf.mxu1 }
 0x897   :  { %v7037_v9 = vpop.f32.mrf.mxu0  ;;  %v7042_v56 = vpop.f32.mrf.mxu1 }
 0x898   :  { %v7783_v56 = vld [vmem:[#allocation7 + $0x18] sm:$0xff] }
 0x899   :  { %v9916_v48 = vpop.f32.mrf.mxu1  ;;  %v9918_v20 = vpop.f32.mrf.mxu0 }
 0x89b   :  { %v7043_v29 = vpop.f32.mrf.mxu1  ;;  %v7048_v15 = vpop.f32.mrf.mxu0 }
 0x89c   :  { %v7784_v15 = vld [vmem:[#allocation7 + $0x20] sm:$0xff] }
 0x89d   :  { %v9920_v39 = vpop.f32.mrf.mxu0  ;;  %v9922_v35 = vpop.f32.mrf.mxu1 }
 0x89f   :  { %v7049_v36 = vpop.f32.mrf.mxu0  ;;  %v7054_v28 = vpop.f32.mrf.mxu1 }
 0x8a1   :  { %v9930_v50 = vpop.f32.mrf.mxu1  ;;  %v5069_v10 = vpop.f32.mrf.mxu0 }
 0x8a2   :  { %v5070_v40 = vadd.f32 %v9927_v51, %v5069_v10 }
 0x8a3   :  { %v7055_v47 = vpop.f32.mrf.mxu1  ;;  %v7060_v44 = vpop.f32.mrf.mxu0 }
 0x8a4   :  { %v5463_v13 = vadd.f32 %v7780_v34, %v5070_v40 }
 0x8a5   :  { %v5072_v22 = vpop.f32.mrf.mxu0  ;;  %v5122_v61 = vpop.f32.mrf.mxu1 }
 0x8a6   :  { %v5481_v41 = vsub.f32 %v5463_v13, %v9933_v24  ;;  %v5073_v11 = vadd.f32 %v9938_v46, %v5072_v22  ;;  %v5123_v16 = vadd.f32 %v9927_v51, %v5122_v61 }
 0x8a7   :  { %v7061_v25 = vpop.f32.mrf.mxu0  ;;  %v7066_v45 = vpop.f32.mrf.mxu1 }
 0x8a8   :  { %v5497_v7 = vmax.f32 %v5481_v41, -60.0  ;;  %v5464_v21 = vadd.f32 %v7781_v3, %v5073_v11  ;;  %v5465_v60 = vadd.f32 %v7782_v54, %v5123_v16  ;;  %v7785_v16 = vld [vmem:[#allocation7 + $0x28] sm:$0xff] }
 0x8a9   :  { %v5125_v2 = vpop.f32.mrf.mxu1  ;;  %v5175_v55 = vpop.f32.mrf.mxu0 }
 0x8aa   :  { %v5513_v59 = vmul.f32 1.442695, %v5497_v7  ;;  %v5482_v38 = vsub.f32 %v5464_v21, %v9933_v24  ;;  %v5483_v49 = vsub.f32 %v5465_v60, %v9933_v24  ;;  %v5126_v27 = vadd.f32 %v9938_v46, %v5125_v2  ;;  %v7786_v7 = vld [vmem:[#allocation7 + $0x30] sm:$0xff] }
 0x8ab   :  { %v5176_v53 = vadd.f32 %v9927_v51, %v5175_v55  ;;  %v7067_v32 = vpop.f32.mrf.mxu1  ;;  %v7072_v26 = vpop.f32.mrf.mxu0 }
 0x8ac   :  { %7665 = vpow2.f32 %v5513_v59  ;;  %v5498_v6 = vmax.f32 %v5482_v38, -60.0  ;;  %v5499_v9 = vmax.f32 %v5483_v49, -60.0  ;;  %v5466_v29 = vadd.f32 %v7783_v56, %v5126_v27  ;;  %v7787_v26 = vld [vmem:[#allocation7 + $0x38] sm:$0xff] }
 0x8ad   :  { %v5467_v36 = vadd.f32 %v7784_v15, %v5176_v53  ;;  %v5178_v28 = vpop.f32.mrf.mxu0  ;;  %v5228_v10 = vpop.f32.mrf.mxu1 }
 0x8ae   :  { %v5515_v40 = vmul.f32 1.442695, %v5498_v6  ;;  %v5484_v47 = vsub.f32 %v5466_v29, %v9933_v24  ;;  %v5179_v44 = vadd.f32 %v9938_v46, %v5178_v28  ;;  %v5517_v34 = vmul.f32 1.442695, %v5499_v9  ;;  %v7788_v9 = vld [vmem:[#allocation7 + $0x40] sm:$0xff] }
 0x8af   :  { %v5485_v13 = vsub.f32 %v5467_v36, %v9933_v24  ;;  %v5229_v22 = vadd.f32 %v9927_v51, %v5228_v10  ;;  %v7073_v61 = vpop.f32.mrf.mxu0  ;;  %v7078_v41 = vpop.f32.mrf.mxu1 }
 0x8b0   :  { %7667 = vpow2.f32 %v5515_v40  ;;  %v5500_v11 = vmax.f32 %v5484_v47, -60.0  ;;  %v5468_v25 = vadd.f32 %v7785_v16, %v5179_v44 }
 0x8b1   :  { %v5501_v45 = vmax.f32 %v5485_v13, -60.0  ;;  %v5469_v3 = vadd.f32 %v7786_v7, %v5229_v22  ;;  %v5231_v21 = vpop.f32.mrf.mxu1  ;;  %v5281_v54 = vpop.f32.mrf.mxu0  ;;  %7669 = vpow2.f32 %v5517_v34 }
 0x8b2   :  { %v5519_v60 = vmul.f32 1.442695, %v5500_v11  ;;  %v5486_v2 = vsub.f32 %v5468_v25, %v9933_v24  ;;  %v5232_v55 = vadd.f32 %v9938_v46, %v5231_v21  ;;  %v5282_v59 = vadd.f32 %v9927_v51, %v5281_v54  ;;  %v7789_v11 = vld [vmem:[#allocation7 + $0x48] sm:$0xff] }
 0x8b3   :  { %v5521_v38 = vmul.f32 1.442695, %v5501_v45  ;;  %v5487_v49 = vsub.f32 %v5469_v3, %v9933_v24  ;;  %v7079_v27 = vpop.f32.mrf.mxu1  ;;  %v7084_v53 = vpop.f32.mrf.mxu0  ;;  %v7790_v45 = vld [vmem:[#allocation7 + $0x50] sm:$0xff] }
 0x8b4   :  { %7671 = vpow2.f32 %v5519_v60  ;;  %v5502_v32 = vmax.f32 %v5486_v2, -60.0  ;;  %v5470_v6 = vadd.f32 %v7787_v26, %v5232_v55  ;;  %v5471_v56 = vadd.f32 %v7788_v9, %v5282_v59  ;;  %v7791_v26 = vld [vmem:[#allocation7 + $0x58] sm:$0xff] }
 0x8b5   :  { %v5503_v29 = vmax.f32 %v5487_v49, -60.0  ;;  %v5284_v15 = vpop.f32.mrf.mxu0  ;;  %v5334_v36 = vpop.f32.mrf.mxu1  ;;  %7673 = vpow2.f32 %v5521_v38 }
 0x8b6   :  { %v5523_v28 = vmul.f32 1.442695, %v5502_v32  ;;  %v5488_v10 = vsub.f32 %v5470_v6, %v9933_v24  ;;  %v5489_v40 = vsub.f32 %v5471_v56, %v9933_v24  ;;  %v5285_v47 = vadd.f32 %v9938_v46, %v5284_v15 }
 0x8b7   :  { %v5525_v44 = vmul.f32 1.442695, %v5503_v29  ;;  %v5335_v34 = vadd.f32 %v9927_v51, %v5334_v36  ;;  %v7085_v13 = vpop.f32.mrf.mxu0  ;;  %v7090_v22 = vpop.f32.mrf.mxu1  ;;  %v7792_v29 = vld [vmem:[#allocation7 + $0x60] sm:$0xff] }
 0x8b8   :  { %7675 = vpow2.f32 %v5523_v28  ;;  %v5504_v61 = vmax.f32 %v5488_v10, -60.0  ;;  %v5505_v41 = vmax.f32 %v5489_v40, -60.0  ;;  %v5472_v16 = vadd.f32 %v7789_v11, %v5285_v47 }
 0x8b9   :  { %v9959_v25 = vpop.eup %7665  ;;  %v5473_v7 = vadd.f32 %v7790_v45, %v5335_v34  ;;  %v5337_v3 = vpop.f32.mrf.mxu1  ;;  %7677 = vpow2.f32 %v5525_v44  ;;  %v7793_v45 = vld [vmem:[#allocation7 + $0x68] sm:$0xff] }
 0x8ba   :  { %v5387_v21 = vpop.f32.mrf.mxu0  ;;  %v5527_v54 = vmul.f32 1.442695, %v5504_v61  ;;  %v5490_v60 = vsub.f32 %v5472_v16, %v9933_v24  ;;  %v5338_v2 = vadd.f32 %v9938_v46, %v5337_v3  ;;  %v5529_v55 = vmul.f32 1.442695, %v5505_v41  ;;  %v7794_v3 = vld [vmem:[#allocation7 + $0x70] sm:$0xff] }
 0x8bb   :  { %v5491_v59 = vsub.f32 %v5473_v7, %v9933_v24  ;;  %v5388_v38 = vadd.f32 %v9927_v51, %v5387_v21  ;;  %v5545_v49 = vsel %vm1112_vm4, %v9959_v25, 0.0  ;;  %v7091_v27 = vpop.f32.mrf.mxu1 }
 0x8bc   :  { %v7096_v53 = vpop.f32.mrf.mxu0  ;;  %7679 = vpow2.f32 %v5527_v54  ;;  %v5506_v32 = vmax.f32 %v5490_v60, -60.0  ;;  %v5474_v6 = vadd.f32 %v7791_v26, %v5338_v2  ;;  %5546 = vadd.xlane.f32.xlu1 %v5545_v49 }
 0x8bd   :  { %v9967_v9 = vpop.eup %7667  ;;  %v5507_v56 = vmax.f32 %v5491_v59, -60.0  ;;  %v5475_v15 = vadd.f32 %v7792_v29, %v5388_v38  ;;  %v5440_v28 = vpop.f32.mrf.mxu1  ;;  %7681 = vpow2.f32 %v5529_v55  ;;  %v7795_v29 = vld [vmem:[#allocation7 + $0x78] sm:$0xff] }
 0x8be   :  { %v5390_v36 = vpop.f32.mrf.mxu0  ;;  %v5531_v10 = vmul.f32 1.442695, %v5506_v32  ;;  %v5492_v40 = vsub.f32 %v5474_v6, %v9933_v24  ;;  %v5441_v44 = vadd.f32 %v9927_v51, %v5440_v28  ;;  %v5548_v22 = vsel %vm1112_vm4, %v9967_v9, 0.0  ;;  %v9975_v11 = vpop.eup %7669 }
 0x8bf   :  { %v5391_v47 = vadd.f32 %v9938_v46, %v5390_v36  ;;  %v5533_v34 = vmul.f32 1.442695, %v5507_v56  ;;  %v5493_v13 = vsub.f32 %v5475_v15, %v9933_v24  ;;  %v7102_v41 = vpop.f32.mrf.mxu1  ;;  %5549 = vadd.xlane.f32.xlu0 %v5548_v22  ;;  %v5551_v27 = vsel %vm1112_vm4, %v9975_v11, 0.0 }
 0x8c0   :  { %v7097_v61 = vpop.f32.mrf.mxu0  ;;  %7683 = vpow2.f32 %v5531_v10  ;;  %v5508_v16 = vmax.f32 %v5492_v40, -60.0  ;;  %v5477_v21 = vadd.f32 %v7794_v3, %v5441_v44 }
 0x8c1   :  { %v5476_v7 = vadd.f32 %v7793_v45, %v5391_v47  ;;  %v9977_v54 = vpop.eup %7671  ;;  %v5509_v51 = vmax.f32 %v5493_v13, -60.0  ;;  %v5443_v60 = vpop.f32.mrf.mxu1  ;;  %7685 = vpow2.f32 %v5533_v34 }
 0x8c2   :  { %v5535_v2 = vmul.f32 1.442695, %v5508_v16  ;;  %v5495_v59 = vsub.f32 %v5477_v21, %v9933_v24  ;;  %v5444_v38 = vadd.f32 %v9938_v46, %v5443_v60  ;;  %v5554_v53 = vsel %vm1112_vm4, %v9977_v54, 0.0  ;;  %v9986_v26 = vpop.eup %7673 }
 0x8c3   :  { %v5494_v55 = vsub.f32 %v5476_v7, %v9933_v24  ;;  %v5537_v49 = vmul.f32 1.442695, %v5509_v51  ;;  %v7103_v32 = vpop.f32.mrf.mxu1  ;;  %5552 = vadd.xlane.f32.xlu0 %v5551_v27  ;;  %5555 = vadd.xlane.f32.xlu1 %v5554_v53  ;;  %v5557_v44 = vsel %vm1112_vm4, %v9986_v26, 0.0 }
 0x8c4   :  { %7687 = vpow2.f32 %v5535_v2  ;;  %v5511_v56 = vmax.f32 %v5495_v59, -60.0  ;;  %v5478_v15 = vadd.f32 %v7795_v29, %v5444_v38  ;;  %v5640_v29 = vpack.c.bf16 %v9763_v30, %v9760_v19  ;;  %v10360_v30 = vld [vmem:[#allocation13_spill] sm:$0xff] }
 0x8c5   :  { %v5510_v6 = vmax.f32 %v5494_v55, -60.0  ;;  %v9988_v36 = vpop.eup %7675  ;;  %7689 = vpow2.f32 %v5537_v49  ;;  %v6558_v19 = vpack.c.bf16 %v9486_v14, %v9486_v14  ;;  %v6574_v14 = vpack.c.bf16 %v9906_v5, %v9906_v5 }
 0x8c6   :  { %v5496_v28 = vsub.f32 %v5478_v15, %v9933_v24  ;;  %v5560_v10 = vsel %vm1112_vm4, %v9988_v36, 0.0  ;;  %v9993_v40 = vpop.eup %7677  ;;  %v5541_v47 = vmul.f32 1.442695, %v5511_v56  ;;  %v6552_v56 = vpack.c.bf16 %v9449_v1, %v9449_v1 }
 0x8c7   :  { %v5539_v46 = vmul.f32 1.442695, %v5510_v6  ;;  %5558 = vadd.xlane.f32.xlu0 %v5557_v44  ;;  %5561 = vadd.xlane.f32.xlu1 %v5560_v10  ;;  %v5563_v61 = vsel %vm1112_vm4, %v9993_v40, 0.0  ;;  %v5639_v6 = vpack.c.bf16 %v9751_v57, %v9748_v0  ;;  %v6554_v15 = vpack.c.bf16 %v9465_v18, %v9465_v18  ;;  %v10364_v44 = vld [vmem:[#allocation16_spill] sm:$0xff] }
 0x8c8   :  { %v5512_v34 = vmax.f32 %v5496_v28, -60.0  ;;  %v6568_v1 = vpack.c.bf16 %v9894_v43, %v9894_v43  ;;  %v6555_v0 = vpack.c.bf16 %v9473_v62, %v9473_v62  ;;  %v6570_v18 = vpack.c.bf16 %v9898_v42, %v9898_v42  ;;  %v10362_v28 = vld [vmem:[#allocation14_spill] sm:$0xff] }
 0x8c9   :  { %7691 = vpow2.f32 %v5539_v46  ;;  %v9997_v13 = vpop.eup %7679  ;;  %v6553_v46 = vpack.c.bf16 %v9451_v12, %v9451_v12  ;;  %v6569_v12 = vpack.c.bf16 %v9896_v23, %v9896_v23  ;;  %v6556_v57 = vpack.c.bf16 %v9477_v8, %v9477_v8  ;;  %v10361_v23 = vld [vmem:[#allocation19_spill] sm:$0xff] }
 0x8ca   :  { %v5543_v22 = vmul.f32 1.442695, %v5512_v34  ;;  %v5566_v24 = vsel %vm1112_vm4, %v9997_v13, 0.0  ;;  %7693 = vpow2.f32 %v5541_v47  ;;  %v10003_v41 = vpop.eup %7681  ;;  %v6571_v62 = vpack.c.bf16 %v9900_v37, %v9900_v37  ;;  %v10363_v47 = vld [vmem:[#allocation18_spill] sm:$0xff] }
 0x8cb   :  { %5564 = vadd.xlane.f32.xlu0 %v5563_v61  ;;  %5567 = vadd.xlane.f32.xlu1 %v5566_v24  ;;  %v5569_v7 = vsel %vm1112_vm4, %v10003_v41, 0.0  ;;  %v6557_v43 = vpack.c.bf16 %v10360_v30, %v10360_v30  ;;  %v6572_v8 = vpack.c.bf16 %v9902_v17, %v9902_v17  ;;  %v6559_v42 = vpack.c.bf16 %v10361_v23, %v10361_v23 }
 0x8cc   :  { %7695 = vpow2.f32 %v5543_v22  ;;  %v6573_v37 = vpack.c.bf16 %v9904_v4, %v9904_v4  ;;  %v6560_v17 = vpack.c.bf16 %v10362_v28, %v10362_v28  ;;  %v6575_v10 = vpack.c.bf16 %v9908_v63, %v9908_v63  ;;  %v10365_v22 = vld [vmem:[#allocation17_spill] sm:$0xff] }
 0x8cd   :  { %v10005_v16 = vpop.eup %7683  ;;  %v6562_v5 = vpack.c.bf16 %v10363_v47, %v10363_v47  ;;  %v6561_v4 = vpack.c.bf16 %v10364_v44, %v10364_v44  ;;  %v6576_v34 = vpack.c.bf16 %v9910_v33, %v9910_v33  ;;  %v6563_v63 = vpack.c.bf16 %v10365_v22, %v10365_v22 }
 0x8ce   :  { %v5572_v45 = vsel %vm1112_vm4, %v10005_v16, 0.0  ;;  %v10011_v3 = vpop.eup %7685  ;;  %v6578_v24 = vpack.c.bf16 %v9914_v58, %v9914_v58  ;;  %v6577_v61 = vpack.c.bf16 %v9912_v31, %v9912_v31 }
 0x8cf   :  { %5570 = vadd.xlane.f32.xlu0 %v5569_v7  ;;  %5573 = vadd.xlane.f32.xlu1 %v5572_v45  ;;  %v5575_v60 = vsel %vm1112_vm4, %v10011_v3, 0.0  ;;  %v10366_v45 = vld [vmem:[#allocation15_spill] sm:$0xff]  ;;  %v6579_v7 = vpack.c.bf16 %v9916_v48, %v9916_v48 }
 0x8d0   :  { %v6564_v33 = vpack.c.bf16 %v10366_v45, %v10366_v45 }
 0x8d1   :  { %v10013_v21 = vpop.eup %7687 }
 0x8d2   :  { %v5578_v51 = vsel %vm1112_vm4, %v10013_v21, 0.0  ;;  %v10019_v2 = vpop.eup %7689 }
 0x8d3   :  { %5576 = vadd.xlane.f32.xlu0 %v5575_v60  ;;  %5579 = vadd.xlane.f32.xlu1 %v5578_v51  ;;  %v5581_v38 = vsel %vm1112_vm4, %v10019_v2, 0.0  ;;  %v10367_v51 = vld [vmem:[#allocation21_spill] sm:$0xff]  ;;  %v10368_v60 = vld [vmem:[#allocation20_spill] sm:$0xff] }
 0x8d4   :  { %v6566_v58 = vpack.c.bf16 %v10367_v51, %v10367_v51  ;;  %v6565_v31 = vpack.c.bf16 %v10368_v60, %v10368_v60 }
 0x8d6   :  { %v10021_v55 = vpop.eup %7691 }
 0x8d7   :  { %v5584_v59 = vsel %vm1112_vm4, %v10021_v55, 0.0  ;;  %v10027_v49 = vpop.eup %7693  ;;  %5582 = vadd.xlane.f32.xlu0 %v5581_v38  ;;  %v10369_v38 = vld [vmem:[#allocation22_spill] sm:$0xff] }
 0x8d8   :  { %5585 = vadd.xlane.f32.xlu1 %v5584_v59  ;;  %v5587_v32 = vsel %vm1112_vm4, %v10027_v49, 0.0  ;;  %v6580_v59 = vpack.c.bf16 %v9918_v20, %v9918_v20  ;;  %v6567_v48 = vpack.c.bf16 %v10369_v38, %v10369_v38  ;;  %v6583_v20 = vpack.c.bf16 %v9930_v50, %v9930_v50 }
 0x8d9   :  { %v10029_v27 = vpop.eup %7695 }
 0x8da   :  { %v5590_v53 = vsel %vm1112_vm4, %v10029_v27, 0.0 }
 0x8db   :  { %5588 = vadd.xlane.f32.xlu0 %v5587_v32  ;;  %v6581_v32 = vpack.c.bf16 %v9920_v39, %v9920_v39 }
 0x8dc   :  { %5591 = vadd.xlane.f32.xlu1 %v5590_v53  ;;  %v6582_v53 = vpack.c.bf16 %v9922_v35, %v9922_v35 }
 0x8ed   :  { %5930 = vrot.lane.b32.xlu1 %v5639_v6, %s7872_s2  ;;  %v5739_v6 = vpop.permute.xlu1 %5738 }
 0x8f1   :  { %3097 = vrot.lane.b32.xlu1 %v6552_v56, %s7857_s13  ;;  %5978 = vrot.lane.b32.xlu0 %v5640_v29, %s7872_s2  ;;  %v5787_v56 = vpop.permute.xlu0 %5786  ;;  %v5835_v29 = vpop.permute.xlu1 %5834 }
 0x8f5   :  { %3101 = vrot.lane.b32.xlu1 %v6554_v15, %s7857_s13  ;;  %3099 = vrot.lane.b32.xlu0 %v6553_v46, %s7857_s13  ;;  %v10137_v15 = vpop.permute.xlu0 %5882 }
 0x8f9   :  { %4585 = vrot.lane.b32.xlu1 %v6568_v1, %s7873_s4  ;;  %3103 = vrot.lane.b32.xlu0 %v6555_v0, %s7857_s13 }
 0x8fd   :  { %4589 = vrot.lane.b32.xlu1 %v6570_v18, %s7873_s4  ;;  %4587 = vrot.lane.b32.xlu0 %v6569_v12, %s7873_s4 }
 0x901   :  { %3105 = vrot.lane.b32.xlu1 %v6556_v57, %s7857_s13  ;;  %4591 = vrot.lane.b32.xlu0 %v6571_v62, %s7873_s4 }
 0x905   :  { %3109 = vrot.lane.b32.xlu1 %v6558_v19, %s7857_s13  ;;  %3107 = vrot.lane.b32.xlu0 %v6557_v43, %s7857_s13 }
 0x909   :  { %4593 = vrot.lane.b32.xlu1 %v6572_v8, %s7873_s4  ;;  %3111 = vrot.lane.b32.xlu0 %v6559_v42, %s7857_s13 }
 0x90d   :  { %4597 = vrot.lane.b32.xlu1 %v6574_v14, %s7873_s4  ;;  %4595 = vrot.lane.b32.xlu0 %v6573_v37, %s7873_s4 }
 0x911   :  { %3113 = vrot.lane.b32.xlu1 %v6560_v17, %s7857_s13  ;;  %4599 = vrot.lane.b32.xlu0 %v6575_v10, %s7873_s4 }
 0x915   :  { %3117 = vrot.lane.b32.xlu1 %v6562_v5, %s7857_s13  ;;  %3115 = vrot.lane.b32.xlu0 %v6561_v4, %s7857_s13 }
 0x919   :  { %4601 = vrot.lane.b32.xlu1 %v6576_v34, %s7873_s4  ;;  %3119 = vrot.lane.b32.xlu0 %v6563_v63, %s7857_s13 }
 0x91d   :  { %4605 = vrot.lane.b32.xlu1 %v6578_v24, %s7873_s4  ;;  %4603 = vrot.lane.b32.xlu0 %v6577_v61, %s7873_s4 }
 0x921   :  { %3121 = vrot.lane.b32.xlu1 %v6564_v33, %s7857_s13  ;;  %4607 = vrot.lane.b32.xlu0 %v6579_v7, %s7873_s4 }
 0x925   :  { %3125 = vrot.lane.b32.xlu1 %v6566_v58, %s7857_s13  ;;  %3123 = vrot.lane.b32.xlu0 %v6565_v31, %s7857_s13 }
 0x929   :  { %4609 = vrot.lane.b32.xlu1 %v6580_v59, %s7873_s4  ;;  %3127 = vrot.lane.b32.xlu0 %v6567_v48, %s7857_s13  ;;  %s7874_s13 = smov 24  }
 0x92d   :  { %4613 = vrot.lane.b32.xlu1 %v6582_v53, %s7873_s4  ;;  %4611 = vrot.lane.b32.xlu0 %v6581_v32, %s7873_s4 }
 0x931   :  { %4615 = vrot.lane.b32.xlu0 %v6583_v20, %s7873_s4 }
 0x945   :  { %v5547_v46 = vpop.xlane.xlu1 %5546 }
 0x946   :  { %7697 = vrcp.f32 %v5547_v46 }
 0x948   :  { %v5550_v35 = vpop.xlane.xlu0 %5549 }
 0x949   :  { %7699 = vrcp.f32 %v5550_v35 }
 0x94c   :  { %v5553_v1 = vpop.xlane.xlu0 %5552  ;;  %v5556_v39 = vpop.xlane.xlu1 %5555 }
 0x94d   :  { %7701 = vrcp.f32 %v5553_v1 }
 0x94e   :  { %7703 = vrcp.f32 %v5556_v39 }
 0x950   :  { %v5559_v0 = vpop.xlane.xlu0 %5558  ;;  %v5562_v18 = vpop.xlane.xlu1 %5561 }
 0x951   :  { %7705 = vrcp.f32 %v5559_v0 }
 0x952   :  { %7707 = vrcp.f32 %v5562_v18 }
 0x953   :  { %v7698_v50 = vpop.eup %7697 }
 0x954   :  { %v5565_v12 = vpop.xlane.xlu0 %5564  ;;  %v5568_v57 = vpop.xlane.xlu1 %5567  ;;  %v5609_v19 = vmul.f32 %v7698_v50, %v9959_v25 }
 0x955   :  { %7709 = vrcp.f32 %v5565_v12 }
 0x956   :  { %v7700_v62 = vpop.eup %7699  ;;  %7711 = vrcp.f32 %v5568_v57 }
 0x957   :  { %v5610_v30 = vmul.f32 %v7700_v62, %v9967_v9 }
 0x958   :  { %v5571_v43 = vpop.xlane.xlu0 %5570  ;;  %v5574_v8 = vpop.xlane.xlu1 %5573 }
 0x959   :  { %v5625_v23 = vpack.c.bf16 %v5610_v30, %v5609_v19  ;;  %7713 = vrcp.f32 %v5571_v43 }
 0x95a   :  { %v7702_v42 = vpop.eup %7701  ;;  %7715 = vrcp.f32 %v5574_v8 }
 0x95b   :  { %v7704_v14 = vpop.eup %7703  ;;  %v5611_v37 = vmul.f32 %v7702_v42, %v9975_v11  ;;  %7107 = vmatmul.mubr.msk.bf16.vlgmr.msra.gmra.mxu0 %vm1112_vm4, %v5625_v23 }
 0x95c   :  { %v5612_v28 = vmul.f32 %v7704_v14, %v9977_v54  ;;  %7117 = vmatpush3.bf16.msra.mxu0 %v5739_v6  ;;  %v5577_v17 = vpop.xlane.xlu0 %5576  ;;  %v5580_v10 = vpop.xlane.xlu1 %5579  ;;  %7118 = vmatprep.mubr.msk.bf16.mxu0 %vm7863_vm3, %v10345_v52 }
 0x95d   :  { %7717 = vrcp.f32 %v5577_v17  ;;  %7128 = vmatprep.subr.bf16.mxu0 %v10345_v52 }
 0x95e   :  { %v7706_v25 = vpop.eup %7705  ;;  %v5626_v9 = vpack.c.bf16 %v5612_v28, %v5611_v37  ;;  %7719 = vrcp.f32 %v5580_v10 }
 0x95f   :  { %v7708_v47 = vpop.eup %7707  ;;  %v5613_v5 = vmul.f32 %v7706_v25, %v9986_v26 }
 0x960   :  { %v5614_v11 = vmul.f32 %v7708_v47, %v9988_v36  ;;  %7113 = vmatmul.mubr.msk.bf16.vlgmr.msra.gmra.mxu1 %vm1112_vm4, %v5626_v9  ;;  %v5583_v54 = vpop.xlane.xlu0 %5582 }
 0x961   :  { %v5586_v44 = vpop.xlane.xlu1 %5585  ;;  %7123 = vmatpush3.bf16.msra.mxu1 %v5787_v56  ;;  %7721 = vrcp.f32 %v5583_v54  ;;  %7124 = vmatprep.mubr.msk.bf16.mxu1 %vm7863_vm3, %v10345_v52  ;;  %v7207_v54 = vld [vmem:[#allocation8 + $0x8] sm:$0xff]  }
 0x962   :  { %v7710_v4 = vpop.eup %7709  ;;  %v5627_v34 = vpack.c.bf16 %v5614_v11, %v5613_v5  ;;  %7723 = vrcp.f32 %v5586_v44  ;;  %7134 = vmatprep.subr.bf16.mxu1 %v10345_v52 }
 0x963   :  { %v7712_v22 = vpop.eup %7711  ;;  %v5615_v63 = vmul.f32 %v7710_v4, %v9993_v40 }
 0x964   :  { %v5616_v26 = vmul.f32 %v7712_v22, %v9997_v13  ;;  %7119 = vmatmul.mubr.msk.bf16.vlgmr.msra.gmra.mxu0 %vm1112_vm4, %v5627_v34  ;;  %v5589_v36 = vpop.xlane.xlu0 %5588  ;;  %v7208_v22 = vld [vmem:[#allocation8] sm:$0xff]  }
 0x965   :  { %v5592_v24 = vpop.xlane.xlu1 %5591  ;;  %7129 = vmatpush3.bf16.msra.mxu0 %v5835_v29  ;;  %7725 = vrcp.f32 %v5589_v36  ;;  %7130 = vmatprep.mubr.msk.bf16.mxu0 %vm7863_vm3, %v10345_v52 }
 0x966   :  { %v7714_v61 = vpop.eup %7713  ;;  %v5628_v45 = vpack.c.bf16 %v5616_v26, %v5615_v63  ;;  %7727 = vrcp.f32 %v5592_v24  ;;  %7140 = vmatprep.subr.bf16.mxu0 %v10345_v52 }
 0x967   :  { %v7716_v33 = vpop.eup %7715  ;;  %v5617_v7 = vmul.f32 %v7714_v61, %v10003_v41 }
 0x968   :  { %v5618_v40 = vmul.f32 %v7716_v33, %v10005_v16  ;;  %7125 = vmatmul.mubr.msk.bf16.vlgmr.msra.gmra.mxu1 %vm1112_vm4, %v5628_v45  ;;  %v5979_v13 = vpop.permute.xlu0 %5978 }
 0x969   :  { %v5931_v51 = vpop.permute.xlu1 %5930  ;;  %7135 = vmatpush3.bf16.msra.mxu1 %v10137_v15  ;;  %7136 = vmatprep.mubr.msk.bf16.mxu1 %vm7863_vm3, %v10345_v52 }
 0x96a   :  { %v7718_v58 = vpop.eup %7717  ;;  %v5629_v60 = vpack.c.bf16 %v5618_v40, %v5617_v7  ;;  %7146 = vmatprep.subr.bf16.mxu1 %v10345_v52 }
 0x96b   :  { %v7720_v31 = vpop.eup %7719  ;;  %v5619_v59 = vmul.f32 %v7718_v58, %v10011_v3 }
 0x96c   :  { %v5620_v41 = vmul.f32 %v7720_v31, %v10013_v21  ;;  %7131 = vmatmul.mubr.msk.bf16.vlgmr.msra.gmra.mxu0 %vm1112_vm4, %v5629_v60  ;;  %v3100_v16 = vpop.permute.xlu0 %3099 }
 0x96d   :  { %v3098_v38 = vpop.permute.xlu1 %3097  ;;  %7141 = vmatpush3.bf16.msra.mxu0 %v5931_v51  ;;  %3147 = vst.msk [vmem:[#allocation3 + $0x4] sm:$0xf] %vm3145_vm6, %v3100_v16  ;;  %7142 = vmatprep.mubr.msk.bf16.mxu0 %vm7863_vm3, %v10345_v52 }
 0x96e   :  { %3146 = vst.msk [vmem:[#allocation3] sm:$0xf] %vm3145_vm6, %v3098_v38  ;;  %v7722_v48 = vpop.eup %7721  ;;  %v5630_v53 = vpack.c.bf16 %v5620_v41, %v5619_v59  ;;  %7152 = vmatprep.subr.bf16.mxu0 %v7207_v54 }
 0x96f   :  { %v7724_v32 = vpop.eup %7723  ;;  %v5621_v20 = vmul.f32 %v7722_v48, %v10019_v2 }
 0x970   :  { %v5622_v3 = vmul.f32 %v7724_v32, %v10021_v55  ;;  %7137 = vmatmul.mubr.msk.bf16.vlgmr.msra.gmra.mxu1 %vm1112_vm4, %v5630_v53  ;;  %v3104_v21 = vpop.permute.xlu0 %3103 }
 0x971   :  { %v3102_v6 = vpop.permute.xlu1 %3101  ;;  %7147 = vmatpush3.bf16.msra.mxu1 %v5979_v13  ;;  %3149 = vst.msk [vmem:[#allocation3 + $0xc] sm:$0xf] %vm3145_vm6, %v3104_v21  ;;  %7148 = vmatprep.mubr.msk.bf16.mxu1 %vm7863_vm3, %v10345_v52 }
 0x972   :  { %3148 = vst.msk [vmem:[#allocation3 + $0x8] sm:$0xf] %vm3145_vm6, %v3102_v6  ;;  %v7726_v56 = vpop.eup %7725  ;;  %v5631_v29 = vpack.c.bf16 %v5622_v3, %v5621_v20 }
 0x973   :  { %v7728_v15 = vpop.eup %7727  ;;  %v5623_v2 = vmul.f32 %v7726_v56, %v10027_v49 }
 0x974   :  { %v5624_v55 = vmul.f32 %v7728_v15, %v10029_v27  ;;  %7143 = vmatmul.mubr.msk.bf16.vlgmr.msra.gmra.mxu0 %vm1112_vm4, %v5631_v29  ;;  %v4588_v46 = vpop.permute.xlu0 %4587 }
 0x975   :  { %v4586_v35 = vpop.permute.xlu1 %4585  ;;  %4635 = vst.msk [vmem:[#allocation3 + $0x4] sm:$0xf] %vm4633_vm7, %v4588_v46  ;;  %7153 = vmatpush3.bf16.msra.mxu0 %v7207_v54 }
 0x976   :  { %4634 = vst.msk [vmem:[#allocation3] sm:$0xf] %vm4633_vm7, %v4586_v35  ;;  %v5632_v1 = vpack.c.bf16 %v5624_v55, %v5623_v2  ;;  %7154 = vmatprep.subr.bf16.mxu0 %v7208_v22 }
 0x978   :  { %7149 = vmatmul.mubr.msk.bf16.vlgmr.msra.gmra.mxu1 %vm1112_vm4, %v5632_v1  ;;  %v4592_v52 = vpop.permute.xlu0 %4591 }
 0x979   :  { %v4590_v39 = vpop.permute.xlu1 %4589  ;;  %4637 = vst.msk [vmem:[#allocation3 + $0xc] sm:$0xf] %vm4633_vm7, %v4592_v52  ;;  %7155 = vmatpush3.bf16.msra.mxu0 %v7208_v22 }
 0x97a   :  { %4636 = vst.msk [vmem:[#allocation3 + $0x8] sm:$0xf] %vm4633_vm7, %v4590_v39 }
 0x97c   :  { %v3108_v49 = vpop.permute.xlu0 %3107 }
 0x97d   :  { %v3106_v0 = vpop.permute.xlu1 %3105  ;;  %3151 = vst.msk [vmem:[#allocation3 + $0x14] sm:$0xf] %vm3145_vm6, %v3108_v49 }
 0x97e   :  { %3150 = vst.msk [vmem:[#allocation3 + $0x10] sm:$0xf] %vm3145_vm6, %v3106_v0 }
 0x980   :  { %v3112_v27 = vpop.permute.xlu0 %3111 }
 0x981   :  { %v3110_v18 = vpop.permute.xlu1 %3109  ;;  %3153 = vst.msk [vmem:[#allocation3 + $0x1c] sm:$0xf] %vm3145_vm6, %v3112_v27 }
 0x982   :  { %3152 = vst.msk [vmem:[#allocation3 + $0x18] sm:$0xf] %vm3145_vm6, %v3110_v18 }
 0x984   :  { %v4596_v50 = vpop.permute.xlu0 %4595 }
 0x985   :  { %v4594_v12 = vpop.permute.xlu1 %4593  ;;  %4639 = vst.msk [vmem:[#allocation3 + $0x14] sm:$0xf] %vm4633_vm7, %v4596_v50 }
 0x986   :  { %4638 = vst.msk [vmem:[#allocation3 + $0x10] sm:$0xf] %vm4633_vm7, %v4594_v12 }
 0x988   :  { %v4600_v57 = vpop.permute.xlu0 %4599 }
 0x989   :  { %v4598_v62 = vpop.permute.xlu1 %4597  ;;  %4641 = vst.msk [vmem:[#allocation3 + $0x1c] sm:$0xf] %vm4633_vm7, %v4600_v57 }
 0x98a   :  { %4640 = vst.msk [vmem:[#allocation3 + $0x18] sm:$0xf] %vm4633_vm7, %v4598_v62 }
 0x98c   :  { %v3116_v19 = vpop.permute.xlu0 %3115 }
 0x98d   :  { %v3114_v30 = vpop.permute.xlu1 %3113  ;;  %3155 = vst.msk [vmem:[#allocation3 + $0x24] sm:$0xf] %vm3145_vm6, %v3116_v19 }
 0x98e   :  { %3154 = vst.msk [vmem:[#allocation3 + $0x20] sm:$0xf] %vm3145_vm6, %v3114_v30 }
 0x990   :  { %v3120_v43 = vpop.permute.xlu0 %3119 }
 0x991   :  { %v3118_v8 = vpop.permute.xlu1 %3117  ;;  %3157 = vst.msk [vmem:[#allocation3 + $0x2c] sm:$0xf] %vm3145_vm6, %v3120_v43 }
 0x992   :  { %3156 = vst.msk [vmem:[#allocation3 + $0x28] sm:$0xf] %vm3145_vm6, %v3118_v8 }
 0x994   :  { %v4604_v23 = vpop.permute.xlu0 %4603 }
 0x995   :  { %v4602_v42 = vpop.permute.xlu1 %4601  ;;  %4643 = vst.msk [vmem:[#allocation3 + $0x24] sm:$0xf] %vm4633_vm7, %v4604_v23 }
 0x996   :  { %4642 = vst.msk [vmem:[#allocation3 + $0x20] sm:$0xf] %vm4633_vm7, %v4602_v42 }
 0x998   :  { %v4608_v14 = vpop.permute.xlu0 %4607 }
 0x999   :  { %v4606_v37 = vpop.permute.xlu1 %4605  ;;  %4645 = vst.msk [vmem:[#allocation3 + $0x2c] sm:$0xf] %vm4633_vm7, %v4608_v14 }
 0x99a   :  { %4644 = vst.msk [vmem:[#allocation3 + $0x28] sm:$0xf] %vm4633_vm7, %v4606_v37 }
 0x99c   :  { %v3124_v28 = vpop.permute.xlu0 %3123 }
 0x99d   :  { %v3122_v17 = vpop.permute.xlu1 %3121  ;;  %3159 = vst.msk [vmem:[#allocation3 + $0x34] sm:$0xf] %vm3145_vm6, %v3124_v28 }
 0x99e   :  { %3158 = vst.msk [vmem:[#allocation3 + $0x30] sm:$0xf] %vm3145_vm6, %v3122_v17 }
 0x9a0   :  { %v3128_v10 = vpop.permute.xlu0 %3127 }
 0x9a1   :  { %v3126_v25 = vpop.permute.xlu1 %3125  ;;  %3161 = vst.msk [vmem:[#allocation3 + $0x3c] sm:$0xf] %vm3145_vm6, %v3128_v10 }
 0x9a2   :  { %3160 = vst.msk [vmem:[#allocation3 + $0x38] sm:$0xf] %vm3145_vm6, %v3126_v25 }
 0x9a4   :  { %v4612_v9 = vpop.permute.xlu0 %4611 }
 0x9a5   :  { %v4610_v47 = vpop.permute.xlu1 %4609  ;;  %4647 = vst.msk [vmem:[#allocation3 + $0x34] sm:$0xf] %vm4633_vm7, %v4612_v9 }
 0x9a6   :  { %4646 = vst.msk [vmem:[#allocation3 + $0x30] sm:$0xf] %vm4633_vm7, %v4610_v47 }
 0x9a8   :  { %v4616_v5 = vpop.permute.xlu0 %4615 }
 0x9a9   :  { %v4614_v11 = vpop.permute.xlu1 %4613  ;;  %4649 = vst.msk [vmem:[#allocation3 + $0x3c] sm:$0xf] %vm4633_vm7, %v4616_v5 }
 0x9aa   :  { %4648 = vst.msk [vmem:[#allocation3 + $0x38] sm:$0xf] %vm4633_vm7, %v4614_v11 }
 0xa1b   :  { %v5682_v44 = vpop.f32.mrf.mxu0 }
 0xa1c   :  { %v6584_v4 = vpack.c.bf16 %v5682_v44, %v5682_v44 }
 0xa1d   :  { %v7108_v34 = vpop.f32.mrf.mxu0 }
 0xa1e   :  { %6073 = vrot.lane.b32.xlu1 %v6584_v4, %s7874_s13 }
 0xa1f   :  { %v5685_v63 = vpop.f32.mrf.mxu0 }
 0xa20   :  { %v6585_v26 = vpack.c.bf16 %v5685_v63, %v5685_v63  ;;  %v5730_v36 = vpop.f32.mrf.mxu1 }
 0xa21   :  { %v6586_v24 = vpack.c.bf16 %v5730_v36, %v5730_v36  ;;  %v7109_v61 = vpop.f32.mrf.mxu0 }
 0xa22   :  { %v7114_v45 = vpop.f32.mrf.mxu1  ;;  %6075 = vrot.lane.b32.xlu0 %v6585_v26, %s7874_s13 }
 0xa23   :  { %6077 = vrot.lane.b32.xlu1 %v6586_v24, %s7874_s13  ;;  %v6517_v45 = vld [vmem:[%s10326_s7] ss:$0 sm:$0xff] }
 0xa24   :  { %v5733_v33 = vpop.f32.mrf.mxu1  ;;  %v5778_v7 = vpop.f32.mrf.mxu0 }
 0xa25   :  { %v6587_v40 = vpack.c.bf16 %v5733_v33, %v5733_v33  ;;  %v6588_v13 = vpack.c.bf16 %v5778_v7, %v5778_v7 }
 0xa26   :  { %v7115_v51 = vpop.f32.mrf.mxu1  ;;  %v7120_v58 = vpop.f32.mrf.mxu0 }
 0xa27   :  { %6079 = vrot.lane.b32.xlu0 %v6587_v40, %s7874_s13  ;;  %6081 = vrot.lane.b32.xlu1 %v6588_v13, %s7874_s13 }
 0xa28   :  { %v5781_v60 = vpop.f32.mrf.mxu0  ;;  %v5826_v31 = vpop.f32.mrf.mxu1 }
 0xa29   :  { %v6589_v59 = vpack.c.bf16 %v5781_v60, %v5781_v60  ;;  %v6590_v41 = vpack.c.bf16 %v5826_v31, %v5826_v31 }
 0xa2a   :  { %v7121_v16 = vpop.f32.mrf.mxu0  ;;  %v7126_v38 = vpop.f32.mrf.mxu1 }
 0xa2b   :  { %6083 = vrot.lane.b32.xlu0 %v6589_v59, %s7874_s13  ;;  %6085 = vrot.lane.b32.xlu1 %v6590_v41, %s7874_s13 }
 0xa2c   :  { %v5829_v48 = vpop.f32.mrf.mxu1  ;;  %v5874_v53 = vpop.f32.mrf.mxu0 }
 0xa2d   :  { %v6591_v32 = vpack.c.bf16 %v5829_v48, %v5829_v48  ;;  %v6592_v20 = vpack.c.bf16 %v5874_v53, %v5874_v53 }
 0xa2e   :  { %v7127_v3 = vpop.f32.mrf.mxu1  ;;  %v7132_v21 = vpop.f32.mrf.mxu0 }
 0xa2f   :  { %6087 = vrot.lane.b32.xlu0 %v6591_v32, %s7874_s13  ;;  %6089 = vrot.lane.b32.xlu1 %v6592_v20, %s7874_s13 }
 0xa30   :  { %v5877_v6 = vpop.f32.mrf.mxu0  ;;  %v5922_v56 = vpop.f32.mrf.mxu1 }
 0xa31   :  { %v6593_v29 = vpack.c.bf16 %v5877_v6, %v5877_v6  ;;  %v6594_v15 = vpack.c.bf16 %v5922_v56, %v5922_v56 }
 0xa32   :  { %v7133_v2 = vpop.f32.mrf.mxu0  ;;  %v7138_v55 = vpop.f32.mrf.mxu1 }
 0xa33   :  { %6091 = vrot.lane.b32.xlu0 %v6593_v29, %s7874_s13  ;;  %6093 = vrot.lane.b32.xlu1 %v6594_v15, %s7874_s13 }
 0xa34   :  { %v5925_v46 = vpop.f32.mrf.mxu1  ;;  %v5970_v35 = vpop.f32.mrf.mxu0 }
 0xa35   :  { %v6595_v1 = vpack.c.bf16 %v5925_v46, %v5925_v46  ;;  %v6596_v52 = vpack.c.bf16 %v5970_v35, %v5970_v35 }
 0xa36   :  { %v7139_v39 = vpop.f32.mrf.mxu1  ;;  %v7144_v49 = vpop.f32.mrf.mxu0 }
 0xa37   :  { %6095 = vrot.lane.b32.xlu0 %v6595_v1, %s7874_s13  ;;  %6097 = vrot.lane.b32.xlu1 %v6596_v52, %s7874_s13 }
 0xa38   :  { %v5973_v0 = vpop.f32.mrf.mxu0  ;;  %v6018_v27 = vpop.f32.mrf.mxu1 }
 0xa39   :  { %v6597_v18 = vpack.c.bf16 %v5973_v0, %v5973_v0  ;;  %v6598_v50 = vpack.c.bf16 %v6018_v27, %v6018_v27 }
 0xa3a   :  { %v7145_v12 = vpop.f32.mrf.mxu0  ;;  %v7150_v57 = vpop.f32.mrf.mxu1 }
 0xa3b   :  { %6101 = vrot.lane.b32.xlu1 %v6598_v50, %s7874_s13  ;;  %6099 = vrot.lane.b32.xlu0 %v6597_v18, %s7874_s13 }
 0xa3c   :  { %v6021_v62 = vpop.f32.mrf.mxu1 }
 0xa3d   :  { %v6599_v19 = vpack.c.bf16 %v6021_v62, %v6021_v62 }
 0xa3e   :  { %v7151_v30 = vpop.f32.mrf.mxu1 }
 0xa3f   :  { %6103 = vrot.lane.b32.xlu0 %v6599_v19, %s7874_s13 }
 0xa90   :  { %v6074_v43 = vpop.permute.xlu1 %6073 }
 0xa91   :  { %6122 = vst.msk [vmem:[#allocation3] sm:$0xf] %vm6121_vm8, %v6074_v43 }
 0xa94   :  { %v6076_v8 = vpop.permute.xlu0 %6075 }
 0xa95   :  { %6123 = vst.msk [vmem:[#allocation3 + $0x4] sm:$0xf] %vm6121_vm8, %v6076_v8  ;;  %v6078_v23 = vpop.permute.xlu1 %6077 }
 0xa96   :  { %6124 = vst.msk [vmem:[#allocation3 + $0x8] sm:$0xf] %vm6121_vm8, %v6078_v23 }
 0xa99   :  { %v6080_v42 = vpop.permute.xlu0 %6079  ;;  %v6082_v14 = vpop.permute.xlu1 %6081 }
 0xa9a   :  { %6125 = vst.msk [vmem:[#allocation3 + $0xc] sm:$0xf] %vm6121_vm8, %v6080_v42  ;;  %6126 = vst.msk [vmem:[#allocation3 + $0x10] sm:$0xf] %vm6121_vm8, %v6082_v14 }
 0xa9c   :  { %v7209_v37 = vld [vmem:[#allocation3] sm:$0xff]  }
 0xa9d   :  { %v6084_v28 = vpop.permute.xlu0 %6083  ;;  %v6086_v17 = vpop.permute.xlu1 %6085  ;;  %7156 = vmatprep.mubr.msk.bf16.mxu0 %vm150_vm0, %v7209_v37 }
 0xa9e   :  { %6127 = vst.msk [vmem:[#allocation3 + $0x14] sm:$0xf] %vm6121_vm8, %v6084_v28  ;;  %6128 = vst.msk [vmem:[#allocation3 + $0x18] sm:$0xf] %vm6121_vm8, %v6086_v17 }
 0xaa1   :  { %v6088_v10 = vpop.permute.xlu0 %6087  ;;  %v6090_v25 = vpop.permute.xlu1 %6089  ;;  %v7210_v9 = vld [vmem:[#allocation3 + $0x8] sm:$0xff]  }
 0xaa2   :  { %6129 = vst.msk [vmem:[#allocation3 + $0x1c] sm:$0xf] %vm6121_vm8, %v6088_v10  ;;  %6130 = vst.msk [vmem:[#allocation3 + $0x20] sm:$0xf] %vm6121_vm8, %v6090_v25  ;;  %7157 = vmatmul.mubr.msk.bf16.vlgmr.msra.gmra.mxu0 %vm150_vm0, %v7210_v9 }
 0xaa5   :  { %v6092_v47 = vpop.permute.xlu0 %6091  ;;  %v6094_v5 = vpop.permute.xlu1 %6093  ;;  %v7211_v11 = vld [vmem:[#allocation3 + $0x10] sm:$0xff]  }
 0xaa6   :  { %6131 = vst.msk [vmem:[#allocation3 + $0x24] sm:$0xf] %vm6121_vm8, %v6092_v47  ;;  %6132 = vst.msk [vmem:[#allocation3 + $0x28] sm:$0xf] %vm6121_vm8, %v6094_v5  ;;  %7160 = vmatprep.mubr.msk.bf16.mxu0 %vm150_vm0, %v7211_v11 }
 0xaa9   :  { %v6096_v54 = vpop.permute.xlu0 %6095  ;;  %v6098_v44 = vpop.permute.xlu1 %6097  ;;  %v7212_v4 = vld [vmem:[#allocation3 + $0x18] sm:$0xff]  }
 0xaaa   :  { %6133 = vst.msk [vmem:[#allocation3 + $0x2c] sm:$0xf] %vm6121_vm8, %v6096_v54  ;;  %6134 = vst.msk [vmem:[#allocation3 + $0x30] sm:$0xf] %vm6121_vm8, %v6098_v44  ;;  %7161 = vmatmul.mubr.msk.bf16.gmra.mxu0 %vm150_vm0, %v7212_v4 }
 0xaad   :  { %v6100_v34 = vpop.permute.xlu0 %6099  ;;  %v6102_v22 = vpop.permute.xlu1 %6101  ;;  %v7213_v63 = vld [vmem:[#allocation3 + $0x20] sm:$0xff]  }
 0xaae   :  { %6135 = vst.msk [vmem:[#allocation3 + $0x34] sm:$0xf] %vm6121_vm8, %v6100_v34  ;;  %6136 = vst.msk [vmem:[#allocation3 + $0x38] sm:$0xf] %vm6121_vm8, %v6102_v22  ;;  %7164 = vmatprep.mubr.msk.bf16.mxu0 %vm150_vm0, %v7213_v63 }
 0xab1   :  { %v6104_v26 = vpop.permute.xlu0 %6103  ;;  %v7214_v36 = vld [vmem:[#allocation3 + $0x28] sm:$0xff]  }
 0xab2   :  { %6137 = vst.msk [vmem:[#allocation3 + $0x3c] sm:$0xf] %vm6121_vm8, %v6104_v26  ;;  %7165 = vmatmul.mubr.msk.bf16.gmra.mxu0 %vm150_vm0, %v7214_v36 }
 0xab5   :  { %v7215_v24 = vld [vmem:[#allocation3 + $0x30] sm:$0xff]  }
 0xab6   :  { %7168 = vmatprep.mubr.msk.bf16.mxu0 %vm150_vm0, %v7215_v24 }
 0xab9   :  { %v7216_v61 = vld [vmem:[#allocation3 + $0x38] sm:$0xff]  }
 0xaba   :  { %7169 = vmatmul.mubr.msk.bf16.gmra.mxu0 %vm150_vm0, %v7216_v61 }
 0xb62   :  { %v7158_v33 = vpop.f32.mrf.mxu0 }
 0xb63   :  { %v6284_v7 = vadd.f32 %v7158_v33, %v6517_v45 }
 0xb64   :  { %v6275_v40 = vpop.f32.mrf.mxu0 }
 0xb65   :  { %6340 = vst.msk [vmem:[%s10327_s8 + $0x10] sm:$0xff] %vm150_vm0, %v6284_v7  ;;  %v6276_v13 = vadd.f32 %v6517_v45, %v6275_v40 }
 0xb66   :  { %v7159_v51 = vpop.f32.mrf.mxu0 }
 0xb67   :  { %6338 = vst.msk [vmem:[%s10327_s8] sm:$0xff] %vm150_vm0, %v6276_v13  ;;  %v6287_v58 = vadd.f32 %v7159_v51, %v6517_v45 }
 0xb68   :  { %v6278_v60 = vpop.f32.mrf.mxu0 }
 0xb69   :  { %6341 = vst.msk [vmem:[%s10327_s8 + $0x18] sm:$0xff] %vm150_vm0, %v6287_v58  ;;  %v6279_v31 = vadd.f32 %v6517_v45, %v6278_v60 }
 0xb6a   :  { %v7162_v59 = vpop.f32.mrf.mxu0 }
 0xb6b   :  { %6339 = vst.msk [vmem:[%s10327_s8 + $0x8] sm:$0xff] %vm150_vm0, %v6279_v31  ;;  %v6300_v41 = vadd.f32 %v7162_v59, %v6517_v45 }
 0xb6c   :  { %v6291_v16 = vpop.f32.mrf.mxu0 }
 0xb6d   :  { %6344 = vst.msk [vmem:[%s10327_s8 + $0x30] sm:$0xff] %vm150_vm0, %v6300_v41  ;;  %v6292_v38 = vadd.f32 %v6517_v45, %v6291_v16 }
 0xb6e   :  { %v7163_v48 = vpop.f32.mrf.mxu0 }
 0xb6f   :  { %6342 = vst.msk [vmem:[%s10327_s8 + $0x20] sm:$0xff] %vm150_vm0, %v6292_v38  ;;  %v6303_v53 = vadd.f32 %v7163_v48, %v6517_v45 }
 0xb70   :  { %v6294_v32 = vpop.f32.mrf.mxu0 }
 0xb71   :  { %6345 = vst.msk [vmem:[%s10327_s8 + $0x38] sm:$0xff] %vm150_vm0, %v6303_v53  ;;  %v6295_v20 = vadd.f32 %v6517_v45, %v6294_v32 }
 0xb72   :  { %v7166_v3 = vpop.f32.mrf.mxu0 }
 0xb73   :  { %6343 = vst.msk [vmem:[%s10327_s8 + $0x28] sm:$0xff] %vm150_vm0, %v6295_v20  ;;  %v6316_v21 = vadd.f32 %v7166_v3, %v6517_v45 }
 0xb74   :  { %v6307_v6 = vpop.f32.mrf.mxu0 }
 0xb75   :  { %6348 = vst.msk [vmem:[%s10327_s8 + $0x50] sm:$0xff] %vm150_vm0, %v6316_v21  ;;  %v6308_v56 = vadd.f32 %v6517_v45, %v6307_v6 }
 0xb76   :  { %v7167_v29 = vpop.f32.mrf.mxu0 }
 0xb77   :  { %6346 = vst.msk [vmem:[%s10327_s8 + $0x40] sm:$0xff] %vm150_vm0, %v6308_v56  ;;  %v6319_v15 = vadd.f32 %v7167_v29, %v6517_v45 }
 0xb78   :  { %v6310_v2 = vpop.f32.mrf.mxu0 }
 0xb79   :  { %6349 = vst.msk [vmem:[%s10327_s8 + $0x58] sm:$0xff] %vm150_vm0, %v6319_v15  ;;  %v6311_v55 = vadd.f32 %v6517_v45, %v6310_v2 }
 0xb7a   :  { %v7170_v46 = vpop.f32.mrf.mxu0 }
 0xb7b   :  { %6347 = vst.msk [vmem:[%s10327_s8 + $0x48] sm:$0xff] %vm150_vm0, %v6311_v55  ;;  %v6332_v35 = vadd.f32 %v7170_v46, %v6517_v45 }
 0xb7c   :  { %v6323_v1 = vpop.f32.mrf.mxu0 }
 0xb7d   :  { %6352 = vst.msk [vmem:[%s10327_s8 + $0x70] sm:$0xff] %vm150_vm0, %v6332_v35  ;;  %v6324_v52 = vadd.f32 %v6517_v45, %v6323_v1 }
 0xb7e   :  { %v7171_v39 = vpop.f32.mrf.mxu0 }
 0xb7f   :  { %6350 = vst.msk [vmem:[%s10327_s8 + $0x60] sm:$0xff] %vm150_vm0, %v6324_v52  ;;  %v6335_v49 = vadd.f32 %v7171_v39, %v6517_v45 }
 0xb80   :  { %v6326_v0 = vpop.f32.mrf.mxu0 }
 0xb81   :  { %6353 = vst.msk [vmem:[%s10327_s8 + $0x78] sm:$0xff] %vm150_vm0, %v6335_v49  ;;  %v6327_v27 = vadd.f32 %v6517_v45, %v6326_v0 }
 0xb83   :  { %6351 = vst.msk [vmem:[%s10327_s8 + $0x68] sm:$0xff] %vm150_vm0, %v6327_v27 }
 0xb84   :  { %6358 = vsyncpa [#allocation5], 1 }
 0xb85   :  { %6359 = vsyncpa [#allocation9], 1 }
 0xb86   :  { %6360 = vsyncpa [#allocation6], 1 }

// kernel: tpu_custom_call.1
= control target key start
LH: loop header
LB: loop body
LE: loop exit
PB: predicated region body
PF: predicated region fallthrough
CT: control target
= control target key end

     0   :  { %13 = vsyncpa [#allocation6], 0  ;;  %s10319_s0 = inlined_call_operand.vmem [shape: bf16[128,32], index: 0, kind: input, shape index: {}]   ;;  %s10320_s1 = inlined_call_operand.vmem [shape: bf16[32,96], index: 1, kind: input, shape index: {}]   ;;  %s10321_s2 = inlined_call_operand.vmem [shape: f32[1,96], index: 2, kind: input, shape index: {}]   ;;  %s10322_s3 = inlined_call_operand.vmem [shape: f32[4], index: 3, kind: input, shape index: {}]   ;;  %s10323_s4 = inlined_call_operand.vmem [shape: f32[4,16,16], index: 4, kind: input, shape index: {}]   ;;  %s10324_s5 = inlined_call_operand.hbm [shape: f32[8,16,16], index: 5, kind: input, shape index: {}]   ;;  %s10325_s6 = inlined_call_operand.hbm [shape: bf16[32,32], index: 6, kind: input, shape index: {}]   ;;  %s10326_s7 = inlined_call_operand.vmem [shape: f32[1,32], index: 7, kind: input, shape index: {}]   ;;  %s10327_s8 = inlined_call_operand.vmem [shape: f32[128,32], index: 8, kind: output, shape index: {}]  }
   0x1   :  { %14 = vsyncpa [#allocation5], 0  ;;  %s28_s29 = sshll.u32 %s10322_s3, 4  ;;  %s29_s29 = int_to_ptr.vmem [resolvable:$true] %s28_s29 }
   0x2   :  { %15 = vsyncpa [#allocation9], 0  ;;  %s7796_s30 = scalar_lea.vmem %s29_s29, 16  ;;  %p7801_p1 = scmp.lt.s32.totalorder %s29_s29, %s29_s29 }
   0x3   :  { %p7797_p0 = scmp.ne.s32.totalorder %s29_s29, %s7796_s30  ;;  %p7802_p2 = scmp.lt.s32.totalorder %s7796_s30, %s7796_s30 }
   0x5   :  { %p7803_p3 = por %p7802_p2, %p7801_p1 }
   0x7   :  { %p7804_p4 = pnand %p7803_p3, %p7797_p0 }
   0x9   :  { %7807 = shalt.err (!%p7804_p4)
}
   0xa   :  { %s7854_s9 = smov [#allocation4]   ;;  %s7855_s10 = smov [#allocation7]  }
   0xb   :  { %31 = dma.vmem_to_smem %s29_s29, 16, %s7854_s9, [#allocation6]  }
   0xc   :  { %s39_s11 = sshll.u32 %s7855_s10, 4  ;;  %s40_s11 = int_to_ptr.vmem [resolvable:$true] %s39_s11 }
   0xd   :  { %s7816_s12 = scalar_lea.vmem %s40_s11, 2048  ;;  %p7821_p6 = scmp.lt.s32.totalorder %s40_s11, %s40_s11 }
   0xe   :  { %p7817_p5 = scmp.ne.s32.totalorder %s40_s11, %s7816_s12  ;;  %p7822_p7 = scmp.lt.s32.totalorder %s7816_s12, %s7816_s12 }
  0x10   :  { %p7823_p8 = por %p7822_p7, %p7821_p6 }
  0x12   :  { %p7824_p9 = pnand %p7823_p8, %p7817_p5 }
  0x14   :  { %7827 = shalt.err (!%p7824_p9)
}
  0x15   :  { %s7856_s3 = smov 128   ;;  %s7857_s13 = smov 8  }
  0x16   :  { %45 = dma.hbm_to_vmem [thread:$0]  %s10324_s5, 2048, %s40_s11, [#allocation5], %s7856_s3, %s7856_s3, %s7857_s13  }
  0x17   :  { %s7858_s16 = smov [#allocation8]  }
  0x18   :  { %s51_s17 = sshll.u32 %s7858_s16, 4  ;;  %s52_s17 = int_to_ptr.vmem [resolvable:$true] %s51_s17 }
  0x19   :  { %s7836_s18 = scalar_lea.vmem %s52_s17, 256  ;;  %p7841_p11 = scmp.lt.s32.totalorder %s52_s17, %s52_s17 }
  0x1a   :  { %p7837_p10 = scmp.ne.s32.totalorder %s52_s17, %s7836_s18  ;;  %p7842_p12 = scmp.lt.s32.totalorder %s7836_s18, %s7836_s18 }
  0x1c   :  { %p7843_p13 = por %p7842_p12, %p7841_p11 }
  0x1e   :  { %p7844_p0 = pnand %p7843_p13, %p7837_p10 }
  0x20   :  { %7847 = shalt.err (!%p7844_p0)
}
  0x21   :  { %s7859_s19 = smov 64   ;;  %s7860_s20 = smov 4  }
  0x22   :  { %57 = dma.hbm_to_vmem [thread:$0]  %s10325_s6, 256, %s52_s17, [#allocation9], %s7859_s19, %s7859_s19, %s7860_s20  }
  0x23   :  { %7848 = dma.done.wait [#allocation6], 16  }
  0x24   :  { %7849 = vsyncadd [#allocation6], 4294967280 }
  0x25   :  { %7850 = dma.done.wait [#allocation5], 2048  }
  0x26   :  { %7851 = vsyncadd [#allocation5], 4294965248 }
  0x27   :  { %7852 = dma.done.wait [#allocation9], 256  }
  0x28   :  { %7853 = vsyncadd [#allocation9], 4294967040 }
  0x29   :  { %69 = sfence }
  0x2a   :  { %v7197_v0 = vld [vmem:[%s10320_s1 + $0x8] sm:$0xff]   ;;  %v7198_v1 = vld [vmem:[%s10320_s1] sm:$0xff]   ;;  %vm150_vm0 = vcmask 261120   ;;  %v7201_v4 = vld [vmem:[%s10319_s0 + $0x10] sm:$0xff]   ;;  %vm272_vm1 = vcmask 785408   ;;  %vm322_vm2 = vcmask 64512  }
  0x2b   :  { %6748 = vmatprep.subr.bf16.mxu0 %v7197_v0  ;;  %v7199_v2 = vld [vmem:[%s10319_s0] sm:$0xff]   ;;  %7172 = vmatprep.subr.bf16.mxu1 %v7197_v0  ;;  %v7200_v3 = vld [vmem:[%s10319_s0 + $0x8] sm:$0xff]   ;;  %v7205_v7 = vld [vmem:[%s10319_s0 + $0x30] sm:$0xff]   ;;  %vm7863_vm3 = vmmov 0   ;;  %s7865_s21 = smov 120   ;;  %s8268_s22 = sld [smem:[#allocation4]] }
  0x2c   :  { %6749 = vmatpush3.bf16.msra.mxu0 %v7197_v0  ;;  %7174 = vmatpush3.bf16.msra.mxu1 %v7197_v0  ;;  %v7203_v5 = vld [vmem:[%s10319_s0 + $0x20] sm:$0xff]   ;;  %v7204_v6 = vld [vmem:[%s10319_s0 + $0x28] sm:$0xff]   ;;  %v7202_v8 = vld [vmem:[%s10319_s0 + $0x18] sm:$0xff]   ;;  %vm1112_vm4 = vcmask 130048   ;;  %s7866_s27 = smov 80   ;;  %s7867_s6 = smov 112  }
  0x2d   :  { %6750 = vmatprep.subr.bf16.mxu0 %v7198_v1  ;;  %6752 = vmatprep.mubr.msk.bf16.mxu0 %vm150_vm0, %v7199_v2  ;;  %v7206_v9 = vld [vmem:[%s10319_s0 + $0x38] sm:$0xff]   ;;  %v6361_v10 = vld [vmem:[%s10321_s2] ss:$0 sm:$0xff]  ;;  %s7861_s0 = smov 96   ;;  %s7864_s2 = smov 88   ;;  %vm1657_vm5 = vcmask 60416  }
  0x2e   :  { %7173 = vmatprep.subr.bf16.mxu1 %v7198_v1  ;;  %6760 = vmatprep.mubr.msk.bf16.mxu1 %vm150_vm0, %v7203_v5  ;;  %s7868_s28 = smov 56   ;;  %s9135_s11 = sld [smem:[#allocation4 + $0x2]]  ;;  %vm3145_vm6 = vcmask 126016   ;;  %vm4633_vm7 = vcmask 191616   ;;  %vm6121_vm8 = vcmask 257216  }
  0x2f   :  { %s7869_s12 = smov 72   ;;  %s7870_s3 = smov 104  }
  0x30   :  { %6751 = vmatpush3.bf16.msra.mxu0 %v7198_v1  ;;  %7175 = vmatpush3.bf16.msra.mxu1 %v7198_v1  ;;  %s7871_s14 = smov 48  }
  0x31   :  { %s1046_s24 = sadd.f32 16.0, %s8268_s22 }
  0x33   :  { %6753 = vmatmul.mubr.msk.bf16.vlgmr.msra.gmra.mxu0 %vm150_vm0, %v7200_v3  ;;  %6761 = vmatmul.mubr.msk.bf16.vlgmr.msra.gmra.mxu1 %vm150_vm0, %v7204_v6 }
  0x34   :  { %6756 = vmatprep.mubr.msk.bf16.mxu0 %vm150_vm0, %v7201_v4  ;;  %6764 = vmatprep.mubr.msk.bf16.mxu1 %vm150_vm0, %v7205_v7  ;;  %s3991_s17 = sadd.f32 16.0, %s9135_s11 }
  0x3b   :  { %6757 = vmatmul.mubr.msk.bf16.gmra.mxu0 %vm150_vm0, %v7202_v8  ;;  %6765 = vmatmul.mubr.msk.bf16.gmra.mxu1 %vm150_vm0, %v7206_v9 }
  0xf3   :  { %v6754_v11 = vpop.f32.mrf.mxu0  ;;  %v6762_v12 = vpop.f32.mrf.mxu1 }
  0xf4   :  { %v218_v13 = vadd.f32 %v6754_v11, %v6361_v10  ;;  %v250_v14 = vadd.f32 %v6762_v12, %v6361_v10 }
  0xf5   :  { %v209_v15 = vpop.f32.mrf.mxu0  ;;  %v241_v16 = vpop.f32.mrf.mxu1 }
  0xf6   :  { %275 = vst.msk [vmem:[#allocation2 + $0x10] sm:$0xff] %vm272_vm1, %v218_v13  ;;  %v210_v17 = vadd.f32 %v6361_v10, %v209_v15  ;;  %283 = vst.msk [vmem:[#allocation2 + $0x50] sm:$0xff] %vm272_vm1, %v250_v14  ;;  %v242_v18 = vadd.f32 %v6361_v10, %v241_v16 }
  0xf7   :  { %v6755_v19 = vpop.f32.mrf.mxu0  ;;  %v6763_v20 = vpop.f32.mrf.mxu1 }
  0xf8   :  { %273 = vst.msk [vmem:[#allocation2] sm:$0xff] %vm272_vm1, %v210_v17  ;;  %v221_v21 = vadd.f32 %v6755_v19, %v6361_v10  ;;  %281 = vst.msk [vmem:[#allocation2 + $0x40] sm:$0xff] %vm272_vm1, %v242_v18  ;;  %v253_v22 = vadd.f32 %v6763_v20, %v6361_v10 }
  0xf9   :  { %v212_v23 = vpop.f32.mrf.mxu0  ;;  %v244_v24 = vpop.f32.mrf.mxu1 }
  0xfa   :  { %276 = vst.msk [vmem:[#allocation2 + $0x18] sm:$0xff] %vm272_vm1, %v221_v21  ;;  %v213_v25 = vadd.f32 %v6361_v10, %v212_v23  ;;  %284 = vst.msk [vmem:[#allocation2 + $0x58] sm:$0xff] %vm272_vm1, %v253_v22  ;;  %v245_v26 = vadd.f32 %v6361_v10, %v244_v24 }
  0xfb   :  { %v6758_v27 = vpop.f32.mrf.mxu0  ;;  %v6766_v28 = vpop.f32.mrf.mxu1 }
  0xfc   :  { %274 = vst.msk [vmem:[#allocation2 + $0x8] sm:$0xff] %vm272_vm1, %v213_v25  ;;  %v234_v29 = vadd.f32 %v6758_v27, %v6361_v10  ;;  %282 = vst.msk [vmem:[#allocation2 + $0x48] sm:$0xff] %vm272_vm1, %v245_v26  ;;  %v266_v30 = vadd.f32 %v6766_v28, %v6361_v10 }
  0xfd   :  { %v225_v31 = vpop.f32.mrf.mxu0  ;;  %v7981_v32 = vld [vmem:[#allocation2 + $0x10] sm:$0xff]  ;;  %v257_v33 = vpop.f32.mrf.mxu1 }
  0xfe   :  { %279 = vst.msk [vmem:[#allocation2 + $0x30] sm:$0xff] %vm272_vm1, %v234_v29  ;;  %v226_v34 = vadd.f32 %v6361_v10, %v225_v31  ;;  %v7986_v35 = vmul.f32 %v7981_v32, %v7981_v32  ;;  %287 = vst.msk [vmem:[#allocation2 + $0x70] sm:$0xff] %vm272_vm1, %v266_v30  ;;  %v258_v36 = vadd.f32 %v6361_v10, %v257_v33  ;;  %v8061_v62 = vld [vmem:[#allocation2 + $0x50] sm:$0xff] }
  0xff   :  { %v6759_v37 = vpop.f32.mrf.mxu0  ;;  %v7989_v38 = vld [vmem:[#allocation2] sm:$0xff]  ;;  %v6767_v39 = vpop.f32.mrf.mxu1  ;;  %v8077_v2 = vmul.f32 %v8061_v62, %v8061_v62 }
 0x100   :  { %277 = vst.msk [vmem:[#allocation2 + $0x20] sm:$0xff] %vm272_vm1, %v226_v34  ;;  %v237_v40 = vadd.f32 %v6759_v37, %v6361_v10  ;;  %440 = vrot.lane.b32.xlu1 %v7986_v35, %s7861_s0  ;;  %v7996_v41 = vmul.f32 %v7989_v38, %v7989_v38  ;;  %285 = vst.msk [vmem:[#allocation2 + $0x60] sm:$0xff] %vm272_vm1, %v258_v36  ;;  %v269_v42 = vadd.f32 %v6767_v39, %v6361_v10  ;;  %v8045_v58 = vld [vmem:[#allocation2 + $0x40] sm:$0xff] }
 0x101   :  { %v228_v43 = vpop.f32.mrf.mxu0  ;;  %v7999_v44 = vld [vmem:[#allocation2 + $0x18] sm:$0xff]  ;;  %v260_v45 = vpop.f32.mrf.mxu1  ;;  %v8059_v61 = vmul.f32 %v8045_v58, %v8045_v58 }
 0x102   :  { %280 = vst.msk [vmem:[#allocation2 + $0x38] sm:$0xff] %vm272_vm1, %v237_v40  ;;  %v229_v46 = vadd.f32 %v6361_v10, %v228_v43  ;;  %436 = vrot.lane.b32.xlu0 %v7996_v41, %s7861_s0  ;;  %v8006_v47 = vmul.f32 %v7999_v44, %v7999_v44  ;;  %288 = vst.msk [vmem:[#allocation2 + $0x78] sm:$0xff] %vm272_vm1, %v269_v42  ;;  %v261_v48 = vadd.f32 %v6361_v10, %v260_v45  ;;  %v8069_v0 = vld [vmem:[#allocation2 + $0x58] sm:$0xff] }
 0x103   :  { %v8009_v49 = vld [vmem:[#allocation2 + $0x8] sm:$0xff]  ;;  %v8085_v4 = vmul.f32 %v8069_v0, %v8069_v0 }
 0x104   :  { %278 = vst.msk [vmem:[#allocation2 + $0x28] sm:$0xff] %vm272_vm1, %v229_v46  ;;  %442 = vrot.lane.b32.xlu1 %v8006_v47, %s7861_s0  ;;  %v8016_v50 = vmul.f32 %v8009_v49, %v8009_v49  ;;  %286 = vst.msk [vmem:[#allocation2 + $0x68] sm:$0xff] %vm272_vm1, %v261_v48  ;;  %v8053_v60 = vld [vmem:[#allocation2 + $0x48] sm:$0xff]  ;;  %v332_v48 = vsel %vm322_vm2, %v8006_v47, 0.0 }
 0x105   :  { %v8029_v54 = vld [vmem:[#allocation2 + $0x30] sm:$0xff]  ;;  %v8067_v63 = vmul.f32 %v8053_v60, %v8053_v60 }
 0x106   :  { %438 = vrot.lane.b32.xlu0 %v8016_v50, %s7861_s0  ;;  %v8043_v57 = vmul.f32 %v8029_v54, %v8029_v54  ;;  %v8091_v6 = vld [vmem:[#allocation2 + $0x70] sm:$0xff]  ;;  %v326_v40 = vsel %vm322_vm2, %v8016_v50, 0.0 }
 0x107   :  { %v8021_v51 = vld [vmem:[#allocation2 + $0x20] sm:$0xff]  ;;  %v8105_v9 = vmul.f32 %v8091_v6, %v8091_v6 }
 0x108   :  { %v8025_v52 = vmul.f32 %v8021_v51, %v8021_v51  ;;  %v8071_v1 = vld [vmem:[#allocation2 + $0x60] sm:$0xff] }
 0x109   :  { %v8027_v53 = vld [vmem:[#allocation2 + $0x38] sm:$0xff]  ;;  %v8089_v5 = vmul.f32 %v8071_v1, %v8071_v1 }
 0x10a   :  { %444 = vrot.lane.b32.xlu0 %v8025_v52, %s7861_s0  ;;  %v8035_v55 = vmul.f32 %v8027_v53, %v8027_v53  ;;  %v8079_v3 = vld [vmem:[#allocation2 + $0x78] sm:$0xff] }
 0x10b   :  { %v8037_v56 = vld [vmem:[#allocation2 + $0x28] sm:$0xff]  ;;  %v8097_v7 = vmul.f32 %v8079_v3, %v8079_v3 }
 0x10c   :  { %450 = vrot.lane.b32.xlu1 %v8035_v55, %s7861_s0  ;;  %v8051_v59 = vmul.f32 %v8037_v56, %v8037_v56  ;;  %v8099_v8 = vld [vmem:[#allocation2 + $0x68] sm:$0xff] }
 0x10d   :  { %v8111_v10 = vmul.f32 %v8099_v8, %v8099_v8 }
 0x10e   :  { %448 = vrot.lane.b32.xlu0 %v8043_v57, %s7861_s0 }
 0x110   :  { %446 = vrot.lane.b32.xlu1 %v8051_v59, %s7861_s0 }
 0x112   :  { %452 = vrot.lane.b32.xlu0 %v8059_v61, %s7861_s0 }
 0x114   :  { %454 = vrot.lane.b32.xlu1 %v8067_v63, %s7861_s0 }
 0x116   :  { %456 = vrot.lane.b32.xlu0 %v8077_v2, %s7861_s0 }
 0x118   :  { %458 = vrot.lane.b32.xlu1 %v8085_v4, %s7861_s0 }
 0x11a   :  { %460 = vrot.lane.b32.xlu0 %v8089_v5, %s7861_s0 }
 0x11c   :  { %466 = vrot.lane.b32.xlu1 %v8097_v7, %s7861_s0 }
 0x11e   :  { %464 = vrot.lane.b32.xlu0 %v8105_v9, %s7861_s0 }
 0x120   :  { %462 = vrot.lane.b32.xlu1 %v8111_v10, %s7861_s0 }
 0x172   :  { %v441_v11 = vpop.permute.xlu1 %440 }
 0x173   :  { %v490_v15 = vsel %vm322_vm2, %v441_v11, 0.0 }
 0x174   :  { %v437_v12 = vpop.permute.xlu0 %436 }
 0x175   :  { %v484_v13 = vsel %vm322_vm2, %v437_v12, 0.0 }
 0x176   :  { %485 = vadd.xlane.f32.xlu0 %v484_v13  ;;  %v443_v16 = vpop.permute.xlu1 %442  ;;  %v338_v13 = vsel %vm322_vm2, %v8051_v59, 0.0 }
 0x177   :  { %v493_v18 = vsel %vm322_vm2, %v443_v16, 0.0  ;;  %v329_v16 = vsel %vm322_vm2, %v7986_v35, 0.0 }
 0x178   :  { %v439_v14 = vpop.permute.xlu0 %438 }
 0x179   :  { %v487_v28 = vsel %vm322_vm2, %v439_v14, 0.0  ;;  %v323_v14 = vsel %vm322_vm2, %v7996_v41, 0.0 }
 0x17a   :  { %491 = vadd.xlane.f32.xlu0 %v490_v15  ;;  %v344_v15 = vsel %vm322_vm2, %v8035_v55, 0.0 }
 0x17c   :  { %v445_v17 = vpop.permute.xlu0 %444 }
 0x17d   :  { %v496_v37 = vsel %vm322_vm2, %v445_v17, 0.0  ;;  %v347_v17 = vsel %vm322_vm2, %v8059_v61, 0.0 }
 0x17e   :  { %v451_v19 = vpop.permute.xlu1 %450  ;;  %494 = vadd.xlane.f32.xlu0 %v493_v18  ;;  %v335_v18 = vsel %vm322_vm2, %v8025_v52, 0.0 }
 0x17f   :  { %v505_v21 = vsel %vm322_vm2, %v451_v19, 0.0  ;;  %v350_v19 = vsel %vm322_vm2, %v8067_v63, 0.0 }
 0x180   :  { %v449_v20 = vpop.permute.xlu0 %448 }
 0x181   :  { %v502_v31 = vsel %vm322_vm2, %v449_v20, 0.0  ;;  %v341_v20 = vsel %vm322_vm2, %v8043_v57, 0.0 }
 0x182   :  { %v447_v22 = vpop.permute.xlu1 %446  ;;  %506 = vadd.xlane.f32.xlu0 %v505_v21  ;;  %v353_v21 = vsel %vm322_vm2, %v8077_v2, 0.0 }
 0x183   :  { %v499_v24 = vsel %vm322_vm2, %v447_v22, 0.0  ;;  %v356_v22 = vsel %vm322_vm2, %v8085_v4, 0.0 }
 0x184   :  { %v453_v23 = vpop.permute.xlu0 %452 }
 0x185   :  { %v508_v25 = vsel %vm322_vm2, %v453_v23, 0.0  ;;  %v359_v23 = vsel %vm322_vm2, %v8089_v5, 0.0 }
 0x186   :  { %v455_v26 = vpop.permute.xlu1 %454  ;;  %500 = vadd.xlane.f32.xlu0 %v499_v24  ;;  %509 = vadd.xlane.f32.xlu1 %v508_v25  ;;  %v365_v24 = vsel %vm322_vm2, %v8105_v9, 0.0  ;;  %v368_v25 = vsel %vm322_vm2, %v8097_v7, 0.0 }
 0x187   :  { %v511_v27 = vsel %vm322_vm2, %v455_v26, 0.0 }
 0x188   :  { %v457_v33 = vpop.permute.xlu0 %456 }
 0x189   :  { %v514_v42 = vsel %vm322_vm2, %v457_v33, 0.0 }
 0x18a   :  { %v459_v29 = vpop.permute.xlu1 %458  ;;  %512 = vadd.xlane.f32.xlu0 %v511_v27  ;;  %488 = vadd.xlane.f32.xlu1 %v487_v28 }
 0x18b   :  { %v517_v30 = vsel %vm322_vm2, %v459_v29, 0.0 }
 0x18c   :  { %v461_v39 = vpop.permute.xlu0 %460 }
 0x18d   :  { %v520_v43 = vsel %vm322_vm2, %v461_v39, 0.0 }
 0x18e   :  { %518 = vadd.xlane.f32.xlu0 %v517_v30  ;;  %503 = vadd.xlane.f32.xlu1 %v502_v31  ;;  %v467_v34 = vpop.permute.xlu1 %466 }
 0x18f   :  { %v529_v36 = vsel %vm322_vm2, %v467_v34, 0.0 }
 0x190   :  { %v465_v46 = vpop.permute.xlu0 %464 }
 0x191   :  { %v526_v12 = vsel %vm322_vm2, %v465_v46, 0.0 }
 0x192   :  { %530 = vadd.xlane.f32.xlu0 %v529_v36  ;;  %497 = vadd.xlane.f32.xlu1 %v496_v37  ;;  %v463_v45 = vpop.permute.xlu1 %462 }
 0x193   :  { %v523_v11 = vsel %vm322_vm2, %v463_v45, 0.0 }
 0x196   :  { %327 = vadd.xlane.f32.xlu0 %v326_v40  ;;  %515 = vadd.xlane.f32.xlu1 %v514_v42 }
 0x19a   :  { %333 = vadd.xlane.f32.xlu0 %v332_v48  ;;  %521 = vadd.xlane.f32.xlu1 %v520_v43 }
 0x19e   :  { %524 = vadd.xlane.f32.xlu0 %v523_v11  ;;  %527 = vadd.xlane.f32.xlu1 %v526_v12 }
 0x1a2   :  { %339 = vadd.xlane.f32.xlu0 %v338_v13  ;;  %324 = vadd.xlane.f32.xlu1 %v323_v14 }
 0x1a6   :  { %345 = vadd.xlane.f32.xlu0 %v344_v15  ;;  %330 = vadd.xlane.f32.xlu1 %v329_v16 }
 0x1aa   :  { %348 = vadd.xlane.f32.xlu0 %v347_v17  ;;  %336 = vadd.xlane.f32.xlu1 %v335_v18 }
 0x1ae   :  { %351 = vadd.xlane.f32.xlu0 %v350_v19  ;;  %342 = vadd.xlane.f32.xlu1 %v341_v20  ;;  %v10329_v19 = vmov 0.0  }
 0x1af   :  { %6768 = vmatprep.subr.bf16.mxu1 %v10329_v19  ;;  %6770 = vmatprep.mubr.msk.bf16.mxu1 %vm7863_vm3, %v10329_v19 }
 0x1b0   :  { %6792 = vmatprep.subr.bf16.mxu0 %v10329_v19  ;;  %6794 = vmatprep.mubr.msk.bf16.mxu0 %vm7863_vm3, %v10329_v19 }
 0x1b2   :  { %354 = vadd.xlane.f32.xlu0 %v353_v21 }
 0x1b6   :  { %357 = vadd.xlane.f32.xlu0 %v356_v22 }
 0x1ba   :  { %360 = vadd.xlane.f32.xlu0 %v359_v23 }
 0x1be   :  { %366 = vadd.xlane.f32.xlu0 %v365_v24 }
 0x1c2   :  { %369 = vadd.xlane.f32.xlu0 %v368_v25 }
 0x1ff   :  { %v486_v26 = vpop.xlane.xlu0 %485 }
 0x200   :  { %v532_v36 = vmax.f32 %v486_v26, 1e-24 }
 0x203   :  { %v492_v27 = vpop.xlane.xlu0 %491 }
 0x204   :  { %v534_v28 = vmax.f32 %v492_v27, 1e-24 }
 0x206   :  { %7217 = vrsqrt.f32 %v534_v28 }
 0x207   :  { %v495_v29 = vpop.xlane.xlu0 %494 }
 0x208   :  { %v535_v30 = vmax.f32 %v495_v29, 1e-24 }
 0x20a   :  { %7219 = vrsqrt.f32 %v535_v30 }
 0x20b   :  { %v507_v31 = vpop.xlane.xlu0 %506  ;;  %7221 = vrsqrt.f32 %v532_v36 }
 0x20c   :  { %v539_v17 = vmax.f32 %v507_v31, 1e-24 }
 0x20f   :  { %v510_v33 = vpop.xlane.xlu1 %509  ;;  %v501_v34 = vpop.xlane.xlu0 %500 }
 0x210   :  { %v537_v48 = vmax.f32 %v501_v34, 1e-24  ;;  %v540_v23 = vmax.f32 %v510_v33, 1e-24 }
 0x213   :  { %v489_v37 = vpop.xlane.xlu1 %488  ;;  %v513_v39 = vpop.xlane.xlu0 %512 }
 0x214   :  { %v533_v40 = vmax.f32 %v489_v37, 1e-24  ;;  %v7218_v42 = vpop.eup %7217  ;;  %v541_v20 = vmax.f32 %v513_v39, 1e-24 }
 0x215   :  { %v590_v11 = vmul.f32 %v7218_v42, %v7981_v32 }
 0x216   :  { %7223 = vrsqrt.f32 %v533_v40 }
 0x217   :  { %v7220_v43 = vpop.eup %7219  ;;  %v504_v45 = vpop.xlane.xlu1 %503  ;;  %7225 = vrsqrt.f32 %v537_v48 }
 0x218   :  { %v8163_v46 = vpop.xlane.xlu0 %518  ;;  %v591_v12 = vmul.f32 %v7220_v43, %v7999_v44  ;;  %v538_v13 = vmax.f32 %v504_v45, 1e-24  ;;  %v7222_v24 = vpop.eup %7221 }
 0x219   :  { %v588_v29 = vmul.f32 %v7222_v24, %v7989_v38 }
 0x21a   :  { %v605_v14 = vpack.c.bf16 %v591_v12, %v590_v11  ;;  %7227 = vrsqrt.f32 %v538_v13 }
 0x21b   :  { %v498_v15 = vpop.xlane.xlu1 %497 }
 0x21c   :  { %v531_v16 = vpop.xlane.xlu0 %530  ;;  %v536_v18 = vmax.f32 %v498_v15, 1e-24  ;;  %665 = vrot.lane.b32.xlu1 %v605_v14, %s7861_s0 }
 0x21d   :  { %v547_v28 = vmax.f32 %v531_v16, 1e-24 }
 0x21e   :  { %7229 = vrsqrt.f32 %v536_v18 }
 0x21f   :  { %v516_v21 = vpop.xlane.xlu1 %515  ;;  %7231 = vrsqrt.f32 %v539_v17 }
 0x220   :  { %v8174_v22 = vpop.xlane.xlu0 %327  ;;  %7233 = vrsqrt.f32 %v541_v20 }
 0x221   :  { %7235 = vrsqrt.f32 %v540_v23 }
 0x222   :  { %7237 = vrsqrt.f32 %v547_v28 }
 0x223   :  { %v7224_v25 = vpop.eup %7223  ;;  %v522_v26 = vpop.xlane.xlu1 %521 }
 0x224   :  { %v8176_v27 = vpop.xlane.xlu0 %333  ;;  %v589_v30 = vmul.f32 %v7224_v25, %v8009_v49  ;;  %v544_v37 = vmax.f32 %v522_v26, 1e-24  ;;  %v7226_v33 = vpop.eup %7225 }
 0x225   :  { %v593_v48 = vmul.f32 %v7226_v33, %v8037_v56  ;;  %v362_v33 = vsel %vm322_vm2, %v8111_v10, 0.0 }
 0x226   :  { %v604_v31 = vpack.c.bf16 %v589_v30, %v588_v29 }
 0x227   :  { %v528_v34 = vpop.xlane.xlu1 %527  ;;  %v7228_v42 = vpop.eup %7227 }
 0x228   :  { %v525_v36 = vpop.xlane.xlu0 %524  ;;  %v546_v39 = vmax.f32 %v528_v34, 1e-24  ;;  %615 = vrot.lane.b32.xlu1 %v604_v31, %s7861_s0  ;;  %v594_v13 = vmul.f32 %v7228_v42, %v8029_v54 }
 0x229   :  { %v545_v40 = vmax.f32 %v525_v36, 1e-24 }
 0x22a   :  { %7239 = vrsqrt.f32 %v546_v39  ;;  %v542_v39 = vmax.f32 %v516_v21, 1e-24 }
 0x22b   :  { %v7230_v43 = vpop.eup %7229  ;;  %7241 = vrsqrt.f32 %v545_v40  ;;  %v543_v40 = vmax.f32 %v8163_v46, 1e-24 }
 0x22c   :  { %7243 = vrsqrt.f32 %v544_v37  ;;  %v592_v45 = vmul.f32 %v7230_v43, %v8021_v51  ;;  %v7232_v11 = vpop.eup %7231 }
 0x22d   :  { %v7234_v14 = vpop.eup %7233  ;;  %v595_v15 = vmul.f32 %v7232_v11, %v8027_v53  ;;  %7245 = vrsqrt.f32 %v542_v39 }
 0x22e   :  { %v606_v12 = vpack.c.bf16 %v593_v48, %v592_v45  ;;  %v7236_v16 = vpop.eup %7235  ;;  %v597_v18 = vmul.f32 %v7234_v14, %v8053_v60  ;;  %7247 = vrsqrt.f32 %v543_v40 }
 0x22f   :  { %v607_v17 = vpack.c.bf16 %v595_v15, %v594_v13  ;;  %v596_v20 = vmul.f32 %v7236_v16, %v8045_v58  ;;  %v7238_v23 = vpop.eup %7237  ;;  %v8277_v16 = vstv %s8268_s22 }
 0x230   :  { %715 = vrot.lane.b32.xlu0 %v606_v12, %s7861_s0  ;;  %v603_v29 = vmul.f32 %v7238_v23, %v8079_v3 }
 0x231   :  { %v608_v24 = vpack.c.bf16 %v597_v18, %v596_v20 }
 0x234   :  { %765 = vrot.lane.b32.xlu0 %v607_v17, %s7861_s0 }
 0x237   :  { %v7240_v25 = vpop.eup %7239 }
 0x238   :  { %v7242_v26 = vpop.eup %7241  ;;  %815 = vrot.lane.b32.xlu0 %v608_v24, %s7861_s0  ;;  %v602_v28 = vmul.f32 %v7240_v25, %v8091_v6 }
 0x239   :  { %v7244_v30 = vpop.eup %7243  ;;  %v601_v34 = vmul.f32 %v7242_v26, %v8099_v8 }
 0x23a   :  { %v611_v31 = vpack.c.bf16 %v603_v29, %v602_v28  ;;  %v600_v36 = vmul.f32 %v7244_v30, %v8071_v1  ;;  %v7246_v21 = vpop.eup %7245 }
 0x23b   :  { %v7248_v46 = vpop.eup %7247  ;;  %v598_v42 = vmul.f32 %v7246_v21, %v8061_v62 }
 0x23c   :  { %965 = vrot.lane.b32.xlu0 %v611_v31, %s7861_s0  ;;  %v610_v37 = vpack.c.bf16 %v601_v34, %v600_v36  ;;  %v599_v43 = vmul.f32 %v7248_v46, %v8069_v0 }
 0x23e   :  { %v609_v45 = vpack.c.bf16 %v599_v43, %v598_v42 }
 0x240   :  { %915 = vrot.lane.b32.xlu0 %v610_v37, %s7861_s0 }
 0x244   :  { %1868 = vrot.lane.b32.xlu0 %v7996_v41, %s7864_s2 }
 0x248   :  { %1870 = vrot.lane.b32.xlu0 %v8016_v50, %s7864_s2 }
 0x24c   :  { %1874 = vrot.lane.b32.xlu0 %v8006_v47, %s7864_s2  ;;  %363 = vadd.xlane.f32.xlu1 %v362_v33 }
 0x250   :  { %1725 = vrot.lane.b32.xlu0 %v8016_v50, %s7865_s21  ;;  %v325_v50 = vpop.xlane.xlu1 %324 }
 0x254   :  { %1729 = vrot.lane.b32.xlu0 %v8006_v47, %s7865_s21  ;;  %v340_v47 = vpop.xlane.xlu0 %339 }
 0x255   :  { %v376_v13 = vmax.f32 %v340_v47, 1e-24 }
 0x258   :  { %1878 = vrot.lane.b32.xlu0 %v8051_v59, %s7864_s2 }
 0x25c   :  { %1882 = vrot.lane.b32.xlu0 %v8035_v55, %s7864_s2 }
 0x25d   :  { %865 = vrot.lane.b32.xlu1 %v609_v45, %s7861_s0  ;;  %s9662_s0 = sld [smem:[#allocation4 + $0x3]] }
 0x260   :  { %1733 = vrot.lane.b32.xlu0 %v8051_v59, %s7865_s21 }
 0x261   :  { %1872 = vrot.lane.b32.xlu1 %v7986_v35, %s7864_s2 }
 0x263   :  { %s5479_s5 = sadd.f32 16.0, %s9662_s0 }
 0x264   :  { %1737 = vrot.lane.b32.xlu0 %v8035_v55, %s7865_s21 }
 0x265   :  { %1723 = vrot.lane.b32.xlu1 %v7996_v41, %s7865_s21  ;;  %v8236_v41 = vpop.xlane.xlu0 %345 }
 0x268   :  { %1886 = vrot.lane.b32.xlu0 %v8067_v63, %s7864_s2 }
 0x269   :  { %1727 = vrot.lane.b32.xlu1 %v7986_v35, %s7865_s21  ;;  %v349_v35 = vpop.xlane.xlu0 %348 }
 0x26c   :  { %1890 = vrot.lane.b32.xlu0 %v8085_v4, %s7864_s2 }
 0x26d   :  { %1876 = vrot.lane.b32.xlu1 %v8025_v52, %s7864_s2  ;;  %v352_v55 = vpop.xlane.xlu0 %351 }
 0x26e   :  { %v380_v11 = vmax.f32 %v352_v55, 1e-24 }
 0x270   :  { %1741 = vrot.lane.b32.xlu0 %v8067_v63, %s7865_s21  ;;  %v372_v63 = vmax.f32 %v8174_v22, 1e-24 }
 0x271   :  { %1880 = vrot.lane.b32.xlu1 %v8043_v57, %s7864_s2  ;;  %v8258_v59 = vpop.xlane.xlu0 %354 }
 0x274   :  { %1745 = vrot.lane.b32.xlu0 %v8085_v4, %s7865_s21 }
 0x275   :  { %1731 = vrot.lane.b32.xlu1 %v8025_v52, %s7865_s21  ;;  %v371_v52 = vmax.f32 %v325_v50, 1e-24 }
 0x277   :  { %7249 = vrsqrt.f32 %v371_v52 }
 0x278   :  { %1894 = vrot.lane.b32.xlu0 %v8111_v10, %s7864_s2  ;;  %7251 = vrsqrt.f32 %v372_v63 }
 0x279   :  { %1735 = vrot.lane.b32.xlu1 %v8043_v57, %s7865_s21  ;;  %v331_v57 = vpop.xlane.xlu1 %330 }
 0x27a   :  { %v373_v48 = vmax.f32 %v331_v57, 1e-24 }
 0x27c   :  { %1898 = vrot.lane.b32.xlu0 %v8097_v7, %s7864_s2  ;;  %7253 = vrsqrt.f32 %v373_v48 }
 0x27d   :  { %1884 = vrot.lane.b32.xlu1 %v8059_v61, %s7864_s2  ;;  %v337_v4 = vpop.xlane.xlu1 %336 }
 0x280   :  { %1749 = vrot.lane.b32.xlu0 %v8111_v10, %s7865_s21  ;;  %v8263_v10 = vpop.xlane.xlu0 %357 }
 0x281   :  { %1888 = vrot.lane.b32.xlu1 %v8077_v2, %s7864_s2 }
 0x284   :  { %1753 = vrot.lane.b32.xlu0 %v8097_v7, %s7865_s21  ;;  %v374_v7 = vmax.f32 %v8176_v27, 1e-24  ;;  %v8272_v22 = vpop.xlane.xlu0 %360  ;;  %v7250_v12 = vpop.eup %7249  ;;  %v379_v27 = vmax.f32 %v349_v35, 1e-24 }
 0x285   :  { %1739 = vrot.lane.b32.xlu1 %v8059_v61, %s7865_s21  ;;  %v343_v61 = vpop.xlane.xlu1 %342  ;;  %v7252_v15 = vpop.eup %7251  ;;  %v404_v18 = vmul.f32 %v7250_v12, %v8277_v16 }
 0x286   :  { %7255 = vrsqrt.f32 %v374_v7  ;;  %v377_v25 = vmax.f32 %v343_v61, 1e-24 }
 0x287   :  { %v564_v24 = vmul.f32 %v404_v18, %v7989_v38 }
 0x288   :  { %v8279_v17 = vpop.xlane.xlu0 %366 }
 0x289   :  { %1743 = vrot.lane.b32.xlu1 %v8077_v2, %s7865_s21  ;;  %v375_v2 = vmax.f32 %v337_v4, 1e-24  ;;  %v7254_v26 = vpop.eup %7253 }
 0x28a   :  { %v406_v34 = vmul.f32 %v7254_v26, %v8277_v16 }
 0x28b   :  { %7257 = vrsqrt.f32 %v375_v2 }
 0x28c   :  { %7259 = vrsqrt.f32 %v380_v11  ;;  %v8288_v28 = vpop.xlane.xlu0 %369  ;;  %v566_v39 = vmul.f32 %v406_v34, %v7981_v32  ;;  %v382_v34 = vmax.f32 %v8263_v10, 1e-24 }
 0x28d   :  { %1892 = vrot.lane.b32.xlu1 %v8089_v5, %s7864_s2  ;;  %7261 = vrsqrt.f32 %v376_v13 }
 0x28e   :  { %v666_v14 = vpop.permute.xlu1 %665  ;;  %7263 = vrsqrt.f32 %v379_v27 }
 0x28f   :  { %7265 = vrsqrt.f32 %v377_v25  ;;  %v671_v37 = vsel %vm322_vm2, %v666_v14, 0 }
 0x291   :  { %1896 = vrot.lane.b32.xlu1 %v8105_v9, %s7864_s2 }
 0x293   :  { %v7256_v30 = vpop.eup %7255 }
 0x294   :  { %v407_v38 = vmul.f32 %v7256_v30, %v8277_v16 }
 0x295   :  { %1747 = vrot.lane.b32.xlu1 %v8089_v5, %s7865_s21  ;;  %v405_v5 = vmul.f32 %v7252_v15, %v8277_v16 }
 0x296   :  { %v567_v46 = vmul.f32 %v407_v38, %v7999_v44 }
 0x297   :  { %v565_v29 = vmul.f32 %v405_v5, %v8009_v49 }
 0x298   :  { %v7258_v49 = vpop.eup %7257  ;;  %v581_v45 = vpack.c.bf16 %v567_v46, %v566_v39  ;;  %v383_v46 = vmax.f32 %v8272_v22, 1e-24 }
 0x299   :  { %1751 = vrot.lane.b32.xlu1 %v8105_v9, %s7865_s21  ;;  %v378_v9 = vmax.f32 %v8236_v41, 1e-24  ;;  %v580_v31 = vpack.c.bf16 %v565_v29, %v564_v24  ;;  %v7260_v40 = vpop.eup %7259  ;;  %v408_v47 = vmul.f32 %v7258_v49, %v8277_v16 }
 0x29a   :  { %v616_v20 = vpop.permute.xlu1 %615  ;;  %v7262_v21 = vpop.eup %7261  ;;  %v413_v43 = vmul.f32 %v7260_v40, %v8277_v16  ;;  %v386_v40 = vmax.f32 %v8288_v28, 1e-24 }
 0x29b   :  { %v621_v23 = vsel %vm322_vm2, %v616_v20, 0  ;;  %7267 = vrsqrt.f32 %v378_v9  ;;  %v7264_v42 = vpop.eup %7263  ;;  %v409_v55 = vmul.f32 %v7262_v21, %v8277_v16  ;;  %v568_v57 = vmul.f32 %v408_v47, %v8021_v51 }
 0x29c   :  { %6769 = vmatpush3.bf16.xpose.msra.mxu1 %v621_v23  ;;  %v412_v35 = vmul.f32 %v7264_v42, %v8277_v16  ;;  %v573_v52 = vmul.f32 %v413_v43, %v8053_v60  ;;  %v7266_v63 = vpop.eup %7265  ;;  %7269 = vrsqrt.f32 %v382_v34 }
 0x29d   :  { %6774 = vmatprep.subr.bf16.mxu1 %v10329_v19  ;;  %v569_v7 = vmul.f32 %v409_v55, %v8037_v56  ;;  %v410_v12 = vmul.f32 %v7266_v63, %v8277_v16 }
 0x29e   :  { %v572_v48 = vmul.f32 %v412_v35, %v8045_v58 }
 0x29f   :  { %v582_v2 = vpack.c.bf16 %v569_v7, %v568_v57  ;;  %v570_v18 = vmul.f32 %v410_v12, %v8029_v54 }
 0x2a0   :  { %v584_v11 = vpack.c.bf16 %v573_v52, %v572_v48 }
 0x2a2   :  { %v716_v36 = vpop.permute.xlu0 %715 }
 0x2a3   :  { %6771 = vmatmul.mubr.msk.bf16.vlgmr.msra.gmra.mxu1 %vm322_vm2, %v580_v31  ;;  %v721_v50 = vsel %vm322_vm2, %v716_v36, 0  ;;  %v381_v36 = vmax.f32 %v8258_v59, 1e-24 }
 0x2a4   :  { %6775 = vmatpush3.bf16.xpose.msra.mxu1 %v671_v37  ;;  %6776 = vmatprep.mubr.msk.bf16.mxu1 %vm7863_vm3, %v10329_v19 }
 0x2a5   :  { %6780 = vmatprep.subr.bf16.mxu1 %v10329_v19  ;;  %7271 = vrsqrt.f32 %v381_v36 }
 0x2a6   :  { %v766_v33 = vpop.permute.xlu0 %765  ;;  %7273 = vrsqrt.f32 %v386_v40 }
 0x2a7   :  { %v771_v14 = vsel %vm322_vm2, %v766_v33, 0  ;;  %v385_v33 = vmax.f32 %v8279_v17, 1e-24 }
 0x2a8   :  { %v7268_v61 = vpop.eup %7267 }
 0x2a9   :  { %v411_v15 = vmul.f32 %v7268_v61, %v8277_v16  ;;  %7275 = vrsqrt.f32 %v385_v33  ;;  %v7270_v43 = vpop.eup %7269 }
 0x2aa   :  { %v816_v41 = vpop.permute.xlu0 %815  ;;  %7277 = vrsqrt.f32 %v383_v46  ;;  %v415_v35 = vmul.f32 %v7270_v43, %v8277_v16 }
 0x2ab   :  { %v821_v32 = vsel %vm322_vm2, %v816_v41, 0  ;;  %6777 = vmatmul.mubr.msk.bf16.vlgmr.msra.gmra.mxu1 %vm322_vm2, %v581_v45  ;;  %v571_v5 = vmul.f32 %v411_v15, %v8027_v53 }
 0x2ac   :  { %6781 = vmatpush3.bf16.xpose.msra.mxu1 %v721_v50  ;;  %6793 = vmatpush3.bf16.xpose.msra.mxu0 %v821_v32  ;;  %v575_v57 = vmul.f32 %v415_v35, %v8069_v0 }
 0x2ad   :  { %6782 = vmatprep.mubr.msk.bf16.mxu1 %vm7863_vm3, %v10329_v19  ;;  %6786 = vmatprep.subr.bf16.mxu1 %v10329_v19  ;;  %v583_v23 = vpack.c.bf16 %v571_v5, %v570_v18 }
 0x2ae   :  { %v8313_v4 = vpop.permute.xlu0 %965  ;;  %6804 = vmatprep.subr.bf16.mxu0 %v10329_v19 }
 0x2af   :  { %v971_v18 = vsel %vm322_vm2, %v8313_v4, 0 }
 0x2b2   :  { %v916_v13 = vpop.permute.xlu0 %915  ;;  %v7272_v41 = vpop.eup %7271 }
 0x2b3   :  { %v921_v27 = vsel %vm322_vm2, %v916_v13, 0  ;;  %6783 = vmatmul.mubr.msk.bf16.vlgmr.msra.gmra.mxu1 %vm322_vm2, %v582_v2  ;;  %6795 = vmatmul.mubr.msk.bf16.vlgmr.msra.gmra.mxu0 %vm322_vm2, %v584_v11  ;;  %v414_v55 = vmul.f32 %v7272_v41, %v8277_v16  ;;  %v7274_v63 = vpop.eup %7273 }
 0x2b4   :  { %6787 = vmatpush3.bf16.xpose.msra.mxu1 %v771_v14  ;;  %6805 = vmatpush3.bf16.xpose.msra.mxu0 %v921_v27  ;;  %v419_v14 = vmul.f32 %v7274_v63, %v8277_v16 }
 0x2b5   :  { %6788 = vmatprep.mubr.msk.bf16.mxu1 %vm7863_vm3, %v10329_v19  ;;  %6798 = vmatprep.subr.bf16.mxu1 %v10329_v19  ;;  %v574_v2 = vmul.f32 %v414_v55, %v8061_v62 }
 0x2b6   :  { %v1869_v20 = vpop.permute.xlu0 %1868  ;;  %6806 = vmatprep.mubr.msk.bf16.mxu0 %vm7863_vm3, %v10329_v19  ;;  %6816 = vmatprep.subr.bf16.mxu0 %v10329_v19  ;;  %v7276_v11 = vpop.eup %7275 }
 0x2b7   :  { %v1916_v26 = vsel %vm322_vm2, %v1869_v20, 0.0  ;;  %v585_v13 = vpack.c.bf16 %v575_v57, %v574_v2  ;;  %v7278_v27 = vpop.eup %7277 }
 0x2ba   :  { %v1871_v24 = vpop.permute.xlu0 %1870 }
 0x2bb   :  { %6789 = vmatmul.mubr.msk.bf16.vlgmr.msra.gmra.mxu1 %vm322_vm2, %v583_v23  ;;  %v1919_v25 = vsel %vm322_vm2, %v1871_v24, 0.0  ;;  %v418_v23 = vmul.f32 %v7276_v11, %v8277_v16  ;;  %v1203_v11 = vpack.c.bf16 %v8037_v56, %v8021_v51  ;;  %v8412_v56 = vld [vmem:[#allocation2] sm:$0xff] }
 0x2bc   :  { %1920 = vadd.xlane.f32.xlu0 %v1919_v25  ;;  %6800 = vmatprep.mubr.msk.bf16.mxu1 %vm7863_vm3, %v10329_v19  ;;  %v579_v25 = vmul.f32 %v419_v14, %v8079_v3  ;;  %v1205_v14 = vpack.c.bf16 %v8053_v60, %v8045_v58  ;;  %v1204_v60 = vpack.c.bf16 %v8027_v53, %v8029_v54  ;;  %v8442_v54 = vld [vmem:[%s10323_s4] sm:$0xff] }
 0x2bd   :  { %1917 = vadd.xlane.f32.xlu1 %v1916_v26  ;;  %v416_v26 = vmul.f32 %v7278_v27, %v8277_v16 }
 0x2be   :  { %v1875_v29 = vpop.permute.xlu0 %1874 }
 0x2bf   :  { %v1925_v9 = vsel %vm322_vm2, %v1875_v29, 0.0  ;;  %v576_v3 = vmul.f32 %v416_v26, %v8071_v1 }
 0x2c1   :  { %1926 = vadd.xlane.f32.xlu1 %v1925_v9 }
 0x2c2   :  { %v1726_v30 = vpop.permute.xlu0 %1725 }
 0x2c3   :  { %v1774_v31 = vsel %vm322_vm2, %v1726_v30, 0.0 }
 0x2c5   :  { %1775 = vadd.xlane.f32.xlu1 %v1774_v31  ;;  %v578_v31 = vmul.f32 %v418_v23, %v8091_v6 }
 0x2c6   :  { %v1730_v37 = vpop.permute.xlu0 %1729 }
 0x2c7   :  { %v1780_v38 = vsel %vm322_vm2, %v1730_v37, 0.0  ;;  %v587_v37 = vpack.c.bf16 %v579_v25, %v578_v31 }
 0x2c9   :  { %1781 = vadd.xlane.f32.xlu1 %v1780_v38 }
 0x2ca   :  { %v1879_v49 = vpop.permute.xlu0 %1878 }
 0x2cb   :  { %v1931_v39 = vsel %vm322_vm2, %v1879_v49, 0.0 }
 0x2cd   :  { %1932 = vadd.xlane.f32.xlu1 %v1931_v39 }
 0x2ce   :  { %v1883_v21 = vpop.permute.xlu0 %1882 }
 0x2cf   :  { %v1937_v10 = vsel %vm322_vm2, %v1883_v21, 0.0 }
 0x2d1   :  { %1938 = vadd.xlane.f32.xlu1 %v1937_v10 }
 0x2d2   :  { %v1734_v59 = vpop.permute.xlu0 %1733 }
 0x2d3   :  { %v1786_v42 = vsel %vm322_vm2, %v1734_v59, 0.0 }
 0x2d5   :  { %1787 = vadd.xlane.f32.xlu1 %v1786_v42  ;;  %v364_v45 = vpop.xlane.xlu1 %363 }
 0x2d6   :  { %v384_v47 = vmax.f32 %v364_v45, 1e-24  ;;  %v1738_v28 = vpop.permute.xlu0 %1737 }
 0x2d7   :  { %v1792_v17 = vsel %vm322_vm2, %v1738_v28, 0.0 }
 0x2d8   :  { %7279 = vrsqrt.f32 %v384_v47 }
 0x2d9   :  { %1793 = vadd.xlane.f32.xlu1 %v1792_v17  ;;  %v866_v22 = vpop.permute.xlu1 %865 }
 0x2da   :  { %v871_v50 = vsel %vm322_vm2, %v866_v22, 0  ;;  %v1887_v32 = vpop.permute.xlu0 %1886 }
 0x2db   :  { %6799 = vmatpush3.bf16.xpose.msra.mxu1 %v871_v50  ;;  %v1943_v52 = vsel %vm322_vm2, %v1887_v32, 0.0 }
 0x2dc   :  { %6810 = vmatprep.subr.bf16.mxu1 %v10329_v19 }
 0x2dd   :  { %1944 = vadd.xlane.f32.xlu1 %v1943_v52  ;;  %v1873_v48 = vpop.permute.xlu1 %1872 }
 0x2de   :  { %v1891_v7 = vpop.permute.xlu0 %1890  ;;  %v1922_v61 = vsel %vm322_vm2, %v1873_v48, 0.0  ;;  %v8394_v48 = vld [vmem:[#allocation2 + $0x10] sm:$0xff] }
 0x2df   :  { %1923 = vadd.xlane.f32.xlu0 %v1922_v61  ;;  %v1949_v12 = vsel %vm322_vm2, %v1891_v7, 0.0  ;;  %v1202_v7 = vpack.c.bf16 %v7999_v44, %v8394_v48 }
 0x2e1   :  { %1950 = vadd.xlane.f32.xlu1 %v1949_v12  ;;  %v1724_v15 = vpop.permute.xlu1 %1723 }
 0x2e2   :  { %v1742_v20 = vpop.permute.xlu0 %1741  ;;  %6801 = vmatmul.mubr.msk.bf16.vlgmr.msra.gmra.mxu1 %vm322_vm2, %v585_v13  ;;  %v1771_v5 = vsel %vm322_vm2, %v1724_v15, 0.0  ;;  %v1207_v15 = vpack.c.bf16 %v8099_v8, %v8071_v1  ;;  %v1206_v1 = vpack.c.bf16 %v8069_v0, %v8061_v62 }
 0x2e3   :  { %6811 = vmatpush3.bf16.xpose.msra.mxu1 %v971_v18  ;;  %1772 = vadd.xlane.f32.xlu0 %v1771_v5  ;;  %v1798_v24 = vsel %vm322_vm2, %v1742_v20, 0.0  ;;  %v8414_v20 = vld [vmem:[#allocation2 + $0x8] sm:$0xff] }
 0x2e4   :  { %6812 = vmatprep.mubr.msk.bf16.mxu1 %vm7863_vm3, %v10329_v19  ;;  %6822 = vmatprep.subr.bf16.mxu1 %v10329_v19  ;;  %v1201_v58 = vpack.c.bf16 %v8414_v20, %v8412_v56 }
 0x2e5   :  { %v7280_v4 = vpop.eup %7279  ;;  %1799 = vadd.xlane.f32.xlu1 %v1798_v24  ;;  %v1728_v29 = vpop.permute.xlu1 %1727 }
 0x2e6   :  { %v1746_v9 = vpop.permute.xlu0 %1745  ;;  %v1777_v30 = vsel %vm322_vm2, %v1728_v29, 0.0  ;;  %v417_v34 = vmul.f32 %v7280_v4, %v8277_v16  ;;  %v1014_v4 = vld [vmem:[#allocation7] sm:$0xff] }
 0x2e7   :  { %1778 = vadd.xlane.f32.xlu0 %v1777_v30  ;;  %v1804_v36 = vsel %vm322_vm2, %v1746_v9, 0.0  ;;  %v8450_v30 = vstv %s1046_s24 }
 0x2e8   :  { %v577_v38 = vmul.f32 %v417_v34, %v8099_v8  ;;  %v8455_v34 = vld [vmem:[%s10323_s4 + $0x8] sm:$0xff] }
 0x2e9   :  { %1805 = vadd.xlane.f32.xlu1 %v1804_v36  ;;  %v1877_v49 = vpop.permute.xlu1 %1876 }
 0x2ea   :  { %v1895_v39 = vpop.permute.xlu0 %1894  ;;  %6813 = vmatmul.mubr.msk.bf16.vlgmr.msra.gmra.mxu1 %vm322_vm2, %v587_v37  ;;  %v1928_v40 = vsel %vm322_vm2, %v1877_v49, 0.0  ;;  %v586_v33 = vpack.c.bf16 %v577_v38, %v576_v3  ;;  %v1015_v38 = vld [vmem:[#allocation7 + $0x8] sm:$0xff] }
 0x2eb   :  { %1929 = vadd.xlane.f32.xlu0 %v1928_v40  ;;  %v1955_v6 = vsel %vm322_vm2, %v1895_v39, 0.0  ;;  %6824 = vmatprep.mubr.msk.bf16.mxu1 %vm7863_vm3, %v10329_v19 }
 0x2ec   :  { %6807 = vmatmul.mubr.msk.bf16.vlgmr.msra.gmra.mxu0 %vm322_vm2, %v586_v33 }
 0x2ed   :  { %1956 = vadd.xlane.f32.xlu1 %v1955_v6  ;;  %v1881_v16 = vpop.permute.xlu1 %1880  ;;  %6818 = vmatprep.mubr.msk.bf16.mxu0 %vm7863_vm3, %v10329_v19 }
 0x2ee   :  { %v1899_v21 = vpop.permute.xlu0 %1898  ;;  %v1934_v10 = vsel %vm322_vm2, %v1881_v16, 0.0 }
 0x2ef   :  { %1935 = vadd.xlane.f32.xlu0 %v1934_v10  ;;  %v1961_v46 = vsel %vm322_vm2, %v1899_v21, 0.0 }
 0x2f1   :  { %1962 = vadd.xlane.f32.xlu1 %v1961_v46  ;;  %v1732_v59 = vpop.permute.xlu1 %1731 }
 0x2f2   :  { %v1750_v42 = vpop.permute.xlu0 %1749  ;;  %v1783_v43 = vsel %vm322_vm2, %v1732_v59, 0.0 }
 0x2f3   :  { %1784 = vadd.xlane.f32.xlu0 %v1783_v43  ;;  %v1810_v45 = vsel %vm322_vm2, %v1750_v42, 0.0 }
 0x2f5   :  { %1811 = vadd.xlane.f32.xlu1 %v1810_v45  ;;  %v1736_v47 = vpop.permute.xlu1 %1735 }
 0x2f6   :  { %v1754_v28 = vpop.permute.xlu0 %1753  ;;  %v1789_v41 = vsel %vm322_vm2, %v1736_v47, 0.0 }
 0x2f7   :  { %1790 = vadd.xlane.f32.xlu0 %v1789_v41  ;;  %v1816_v17 = vsel %vm322_vm2, %v1754_v28, 0.0  ;;  %v1016_v28 = vld [vmem:[#allocation7 + $0x10] sm:$0xff] }
 0x2f9   :  { %1817 = vadd.xlane.f32.xlu1 %v1816_v17  ;;  %v1885_v35 = vpop.permute.xlu1 %1884 }
 0x2fa   :  { %v1940_v22 = vsel %vm322_vm2, %v1885_v35, 0.0 }
 0x2fb   :  { %1941 = vadd.xlane.f32.xlu0 %v1940_v22 }
 0x2fd   :  { %v1889_v50 = vpop.permute.xlu1 %1888 }
 0x2fe   :  { %v1946_v32 = vsel %vm322_vm2, %v1889_v50, 0.0 }
 0x2ff   :  { %1947 = vadd.xlane.f32.xlu0 %v1946_v32 }
 0x301   :  { %v1740_v55 = vpop.permute.xlu1 %1739 }
 0x302   :  { %v1795_v52 = vsel %vm322_vm2, %v1740_v55, 0.0 }
 0x303   :  { %1796 = vadd.xlane.f32.xlu0 %v1795_v52  ;;  %v1017_v52 = vld [vmem:[#allocation7 + $0x18] sm:$0xff] }
 0x305   :  { %v1744_v57 = vpop.permute.xlu1 %1743 }
 0x306   :  { %v1801_v63 = vsel %vm322_vm2, %v1744_v57, 0.0 }
 0x307   :  { %1802 = vadd.xlane.f32.xlu0 %v1801_v63 }
 0x309   :  { %v1893_v61 = vpop.permute.xlu1 %1892 }
 0x30a   :  { %1258 = vrot.lane.b32.xlu1 %v1202_v7, %s7859_s19  ;;  %v1952_v2 = vsel %vm322_vm2, %v1893_v61, 0.0  ;;  %v1022_v61 = vld [vmem:[#allocation7 + $0x40] sm:$0xff] }
 0x30b   :  { %1953 = vadd.xlane.f32.xlu0 %v1952_v2 }
 0x30d   :  { %v1897_v12 = vpop.permute.xlu1 %1896 }
 0x30e   :  { %1306 = vrot.lane.b32.xlu1 %v1203_v11, %s7859_s19  ;;  %v1958_v13 = vsel %vm322_vm2, %v1897_v12, 0.0 }
 0x30f   :  { %1959 = vadd.xlane.f32.xlu0 %v1958_v13 }
 0x311   :  { %v1748_v27 = vpop.permute.xlu1 %1747 }
 0x312   :  { %1402 = vrot.lane.b32.xlu1 %v1205_v14, %s7859_s19  ;;  %v1807_v44 = vsel %vm322_vm2, %v1748_v27, 0.0 }
 0x313   :  { %1808 = vadd.xlane.f32.xlu0 %v1807_v44 }
 0x315   :  { %v1752_v18 = vpop.permute.xlu1 %1751 }
 0x316   :  { %1498 = vrot.lane.b32.xlu1 %v1207_v15, %s7859_s19  ;;  %v1813_v51 = vsel %vm322_vm2, %v1752_v18, 0.0 }
 0x317   :  { %1814 = vadd.xlane.f32.xlu0 %v1813_v51 }
 0x32d   :  { %1210 = vrot.lane.b32.xlu0 %v1201_v58, %s7859_s19 }
 0x331   :  { %1354 = vrot.lane.b32.xlu0 %v1204_v60, %s7859_s19  ;;  %v1023_v60 = vld [vmem:[#allocation7 + $0x48] sm:$0xff] }
 0x335   :  { %1450 = vrot.lane.b32.xlu0 %v1206_v1, %s7859_s19 }
 0x345   :  { %v8447_v29 = vpop.xlane.xlu0 %1920 }
 0x346   :  { %v8425_v8 = vpop.xlane.xlu1 %1917 }
 0x34a   :  { %v8427_v5 = vpop.xlane.xlu1 %1926 }
 0x34e   :  { %v8429_v23 = vpop.xlane.xlu1 %1775 }
 0x352   :  { %v8431_v24 = vpop.xlane.xlu1 %1781 }
 0x356   :  { %v8433_v25 = vpop.xlane.xlu1 %1932 }
 0x35a   :  { %v8435_v26 = vpop.xlane.xlu1 %1938 }
 0x35e   :  { %v8437_v53 = vpop.xlane.xlu1 %1787 }
 0x362   :  { %v8445_v62 = vpop.xlane.xlu1 %1793 }
 0x363   :  { %v657_v0 = vpop.f32.mrf.mxu1 }
 0x364   :  { %v658_v9 = vadd.f32 %v657_v0, %v8442_v54 }
 0x365   :  { %v6772_v31 = vpop.f32.mrf.mxu1 }
 0x366   :  { %v1030_v36 = vadd.f32 %v1014_v4, %v658_v9  ;;  %v8457_v37 = vpop.xlane.xlu1 %1944 }
 0x367   :  { %v660_v3 = vpop.f32.mrf.mxu1 }
 0x368   :  { %v1048_v49 = vsub.f32 %v1030_v36, %v8450_v30  ;;  %v661_v39 = vadd.f32 %v660_v3, %v8455_v34  ;;  %v8461_v40 = vpop.xlane.xlu0 %1923 }
 0x369   :  { %v6773_v33 = vpop.f32.mrf.mxu1 }
 0x36a   :  { %v1064_v6 = vmax.f32 %v1048_v49, -60.0  ;;  %v1031_v16 = vadd.f32 %v1015_v38, %v661_v39  ;;  %v8463_v21 = vpop.xlane.xlu1 %1950 }
 0x36b   :  { %v707_v10 = vpop.f32.mrf.mxu1 }
 0x36c   :  { %v1080_v46 = vmul.f32 1.442695, %v1064_v6  ;;  %v1049_v59 = vsub.f32 %v1031_v16, %v8450_v30  ;;  %v8466_v42 = vpop.xlane.xlu0 %1772  ;;  %v708_v43 = vadd.f32 %v707_v10, %v8442_v54 }
 0x36d   :  { %v6778_v45 = vpop.f32.mrf.mxu1 }
 0x36e   :  { %7281 = vpow2.f32 %v1080_v46  ;;  %v1065_v47 = vmax.f32 %v1049_v59, -60.0  ;;  %v8469_v41 = vpop.xlane.xlu1 %1799  ;;  %v1032_v50 = vadd.f32 %v1016_v28, %v708_v43 }
 0x36f   :  { %v710_v17 = vpop.f32.mrf.mxu1 }
 0x370   :  { %v1082_v35 = vmul.f32 1.442695, %v1065_v47  ;;  %v8471_v22 = vpop.xlane.xlu0 %1778  ;;  %v711_v32 = vadd.f32 %v710_v17, %v8455_v34  ;;  %v1050_v12 = vsub.f32 %v1032_v50, %v8450_v30 }
 0x371   :  { %v6779_v55 = vpop.f32.mrf.mxu1 }
 0x372   :  { %7283 = vpow2.f32 %v1082_v35  ;;  %v8474_v57 = vpop.xlane.xlu1 %1805  ;;  %v1033_v13 = vadd.f32 %v1017_v52, %v711_v32  ;;  %v1066_v0 = vmax.f32 %v1050_v12, -60.0 }
 0x373   :  { %v8476_v63 = vpop.f32.mrf.mxu1  ;;  %v857_v7 = vpop.f32.mrf.mxu0 }
 0x374   :  { %v858_v2 = vadd.f32 %v857_v7, %v8442_v54  ;;  %v8479_v11 = vpop.xlane.xlu0 %1929  ;;  %v1051_v4 = vsub.f32 %v1033_v13, %v8450_v30  ;;  %v1084_v10 = vmul.f32 1.442695, %v1066_v0 }
 0x375   :  { %v6784_v14 = vpop.f32.mrf.mxu1  ;;  %v6796_v27 = vpop.f32.mrf.mxu0 }
 0x376   :  { %v1038_v44 = vadd.f32 %v1022_v61, %v858_v2  ;;  %v8482_v15 = vpop.xlane.xlu1 %1956  ;;  %v1067_v46 = vmax.f32 %v1051_v4, -60.0 }
 0x377   :  { %v8484_v18 = vpop.f32.mrf.mxu1  ;;  %v860_v51 = vpop.f32.mrf.mxu0 }
 0x378   :  { %v1056_v58 = vsub.f32 %v1038_v44, %v8450_v30  ;;  %v8487_v1 = vpop.xlane.xlu0 %1935  ;;  %v861_v9 = vadd.f32 %v860_v51, %v8455_v34  ;;  %v1086_v32 = vmul.f32 1.442695, %v1067_v46 }
 0x379   :  { %v6785_v31 = vpop.f32.mrf.mxu1  ;;  %v6797_v36 = vpop.f32.mrf.mxu0 }
 0x37a   :  { %v1072_v3 = vmax.f32 %v1056_v58, -60.0  ;;  %v8491_v38 = vpop.xlane.xlu1 %1962  ;;  %v1039_v39 = vadd.f32 %v1023_v60, %v861_v9 }
 0x37b   :  { %v8493_v49 = vpop.eup %7281  ;;  %v807_v33 = vpop.f32.mrf.mxu1 }
 0x37c   :  { %v1096_v6 = vmul.f32 1.442695, %v1072_v3  ;;  %v8495_v16 = vpop.xlane.xlu0 %1784  ;;  %v1057_v59 = vsub.f32 %v1039_v39, %v8450_v30  ;;  %v1113_v45 = vsel %vm1112_vm4, %v8493_v49, 0.0 }
 0x37d   :  { %v6790_v43 = vpop.f32.mrf.mxu1  ;;  %1114 = vadd.xlane.f32.xlu0 %v1113_v45  ;;  %v1018_v45 = vld [vmem:[#allocation7 + $0x20] sm:$0xff] }
 0x37e   :  { %v8500_v47 = vpop.xlane.xlu1 %1811  ;;  %7285 = vpow2.f32 %v1096_v6  ;;  %v1073_v17 = vmax.f32 %v1057_v59, -60.0  ;;  %v758_v43 = vadd.f32 %v8476_v63, %v8442_v54 }
 0x37f   :  { %v8502_v28 = vpop.eup %7283  ;;  %v810_v35 = vpop.f32.mrf.mxu1  ;;  %7287 = vpow2.f32 %v1084_v10 }
 0x380   :  { %10335 = vst [vmem:[#allocation13_spill] sm:$0xff] %v8502_v28  ;;  %v8504_v50 = vpop.xlane.xlu0 %1790  ;;  %v1098_v55 = vmul.f32 1.442695, %v1073_v17  ;;  %v1116_v52 = vsel %vm1112_vm4, %v8502_v28, 0.0 }
 0x381   :  { %v6791_v7 = vpop.f32.mrf.mxu1  ;;  %1117 = vadd.xlane.f32.xlu1 %v1116_v52  ;;  %v808_v52 = vadd.f32 %v807_v33, %v8442_v54  ;;  %v811_v33 = vadd.f32 %v810_v35, %v8455_v34 }
 0x382   :  { %v8508_v61 = vpop.xlane.xlu1 %1817  ;;  %7289 = vpow2.f32 %v1098_v55  ;;  %v1034_v55 = vadd.f32 %v1018_v45, %v758_v43  ;;  %v761_v7 = vadd.f32 %v8484_v18, %v8455_v34  ;;  %v1024_v45 = vld [vmem:[#allocation7 + $0x50] sm:$0xff] }
 0x383   :  { %10336 = vst [vmem:[#allocation14_spill] sm:$0xff] %v8508_v61  ;;  %7291 = vpow2.f32 %v1086_v32 }
 0x384   :  { %v8510_v2 = vpop.xlane.xlu0 %1941  ;;  %v1052_v63 = vsub.f32 %v1034_v55, %v8450_v30 }
 0x386   :  { %v1259_v12 = vpop.permute.xlu1 %1258 }
 0x387   :  { %6823 = vmatpush3.bf16.msra.mxu1 %v1259_v12  ;;  %v1020_v12 = vld [vmem:[#allocation7 + $0x30] sm:$0xff] }
 0x388   :  { %v8512_v13 = vpop.xlane.xlu0 %1947  ;;  %6834 = vmatprep.subr.bf16.mxu1 %v10329_v19 }
 0x38b   :  { %v8515_v14 = vpop.eup %7285 }
 0x38c   :  { %10337 = vst [vmem:[#allocation15_spill] sm:$0xff] %v8515_v14  ;;  %v8517_v27 = vpop.xlane.xlu0 %1796  ;;  %v1137_v44 = vsel %vm1112_vm4, %v8515_v14, 0.0  ;;  %v8521_v51 = vpop.eup %7287 }
 0x38d   :  { %10338 = vst [vmem:[#allocation16_spill] sm:$0xff] %v8521_v51  ;;  %1138 = vadd.xlane.f32.xlu0 %v1137_v44  ;;  %v1119_v4 = vsel %vm1112_vm4, %v8521_v51, 0.0 }
 0x38f   :  { %v8523_v58 = vpop.eup %7289 }
 0x390   :  { %10339 = vst [vmem:[#allocation17_spill] sm:$0xff] %v8523_v58  ;;  %v8525_v60 = vpop.xlane.xlu0 %1802  ;;  %v1140_v0 = vsel %vm1112_vm4, %v8523_v58, 0.0  ;;  %v8531_v9 = vpop.eup %7291  ;;  %v1021_v58 = vld [vmem:[#allocation7 + $0x38] sm:$0xff] }
 0x391   :  { %10340 = vst [vmem:[#allocation18_spill] sm:$0xff] %v8531_v9  ;;  %1141 = vadd.xlane.f32.xlu1 %v1140_v0  ;;  %1120 = vadd.xlane.f32.xlu0 %v1119_v4  ;;  %v1122_v36 = vsel %vm1112_vm4, %v8531_v9, 0.0  ;;  %v1019_v0 = vld [vmem:[#allocation7 + $0x28] sm:$0xff] }
 0x392   :  { %v1035_v43 = vadd.f32 %v1019_v0, %v761_v7  ;;  %v1037_v7 = vadd.f32 %v1021_v58, %v811_v33 }
 0x394   :  { %v8533_v31 = vpop.xlane.xlu0 %1953 }
 0x395   :  { %1123 = vadd.xlane.f32.xlu1 %v1122_v36  ;;  %v1026_v36 = vld [vmem:[#allocation7 + $0x60] sm:$0xff] }
 0x398   :  { %v8537_v3 = vpop.xlane.xlu0 %1959 }
 0x39c   :  { %v8539_v39 = vpop.xlane.xlu0 %1808 }
 0x3a0   :  { %v8541_v6 = vpop.xlane.xlu0 %1814 }
 0x3a1   :  { %10341 = vst [vmem:[#allocation19_spill] sm:$0xff] %v8541_v6  ;;  %v1068_v6 = vmax.f32 %v1052_v63, -60.0 }
 0x3a2   :  { %v907_v10 = vpop.f32.mrf.mxu1 }
 0x3a3   :  { %v908_v14 = vadd.f32 %v907_v10, %v8442_v54  ;;  %v1027_v10 = vld [vmem:[#allocation7 + $0x68] sm:$0xff] }
 0x3a4   :  { %v6802_v46 = vpop.f32.mrf.mxu1  ;;  %v1211_v59 = vpop.permute.xlu0 %1210 }
 0x3a5   :  { %6817 = vmatpush3.bf16.msra.mxu0 %v1211_v59  ;;  %v1036_v59 = vadd.f32 %v1020_v12, %v808_v52  ;;  %v1040_v55 = vadd.f32 %v1024_v45, %v908_v14  ;;  %v1053_v12 = vsub.f32 %v1035_v43, %v8450_v30 }
 0x3a6   :  { %v910_v17 = vpop.f32.mrf.mxu1  ;;  %6828 = vmatprep.subr.bf16.mxu0 %v10329_v19 }
 0x3a7   :  { %v911_v35 = vadd.f32 %v910_v17, %v8455_v34  ;;  %v1058_v63 = vsub.f32 %v1040_v55, %v8450_v30  ;;  %v1069_v14 = vmax.f32 %v1053_v12, -60.0 }
 0x3a8   :  { %v6803_v32 = vpop.f32.mrf.mxu1 }
 0x3a9   :  { %v1090_v33 = vmul.f32 1.442695, %v1069_v14 }
 0x3aa   :  { %v8549_v44 = vpop.f32.mrf.mxu1 }
 0x3ac   :  { %v957_v4 = vpop.f32.mrf.mxu0  ;;  %v6814_v46 = vpop.f32.mrf.mxu1 }
 0x3ad   :  { %v958_v32 = vadd.f32 %v957_v4, %v8442_v54  ;;  %v1054_v46 = vsub.f32 %v1036_v59, %v8450_v30  ;;  %v1025_v4 = vld [vmem:[#allocation7 + $0x58] sm:$0xff] }
 0x3ae   :  { %v6808_v19 = vpop.f32.mrf.mxu0  ;;  %v8555_v18 = vpop.f32.mrf.mxu1  ;;  %v1041_v45 = vadd.f32 %v1025_v4, %v911_v35 }
 0x3af   :  { %v1042_v9 = vadd.f32 %v1026_v36, %v958_v32  ;;  %v1088_v32 = vmul.f32 1.442695, %v1068_v6 }
 0x3b0   :  { %v960_v51 = vpop.f32.mrf.mxu0  ;;  %v6815_v61 = vpop.f32.mrf.mxu1 }
 0x3b1   :  { %v1060_v52 = vsub.f32 %v1042_v9, %v8450_v30  ;;  %v961_v19 = vadd.f32 %v960_v51, %v8455_v34  ;;  %v1070_v61 = vmax.f32 %v1054_v46, -60.0  ;;  %v1055_v9 = vsub.f32 %v1037_v7, %v8450_v30 }
 0x3b2   :  { %v6809_v0 = vpop.f32.mrf.mxu0  ;;  %v1074_v51 = vmax.f32 %v1058_v63, -60.0  ;;  %v1965_v63 = vmax.f32 %v8447_v29, 1e-24 }
 0x3b3   :  { %v1076_v28 = vmax.f32 %v1060_v52, -60.0  ;;  %v1043_v36 = vadd.f32 %v1027_v10, %v961_v19  ;;  %v1092_v17 = vmul.f32 1.442695, %v1070_v61  ;;  %v1071_v0 = vmax.f32 %v1055_v9, -60.0 }
 0x3b4   :  { %v1059_v52 = vsub.f32 %v1041_v45, %v8450_v30  ;;  %v1100_v46 = vmul.f32 1.442695, %v1074_v51  ;;  %v1964_v9 = vmax.f32 %v8425_v8, 1e-24 }
 0x3b5   :  { %v1104_v59 = vmul.f32 1.442695, %v1076_v28  ;;  %v1061_v43 = vsub.f32 %v1043_v36, %v8450_v30  ;;  %v1094_v28 = vmul.f32 1.442695, %v1071_v0  ;;  %v1008_v0 = vadd.f32 %v8549_v44, %v8442_v54 }
 0x3b6   :  { %v1075_v55 = vmax.f32 %v1059_v52, -60.0 }
 0x3b7   :  { %7293 = vpow2.f32 %v1104_v59  ;;  %v1077_v58 = vmax.f32 %v1061_v43, -60.0 }
 0x3b8   :  { %7295 = vpow2.f32 %v1088_v32  ;;  %v1102_v10 = vmul.f32 1.442695, %v1075_v55 }
 0x3b9   :  { %v1106_v6 = vmul.f32 1.442695, %v1077_v58 }
 0x3bb   :  { %7297 = vpow2.f32 %v1106_v6 }
 0x3bc   :  { %7299 = vpow2.f32 %v1092_v17 }
 0x3bd   :  { %7301 = vpow2.f32 %v1090_v33 }
 0x3be   :  { %7303 = vpow2.f32 %v1100_v46  ;;  %v1028_v46 = vld [vmem:[#allocation7 + $0x70] sm:$0xff] }
 0x3bf   :  { %7305 = vpow2.f32 %v1094_v28  ;;  %v1044_v28 = vadd.f32 %v1028_v46, %v1008_v0  ;;  %v1822_v0 = vmax.f32 %v8431_v24, 1e-24  ;;  %v1821_v46 = vmax.f32 %v8471_v22, 1e-24 }
 0x3c0   :  { %7307 = vpow2.f32 %v1102_v10  ;;  %v8604_v10 = vld [vmem:[#allocation2 + $0x78] sm:$0xff]  ;;  %v1968_v24 = vmax.f32 %v8479_v11, 1e-24  ;;  %v1970_v11 = vmax.f32 %v8487_v1, 1e-24 }
 0x3c1   :  { %7309 = vrsqrt.f32 %v1965_v63  ;;  %v1029_v63 = vld [vmem:[#allocation7 + $0x78] sm:$0xff]  ;;  %v1062_v54 = vsub.f32 %v1044_v28, %v8450_v30  ;;  %v1972_v1 = vmax.f32 %v8510_v2, 1e-24  ;;  %v1829_v2 = vmax.f32 %v8525_v60, 1e-24 }
 0x3c2   :  { %7311 = vrsqrt.f32 %v1964_v9 }
 0x3c4   :  { %v8566_v12 = vpop.eup %7293 }
 0x3c5   :  { %v1149_v7 = vsel %vm1112_vm4, %v8566_v12, 0.0  ;;  %v8570_v35 = vpop.eup %7295 }
 0x3c6   :  { %1150 = vadd.xlane.f32.xlu0 %v1149_v7  ;;  %v1125_v4 = vsel %vm1112_vm4, %v8570_v35, 0.0  ;;  %v8606_v7 = vld [vmem:[#allocation2 + $0x70] sm:$0xff] }
 0x3c8   :  { %v8572_v19 = vpop.eup %7297 }
 0x3c9   :  { %v8576_v36 = vpop.eup %7299  ;;  %v1152_v32 = vsel %vm1112_vm4, %v8572_v19, 0.0 }
 0x3ca   :  { %1126 = vadd.xlane.f32.xlu0 %v1125_v4  ;;  %v8580_v61 = vpop.eup %7301  ;;  %1153 = vadd.xlane.f32.xlu1 %v1152_v32  ;;  %v1131_v59 = vsel %vm1112_vm4, %v8576_v36, 0.0  ;;  %v8610_v4 = vpack.c.bf16 %v8604_v10, %v8606_v7  ;;  %v1011_v32 = vadd.f32 %v8555_v18, %v8455_v34  ;;  %v1967_v34 = vmax.f32 %v8427_v5, 1e-24 }
 0x3cb   :  { %v8585_v14 = vpop.eup %7303  ;;  %v1128_v45 = vsel %vm1112_vm4, %v8580_v61, 0.0  ;;  %v1819_v18 = vmax.f32 %v8466_v42, 1e-24  ;;  %v1971_v42 = vmax.f32 %v8435_v26, 1e-24 }
 0x3cc   :  { %v8590_v43 = vpop.eup %7305  ;;  %v1143_v58 = vsel %vm1112_vm4, %v8585_v14, 0.0  ;;  %v1045_v44 = vadd.f32 %v1029_v63, %v1011_v32  ;;  %v1825_v32 = vmax.f32 %v8504_v50, 1e-24  ;;  %v1827_v50 = vmax.f32 %v8517_v27, 1e-24 }
 0x3cd   :  { %v1134_v29 = vsel %vm1112_vm4, %v8590_v43, 0.0  ;;  %v8596_v17 = vpop.eup %7307 }
 0x3ce   :  { %1132 = vadd.xlane.f32.xlu0 %v1131_v59  ;;  %1129 = vadd.xlane.f32.xlu1 %v1128_v45  ;;  %v1146_v8 = vsel %vm1112_vm4, %v8596_v17, 0.0  ;;  %v7310_v51 = vpop.eup %7309  ;;  %v1078_v59 = vmax.f32 %v1062_v54, -60.0  ;;  %v1063_v9 = vsub.f32 %v1045_v44, %v8450_v30  ;;  %v1969_v30 = vmax.f32 %v8433_v25, 1e-24 }
 0x3cf   :  { %v7312_v33 = vpop.eup %7311  ;;  %v2021_v6 = vmul.f32 %v8414_v20, %v7310_v51  ;;  %v8623_v51 = vpop.permute.xlu0 %1354  ;;  %v1973_v54 = vmax.f32 %v8457_v37, 1e-24 }
 0x3d0   :  { %v2020_v52 = vmul.f32 %v8412_v56, %v7312_v33  ;;  %v1108_v45 = vmul.f32 1.442695, %v1078_v59  ;;  %v1820_v33 = vmax.f32 %v8429_v23, 1e-24  ;;  %v1824_v23 = vmax.f32 %v8437_v53, 1e-24 }
 0x3d1   :  { %v1826_v53 = vmax.f32 %v8445_v62, 1e-24  ;;  %v1975_v62 = vmax.f32 %v8463_v21, 1e-24 }
 0x3d2   :  { %1144 = vadd.xlane.f32.xlu0 %v1143_v58  ;;  %1135 = vadd.xlane.f32.xlu1 %v1134_v29  ;;  %v2036_v55 = vpack.c.bf16 %v2021_v6, %v2020_v52  ;;  %v1079_v58 = vmax.f32 %v1063_v9, -60.0  ;;  %7313 = vpow2.f32 %v1108_v45  ;;  %v1966_v52 = vmax.f32 %v8461_v40, 1e-24 }
 0x3d3   :  { %v8635_v28 = vpop.permute.xlu0 %1450  ;;  %v1823_v40 = vmax.f32 %v8495_v16, 1e-24 }
 0x3d4   :  { %v1110_v29 = vmul.f32 1.442695, %v1079_v58  ;;  %v1828_v58 = vmax.f32 %v8469_v41, 1e-24  ;;  %v1977_v41 = vmax.f32 %v8482_v15, 1e-24 }
 0x3d6   :  { %1147 = vadd.xlane.f32.xlu1 %v1146_v8  ;;  %v8619_v8 = vpop.permute.xlu1 %1306  ;;  %7315 = vpow2.f32 %v1110_v29 }
 0x3d7   :  { %7317 = vrsqrt.f32 %v1967_v34  ;;  %v1830_v34 = vmax.f32 %v8474_v57, 1e-24  ;;  %v1979_v57 = vmax.f32 %v8491_v38, 1e-24 }
 0x3d8   :  { %7319 = vrsqrt.f32 %v1819_v18 }
 0x3d9   :  { %7321 = vrsqrt.f32 %v1820_v33 }
 0x3da   :  { %v8629_v6 = vpop.permute.xlu1 %1402  ;;  %7323 = vrsqrt.f32 %v1822_v0  ;;  %v1974_v0 = vmax.f32 %v8512_v13, 1e-24  ;;  %v1976_v13 = vmax.f32 %v8533_v31, 1e-24 }
 0x3db   :  { %7325 = vrsqrt.f32 %v1969_v30 }
 0x3dc   :  { %7327 = vrsqrt.f32 %v1966_v52 }
 0x3dd   :  { %7329 = vrsqrt.f32 %v1821_v46 }
 0x3de   :  { %7331 = vrsqrt.f32 %v1971_v42  ;;  %v8642_v22 = vpop.permute.xlu1 %1498 }
 0x3df   :  { %v8632_v5 = vpop.eup %7313  ;;  %7333 = vrsqrt.f32 %v1824_v23 }
 0x3e0   :  { %v1155_v25 = vsel %vm1112_vm4, %v8632_v5, 0.0  ;;  %7335 = vrsqrt.f32 %v1968_v24 }
 0x3e3   :  { %v8644_v26 = vpop.eup %7315 }
 0x3e4   :  { %v1158_v16 = vsel %vm1112_vm4, %v8644_v26, 0.0  ;;  %v7318_v44 = vpop.eup %7317 }
 0x3e5   :  { %v7320_v59 = vpop.eup %7319 }
 0x3e6   :  { %v7322_v9 = vpop.eup %7321 }
 0x3e7   :  { %2051 = vrot.lane.b32.xlu1 %v2036_v55, %s7864_s2  ;;  %v7324_v45 = vpop.eup %7323 }
 0x3e8   :  { %1546 = vrot.lane.b32.xlu0 %v8610_v4, %s7859_s19  ;;  %s8646_s19 = sld [smem:[#allocation4 + $0x1]]  ;;  %v7326_v37 = vpop.eup %7325 }
 0x3e9   :  { %v7328_v18 = vpop.eup %7327 }
 0x3ea   :  { %v7330_v33 = vpop.eup %7329  ;;  %v2022_v42 = vmul.f32 %v8394_v48, %v7328_v18 }
 0x3eb   :  { %v8666_v30 = vpop.eup %7331 }
 0x3ec   :  { %v7334_v52 = vpop.eup %7333 }
 0x3ed   :  { %v7336_v60 = vpop.eup %7335 }
 0x3ee   :  { %v8659_v29 = vstv %s8646_s19  ;;  %s2503_s1 = sadd.f32 16.0, %s8646_s19 }
 0x3ef   :  { %v1852_v21 = vmul.f32 %v7320_v59, %v8659_v29  ;;  %v1853_v27 = vmul.f32 %v7322_v9, %v8659_v29  ;;  %v1854_v23 = vmul.f32 %v7330_v33, %v8659_v29  ;;  %v1855_v31 = vmul.f32 %v7324_v45, %v8659_v29  ;;  %v8690_v45 = vld [vmem:[#allocation2 + $0x20] sm:$0xff]  ;;  %v8698_v33 = vld [vmem:[#allocation2 + $0x28] sm:$0xff] }
 0x3f1   :  { %v1996_v46 = vmul.f32 %v8412_v56, %v1852_v21  ;;  %v1997_v15 = vmul.f32 %v8414_v20, %v1853_v27  ;;  %v1857_v27 = vmul.f32 %v7334_v52, %v8659_v29  ;;  %v10345_v52 = vmov 0.0  }
 0x406   :  { %v1115_v55 = vpop.xlane.xlu0 %1114 }
 0x407   :  { %1156 = vadd.xlane.f32.xlu0 %v1155_v25  ;;  %7337 = vrcp.f32 %v1115_v55  ;;  %v1831_v25 = vmax.f32 %v8539_v39, 1e-24  ;;  %v8678_v55 = vld [vmem:[#allocation2 + $0x18] sm:$0xff] }
 0x408   :  { %7339 = vrsqrt.f32 %v1823_v40  ;;  %v2023_v56 = vmul.f32 %v8678_v55, %v7318_v44  ;;  %v1998_v44 = vmul.f32 %v8394_v48, %v1854_v23  ;;  %v1999_v21 = vmul.f32 %v8678_v55, %v1855_v31  ;;  %v10344_v48 = vld [vmem:[#allocation14_spill] sm:$0xff] }
 0x40a   :  { %v1118_v63 = vpop.xlane.xlu1 %1117  ;;  %v2037_v39 = vpack.c.bf16 %v2023_v56, %v2022_v42 }
 0x40b   :  { %7341 = vrcp.f32 %v1118_v63  ;;  %1159 = vadd.xlane.f32.xlu1 %v1158_v16  ;;  %v2012_v63 = vpack.c.bf16 %v1997_v15, %v1996_v46  ;;  %v8703_v46 = vld [vmem:[#allocation2 + $0x30] sm:$0xff]  ;;  %v8711_v15 = vld [vmem:[#allocation2 + $0x38] sm:$0xff] }
 0x40c   :  { %7343 = vrsqrt.f32 %v1826_v53  ;;  %v1832_v53 = vmax.f32 %v8500_v47, 1e-24  ;;  %v2027_v56 = vmul.f32 %v8711_v15, %v8666_v30 }
 0x40d   :  { %7345 = vrsqrt.f32 %v1970_v11 }
 0x40e   :  { %7347 = vrsqrt.f32 %v1825_v32  ;;  %v1978_v32 = vmax.f32 %v8537_v3, 1e-24  ;;  %v2024_v3 = vmul.f32 %v8690_v45, %v7336_v60 }
 0x40f   :  { %7349 = vrsqrt.f32 %v1973_v54  ;;  %v10342_v54 = vld [vmem:[#allocation13_spill] sm:$0xff] }
 0x410   :  { %7351 = vrsqrt.f32 %v1975_v62 }
 0x411   :  { %7353 = vrsqrt.f32 %v1972_v1  ;;  %v10343_v1 = vld [vmem:[#allocation19_spill] sm:$0xff] }
 0x412   :  { %7355 = vrsqrt.f32 %v1827_v50  ;;  %v1833_v47 = vmax.f32 %v10343_v1, 1e-24 }
 0x413   :  { %7357 = vrsqrt.f32 %v1828_v58 }
 0x414   :  { %7359 = vrsqrt.f32 %v1830_v34  ;;  %v7338_v24 = vpop.eup %7337 }
 0x415   :  { %7361 = vrsqrt.f32 %v1829_v2  ;;  %v7340_v38 = vpop.eup %7339  ;;  %v1177_v20 = vmul.f32 %v7338_v24, %v8493_v49  ;;  %v1834_v2 = vmax.f32 %v10344_v48, 1e-24  ;;  %v8734_v48 = vld [vmem:[#allocation2 + $0x50] sm:$0xff] }
 0x416   :  { %7363 = vrsqrt.f32 %v1974_v0  ;;  %v8675_v40 = vpop.xlane.xlu0 %1138  ;;  %v1856_v58 = vmul.f32 %v7340_v38, %v8659_v29  ;;  %v2025_v0 = vmul.f32 %v8698_v33, %v7326_v37 }
 0x417   :  { %7365 = vrsqrt.f32 %v1977_v41 }
 0x418   :  { %v7342_v11 = vpop.eup %7341  ;;  %7367 = vrsqrt.f32 %v1979_v57  ;;  %v2013_v57 = vpack.c.bf16 %v1999_v21, %v1998_v44  ;;  %v2038_v23 = vpack.c.bf16 %v2025_v0, %v2024_v3  ;;  %v2000_v24 = vmul.f32 %v8690_v45, %v1856_v58 }
 0x419   :  { %v7344_v16 = vpop.eup %7343  ;;  %7369 = vrsqrt.f32 %v1976_v13  ;;  %v1178_v62 = vmul.f32 %v7342_v11, %v10342_v54 }
 0x41a   :  { %v7346_v59 = vpop.eup %7345  ;;  %7371 = vrsqrt.f32 %v1831_v25  ;;  %v1121_v9 = vpop.xlane.xlu0 %1120 }
 0x41b   :  { %v8688_v50 = vpop.xlane.xlu1 %1141  ;;  %v7348_v34 = vpop.eup %7347  ;;  %7373 = vrsqrt.f32 %v1832_v53  ;;  %v1193_v49 = vpack.c.bf16 %v1178_v62, %v1177_v20  ;;  %v2026_v42 = vmul.f32 %v8703_v46, %v7346_v59  ;;  %v1859_v53 = vmul.f32 %v7344_v16, %v8659_v29  ;;  %v8721_v20 = vld [vmem:[#allocation2 + $0x40] sm:$0xff]  ;;  %v8728_v59 = vld [vmem:[#allocation2 + $0x48] sm:$0xff] }
 0x41c   :  { %v7350_v18 = vpop.eup %7349  ;;  %7375 = vrsqrt.f32 %v1978_v32  ;;  %2048 = vrot.lane.b32.xlu1 %v2012_v63, %s7865_s21  ;;  %v1858_v37 = vmul.f32 %v7348_v34, %v8659_v29 }
 0x41d   :  { %2104 = vrot.lane.b32.xlu0 %v2037_v39, %s7864_s2  ;;  %v7352_v41 = vpop.eup %7351  ;;  %7377 = vrcp.f32 %v1121_v9  ;;  %6819 = vmatmul.mubr.msk.bf16.vlgmr.msra.gmra.mxu0 %vm1112_vm4, %v1193_v49  ;;  %v2039_v11 = vpack.c.bf16 %v2027_v56, %v2026_v42  ;;  %v2003_v16 = vmul.f32 %v8711_v15, %v1859_v53  ;;  %v2029_v1 = vmul.f32 %v8728_v59, %v7350_v18  ;;  %v8741_v42 = vld [vmem:[#allocation2 + $0x58] sm:$0xff]  ;;  %v8745_v56 = vld [vmem:[#allocation2 + $0x60] sm:$0xff] }
 0x41e   :  { %v7354_v60 = vpop.eup %7353  ;;  %7379 = vrsqrt.f32 %v1833_v47  ;;  %6829 = vmatpush3.bf16.msra.mxu0 %v8619_v8  ;;  %6830 = vmatprep.mubr.msk.bf16.mxu0 %vm7863_vm3, %v10345_v52  ;;  %v2001_v8 = vmul.f32 %v8698_v33, %v1857_v27  ;;  %v2002_v39 = vmul.f32 %v8703_v46, %v1858_v37 }
 0x41f   :  { %v1124_v13 = vpop.xlane.xlu1 %1123  ;;  %v7356_v25 = vpop.eup %7355  ;;  %6840 = vmatprep.subr.bf16.mxu0 %v10345_v52  ;;  %v2028_v30 = vmul.f32 %v8721_v20, %v7354_v60  ;;  %v2031_v60 = vmul.f32 %v8741_v42, %v7352_v41  ;;  %v8752_v41 = vld [vmem:[#allocation2 + $0x68] sm:$0xff] }
 0x420   :  { %7381 = vrcp.f32 %v1124_v13  ;;  %v7358_v38 = vpop.eup %7357  ;;  %2101 = vrot.lane.b32.xlu1 %v2013_v57, %s7865_s21  ;;  %v2014_v63 = vpack.c.bf16 %v2001_v8, %v2000_v24  ;;  %v1860_v54 = vmul.f32 %v7356_v25, %v8659_v29  ;;  %v2015_v34 = vpack.c.bf16 %v2003_v16, %v2002_v39  ;;  %v10347_v16 = vld [vmem:[#allocation18_spill] sm:$0xff] }
 0x421   :  { %7383 = vrsqrt.f32 %v1834_v2  ;;  %2157 = vrot.lane.b32.xlu0 %v2038_v23, %s7864_s2  ;;  %v7360_v31 = vpop.eup %7359  ;;  %v1861_v47 = vmul.f32 %v7358_v38, %v8659_v29  ;;  %v2040_v49 = vpack.c.bf16 %v2029_v1, %v2028_v30 }
 0x422   :  { %v7362_v32 = vpop.eup %7361  ;;  %v2004_v21 = vmul.f32 %v8721_v20, %v1860_v54  ;;  %v1863_v27 = vmul.f32 %v7360_v31, %v8659_v29  ;;  %v10346_v54 = vld [vmem:[#allocation16_spill] sm:$0xff] }
 0x423   :  { %v7364_v62 = vpop.eup %7363  ;;  %v1862_v3 = vmul.f32 %v7362_v32, %v8659_v29  ;;  %v2005_v18 = vmul.f32 %v8728_v59, %v1861_v47 }
 0x424   :  { %v7366_v44 = vpop.eup %7365  ;;  %2154 = vrot.lane.b32.xlu1 %v2014_v63, %s7865_s21  ;;  %v2030_v2 = vmul.f32 %v8734_v48, %v7364_v62  ;;  %v2007_v31 = vmul.f32 %v8741_v42, %v1863_v27 }
 0x425   :  { %2210 = vrot.lane.b32.xlu0 %v2039_v11, %s7864_s2  ;;  %v7368_v9 = vpop.eup %7367  ;;  %v2006_v23 = vmul.f32 %v8734_v48, %v1862_v3  ;;  %v2016_v37 = vpack.c.bf16 %v2005_v18, %v2004_v21  ;;  %v2033_v32 = vmul.f32 %v8752_v41, %v7366_v44  ;;  %v8771_v18 = vld [vmem:[#allocation2] sm:$0xff] }
 0x426   :  { %v7370_v58 = vpop.eup %7369  ;;  %v2041_v25 = vpack.c.bf16 %v2031_v60, %v2030_v2  ;;  %v2035_v21 = vmul.f32 %v8604_v10, %v7368_v9  ;;  %v3165_v60 = vld [vmem:[#allocation2 + $0x10] sm:$0xff] }
 0x427   :  { %v7372_v0 = vpop.eup %7371  ;;  %v2032_v38 = vmul.f32 %v8745_v56, %v7370_v58  ;;  %v2017_v30 = vpack.c.bf16 %v2007_v31, %v2006_v23 }
 0x428   :  { %v7374_v57 = vpop.eup %7373  ;;  %2207 = vrot.lane.b32.xlu1 %v2015_v34, %s7865_s21  ;;  %v1864_v8 = vmul.f32 %v7372_v0, %v8659_v29 }
 0x429   :  { %2263 = vrot.lane.b32.xlu0 %v2040_v49, %s7864_s2  ;;  %v7376_v13 = vpop.eup %7375  ;;  %v1865_v63 = vmul.f32 %v7374_v57, %v8659_v29  ;;  %v2042_v47 = vpack.c.bf16 %v2033_v32, %v2032_v38  ;;  %v3169_v38 = vld [vmem:[#allocation2 + $0x30] sm:$0xff] }
 0x42a   :  { %v7378_v24 = vpop.eup %7377  ;;  %v2008_v3 = vmul.f32 %v8745_v56, %v1864_v8  ;;  %v2034_v58 = vmul.f32 %v8606_v7, %v7376_v13  ;;  %v8779_v13 = vld [vmem:[#allocation2 + $0x8] sm:$0xff] }
 0x42b   :  { %v7380_v53 = vpop.eup %7379  ;;  %v1179_v62 = vmul.f32 %v7378_v24, %v10346_v54  ;;  %v2009_v44 = vmul.f32 %v8752_v41, %v1865_v63  ;;  %v3180_v23 = vmul.f32 %v8779_v13, %v8779_v13  ;;  %v3166_v24 = vld [vmem:[#allocation2 + $0x18] sm:$0xff]  ;;  %v3168_v8 = vld [vmem:[#allocation2 + $0x28] sm:$0xff]  ;;  %v3171_v54 = vld [vmem:[#allocation2 + $0x40] sm:$0xff] }
 0x42c   :  { %2260 = vrot.lane.b32.xlu1 %v2016_v37, %s7865_s21  ;;  %v1866_v34 = vmul.f32 %v7380_v53, %v8659_v29  ;;  %v2043_v27 = vpack.c.bf16 %v2035_v21, %v2034_v58  ;;  %v3167_v37 = vld [vmem:[#allocation2 + $0x20] sm:$0xff]  ;;  %v3185_v53 = vmul.f32 %v3169_v38, %v3169_v38  ;;  %v3184_v31 = vmul.f32 %v3168_v8, %v3168_v8 }
 0x42d   :  { %v7382_v11 = vpop.eup %7381  ;;  %2316 = vrot.lane.b32.xlu0 %v2041_v25, %s7864_s2  ;;  %v2018_v0 = vpack.c.bf16 %v2009_v44, %v2008_v3  ;;  %v3183_v25 = vmul.f32 %v3167_v37, %v3167_v37  ;;  %v3172_v3 = vld [vmem:[#allocation2 + $0x48] sm:$0xff]  ;;  %v3174_v44 = vld [vmem:[#allocation2 + $0x58] sm:$0xff] }
 0x42e   :  { %v7384_v39 = vpop.eup %7383  ;;  %v1180_v1 = vmul.f32 %v7382_v11, %v10347_v16  ;;  %v2010_v57 = vmul.f32 %v8606_v7, %v1866_v34  ;;  %v3181_v7 = vmul.f32 %v3165_v60, %v3165_v60  ;;  %v3170_v11 = vld [vmem:[#allocation2 + $0x38] sm:$0xff]  ;;  %v3188_v34 = vmul.f32 %v3172_v3, %v3172_v3  ;;  %v3177_v60 = vld [vmem:[#allocation2 + $0x70] sm:$0xff] }
 0x42f   :  { %v1867_v2 = vmul.f32 %v7384_v39, %v8659_v29  ;;  %v3186_v63 = vmul.f32 %v3170_v11, %v3170_v11  ;;  %v3190_v21 = vmul.f32 %v3174_v44, %v3174_v44  ;;  %v3193_v37 = vmul.f32 %v3177_v60, %v3177_v60 }
 0x430   :  { %v1194_v49 = vpack.c.bf16 %v1180_v1, %v1179_v62  ;;  %2313 = vrot.lane.b32.xlu1 %v2017_v30, %s7865_s21  ;;  %v3187_v62 = vmul.f32 %v3171_v54, %v3171_v54 }
 0x431   :  { %2369 = vrot.lane.b32.xlu0 %v2042_v47, %s7864_s2  ;;  %v2011_v29 = vmul.f32 %v8604_v10, %v1867_v2  ;;  %v3182_v10 = vmul.f32 %v3166_v24, %v3166_v24  ;;  %v3173_v47 = vld [vmem:[#allocation2 + $0x50] sm:$0xff] }
 0x432   :  { %6825 = vmatmul.mubr.msk.bf16.vlgmr.msra.gmra.mxu1 %vm1112_vm4, %v1194_v49  ;;  %v3189_v58 = vmul.f32 %v3173_v47, %v3173_v47 }
 0x433   :  { %6835 = vmatpush3.bf16.msra.mxu1 %v8623_v51  ;;  %6836 = vmatprep.mubr.msk.bf16.mxu1 %vm7863_vm3, %v10345_v52  ;;  %v3179_v51 = vmul.f32 %v8771_v18, %v8771_v18  ;;  %v2019_v9 = vpack.c.bf16 %v2011_v29, %v2010_v57 }
 0x434   :  { %6846 = vmatprep.subr.bf16.mxu1 %v10345_v52  ;;  %2366 = vrot.lane.b32.xlu1 %v2018_v0, %s7865_s21 }
 0x435   :  { %2422 = vrot.lane.b32.xlu0 %v2043_v27, %s7864_s2  ;;  %s7872_s2 = smov 40  }
 0x438   :  { %3356 = vrot.lane.b32.xlu1 %v3179_v51, %s7866_s27 }
 0x439   :  { %2419 = vrot.lane.b32.xlu0 %v2019_v9, %s7865_s21 }
 0x43c   :  { %3360 = vrot.lane.b32.xlu1 %v3181_v7, %s7866_s27 }
 0x43d   :  { %3358 = vrot.lane.b32.xlu0 %v3180_v23, %s7866_s27 }
 0x440   :  { %3211 = vrot.lane.b32.xlu1 %v3179_v51, %s7867_s6 }
 0x441   :  { %3362 = vrot.lane.b32.xlu0 %v3182_v10, %s7866_s27 }
 0x444   :  { %3215 = vrot.lane.b32.xlu1 %v3181_v7, %s7867_s6  ;;  %v3176_v7 = vld [vmem:[#allocation2 + $0x68] sm:$0xff] }
 0x445   :  { %3213 = vrot.lane.b32.xlu0 %v3180_v23, %s7867_s6 }
 0x448   :  { %3364 = vrot.lane.b32.xlu1 %v3183_v25, %s7866_s27 }
 0x449   :  { %3217 = vrot.lane.b32.xlu0 %v3182_v10, %s7867_s6 }
 0x44c   :  { %3368 = vrot.lane.b32.xlu1 %v3185_v53, %s7866_s27 }
 0x44d   :  { %3366 = vrot.lane.b32.xlu0 %v3184_v31, %s7866_s27 }
 0x44f   :  { %v1151_v32 = vpop.xlane.xlu0 %1150 }
 0x450   :  { %3219 = vrot.lane.b32.xlu1 %v3183_v25, %s7867_s6  ;;  %v3192_v25 = vmul.f32 %v3176_v7, %v3176_v7 }
 0x451   :  { %3370 = vrot.lane.b32.xlu0 %v3186_v63, %s7866_s27 }
 0x453   :  { %v1127_v39 = vpop.xlane.xlu0 %1126  ;;  %v1154_v30 = vpop.xlane.xlu1 %1153 }
 0x454   :  { %3223 = vrot.lane.b32.xlu1 %v3185_v53, %s7867_s6  ;;  %7385 = vrcp.f32 %v1127_v39 }
 0x455   :  { %3221 = vrot.lane.b32.xlu0 %v3184_v31, %s7867_s6  ;;  %v10348_v31 = vld [vmem:[#allocation17_spill] sm:$0xff] }
 0x457   :  { %v1133_v16 = vpop.xlane.xlu0 %1132  ;;  %v1130_v1 = vpop.xlane.xlu1 %1129 }
 0x458   :  { %7387 = vrcp.f32 %v1130_v1  ;;  %3372 = vrot.lane.b32.xlu1 %v3187_v62, %s7866_s27 }
 0x459   :  { %3225 = vrot.lane.b32.xlu0 %v3186_v63, %s7867_s6  ;;  %7389 = vrcp.f32 %v1133_v16 }
 0x45a   :  { %7391 = vrcp.f32 %v8688_v50  ;;  %v3175_v50 = vld [vmem:[#allocation2 + $0x60] sm:$0xff] }
 0x45b   :  { %v1136_v49 = vpop.xlane.xlu1 %1135  ;;  %v1145_v2 = vpop.xlane.xlu0 %1144  ;;  %v3191_v29 = vmul.f32 %v3175_v50, %v3175_v50 }
 0x45c   :  { %7393 = vrcp.f32 %v1136_v49  ;;  %3376 = vrot.lane.b32.xlu1 %v3189_v58, %s7866_s27 }
 0x45d   :  { %3374 = vrot.lane.b32.xlu0 %v3188_v34, %s7866_s27  ;;  %7395 = vrcp.f32 %v8675_v40 }
 0x45f   :  { %v1148_v0 = vpop.xlane.xlu1 %1147  ;;  %v1547_v1 = vpop.permute.xlu0 %1546 }
 0x460   :  { %7397 = vrcp.f32 %v1148_v0  ;;  %3227 = vrot.lane.b32.xlu1 %v3187_v62, %s7867_s6 }
 0x461   :  { %3378 = vrot.lane.b32.xlu0 %v3190_v21, %s7866_s27  ;;  %7399 = vrcp.f32 %v1145_v2  ;;  %v7386_v27 = vpop.eup %7385 }
 0x462   :  { %7401 = vrcp.f32 %v1154_v30  ;;  %v1181_v40 = vmul.f32 %v7386_v27, %v8570_v35 }
 0x463   :  { %7403 = vrcp.f32 %v1151_v32  ;;  %v2052_v47 = vpop.permute.xlu1 %2051 }
 0x464   :  { %3231 = vrot.lane.b32.xlu1 %v3189_v58, %s7867_s6  ;;  %v2057_v3 = vsel %vm322_vm2, %v2052_v47, 0 }
 0x465   :  { %3229 = vrot.lane.b32.xlu0 %v3188_v34, %s7867_s6  ;;  %v7388_v57 = vpop.eup %7387 }
 0x466   :  { %v1182_v51 = vmul.f32 %v7388_v57, %v8580_v61  ;;  %v7390_v9 = vpop.eup %7389  ;;  %v3178_v61 = vld [vmem:[#allocation2 + $0x78] sm:$0xff] }
 0x467   :  { %v7392_v23 = vpop.eup %7391  ;;  %v1183_v38 = vmul.f32 %v7390_v9, %v8576_v36  ;;  %v3194_v36 = vmul.f32 %v3178_v61, %v3178_v61 }
 0x468   :  { %3380 = vrot.lane.b32.xlu1 %v3191_v29, %s7866_s27  ;;  %v1195_v24 = vpack.c.bf16 %v1182_v51, %v1181_v40  ;;  %v1186_v11 = vmul.f32 %v7392_v23, %v10348_v31 }
 0x469   :  { %3233 = vrot.lane.b32.xlu0 %v3190_v21, %s7867_s6  ;;  %v7394_v10 = vpop.eup %7393 }
 0x46a   :  { %6831 = vmatmul.mubr.msk.bf16.vlgmr.msra.gmra.mxu0 %vm1112_vm4, %v1195_v24  ;;  %v1184_v35 = vmul.f32 %v7394_v10, %v8590_v43  ;;  %v7396_v8 = vpop.eup %7395  ;;  %v10349_v43 = vld [vmem:[#allocation15_spill] sm:$0xff] }
 0x46b   :  { %6841 = vmatpush3.bf16.msra.mxu0 %v8629_v6  ;;  %6842 = vmatprep.mubr.msk.bf16.mxu0 %vm7863_vm3, %v10345_v52  ;;  %v1185_v63 = vmul.f32 %v7396_v8, %v10349_v43 }
 0x46c   :  { %3384 = vrot.lane.b32.xlu1 %v3193_v37, %s7866_s27  ;;  %v1196_v53 = vpack.c.bf16 %v1184_v35, %v1183_v38  ;;  %6852 = vmatprep.subr.bf16.mxu0 %v10345_v52 }
 0x46d   :  { %3382 = vrot.lane.b32.xlu0 %v3192_v25, %s7866_s27  ;;  %v7398_v32 = vpop.eup %7397  ;;  %v1197_v39 = vpack.c.bf16 %v1186_v11, %v1185_v63 }
 0x46e   :  { %6837 = vmatmul.mubr.msk.bf16.vlgmr.msra.gmra.mxu1 %vm1112_vm4, %v1196_v53  ;;  %v7400_v6 = vpop.eup %7399  ;;  %v1188_v30 = vmul.f32 %v7398_v32, %v8596_v17 }
 0x46f   :  { %6847 = vmatpush3.bf16.msra.mxu1 %v8635_v28  ;;  %6848 = vmatprep.mubr.msk.bf16.mxu1 %vm7863_vm3, %v10345_v52  ;;  %v7402_v54 = vpop.eup %7401  ;;  %v1187_v62 = vmul.f32 %v7400_v6, %v8585_v14 }
 0x470   :  { %3235 = vrot.lane.b32.xlu1 %v3191_v29, %s7867_s6  ;;  %6858 = vmatprep.subr.bf16.mxu1 %v10345_v52  ;;  %v7404_v16 = vpop.eup %7403  ;;  %v1190_v17 = vmul.f32 %v7402_v54, %v8572_v19 }
 0x471   :  { %3386 = vrot.lane.b32.xlu0 %v3194_v36, %s7866_s27  ;;  %v1198_v28 = vpack.c.bf16 %v1188_v30, %v1187_v62  ;;  %v1189_v14 = vmul.f32 %v7404_v16, %v8566_v12 }
 0x472   :  { %6843 = vmatmul.mubr.msk.bf16.vlgmr.msra.gmra.mxu0 %vm1112_vm4, %v1197_v39 }
 0x473   :  { %6853 = vmatpush3.bf16.msra.mxu0 %v8642_v22  ;;  %6854 = vmatprep.mubr.msk.bf16.mxu0 %vm7863_vm3, %v10345_v52  ;;  %v1199_v22 = vpack.c.bf16 %v1190_v17, %v1189_v14 }
 0x474   :  { %3239 = vrot.lane.b32.xlu1 %v3193_v37, %s7867_s6  ;;  %6864 = vmatprep.subr.bf16.mxu0 %v10345_v52 }
 0x475   :  { %3237 = vrot.lane.b32.xlu0 %v3192_v25, %s7867_s6 }
 0x476   :  { %6849 = vmatmul.mubr.msk.bf16.vlgmr.msra.gmra.mxu1 %vm1112_vm4, %v1198_v28 }
 0x477   :  { %6859 = vmatpush3.bf16.msra.mxu1 %v1547_v1  ;;  %6860 = vmatprep.mubr.msk.bf16.mxu1 %vm7863_vm3, %v10345_v52 }
 0x478   :  { %6870 = vmatprep.subr.bf16.mxu1 %v10345_v52 }
 0x479   :  { %3241 = vrot.lane.b32.xlu0 %v3194_v36, %s7867_s6 }
 0x47a   :  { %6855 = vmatmul.mubr.msk.bf16.vlgmr.msra.gmra.mxu0 %vm1112_vm4, %v1199_v22 }
 0x47b   :  { %6865 = vmatpush3.bf16.xpose.msra.mxu0 %v2057_v3  ;;  %6866 = vmatprep.mubr.msk.bf16.mxu0 %vm7863_vm3, %v10345_v52 }
 0x47c   :  { %6876 = vmatprep.subr.bf16.mxu0 %v10345_v52 }
 0x490   :  { %v1157_v12 = vpop.xlane.xlu0 %1156 }
 0x491   :  { %7405 = vrcp.f32 %v1157_v12 }
 0x494   :  { %v2105_v19 = vpop.permute.xlu0 %2104  ;;  %v1160_v58 = vpop.xlane.xlu1 %1159 }
 0x495   :  { %7407 = vrcp.f32 %v1160_v58  ;;  %v2110_v23 = vsel %vm322_vm2, %v2105_v19, 0 }
 0x498   :  { %v2158_v34 = vpop.permute.xlu0 %2157  ;;  %v2049_v44 = vpop.permute.xlu1 %2048 }
 0x499   :  { %v2163_v49 = vsel %vm322_vm2, %v2158_v34, 0  ;;  %6867 = vmatmul.mubr.msk.bf16.vlgmr.msra.gmra.mxu0 %vm322_vm2, %v2049_v44 }
 0x49a   :  { %6877 = vmatpush3.bf16.xpose.msra.mxu0 %v2163_v49  ;;  %6878 = vmatprep.mubr.msk.bf16.mxu0 %vm7863_vm3, %v10345_v52 }
 0x49b   :  { %6888 = vmatprep.subr.bf16.mxu0 %v10345_v52 }
 0x49c   :  { %v2211_v21 = vpop.permute.xlu0 %2210  ;;  %v2102_v2 = vpop.permute.xlu1 %2101 }
 0x49d   :  { %v2216_v25 = vsel %vm322_vm2, %v2211_v21, 0 }
 0x49e   :  { %v7406_v27 = vpop.eup %7405 }
 0x49f   :  { %v1191_v51 = vmul.f32 %v7406_v27, %v8632_v5 }
 0x4a0   :  { %v2264_v0 = vpop.permute.xlu0 %2263  ;;  %v2155_v57 = vpop.permute.xlu1 %2154 }
 0x4a1   :  { %v2269_v50 = vsel %vm322_vm2, %v2264_v0, 0  ;;  %6879 = vmatmul.mubr.msk.bf16.vlgmr.msra.gmra.mxu0 %vm322_vm2, %v2155_v57 }
 0x4a2   :  { %v7408_v29 = vpop.eup %7407  ;;  %6889 = vmatpush3.bf16.xpose.msra.mxu0 %v2269_v50  ;;  %6890 = vmatprep.mubr.msk.bf16.mxu0 %vm7863_vm3, %v10345_v52 }
 0x4a3   :  { %v1192_v9 = vmul.f32 %v7408_v29, %v8644_v26  ;;  %6900 = vmatprep.subr.bf16.mxu0 %v10345_v52 }
 0x4a4   :  { %v2317_v40 = vpop.permute.xlu0 %2316  ;;  %v2208_v60 = vpop.permute.xlu1 %2207 }
 0x4a5   :  { %v1200_v7 = vpack.c.bf16 %v1192_v9, %v1191_v51  ;;  %v2322_v11 = vsel %vm322_vm2, %v2317_v40, 0 }
 0x4a7   :  { %6861 = vmatmul.mubr.msk.bf16.vlgmr.msra.gmra.mxu1 %vm1112_vm4, %v1200_v7 }
 0x4a8   :  { %v2370_v24 = vpop.permute.xlu0 %2369  ;;  %6871 = vmatpush3.bf16.xpose.msra.mxu1 %v2110_v23  ;;  %v2261_v37 = vpop.permute.xlu1 %2260  ;;  %6872 = vmatprep.mubr.msk.bf16.mxu1 %vm7863_vm3, %v10345_v52 }
 0x4a9   :  { %v2375_v10 = vsel %vm322_vm2, %v2370_v24, 0  ;;  %6891 = vmatmul.mubr.msk.bf16.vlgmr.msra.gmra.mxu0 %vm322_vm2, %v2261_v37  ;;  %6882 = vmatprep.subr.bf16.mxu1 %v10345_v52 }
 0x4aa   :  { %6901 = vmatpush3.bf16.xpose.msra.mxu0 %v2375_v10  ;;  %6902 = vmatprep.mubr.msk.bf16.mxu0 %vm7863_vm3, %v10345_v52 }
 0x4ab   :  { %6912 = vmatprep.subr.bf16.mxu0 %v10345_v52 }
 0x4ac   :  { %v2423_v5 = vpop.permute.xlu0 %2422  ;;  %v2314_v26 = vpop.permute.xlu1 %2313 }
 0x4ad   :  { %v2428_v62 = vsel %vm322_vm2, %v2423_v5, 0 }
 0x4af   :  { %6873 = vmatmul.mubr.msk.bf16.vlgmr.msra.gmra.mxu1 %vm322_vm2, %v2102_v2 }
 0x4b0   :  { %v2420_v38 = vpop.permute.xlu0 %2419  ;;  %6883 = vmatpush3.bf16.xpose.msra.mxu1 %v2216_v25  ;;  %v2367_v35 = vpop.permute.xlu1 %2366  ;;  %6884 = vmatprep.mubr.msk.bf16.mxu1 %vm7863_vm3, %v10345_v52 }
 0x4b1   :  { %6903 = vmatmul.mubr.msk.bf16.vlgmr.msra.gmra.mxu0 %vm322_vm2, %v2367_v35  ;;  %6894 = vmatprep.subr.bf16.mxu1 %v10345_v52 }
 0x4b2   :  { %6914 = vmatprep.mubr.msk.bf16.mxu0 %vm7863_vm3, %v10345_v52 }
 0x4b4   :  { %v3359_v8 = vpop.permute.xlu0 %3358  ;;  %v3357_v61 = vpop.permute.xlu1 %3356 }
 0x4b5   :  { %v3407_v53 = vsel %vm322_vm2, %v3359_v8, 0.0  ;;  %v3404_v31 = vsel %vm322_vm2, %v3357_v61, 0.0 }
 0x4b6   :  { %3408 = vadd.xlane.f32.xlu0 %v3407_v53  ;;  %3405 = vadd.xlane.f32.xlu1 %v3404_v31 }
 0x4b7   :  { %6885 = vmatmul.mubr.msk.bf16.vlgmr.msra.gmra.mxu1 %vm322_vm2, %v2208_v60 }
 0x4b8   :  { %v3363_v32 = vpop.permute.xlu0 %3362  ;;  %6895 = vmatpush3.bf16.xpose.msra.mxu1 %v2322_v11  ;;  %v3361_v36 = vpop.permute.xlu1 %3360  ;;  %6896 = vmatprep.mubr.msk.bf16.mxu1 %vm7863_vm3, %v10345_v52 }
 0x4b9   :  { %v3413_v43 = vsel %vm322_vm2, %v3363_v32, 0.0  ;;  %v3410_v63 = vsel %vm322_vm2, %v3361_v36, 0.0  ;;  %6906 = vmatprep.subr.bf16.mxu1 %v10345_v52 }
 0x4ba   :  { %3414 = vadd.xlane.f32.xlu1 %v3413_v43  ;;  %3411 = vadd.xlane.f32.xlu0 %v3410_v63 }
 0x4bc   :  { %v3214_v6 = vpop.permute.xlu0 %3213  ;;  %v3212_v39 = vpop.permute.xlu1 %3211 }
 0x4bd   :  { %v3262_v30 = vsel %vm322_vm2, %v3214_v6, 0.0  ;;  %v3259_v54 = vsel %vm322_vm2, %v3212_v39, 0.0 }
 0x4be   :  { %3263 = vadd.xlane.f32.xlu1 %v3262_v30  ;;  %3260 = vadd.xlane.f32.xlu0 %v3259_v54 }
 0x4bf   :  { %6897 = vmatmul.mubr.msk.bf16.vlgmr.msra.gmra.mxu1 %vm322_vm2, %v2314_v26 }
 0x4c0   :  { %v3218_v16 = vpop.permute.xlu0 %3217  ;;  %6907 = vmatpush3.bf16.xpose.msra.mxu1 %v2428_v62  ;;  %v3216_v28 = vpop.permute.xlu1 %3215  ;;  %6908 = vmatprep.mubr.msk.bf16.mxu1 %vm7863_vm3, %v10345_v52 }
 0x4c1   :  { %v3268_v17 = vsel %vm322_vm2, %v3218_v16, 0.0  ;;  %v3265_v1 = vsel %vm322_vm2, %v3216_v28, 0.0  ;;  %6918 = vmatprep.subr.bf16.mxu1 %v10345_v52 }
 0x4c2   :  { %3269 = vadd.xlane.f32.xlu1 %v3268_v17  ;;  %3266 = vadd.xlane.f32.xlu0 %v3265_v1 }
 0x4c4   :  { %v3367_v14 = vpop.permute.xlu0 %3366  ;;  %v3365_v47 = vpop.permute.xlu1 %3364 }
 0x4c5   :  { %v3419_v22 = vsel %vm322_vm2, %v3367_v14, 0.0  ;;  %v3416_v3 = vsel %vm322_vm2, %v3365_v47, 0.0 }
 0x4c6   :  { %3420 = vadd.xlane.f32.xlu1 %v3419_v22  ;;  %3417 = vadd.xlane.f32.xlu0 %v3416_v3 }
 0x4c7   :  { %6909 = vmatmul.mubr.msk.bf16.vlgmr.msra.gmra.mxu1 %vm322_vm2, %v2420_v38 }
 0x4c8   :  { %v3371_v12 = vpop.permute.xlu0 %3370  ;;  %v3369_v19 = vpop.permute.xlu1 %3368  ;;  %6920 = vmatprep.mubr.msk.bf16.mxu1 %vm7863_vm3, %v10345_v52 }
 0x4c9   :  { %v3425_v58 = vsel %vm322_vm2, %v3371_v12, 0.0  ;;  %v3422_v34 = vsel %vm322_vm2, %v3369_v19, 0.0 }
 0x4ca   :  { %3426 = vadd.xlane.f32.xlu1 %v3425_v58  ;;  %3423 = vadd.xlane.f32.xlu0 %v3422_v34 }
 0x4cc   :  { %v3222_v49 = vpop.permute.xlu0 %3221  ;;  %v3220_v44 = vpop.permute.xlu1 %3219 }
 0x4cd   :  { %v3274_v21 = vsel %vm322_vm2, %v3222_v49, 0.0  ;;  %v3271_v2 = vsel %vm322_vm2, %v3220_v44, 0.0 }
 0x4ce   :  { %3275 = vadd.xlane.f32.xlu1 %v3274_v21  ;;  %3272 = vadd.xlane.f32.xlu0 %v3271_v2  ;;  %v7745_v2 = vld [vmem:[#allocation2 + $0x10] sm:$0xff] }
 0x4d0   :  { %v3226_v0 = vpop.permute.xlu0 %3225  ;;  %v3224_v27 = vpop.permute.xlu1 %3223 }
 0x4d1   :  { %v3280_v50 = vsel %vm322_vm2, %v3226_v0, 0.0  ;;  %v3277_v57 = vsel %vm322_vm2, %v3224_v27, 0.0  ;;  %v2658_v0 = vpack.c.bf16 %v8678_v55, %v7745_v2  ;;  %v2659_v27 = vpack.c.bf16 %v8698_v33, %v8690_v45  ;;  %v8983_v2 = vld [vmem:[%s10323_s4 + $0x10] sm:$0xff] }
 0x4d2   :  { %3281 = vadd.xlane.f32.xlu1 %v3280_v50  ;;  %3278 = vadd.xlane.f32.xlu0 %v3277_v57  ;;  %v7746_v50 = vld [vmem:[#allocation2] sm:$0xff]  ;;  %v7747_v57 = vld [vmem:[#allocation2 + $0x8] sm:$0xff]  ;;  %v2663_v55 = vpack.c.bf16 %v8752_v41, %v8745_v56 }
 0x4d4   :  { %v3375_v29 = vpop.permute.xlu0 %3374  ;;  %v3373_v40 = vpop.permute.xlu1 %3372 }
 0x4d5   :  { %v3431_v51 = vsel %vm322_vm2, %v3375_v29, 0.0  ;;  %v3428_v9 = vsel %vm322_vm2, %v3373_v40, 0.0  ;;  %v2657_v29 = vpack.c.bf16 %v7747_v57, %v7746_v50  ;;  %v2661_v40 = vpack.c.bf16 %v8728_v59, %v8721_v20 }
 0x4d6   :  { %3432 = vadd.xlane.f32.xlu1 %v3431_v51  ;;  %3429 = vadd.xlane.f32.xlu0 %v3428_v9  ;;  %v2660_v51 = vpack.c.bf16 %v8711_v15, %v8703_v46  ;;  %v2662_v9 = vpack.c.bf16 %v8741_v42, %v8734_v48 }
 0x4d8   :  { %v3379_v60 = vpop.permute.xlu0 %3378  ;;  %v3377_v7 = vpop.permute.xlu1 %3376 }
 0x4d9   :  { %v3437_v23 = vsel %vm322_vm2, %v3379_v60, 0.0  ;;  %v3434_v24 = vsel %vm322_vm2, %v3377_v7, 0.0 }
 0x4da   :  { %3438 = vadd.xlane.f32.xlu1 %v3437_v23  ;;  %3435 = vadd.xlane.f32.xlu0 %v3434_v24 }
 0x4dc   :  { %v3230_v10 = vpop.permute.xlu0 %3229  ;;  %v3228_v37 = vpop.permute.xlu1 %3227 }
 0x4dd   :  { %v3286_v5 = vsel %vm322_vm2, %v3230_v10, 0.0  ;;  %v1250_v26 = vpop.f32.mrf.mxu0  ;;  %v3283_v25 = vsel %vm322_vm2, %v3228_v37, 0.0 }
 0x4de   :  { %v6536_v38 = vpack.c.bf16 %v1250_v26, %v1250_v26  ;;  %3287 = vadd.xlane.f32.xlu1 %v3286_v5  ;;  %3284 = vadd.xlane.f32.xlu0 %v3283_v25 }
 0x4df   :  { %v6820_v35 = vpop.f32.mrf.mxu0 }
 0x4e0   :  { %v3234_v8 = vpop.permute.xlu0 %3233  ;;  %1658 = vst.msk [vmem:[#allocation3] sm:$0xf] %vm1657_vm5, %v6536_v38  ;;  %v3232_v61 = vpop.permute.xlu1 %3231 }
 0x4e1   :  { %v3292_v53 = vsel %vm322_vm2, %v3234_v8, 0.0  ;;  %v1253_v31 = vpop.f32.mrf.mxu0  ;;  %v3289_v11 = vsel %vm322_vm2, %v3232_v61, 0.0 }
 0x4e2   :  { %v6537_v32 = vpack.c.bf16 %v1253_v31, %v1253_v31  ;;  %3293 = vadd.xlane.f32.xlu1 %v3292_v53  ;;  %3290 = vadd.xlane.f32.xlu0 %v3289_v11 }
 0x4e3   :  { %v6821_v36 = vpop.f32.mrf.mxu0 }
 0x4e4   :  { %v3383_v43 = vpop.permute.xlu0 %3382  ;;  %1659 = vst.msk [vmem:[#allocation3 + $0x4] sm:$0xf] %vm1657_vm5, %v6537_v32  ;;  %v3381_v63 = vpop.permute.xlu1 %3380 }
 0x4e5   :  { %v3443_v6 = vsel %vm322_vm2, %v3383_v43, 0.0  ;;  %v3440_v39 = vsel %vm322_vm2, %v3381_v63, 0.0 }
 0x4e6   :  { %3444 = vadd.xlane.f32.xlu1 %v3443_v6  ;;  %3441 = vadd.xlane.f32.xlu0 %v3440_v39 }
 0x4e8   :  { %v3387_v30 = vpop.permute.xlu0 %3386  ;;  %v3385_v54 = vpop.permute.xlu1 %3384 }
 0x4e9   :  { %v3449_v62 = vsel %vm322_vm2, %v3387_v30, 0.0  ;;  %v3446_v16 = vsel %vm322_vm2, %v3385_v54, 0.0 }
 0x4ea   :  { %3450 = vadd.xlane.f32.xlu1 %v3449_v62  ;;  %3447 = vadd.xlane.f32.xlu0 %v3446_v16 }
 0x4ec   :  { %v3238_v28 = vpop.permute.xlu0 %3237  ;;  %v3236_v17 = vpop.permute.xlu1 %3235 }
 0x4ed   :  { %v3298_v1 = vsel %vm322_vm2, %v3238_v28, 0.0  ;;  %v3295_v14 = vsel %vm322_vm2, %v3236_v17, 0.0 }
 0x4ee   :  { %3299 = vadd.xlane.f32.xlu1 %v3298_v1  ;;  %3296 = vadd.xlane.f32.xlu0 %v3295_v14 }
 0x4f0   :  { %v3242_v47 = vpop.permute.xlu0 %3241  ;;  %v3240_v22 = vpop.permute.xlu1 %3239 }
 0x4f1   :  { %v3304_v3 = vsel %vm322_vm2, %v3242_v47, 0.0  ;;  %v3301_v19 = vsel %vm322_vm2, %v3240_v22, 0.0 }
 0x4f2   :  { %v1298_v12 = vpop.f32.mrf.mxu1  ;;  %3305 = vadd.xlane.f32.xlu1 %v3304_v3  ;;  %3302 = vadd.xlane.f32.xlu0 %v3301_v19 }
 0x4f3   :  { %v6538_v58 = vpack.c.bf16 %v1298_v12, %v1298_v12 }
 0x4f4   :  { %v6826_v34 = vpop.f32.mrf.mxu1 }
 0x4f5   :  { %1660 = vst.msk [vmem:[#allocation3 + $0x8] sm:$0xf] %vm1657_vm5, %v6538_v58 }
 0x4f6   :  { %v1301_v49 = vpop.f32.mrf.mxu1 }
 0x4f7   :  { %v6539_v44 = vpack.c.bf16 %v1301_v49, %v1301_v49 }
 0x4f8   :  { %v6827_v21 = vpop.f32.mrf.mxu1 }
 0x4f9   :  { %1661 = vst.msk [vmem:[#allocation3 + $0xc] sm:$0xf] %vm1657_vm5, %v6539_v44 }
 0x503   :  { %2714 = vrot.lane.b32.xlu1 %v2658_v0, %s7868_s28  ;;  %v2471_v0 = vld [vmem:[#allocation7] sm:$0xff] }
 0x507   :  { %2762 = vrot.lane.b32.xlu1 %v2659_v27, %s7868_s28  ;;  %v8987_v27 = vstv %s2503_s1 }
 0x508   :  { %2666 = vrot.lane.b32.xlu0 %v2657_v29, %s7868_s28  ;;  %v8994_v29 = vld [vmem:[%s10323_s4 + $0x18] sm:$0xff] }
 0x50b   :  { %2858 = vrot.lane.b32.xlu1 %v2661_v40, %s7868_s28 }
 0x50c   :  { %2810 = vrot.lane.b32.xlu0 %v2660_v51, %s7868_s28 }
 0x50f   :  { %2954 = vrot.lane.b32.xlu1 %v2663_v55, %s7868_s28 }
 0x510   :  { %2906 = vrot.lane.b32.xlu0 %v2662_v9, %s7868_s28  ;;  %v2472_v9 = vld [vmem:[#allocation7 + $0x8] sm:$0xff] }
 0x514   :  { %3002 = vrot.lane.b32.xlu0 %v8610_v4, %s7868_s28 }
 0x52a   :  { %v1346_v45 = vpop.f32.mrf.mxu0 }
 0x52b   :  { %v6540_v33 = vpack.c.bf16 %v1346_v45, %v1346_v45 }
 0x52c   :  { %v6832_v60 = vpop.f32.mrf.mxu0 }
 0x52d   :  { %1662 = vst.msk [vmem:[#allocation3 + $0x10] sm:$0xf] %vm1657_vm5, %v6540_v33 }
 0x52e   :  { %v1349_v20 = vpop.f32.mrf.mxu0  ;;  %v1394_v59 = vpop.f32.mrf.mxu1 }
 0x52f   :  { %v6541_v46 = vpack.c.bf16 %v1349_v20, %v1349_v20  ;;  %v6542_v15 = vpack.c.bf16 %v1394_v59, %v1394_v59 }
 0x530   :  { %v6833_v7 = vpop.f32.mrf.mxu0  ;;  %v6838_v23 = vpop.f32.mrf.mxu1 }
 0x531   :  { %1663 = vst.msk [vmem:[#allocation3 + $0x14] sm:$0xf] %vm1657_vm5, %v6541_v46  ;;  %1664 = vst.msk [vmem:[#allocation3 + $0x18] sm:$0xf] %vm1657_vm5, %v6542_v15 }
 0x532   :  { %v1397_v48 = vpop.f32.mrf.mxu1  ;;  %v1442_v42 = vpop.f32.mrf.mxu0 }
 0x533   :  { %v6543_v56 = vpack.c.bf16 %v1397_v48, %v1397_v48  ;;  %v6544_v41 = vpack.c.bf16 %v1442_v42, %v1442_v42 }
 0x534   :  { %v6839_v4 = vpop.f32.mrf.mxu1  ;;  %v6844_v24 = vpop.f32.mrf.mxu0 }
 0x535   :  { %1665 = vst.msk [vmem:[#allocation3 + $0x1c] sm:$0xf] %vm1657_vm5, %v6543_v56  ;;  %1666 = vst.msk [vmem:[#allocation3 + $0x20] sm:$0xf] %vm1657_vm5, %v6544_v41 }
 0x536   :  { %v1445_v10 = vpop.f32.mrf.mxu0  ;;  %v1490_v37 = vpop.f32.mrf.mxu1 }
 0x537   :  { %v6545_v5 = vpack.c.bf16 %v1445_v10, %v1445_v10  ;;  %v6546_v26 = vpack.c.bf16 %v1490_v37, %v1490_v37 }
 0x538   :  { %v6845_v25 = vpop.f32.mrf.mxu0  ;;  %v6850_v38 = vpop.f32.mrf.mxu1 }
 0x539   :  { %1667 = vst.msk [vmem:[#allocation3 + $0x24] sm:$0xf] %vm1657_vm5, %v6545_v5  ;;  %1668 = vst.msk [vmem:[#allocation3 + $0x28] sm:$0xf] %vm1657_vm5, %v6546_v26  ;;  %v2475_v25 = vld [vmem:[#allocation7 + $0x20] sm:$0xff] }
 0x53a   :  { %v1493_v35 = vpop.f32.mrf.mxu1  ;;  %v1538_v8 = vpop.f32.mrf.mxu0 }
 0x53b   :  { %v6547_v61 = vpack.c.bf16 %v1493_v35, %v1493_v35  ;;  %v6548_v53 = vpack.c.bf16 %v1538_v8, %v1538_v8 }
 0x53c   :  { %v6851_v31 = vpop.f32.mrf.mxu1  ;;  %v6856_v11 = vpop.f32.mrf.mxu0 }
 0x53d   :  { %1669 = vst.msk [vmem:[#allocation3 + $0x2c] sm:$0xf] %vm1657_vm5, %v6547_v61  ;;  %1670 = vst.msk [vmem:[#allocation3 + $0x30] sm:$0xf] %vm1657_vm5, %v6548_v53 }
 0x53e   :  { %v1541_v32 = vpop.f32.mrf.mxu0 }
 0x53f   :  { %v3409_v36 = vpop.xlane.xlu0 %3408  ;;  %v6549_v43 = vpack.c.bf16 %v1541_v32, %v1541_v32  ;;  %v3406_v6 = vpop.xlane.xlu1 %3405 }
 0x540   :  { %v3453_v63 = vmax.f32 %v3409_v36, 1e-24  ;;  %v3452_v39 = vmax.f32 %v3406_v6, 1e-24  ;;  %v6857_v30 = vpop.f32.mrf.mxu0 }
 0x541   :  { %1671 = vst.msk [vmem:[#allocation3 + $0x34] sm:$0xf] %vm1657_vm5, %v6549_v43 }
 0x542   :  { %7409 = vrsqrt.f32 %v3453_v63 }
 0x543   :  { %7411 = vrsqrt.f32 %v3452_v39  ;;  %v8953_v54 = vpop.xlane.xlu0 %3411  ;;  %v8955_v62 = vpop.xlane.xlu1 %3414  ;;  %v2476_v39 = vld [vmem:[#allocation7 + $0x28] sm:$0xff] }
 0x547   :  { %v8957_v16 = vpop.xlane.xlu0 %3260  ;;  %v8959_v28 = vpop.xlane.xlu1 %3263 }
 0x54b   :  { %v8961_v17 = vpop.xlane.xlu0 %3266  ;;  %v8963_v1 = vpop.xlane.xlu1 %3269 }
 0x54f   :  { %v7410_v14 = vpop.eup %7409  ;;  %v8965_v22 = vpop.xlane.xlu0 %3417 }
 0x550   :  { %v7412_v47 = vpop.eup %7411  ;;  %v8967_v3 = vpop.xlane.xlu1 %3420  ;;  %v3509_v12 = vmul.f32 %v7410_v14, %v8779_v13 }
 0x551   :  { %v3508_v19 = vmul.f32 %v7412_v47, %v8771_v18 }
 0x553   :  { %v3524_v58 = vpack.c.bf16 %v3509_v12, %v3508_v19  ;;  %v8971_v34 = vpop.xlane.xlu0 %3423  ;;  %v2473_v19 = vld [vmem:[#allocation7 + $0x10] sm:$0xff] }
 0x554   :  { %v8973_v49 = vpop.xlane.xlu1 %3426 }
 0x555   :  { %3539 = vrot.lane.b32.xlu1 %v3524_v58, %s7866_s27 }
 0x557   :  { %v8976_v44 = vpop.xlane.xlu0 %3272 }
 0x558   :  { %v8978_v21 = vpop.xlane.xlu1 %3275 }
 0x559   :  { %v2093_v13 = vpop.f32.mrf.mxu0 }
 0x55a   :  { %v2094_v18 = vadd.f32 %v8983_v2, %v2093_v13 }
 0x55b   :  { %v6868_v50 = vpop.f32.mrf.mxu0  ;;  %v8989_v57 = vpop.xlane.xlu0 %3278 }
 0x55c   :  { %v2487_v40 = vadd.f32 %v2471_v0, %v2094_v18  ;;  %v8996_v51 = vpop.xlane.xlu1 %3281 }
 0x55d   :  { %v2096_v55 = vpop.f32.mrf.mxu0 }
 0x55e   :  { %v2505_v45 = vsub.f32 %v2487_v40, %v8987_v27  ;;  %v2097_v33 = vadd.f32 %v8994_v29, %v2096_v55 }
 0x55f   :  { %v6869_v60 = vpop.f32.mrf.mxu0  ;;  %v9000_v20 = vpop.xlane.xlu0 %3429 }
 0x560   :  { %v2521_v59 = vmax.f32 %v2505_v45, -60.0  ;;  %v2488_v46 = vadd.f32 %v2472_v9, %v2097_v33  ;;  %v9002_v15 = vpop.xlane.xlu1 %3432  ;;  %v2479_v9 = vld [vmem:[#allocation7 + $0x40] sm:$0xff] }
 0x561   :  { %v2199_v7 = vpop.f32.mrf.mxu0 }
 0x562   :  { %v2537_v23 = vmul.f32 1.442695, %v2521_v59  ;;  %v2506_v48 = vsub.f32 %v2488_v46, %v8987_v27  ;;  %v2200_v37 = vadd.f32 %v8983_v2, %v2199_v7 }
 0x563   :  { %v6880_v42 = vpop.f32.mrf.mxu0  ;;  %v9005_v56 = vpop.xlane.xlu0 %3435 }
 0x564   :  { %7413 = vpow2.f32 %v2537_v23  ;;  %v2522_v41 = vmax.f32 %v2506_v48, -60.0  ;;  %v9007_v4 = vpop.xlane.xlu1 %3438  ;;  %v2491_v31 = vadd.f32 %v2475_v25, %v2200_v37  ;;  %v2480_v25 = vld [vmem:[#allocation7 + $0x48] sm:$0xff] }
 0x565   :  { %v2202_v24 = vpop.f32.mrf.mxu0 }
 0x566   :  { %v2539_v10 = vmul.f32 1.442695, %v2522_v41  ;;  %v2203_v36 = vadd.f32 %v8994_v29, %v2202_v24  ;;  %v2509_v47 = vsub.f32 %v2491_v31, %v8987_v27 }
 0x567   :  { %v1586_v5 = vpop.f32.mrf.mxu1  ;;  %v6881_v26 = vpop.f32.mrf.mxu0 }
 0x568   :  { %7415 = vpow2.f32 %v2539_v10  ;;  %v6550_v38 = vpack.c.bf16 %v1586_v5, %v1586_v5  ;;  %v9010_v35 = vpop.xlane.xlu0 %3284  ;;  %v9012_v8 = vpop.xlane.xlu1 %3287  ;;  %v2492_v13 = vadd.f32 %v2476_v39, %v2203_v36  ;;  %v2525_v59 = vmax.f32 %v2509_v47, -60.0  ;;  %v2474_v10 = vld [vmem:[#allocation7 + $0x18] sm:$0xff] }
 0x569   :  { %v6862_v61 = vpop.f32.mrf.mxu1  ;;  %v2305_v53 = vpop.f32.mrf.mxu0 }
 0x56a   :  { %1672 = vst.msk [vmem:[#allocation3 + $0x38] sm:$0xf] %vm1657_vm5, %v6550_v38  ;;  %v2306_v0 = vadd.f32 %v8983_v2, %v2305_v53  ;;  %v2510_v48 = vsub.f32 %v2492_v13, %v8987_v27 }
 0x56b   :  { %v1589_v11 = vpop.f32.mrf.mxu1  ;;  %v6892_v32 = vpop.f32.mrf.mxu0 }
 0x56c   :  { %v6551_v43 = vpack.c.bf16 %v1589_v11, %v1589_v11  ;;  %v9016_v63 = vpop.xlane.xlu0 %3290  ;;  %v9018_v6 = vpop.xlane.xlu1 %3293  ;;  %v2495_v42 = vadd.f32 %v2479_v9, %v2306_v0  ;;  %v2545_v11 = vmul.f32 1.442695, %v2525_v59 }
 0x56d   :  { %v6863_v30 = vpop.f32.mrf.mxu1  ;;  %v2308_v14 = vpop.f32.mrf.mxu0 }
 0x56e   :  { %1673 = vst.msk [vmem:[#allocation3 + $0x3c] sm:$0xf] %vm1657_vm5, %v6551_v43  ;;  %v2309_v41 = vadd.f32 %v8994_v29, %v2308_v14  ;;  %v2526_v30 = vmax.f32 %v2510_v48, -60.0  ;;  %v2513_v14 = vsub.f32 %v2495_v42, %v8987_v27 }
 0x56f   :  { %v2146_v12 = vpop.f32.mrf.mxu1  ;;  %v6893_v58 = vpop.f32.mrf.mxu0 }
 0x570   :  { %v2147_v18 = vadd.f32 %v8983_v2, %v2146_v12  ;;  %v9024_v50 = vpop.xlane.xlu0 %3441  ;;  %v9026_v40 = vpop.xlane.xlu1 %3444  ;;  %v2496_v47 = vadd.f32 %v2480_v25, %v2309_v41  ;;  %v2547_v48 = vmul.f32 1.442695, %v2526_v30  ;;  %v2529_v42 = vmax.f32 %v2513_v14, -60.0  ;;  %v2481_v30 = vld [vmem:[#allocation7 + $0x50] sm:$0xff] }
 0x571   :  { %v9028_v55 = vpop.eup %7413  ;;  %v6874_v45 = vpop.f32.mrf.mxu1 }
 0x572   :  { %v2411_v33 = vpop.f32.mrf.mxu0  ;;  %v2489_v60 = vadd.f32 %v2473_v19, %v2147_v18  ;;  %v2569_v23 = vsel %vm1112_vm4, %v9028_v55, 0.0  ;;  %v2477_v19 = vld [vmem:[#allocation7 + $0x30] sm:$0xff]  ;;  %v2514_v41 = vsub.f32 %v2496_v47, %v8987_v27  ;;  %v2553_v14 = vmul.f32 1.442695, %v2529_v42 }
 0x573   :  { %v2149_v46 = vpop.f32.mrf.mxu1  ;;  %2570 = vadd.xlane.f32.xlu0 %v2569_v23  ;;  %v2412_v0 = vadd.f32 %v8983_v2, %v2411_v33  ;;  %v2478_v23 = vld [vmem:[#allocation7 + $0x38] sm:$0xff] }
 0x574   :  { %v6904_v7 = vpop.f32.mrf.mxu0  ;;  %v2507_v24 = vsub.f32 %v2489_v60, %v8987_v27  ;;  %v9035_v37 = vpop.xlane.xlu0 %3447  ;;  %v2150_v38 = vadd.f32 %v8994_v29, %v2149_v46  ;;  %v2483_v60 = vld [vmem:[#allocation7 + $0x60] sm:$0xff] }
 0x575   :  { %v9037_v5 = vpop.xlane.xlu1 %3450  ;;  %v9039_v26 = vpop.eup %7415  ;;  %v2499_v25 = vadd.f32 %v2483_v60, %v2412_v0 }
 0x576   :  { %v6875_v61 = vpop.f32.mrf.mxu1  ;;  %v2414_v53 = vpop.f32.mrf.mxu0  ;;  %v2523_v31 = vmax.f32 %v2507_v24, -60.0  ;;  %v2490_v32 = vadd.f32 %v2474_v10, %v2150_v38  ;;  %v2572_v39 = vsel %vm1112_vm4, %v9039_v26, 0.0 }
 0x577   :  { %v2415_v61 = vadd.f32 %v8994_v29, %v2414_v53  ;;  %v2517_v53 = vsub.f32 %v2499_v25, %v8987_v27 }
 0x578   :  { %v2252_v36 = vpop.f32.mrf.mxu1  ;;  %v6905_v43 = vpop.f32.mrf.mxu0  ;;  %v2541_v12 = vmul.f32 1.442695, %v2523_v31  ;;  %v2508_v18 = vsub.f32 %v2490_v32, %v8987_v27  ;;  %v2484_v32 = vld [vmem:[#allocation7 + $0x68] sm:$0xff] }
 0x579   :  { %v9045_v58 = vpop.xlane.xlu0 %3296  ;;  %v9047_v13 = vpop.xlane.xlu1 %3299  ;;  %2573 = vadd.xlane.f32.xlu1 %v2572_v39  ;;  %v2253_v9 = vadd.f32 %v8983_v2, %v2252_v36  ;;  %v2533_v25 = vmax.f32 %v2517_v53, -60.0 }
 0x57a   :  { %v6886_v45 = vpop.f32.mrf.mxu1  ;;  %7417 = vpow2.f32 %v2541_v12  ;;  %v2524_v59 = vmax.f32 %v2508_v18, -60.0  ;;  %v2530_v18 = vmax.f32 %v2514_v41, -60.0 }
 0x57b   :  { %7419 = vpow2.f32 %v2545_v11  ;;  %v2493_v46 = vadd.f32 %v2477_v19, %v2253_v9  ;;  %v2500_v9 = vadd.f32 %v2484_v32, %v2415_v61 }
 0x57c   :  { %v2255_v7 = vpop.f32.mrf.mxu1  ;;  %v2543_v38 = vmul.f32 1.442695, %v2524_v59 }
 0x57d   :  { %v2256_v24 = vadd.f32 %v8994_v29, %v2255_v7  ;;  %v9054_v10 = vpop.xlane.xlu0 %3302  ;;  %v9056_v33 = vpop.xlane.xlu1 %3305  ;;  %v2511_v31 = vsub.f32 %v2493_v46, %v8987_v27 }
 0x57e   :  { %v6887_v11 = vpop.f32.mrf.mxu1  ;;  %7421 = vpow2.f32 %v2543_v38  ;;  %v2518_v38 = vsub.f32 %v2500_v9, %v8987_v27 }
 0x57f   :  { %v2494_v36 = vadd.f32 %v2478_v23, %v2256_v24  ;;  %v2527_v43 = vmax.f32 %v2511_v31, -60.0  ;;  %7423 = vpow2.f32 %v2547_v48  ;;  %v2482_v23 = vld [vmem:[#allocation7 + $0x58] sm:$0xff]  ;;  %v2555_v24 = vmul.f32 1.442695, %v2530_v18 }
 0x580   :  { %v2358_v39 = vpop.f32.mrf.mxu1 }
 0x581   :  { %v2512_v47 = vsub.f32 %v2494_v36, %v8987_v27  ;;  %v2359_v12 = vadd.f32 %v8983_v2, %v2358_v39  ;;  %v2667_v19 = vpop.permute.xlu0 %2666  ;;  %v2715_v0 = vpop.permute.xlu1 %2714  ;;  %v2549_v45 = vmul.f32 1.442695, %v2527_v43  ;;  %v2485_v43 = vld [vmem:[#allocation7 + $0x70] sm:$0xff] }
 0x582   :  { %6913 = vmatpush3.bf16.msra.mxu0 %v2667_v19  ;;  %6919 = vmatpush3.bf16.msra.mxu1 %v2715_v0  ;;  %v6898_v60 = vpop.f32.mrf.mxu1  ;;  %v2561_v19 = vmul.f32 1.442695, %v2533_v25  ;;  %v2534_v0 = vmax.f32 %v2518_v38, -60.0 }
 0x583   :  { %v2528_v59 = vmax.f32 %v2512_v47, -60.0  ;;  %v2497_v46 = vadd.f32 %v2481_v30, %v2359_v12  ;;  %6924 = vmatprep.subr.bf16.mxu0 %v10345_v52  ;;  %6930 = vmatprep.subr.bf16.mxu1 %v10345_v52  ;;  %7425 = vpow2.f32 %v2549_v45  ;;  %v2486_v60 = vld [vmem:[#allocation7 + $0x78] sm:$0xff] }
 0x584   :  { %v2361_v7 = vpop.f32.mrf.mxu1  ;;  %7427 = vpow2.f32 %v2553_v14 }
 0x585   :  { %v2551_v48 = vmul.f32 1.442695, %v2528_v59  ;;  %v2515_v42 = vsub.f32 %v2497_v46, %v8987_v27  ;;  %v2362_v41 = vadd.f32 %v8994_v29, %v2361_v7 }
 0x586   :  { %v6899_v61 = vpop.f32.mrf.mxu1 }
 0x587   :  { %7429 = vpow2.f32 %v2551_v48  ;;  %v2531_v31 = vmax.f32 %v2515_v42, -60.0  ;;  %v2498_v11 = vadd.f32 %v2482_v23, %v2362_v41  ;;  %v9068_v32 = vpop.eup %7417  ;;  %v2563_v42 = vmul.f32 1.442695, %v2534_v0 }
 0x588   :  { %v2464_v36 = vpop.f32.mrf.mxu1  ;;  %v9070_v39 = vpop.eup %7419  ;;  %v2575_v14 = vsel %vm1112_vm4, %v9068_v32, 0.0  ;;  %7431 = vpow2.f32 %v2555_v24 }
 0x589   :  { %v2557_v30 = vmul.f32 1.442695, %v2531_v31  ;;  %v2516_v47 = vsub.f32 %v2498_v11, %v8987_v27  ;;  %v2465_v12 = vadd.f32 %v8983_v2, %v2464_v36  ;;  %2576 = vadd.xlane.f32.xlu0 %v2575_v14  ;;  %v2581_v23 = vsel %vm1112_vm4, %v9070_v39, 0.0 }
 0x58a   :  { %v6910_v18 = vpop.f32.mrf.mxu1 }
 0x58b   :  { %7433 = vpow2.f32 %v2557_v30  ;;  %v2532_v53 = vmax.f32 %v2516_v47, -60.0  ;;  %v2501_v9 = vadd.f32 %v2485_v43, %v2465_v12  ;;  %v9076_v59 = vpop.eup %7421  ;;  %v3454_v18 = vmax.f32 %v8953_v54, 1e-24 }
 0x58c   :  { %v2467_v45 = vpop.f32.mrf.mxu1  ;;  %v9082_v48 = vpop.eup %7423  ;;  %7435 = vpow2.f32 %v2561_v19  ;;  %v2578_v24 = vsel %vm1112_vm4, %v9076_v59, 0.0  ;;  %v3309_v54 = vmax.f32 %v8961_v17, 1e-24  ;;  %v3456_v17 = vmax.f32 %v8965_v22, 1e-24 }
 0x58d   :  { %v2559_v46 = vmul.f32 1.442695, %v2532_v53  ;;  %v2519_v7 = vsub.f32 %v2501_v9, %v8987_v27  ;;  %v2468_v2 = vadd.f32 %v8994_v29, %v2467_v45  ;;  %2582 = vadd.xlane.f32.xlu0 %v2581_v23  ;;  %2579 = vadd.xlane.f32.xlu1 %v2578_v24  ;;  %v2584_v36 = vsel %vm1112_vm4, %v9082_v48, 0.0 }
 0x58e   :  { %v6911_v41 = vpop.f32.mrf.mxu1  ;;  %v3307_v53 = vmax.f32 %v8957_v16, 1e-24  ;;  %v3308_v45 = vmax.f32 %v8959_v28, 1e-24  ;;  %v3310_v16 = vmax.f32 %v8963_v1, 1e-24 }
 0x58f   :  { %7437 = vpow2.f32 %v2559_v46  ;;  %v2535_v25 = vmax.f32 %v2519_v7, -60.0  ;;  %v2502_v38 = vadd.f32 %v2486_v60, %v2468_v2  ;;  %v3455_v7 = vmax.f32 %v8955_v62, 1e-24 }
 0x590   :  { %v9086_v61 = vpop.eup %7425  ;;  %7439 = vpow2.f32 %v2563_v42  ;;  %v3311_v1 = vmax.f32 %v8976_v44, 1e-24  ;;  %v3312_v24 = vmax.f32 %v8978_v21, 1e-24  ;;  %v3458_v22 = vmax.f32 %v8971_v34, 1e-24 }
 0x591   :  { %v2565_v31 = vmul.f32 1.442695, %v2535_v25  ;;  %v2520_v29 = vsub.f32 %v2502_v38, %v8987_v27  ;;  %v2587_v11 = vsel %vm1112_vm4, %v9086_v61, 0.0  ;;  %v9093_v43 = vpop.eup %7427  ;;  %2585 = vadd.xlane.f32.xlu1 %v2584_v36  ;;  %v3457_v38 = vmax.f32 %v8967_v3, 1e-24 }
 0x592   :  { %2588 = vadd.xlane.f32.xlu0 %v2587_v11  ;;  %v2593_v27 = vsel %vm1112_vm4, %v9093_v43, 0.0  ;;  %v3313_v44 = vmax.f32 %v8989_v57, 1e-24  ;;  %v3459_v3 = vmax.f32 %v8973_v49, 1e-24 }
 0x593   :  { %7441 = vpow2.f32 %v2565_v31  ;;  %v2536_v30 = vmax.f32 %v2520_v29, -60.0  ;;  %v3314_v29 = vmax.f32 %v8996_v51, 1e-24  ;;  %v3315_v11 = vmax.f32 %v9010_v35, 1e-24 }
 0x594   :  { %v9095_v47 = vpop.eup %7429  ;;  %v3316_v34 = vmax.f32 %v9012_v8, 1e-24  ;;  %v3460_v57 = vmax.f32 %v9000_v20, 1e-24  ;;  %v9150_v51 = vstv %s9135_s11  ;;  %v3462_v49 = vmax.f32 %v9005_v56, 1e-24 }
 0x595   :  { %v2567_v12 = vmul.f32 1.442695, %v2536_v30  ;;  %v2590_v14 = vsel %vm1112_vm4, %v9095_v47, 0.0  ;;  %v9101_v19 = vpop.eup %7431  ;;  %v3317_v35 = vmax.f32 %v9016_v63, 1e-24 }
 0x596   :  { %2594 = vadd.xlane.f32.xlu0 %v2593_v27  ;;  %2591 = vadd.xlane.f32.xlu1 %v2590_v14  ;;  %v2596_v60 = vsel %vm1112_vm4, %v9101_v19, 0.0  ;;  %v3461_v14 = vmax.f32 %v9002_v15, 1e-24  ;;  %v3318_v8 = vmax.f32 %v9018_v6, 1e-24 }
 0x597   :  { %7443 = vpow2.f32 %v2567_v12  ;;  %v3463_v15 = vmax.f32 %v9007_v4, 1e-24 }
 0x598   :  { %v9103_v0 = vpop.eup %7433  ;;  %7445 = vrsqrt.f32 %v3454_v18 }
 0x599   :  { %v2599_v9 = vsel %vm1112_vm4, %v9103_v0, 0.0  ;;  %v9112_v46 = vpop.eup %7435  ;;  %7447 = vrsqrt.f32 %v3307_v53 }
 0x59a   :  { %2600 = vadd.xlane.f32.xlu0 %v2599_v9  ;;  %2597 = vadd.xlane.f32.xlu1 %v2596_v60  ;;  %7449 = vrsqrt.f32 %v3308_v45  ;;  %v2605_v23 = vsel %vm1112_vm4, %v9112_v46, 0.0  ;;  %v9158_v45 = vld [vmem:[#allocation2 + $0x10] sm:$0xff]  ;;  %v3464_v60 = vmax.f32 %v9024_v50, 1e-24 }
 0x59b   :  { %7451 = vrsqrt.f32 %v3455_v7  ;;  %v9162_v7 = vld [vmem:[#allocation2 + $0x18] sm:$0xff] }
 0x59c   :  { %v9115_v2 = vpop.eup %7437  ;;  %7453 = vrsqrt.f32 %v3309_v54 }
 0x59d   :  { %v2602_v28 = vsel %vm1112_vm4, %v9115_v2, 0.0  ;;  %v9123_v42 = vpop.eup %7439  ;;  %7455 = vrsqrt.f32 %v3310_v16  ;;  %v3319_v16 = vmax.f32 %v9045_v58, 1e-24  ;;  %v3466_v58 = vmax.f32 %v9035_v37, 1e-24 }
 0x59e   :  { %2606 = vadd.xlane.f32.xlu0 %v2605_v23  ;;  %2603 = vadd.xlane.f32.xlu1 %v2602_v28  ;;  %v2608_v25 = vsel %vm1112_vm4, %v9123_v42, 0.0  ;;  %7457 = vrsqrt.f32 %v3456_v17  ;;  %v3320_v23 = vmax.f32 %v9047_v13, 1e-24  ;;  %v9169_v17 = vld [vmem:[#allocation2] sm:$0xff]  ;;  %v3322_v37 = vmax.f32 %v9056_v33, 1e-24 }
 0x59f   :  { %7459 = vrsqrt.f32 %v3311_v1  ;;  %v9172_v1 = vld [vmem:[#allocation2 + $0x8] sm:$0xff] }
 0x5a0   :  { %v9125_v62 = vpop.eup %7441  ;;  %7461 = vrsqrt.f32 %v3312_v24 }
 0x5a1   :  { %v2611_v41 = vsel %vm1112_vm4, %v9125_v62, 0.0  ;;  %7463 = vrsqrt.f32 %v3457_v38 }
 0x5a2   :  { %2612 = vadd.xlane.f32.xlu0 %v2611_v41  ;;  %2609 = vadd.xlane.f32.xlu1 %v2608_v25  ;;  %7465 = vrsqrt.f32 %v3458_v22  ;;  %v3465_v25 = vmax.f32 %v9026_v40, 1e-24 }
 0x5a3   :  { %7467 = vrsqrt.f32 %v3313_v44 }
 0x5a4   :  { %v9137_v31 = vpop.eup %7443  ;;  %7469 = vrsqrt.f32 %v3314_v29 }
 0x5a5   :  { %v2614_v21 = vsel %vm1112_vm4, %v9137_v31, 0.0  ;;  %v7446_v36 = vpop.eup %7445  ;;  %7471 = vrsqrt.f32 %v3459_v3 }
 0x5a6   :  { %2615 = vadd.xlane.f32.xlu1 %v2614_v21  ;;  %v7448_v30 = vpop.eup %7447  ;;  %7473 = vrsqrt.f32 %v3315_v11  ;;  %v3510_v56 = vmul.f32 %v9158_v45, %v7446_v36  ;;  %v3467_v21 = vmax.f32 %v9037_v5, 1e-24  ;;  %v3321_v36 = vmax.f32 %v9054_v10, 1e-24 }
 0x5a7   :  { %v7450_v12 = vpop.eup %7449  ;;  %7475 = vrsqrt.f32 %v3316_v34  ;;  %v3340_v20 = vmul.f32 %v7448_v30, %v9150_v51 }
 0x5a8   :  { %v7452_v27 = vpop.eup %7451  ;;  %7477 = vrsqrt.f32 %v3460_v57  ;;  %v3341_v9 = vmul.f32 %v7450_v12, %v9150_v51  ;;  %v9184_v57 = vld [vmem:[#allocation2 + $0x20] sm:$0xff]  ;;  %v9187_v12 = vld [vmem:[#allocation2 + $0x28] sm:$0xff] }
 0x5a9   :  { %v7454_v18 = vpop.eup %7453  ;;  %7479 = vrsqrt.f32 %v3461_v14  ;;  %v3511_v63 = vmul.f32 %v9162_v7, %v7452_v27  ;;  %v3484_v50 = vmul.f32 %v9169_v17, %v3340_v20 }
 0x5aa   :  { %v7456_v53 = vpop.eup %7455  ;;  %7481 = vrsqrt.f32 %v3462_v49  ;;  %v3342_v6 = vmul.f32 %v7454_v18, %v9150_v51  ;;  %v3485_v41 = vmul.f32 %v9172_v1, %v3341_v9 }
 0x5ab   :  { %v7458_v54 = vpop.eup %7457  ;;  %7483 = vrsqrt.f32 %v3317_v35  ;;  %v3343_v28 = vmul.f32 %v7456_v53, %v9150_v51  ;;  %v3525_v22 = vpack.c.bf16 %v3511_v63, %v3510_v56 }
 0x5ac   :  { %v7460_v4 = vpop.eup %7459  ;;  %7485 = vrsqrt.f32 %v3318_v8  ;;  %v3486_v44 = vmul.f32 %v9158_v45, %v3342_v6  ;;  %v3500_v40 = vpack.c.bf16 %v3485_v41, %v3484_v50  ;;  %v3512_v5 = vmul.f32 %v9184_v57, %v7458_v54 }
 0x5ad   :  { %v7462_v24 = vpop.eup %7461  ;;  %7487 = vrsqrt.f32 %v3463_v15  ;;  %v3487_v29 = vmul.f32 %v9162_v7, %v3343_v28  ;;  %v3344_v3 = vmul.f32 %v7460_v4, %v9150_v51  ;;  %v9196_v15 = vld [vmem:[#allocation2 + $0x30] sm:$0xff] }
 0x5ae   :  { %v7464_v38 = vpop.eup %7463  ;;  %7489 = vrsqrt.f32 %v3464_v60  ;;  %v3345_v34 = vmul.f32 %v7462_v24, %v9150_v51  ;;  %v9199_v60 = vld [vmem:[#allocation2 + $0x38] sm:$0xff] }
 0x5af   :  { %v7466_v13 = vpop.eup %7465  ;;  %7491 = vrsqrt.f32 %v3319_v16  ;;  %v3513_v14 = vmul.f32 %v9187_v12, %v7464_v38  ;;  %v3501_v49 = vpack.c.bf16 %v3487_v29, %v3486_v44  ;;  %v3488_v18 = vmul.f32 %v9184_v57, %v3344_v3  ;;  %v9208_v38 = vld [vmem:[#allocation2 + $0x40] sm:$0xff] }
 0x5b0   :  { %v7468_v11 = vpop.eup %7467  ;;  %7493 = vrsqrt.f32 %v3320_v23  ;;  %v3489_v35 = vmul.f32 %v9187_v12, %v3345_v34  ;;  %v3514_v56 = vmul.f32 %v9196_v15, %v7466_v13 }
 0x5b1   :  { %v7470_v30 = vpop.eup %7469  ;;  %7495 = vrsqrt.f32 %v3465_v25  ;;  %v3346_v53 = vmul.f32 %v7468_v11, %v9150_v51  ;;  %v3526_v9 = vpack.c.bf16 %v3513_v14, %v3512_v5  ;;  %v9220_v5 = vld [vmem:[#allocation2 + $0x50] sm:$0xff] }
 0x5b2   :  { %v7472_v27 = vpop.eup %7471  ;;  %7497 = vrsqrt.f32 %v3466_v58  ;;  %v3347_v8 = vmul.f32 %v7470_v30, %v9150_v51  ;;  %v3502_v23 = vpack.c.bf16 %v3489_v35, %v3488_v18 }
 0x5b3   :  { %v7474_v10 = vpop.eup %7473  ;;  %7499 = vrsqrt.f32 %v3467_v21  ;;  %v3515_v63 = vmul.f32 %v9199_v60, %v7472_v27  ;;  %v3490_v50 = vmul.f32 %v9196_v15, %v3346_v53  ;;  %v9223_v27 = vld [vmem:[#allocation2 + $0x58] sm:$0xff] }
 0x5b4   :  { %v7476_v33 = vpop.eup %7475  ;;  %7501 = vrsqrt.f32 %v3321_v36  ;;  %v3348_v16 = vmul.f32 %v7474_v10, %v9150_v51  ;;  %v3491_v41 = vmul.f32 %v9199_v60, %v3347_v8 }
 0x5b5   :  { %v7478_v20 = vpop.eup %7477  ;;  %7503 = vrsqrt.f32 %v3322_v37  ;;  %v3349_v28 = vmul.f32 %v7476_v33, %v9150_v51  ;;  %v3527_v25 = vpack.c.bf16 %v3515_v63, %v3514_v56 }
 0x5b6   :  { %v7480_v6 = vpop.eup %7479  ;;  %v3516_v58 = vmul.f32 %v9208_v38, %v7478_v20  ;;  %v3492_v29 = vmul.f32 %v9208_v38, %v3348_v16  ;;  %v3503_v36 = vpack.c.bf16 %v3491_v41, %v3490_v50  ;;  %v9235_v16 = vld [vmem:[#allocation2 + $0x68] sm:$0xff] }
 0x5b7   :  { %3536 = vrot.lane.b32.xlu1 %v3500_v40, %s7867_s6  ;;  %v7482_v54 = vpop.eup %7481 }
 0x5b8   :  { %3592 = vrot.lane.b32.xlu0 %v3525_v22, %s7866_s27  ;;  %v7484_v4 = vpop.eup %7483  ;;  %v9211_v22 = vld [vmem:[#allocation2 + $0x48] sm:$0xff]  ;;  %v3518_v14 = vmul.f32 %v9220_v5, %v7482_v54 }
 0x5b9   :  { %v7486_v24 = vpop.eup %7485  ;;  %v3517_v44 = vmul.f32 %v9211_v22, %v7480_v6  ;;  %v3493_v3 = vmul.f32 %v9211_v22, %v3349_v28  ;;  %v3350_v40 = vmul.f32 %v7484_v4, %v9150_v51  ;;  %v9232_v6 = vld [vmem:[#allocation2 + $0x60] sm:$0xff] }
 0x5ba   :  { %v7488_v13 = vpop.eup %7487  ;;  %v3351_v34 = vmul.f32 %v7486_v24, %v9150_v51  ;;  %v9242_v24 = vld [vmem:[#allocation2 + $0x70] sm:$0xff] }
 0x5bb   :  { %3589 = vrot.lane.b32.xlu1 %v3501_v49, %s7867_s6  ;;  %v7490_v21 = vpop.eup %7489  ;;  %v3528_v37 = vpack.c.bf16 %v3517_v44, %v3516_v58  ;;  %v3519_v10 = vmul.f32 %v9223_v27, %v7488_v13  ;;  %v3504_v33 = vpack.c.bf16 %v3493_v3, %v3492_v29  ;;  %v3494_v53 = vmul.f32 %v9220_v5, %v3350_v40  ;;  %v9245_v44 = vld [vmem:[#allocation2 + $0x78] sm:$0xff] }
 0x5bc   :  { %3645 = vrot.lane.b32.xlu0 %v3526_v9, %s7866_s27  ;;  %v7492_v11 = vpop.eup %7491  ;;  %v3495_v8 = vmul.f32 %v9223_v27, %v3351_v34  ;;  %v3520_v54 = vmul.f32 %v9232_v6, %v7490_v21 }
 0x5bd   :  { %v7494_v30 = vpop.eup %7493  ;;  %v3352_v20 = vmul.f32 %v7492_v11, %v9150_v51  ;;  %v3529_v63 = vpack.c.bf16 %v3519_v10, %v3518_v14  ;;  %v9261_v14 = vld [vmem:[#allocation2 + $0x8] sm:$0xff] }
 0x5be   :  { %v7496_v49 = vpop.eup %7495  ;;  %v3353_v9 = vmul.f32 %v7494_v30, %v9150_v51 }
 0x5bf   :  { %3642 = vrot.lane.b32.xlu1 %v3502_v23, %s7867_s6  ;;  %v7498_v18 = vpop.eup %7497  ;;  %v3521_v28 = vmul.f32 %v9235_v16, %v7496_v49  ;;  %v3505_v23 = vpack.c.bf16 %v3495_v8, %v3494_v53  ;;  %v3496_v50 = vmul.f32 %v9232_v6, %v3352_v20  ;;  %v4668_v49 = vmul.f32 %v9261_v14, %v9261_v14  ;;  %v4657_v8 = vld [vmem:[#allocation2 + $0x30] sm:$0xff]  ;;  %v4656_v20 = vld [vmem:[#allocation2 + $0x28] sm:$0xff] }
 0x5c0   :  { %3698 = vrot.lane.b32.xlu0 %v3527_v25, %s7866_s27  ;;  %v7500_v35 = vpop.eup %7499  ;;  %v3497_v41 = vmul.f32 %v9235_v16, %v3353_v9  ;;  %v3522_v25 = vmul.f32 %v9242_v24, %v7498_v18  ;;  %v4654_v18 = vld [vmem:[#allocation2 + $0x18] sm:$0xff]  ;;  %v4673_v9 = vmul.f32 %v4657_v8, %v4657_v8 }
 0x5c1   :  { %v7502_v56 = vpop.eup %7501  ;;  %v3530_v58 = vpack.c.bf16 %v3521_v28, %v3520_v54  ;;  %v3523_v13 = vmul.f32 %v9245_v44, %v7500_v35  ;;  %v4655_v35 = vld [vmem:[#allocation2 + $0x20] sm:$0xff]  ;;  %v9278_v28 = vpop.permute.xlu0 %2810  ;;  %v4666_v8 = vld [vmem:[#allocation2 + $0x78] sm:$0xff] }
 0x5c2   :  { %v7504_v4 = vpop.eup %7503  ;;  %v3354_v21 = vmul.f32 %v7502_v56, %v9150_v51  ;;  %v3506_v3 = vpack.c.bf16 %v3497_v41, %v3496_v50  ;;  %v4671_v53 = vmul.f32 %v4655_v35, %v4655_v35  ;;  %v4672_v56 = vmul.f32 %v4656_v20, %v4656_v20  ;;  %v4661_v41 = vld [vmem:[#allocation2 + $0x50] sm:$0xff] }
 0x5c3   :  { %3695 = vrot.lane.b32.xlu1 %v3503_v36, %s7867_s6  ;;  %v3355_v29 = vmul.f32 %v7504_v4, %v9150_v51  ;;  %v3531_v11 = vpack.c.bf16 %v3523_v13, %v3522_v25  ;;  %v9252_v36 = vld [vmem:[#allocation2] sm:$0xff]  ;;  %v2763_v4 = vpop.permute.xlu1 %2762  ;;  %v4660_v13 = vld [vmem:[#allocation2 + $0x48] sm:$0xff]  ;;  %v4682_v20 = vmul.f32 %v4666_v8, %v4666_v8 }
 0x5c4   :  { %3751 = vrot.lane.b32.xlu0 %v3528_v37, %s7866_s27  ;;  %v3498_v40 = vmul.f32 %v9242_v24, %v3354_v21  ;;  %v4667_v30 = vmul.f32 %v9252_v36, %v9252_v36  ;;  %v4653_v37 = vld [vmem:[#allocation2 + $0x10] sm:$0xff]  ;;  %v4677_v21 = vmul.f32 %v4661_v41, %v4661_v41 }
 0x5c5   :  { %v3499_v34 = vmul.f32 %v9245_v44, %v3355_v29  ;;  %v4669_v10 = vmul.f32 %v4653_v37, %v4653_v37  ;;  %v9282_v25 = vpop.permute.xlu0 %2906  ;;  %v4676_v29 = vmul.f32 %v4660_v13, %v4660_v13  ;;  %v4663_v37 = vld [vmem:[#allocation2 + $0x60] sm:$0xff] }
 0x5c7   :  { %3748 = vrot.lane.b32.xlu1 %v3504_v33, %s7867_s6  ;;  %v3507_v51 = vpack.c.bf16 %v3499_v34, %v3498_v40  ;;  %v4670_v33 = vmul.f32 %v4654_v18, %v4654_v18  ;;  %v4665_v18 = vld [vmem:[#allocation2 + $0x70] sm:$0xff] }
 0x5c8   :  { %3804 = vrot.lane.b32.xlu0 %v3529_v63, %s7866_s27  ;;  %v4658_v63 = vld [vmem:[#allocation2 + $0x38] sm:$0xff]  ;;  %v4681_v35 = vmul.f32 %v4665_v18, %v4665_v18 }
 0x5c9   :  { %v4674_v54 = vmul.f32 %v4658_v63, %v4658_v63 }
 0x5cb   :  { %3801 = vrot.lane.b32.xlu1 %v3505_v23, %s7867_s6  ;;  %v4659_v23 = vld [vmem:[#allocation2 + $0x40] sm:$0xff] }
 0x5cc   :  { %3857 = vrot.lane.b32.xlu0 %v3530_v58, %s7866_s27  ;;  %v4675_v50 = vmul.f32 %v4659_v23, %v4659_v23  ;;  %v9284_v58 = vpop.permute.xlu1 %2858 }
 0x5cf   :  { %3854 = vrot.lane.b32.xlu1 %v3506_v3, %s7867_s6  ;;  %v4662_v3 = vld [vmem:[#allocation2 + $0x58] sm:$0xff] }
 0x5d0   :  { %3910 = vrot.lane.b32.xlu0 %v3531_v11, %s7866_s27  ;;  %v9290_v11 = vpop.permute.xlu0 %3002  ;;  %v9292_v40 = vpop.permute.xlu1 %2954  ;;  %v4678_v34 = vmul.f32 %v4662_v3, %v4662_v3 }
 0x5d3   :  { %4844 = vrot.lane.b32.xlu1 %v4667_v30, %s7869_s12 }
 0x5d4   :  { %3907 = vrot.lane.b32.xlu0 %v3507_v51, %s7867_s6 }
 0x5d7   :  { %4848 = vrot.lane.b32.xlu1 %v4669_v10, %s7869_s12 }
 0x5d8   :  { %4846 = vrot.lane.b32.xlu0 %v4668_v49, %s7869_s12 }
 0x5db   :  { %4699 = vrot.lane.b32.xlu1 %v4667_v30, %s7870_s3  ;;  %v9296_v30 = vpop.permute.xlu1 %3539 }
 0x5dc   :  { %4850 = vrot.lane.b32.xlu0 %v4670_v33, %s7869_s12 }
 0x5df   :  { %4703 = vrot.lane.b32.xlu1 %v4669_v10, %s7870_s3 }
 0x5e0   :  { %4701 = vrot.lane.b32.xlu0 %v4668_v49, %s7870_s3  ;;  %v4679_v49 = vmul.f32 %v4663_v37, %v4663_v37 }
 0x5e3   :  { %4852 = vrot.lane.b32.xlu1 %v4671_v53, %s7869_s12 }
 0x5e4   :  { %4705 = vrot.lane.b32.xlu0 %v4670_v33, %s7870_s3  ;;  %v4664_v33 = vld [vmem:[#allocation2 + $0x68] sm:$0xff] }
 0x5e7   :  { %4856 = vrot.lane.b32.xlu1 %v4673_v9, %s7869_s12 }
 0x5e8   :  { %4854 = vrot.lane.b32.xlu0 %v4672_v56, %s7869_s12 }
 0x5eb   :  { %4707 = vrot.lane.b32.xlu1 %v4671_v53, %s7870_s3  ;;  %v4680_v53 = vmul.f32 %v4664_v33, %v4664_v33 }
 0x5ec   :  { %4858 = vrot.lane.b32.xlu0 %v4674_v54, %s7869_s12 }
 0x5ef   :  { %4711 = vrot.lane.b32.xlu1 %v4673_v9, %s7870_s3 }
 0x5f0   :  { %4709 = vrot.lane.b32.xlu0 %v4672_v56, %s7870_s3 }
 0x5f3   :  { %4860 = vrot.lane.b32.xlu1 %v4675_v50, %s7869_s12 }
 0x5f4   :  { %4713 = vrot.lane.b32.xlu0 %v4674_v54, %s7870_s3 }
 0x5f7   :  { %4864 = vrot.lane.b32.xlu1 %v4677_v21, %s7869_s12 }
 0x5f8   :  { %4862 = vrot.lane.b32.xlu0 %v4676_v29, %s7869_s12 }
 0x5fb   :  { %4715 = vrot.lane.b32.xlu1 %v4675_v50, %s7870_s3 }
 0x5fc   :  { %4866 = vrot.lane.b32.xlu0 %v4678_v34, %s7869_s12  ;;  %v2571_v51 = vpop.xlane.xlu0 %2570 }
 0x5fd   :  { %7505 = vrcp.f32 %v2571_v51 }
 0x5ff   :  { %4719 = vrot.lane.b32.xlu1 %v4677_v21, %s7870_s3 }
 0x600   :  { %4717 = vrot.lane.b32.xlu0 %v4676_v29, %s7870_s3 }
 0x602   :  { %v2574_v10 = vpop.xlane.xlu1 %2573 }
 0x603   :  { %7507 = vrcp.f32 %v2574_v10  ;;  %4868 = vrot.lane.b32.xlu1 %v4679_v49, %s7869_s12 }
 0x604   :  { %4721 = vrot.lane.b32.xlu0 %v4678_v34, %s7870_s3 }
 0x607   :  { %4872 = vrot.lane.b32.xlu1 %v4681_v35, %s7869_s12 }
 0x608   :  { %4870 = vrot.lane.b32.xlu0 %v4680_v53, %s7869_s12 }
 0x60a   :  { %v7506_v9 = vpop.eup %7505 }
 0x60b   :  { %4723 = vrot.lane.b32.xlu1 %v4679_v49, %s7870_s3  ;;  %v2633_v63 = vmul.f32 %v7506_v9, %v9028_v55 }
 0x60c   :  { %4874 = vrot.lane.b32.xlu0 %v4682_v20, %s7869_s12 }
 0x60f   :  { %4727 = vrot.lane.b32.xlu1 %v4681_v35, %s7870_s3 }
 0x610   :  { %v7508_v56 = vpop.eup %7507  ;;  %4725 = vrot.lane.b32.xlu0 %v4680_v53, %s7870_s3 }
 0x611   :  { %v2634_v54 = vmul.f32 %v7508_v56, %v9039_v26 }
 0x612   :  { %v2577_v23 = vpop.xlane.xlu0 %2576 }
 0x613   :  { %v2649_v50 = vpack.c.bf16 %v2634_v54, %v2633_v63  ;;  %7509 = vrcp.f32 %v2577_v23 }
 0x614   :  { %4729 = vrot.lane.b32.xlu0 %v4682_v20, %s7870_s3 }
 0x615   :  { %6915 = vmatmul.mubr.msk.bf16.vlgmr.msra.gmra.mxu0 %vm1112_vm4, %v2649_v50 }
 0x616   :  { %6925 = vmatpush3.bf16.msra.mxu0 %v2763_v4  ;;  %6926 = vmatprep.mubr.msk.bf16.mxu0 %vm7863_vm3, %v10345_v52  ;;  %v2583_v41 = vpop.xlane.xlu0 %2582  ;;  %v2580_v13 = vpop.xlane.xlu1 %2579 }
 0x617   :  { %6936 = vmatprep.subr.bf16.mxu0 %v10345_v52  ;;  %7511 = vrcp.f32 %v2580_v13 }
 0x618   :  { %7513 = vrcp.f32 %v2583_v41 }
 0x61a   :  { %v2586_v21 = vpop.xlane.xlu1 %2585 }
 0x61b   :  { %v2589_v55 = vpop.xlane.xlu0 %2588  ;;  %7515 = vrcp.f32 %v2586_v21 }
 0x61c   :  { %7517 = vrcp.f32 %v2589_v55 }
 0x61f   :  { %v2595_v26 = vpop.xlane.xlu0 %2594  ;;  %v2592_v29 = vpop.xlane.xlu1 %2591 }
 0x620   :  { %7519 = vrcp.f32 %v2592_v29  ;;  %v7510_v3 = vpop.eup %7509 }
 0x621   :  { %7521 = vrcp.f32 %v2595_v26  ;;  %v2635_v37 = vmul.f32 %v7510_v3, %v9068_v32 }
 0x623   :  { %v2601_v4 = vpop.xlane.xlu0 %2600  ;;  %v2598_v34 = vpop.xlane.xlu1 %2597 }
 0x624   :  { %v7512_v51 = vpop.eup %7511  ;;  %7523 = vrcp.f32 %v2598_v34 }
 0x625   :  { %v2636_v10 = vmul.f32 %v7512_v51, %v9076_v59  ;;  %7525 = vrcp.f32 %v2601_v4  ;;  %v7514_v33 = vpop.eup %7513 }
 0x626   :  { %v2637_v9 = vmul.f32 %v7514_v33, %v9070_v39 }
 0x627   :  { %v2607_v49 = vpop.xlane.xlu0 %2606  ;;  %v2604_v18 = vpop.xlane.xlu1 %2603  ;;  %v2650_v35 = vpack.c.bf16 %v2636_v10, %v2635_v37 }
 0x628   :  { %7527 = vrcp.f32 %v2604_v18  ;;  %v7516_v53 = vpop.eup %7515 }
 0x629   :  { %6921 = vmatmul.mubr.msk.bf16.vlgmr.msra.gmra.mxu1 %vm1112_vm4, %v2650_v35  ;;  %7529 = vrcp.f32 %v2607_v49  ;;  %v2638_v32 = vmul.f32 %v7516_v53, %v9082_v48  ;;  %v7518_v59 = vpop.eup %7517  ;;  %v3545_v35 = vsel %vm322_vm2, %v9296_v30, 0 }
 0x62a   :  { %6931 = vmatpush3.bf16.msra.mxu1 %v9278_v28  ;;  %6932 = vmatprep.mubr.msk.bf16.mxu1 %vm7863_vm3, %v10345_v52  ;;  %v2639_v23 = vmul.f32 %v7518_v59, %v9086_v61 }
 0x62b   :  { %v2613_v8 = vpop.xlane.xlu0 %2612  ;;  %v2610_v20 = vpop.xlane.xlu1 %2609  ;;  %6942 = vmatprep.subr.bf16.mxu1 %v10345_v52  ;;  %v2651_v56 = vpack.c.bf16 %v2638_v32, %v2637_v9 }
 0x62c   :  { %7531 = vrcp.f32 %v2610_v20 }
 0x62d   :  { %v7520_v63 = vpop.eup %7519  ;;  %7533 = vrcp.f32 %v2613_v8  ;;  %6927 = vmatmul.mubr.msk.bf16.vlgmr.msra.gmra.mxu0 %vm1112_vm4, %v2651_v56 }
 0x62e   :  { %v2640_v39 = vmul.f32 %v7520_v63, %v9095_v47  ;;  %v7522_v50 = vpop.eup %7521  ;;  %6937 = vmatpush3.bf16.msra.mxu0 %v9284_v58  ;;  %6938 = vmatprep.mubr.msk.bf16.mxu0 %vm7863_vm3, %v10345_v52 }
 0x62f   :  { %v3593_v54 = vpop.permute.xlu0 %3592  ;;  %v2616_v28 = vpop.xlane.xlu1 %2615  ;;  %6948 = vmatprep.subr.bf16.mxu0 %v10345_v52  ;;  %v2641_v21 = vmul.f32 %v7522_v50, %v9093_v43 }
 0x630   :  { %7535 = vrcp.f32 %v2616_v28  ;;  %v2652_v48 = vpack.c.bf16 %v2640_v39, %v2639_v23  ;;  %v3598_v53 = vsel %vm322_vm2, %v3593_v54, 0 }
 0x631   :  { %v7524_v41 = vpop.eup %7523 }
 0x632   :  { %6933 = vmatmul.mubr.msk.bf16.vlgmr.msra.gmra.mxu1 %vm1112_vm4, %v2652_v48  ;;  %v2642_v61 = vmul.f32 %v7524_v41, %v9101_v19  ;;  %v7526_v47 = vpop.eup %7525 }
 0x633   :  { %v3646_v13 = vpop.permute.xlu0 %3645  ;;  %v3537_v55 = vpop.permute.xlu1 %3536  ;;  %6943 = vmatpush3.bf16.msra.mxu1 %v9282_v25  ;;  %6944 = vmatprep.mubr.msk.bf16.mxu1 %vm7863_vm3, %v10345_v52  ;;  %v2643_v4 = vmul.f32 %v7526_v47, %v9103_v0 }
 0x634   :  { %v2653_v58 = vpack.c.bf16 %v2642_v61, %v2641_v21  ;;  %6954 = vmatprep.subr.bf16.mxu1 %v10345_v52  ;;  %v3651_v30 = vsel %vm322_vm2, %v3646_v13, 0 }
 0x635   :  { %v7528_v26 = vpop.eup %7527 }
 0x636   :  { %6939 = vmatmul.mubr.msk.bf16.vlgmr.msra.gmra.mxu0 %vm1112_vm4, %v2653_v58  ;;  %v2644_v43 = vmul.f32 %v7528_v26, %v9115_v2  ;;  %v7530_v34 = vpop.eup %7529 }
 0x637   :  { %v3699_v29 = vpop.permute.xlu0 %3698  ;;  %v3590_v3 = vpop.permute.xlu1 %3589  ;;  %6949 = vmatpush3.bf16.msra.mxu0 %v9292_v40  ;;  %6950 = vmatprep.mubr.msk.bf16.mxu0 %vm7863_vm3, %v10345_v52  ;;  %v2645_v49 = vmul.f32 %v7530_v34, %v9112_v46 }
 0x638   :  { %v2654_v19 = vpack.c.bf16 %v2644_v43, %v2643_v4  ;;  %6960 = vmatprep.subr.bf16.mxu0 %v10345_v52  ;;  %v3704_v9 = vsel %vm322_vm2, %v3699_v29, 0 }
 0x639   :  { %v7532_v25 = vpop.eup %7531 }
 0x63a   :  { %v7534_v51 = vpop.eup %7533  ;;  %6945 = vmatmul.mubr.msk.bf16.vlgmr.msra.gmra.mxu1 %vm1112_vm4, %v2654_v19  ;;  %v2646_v0 = vmul.f32 %v7532_v25, %v9123_v42 }
 0x63b   :  { %v3752_v37 = vpop.permute.xlu0 %3751  ;;  %v3643_v10 = vpop.permute.xlu1 %3642  ;;  %6955 = vmatpush3.bf16.msra.mxu1 %v9290_v11  ;;  %6956 = vmatprep.mubr.msk.bf16.mxu1 %vm7863_vm3, %v10345_v52  ;;  %v2647_v18 = vmul.f32 %v7534_v51, %v9125_v62 }
 0x63c   :  { %v2655_v40 = vpack.c.bf16 %v2646_v0, %v2645_v49  ;;  %6966 = vmatprep.subr.bf16.mxu1 %v10345_v52  ;;  %v3757_v56 = vsel %vm322_vm2, %v3752_v37, 0 }
 0x63d   :  { %v7536_v2 = vpop.eup %7535 }
 0x63e   :  { %v2648_v33 = vmul.f32 %v7536_v2, %v9137_v31  ;;  %6951 = vmatmul.mubr.msk.bf16.vlgmr.msra.gmra.mxu0 %vm1112_vm4, %v2655_v40 }
 0x63f   :  { %v3805_v46 = vpop.permute.xlu0 %3804  ;;  %v3696_v42 = vpop.permute.xlu1 %3695  ;;  %6961 = vmatpush3.bf16.xpose.msra.mxu0 %v3545_v35  ;;  %6962 = vmatprep.mubr.msk.bf16.mxu0 %vm7863_vm3, %v10345_v52 }
 0x640   :  { %v2656_v11 = vpack.c.bf16 %v2648_v33, %v2647_v18  ;;  %6972 = vmatprep.subr.bf16.mxu0 %v10345_v52  ;;  %v3810_v39 = vsel %vm322_vm2, %v3805_v46, 0 }
 0x642   :  { %6957 = vmatmul.mubr.msk.bf16.vlgmr.msra.gmra.mxu1 %vm1112_vm4, %v2656_v11 }
 0x643   :  { %v3858_v62 = vpop.permute.xlu0 %3857  ;;  %v3749_v31 = vpop.permute.xlu1 %3748  ;;  %6967 = vmatpush3.bf16.xpose.msra.mxu1 %v3598_v53  ;;  %6968 = vmatprep.mubr.msk.bf16.mxu1 %vm7863_vm3, %v10345_v52 }
 0x644   :  { %6978 = vmatprep.subr.bf16.mxu1 %v10345_v52 }
 0x646   :  { %6963 = vmatmul.mubr.msk.bf16.vlgmr.msra.gmra.mxu0 %vm322_vm2, %v3537_v55  ;;  %v3863_v55 = vsel %vm322_vm2, %v3858_v62, 0 }
 0x647   :  { %v3911_v8 = vpop.permute.xlu0 %3910  ;;  %v3802_v20 = vpop.permute.xlu1 %3801  ;;  %6973 = vmatpush3.bf16.xpose.msra.mxu0 %v3651_v30  ;;  %6974 = vmatprep.mubr.msk.bf16.mxu0 %vm7863_vm3, %v10345_v52 }
 0x648   :  { %6984 = vmatprep.subr.bf16.mxu0 %v10345_v52  ;;  %v3916_v26 = vsel %vm322_vm2, %v3911_v8, 0 }
 0x64a   :  { %6969 = vmatmul.mubr.msk.bf16.vlgmr.msra.gmra.mxu1 %vm322_vm2, %v3590_v3 }
 0x64b   :  { %v3908_v32 = vpop.permute.xlu0 %3907  ;;  %v3855_v59 = vpop.permute.xlu1 %3854  ;;  %6979 = vmatpush3.bf16.xpose.msra.mxu1 %v3704_v9  ;;  %6980 = vmatprep.mubr.msk.bf16.mxu1 %vm7863_vm3, %v10345_v52 }
 0x64c   :  { %6990 = vmatprep.subr.bf16.mxu1 %v10345_v52 }
 0x64e   :  { %6975 = vmatmul.mubr.msk.bf16.vlgmr.msra.gmra.mxu0 %vm322_vm2, %v3643_v10 }
 0x64f   :  { %v4847_v63 = vpop.permute.xlu0 %4846  ;;  %v4845_v54 = vpop.permute.xlu1 %4844  ;;  %6985 = vmatpush3.bf16.xpose.msra.mxu0 %v3757_v56  ;;  %6986 = vmatprep.mubr.msk.bf16.mxu0 %vm7863_vm3, %v10345_v52 }
 0x650   :  { %v4895_v28 = vsel %vm322_vm2, %v4847_v63, 0.0  ;;  %v4892_v23 = vsel %vm322_vm2, %v4845_v54, 0.0  ;;  %6996 = vmatprep.subr.bf16.mxu0 %v10345_v52 }
 0x651   :  { %4896 = vadd.xlane.f32.xlu0 %v4895_v28  ;;  %4893 = vadd.xlane.f32.xlu1 %v4892_v23 }
 0x652   :  { %6981 = vmatmul.mubr.msk.bf16.vlgmr.msra.gmra.mxu1 %vm322_vm2, %v3696_v42 }
 0x653   :  { %v4851_v50 = vpop.permute.xlu0 %4850  ;;  %v4849_v48 = vpop.permute.xlu1 %4848  ;;  %6991 = vmatpush3.bf16.xpose.msra.mxu1 %v3810_v39  ;;  %6992 = vmatprep.mubr.msk.bf16.mxu1 %vm7863_vm3, %v10345_v52 }
 0x654   :  { %v4901_v41 = vsel %vm322_vm2, %v4851_v50, 0.0  ;;  %v4898_v13 = vsel %vm322_vm2, %v4849_v48, 0.0  ;;  %7002 = vmatprep.subr.bf16.mxu1 %v10345_v52 }
 0x655   :  { %4902 = vadd.xlane.f32.xlu1 %v4901_v41  ;;  %4899 = vadd.xlane.f32.xlu0 %v4898_v13 }
 0x656   :  { %6987 = vmatmul.mubr.msk.bf16.vlgmr.msra.gmra.mxu0 %vm322_vm2, %v3749_v31 }
 0x657   :  { %v4702_v21 = vpop.permute.xlu0 %4701  ;;  %v4700_v61 = vpop.permute.xlu1 %4699  ;;  %6997 = vmatpush3.bf16.xpose.msra.mxu0 %v3863_v55  ;;  %6998 = vmatprep.mubr.msk.bf16.mxu0 %vm7863_vm3, %v10345_v52 }
 0x658   :  { %v4750_v47 = vsel %vm322_vm2, %v4702_v21, 0.0  ;;  %v4747_v58 = vsel %vm322_vm2, %v4700_v61, 0.0  ;;  %7008 = vmatprep.subr.bf16.mxu0 %v10345_v52 }
 0x659   :  { %4751 = vadd.xlane.f32.xlu1 %v4750_v47  ;;  %4748 = vadd.xlane.f32.xlu0 %v4747_v58 }
 0x65a   :  { %6993 = vmatmul.mubr.msk.bf16.vlgmr.msra.gmra.mxu1 %vm322_vm2, %v3802_v20 }
 0x65b   :  { %v4706_v29 = vpop.permute.xlu0 %4705  ;;  %v4704_v3 = vpop.permute.xlu1 %4703  ;;  %7003 = vmatpush3.bf16.xpose.msra.mxu1 %v3916_v26  ;;  %7004 = vmatprep.mubr.msk.bf16.mxu1 %vm7863_vm3, %v10345_v52 }
 0x65c   :  { %v4756_v4 = vsel %vm322_vm2, %v4706_v29, 0.0  ;;  %v4753_v43 = vsel %vm322_vm2, %v4704_v3, 0.0  ;;  %7014 = vmatprep.subr.bf16.mxu1 %v10345_v52 }
 0x65d   :  { %4757 = vadd.xlane.f32.xlu1 %v4756_v4  ;;  %4754 = vadd.xlane.f32.xlu0 %v4753_v43 }
 0x65e   :  { %6999 = vmatmul.mubr.msk.bf16.vlgmr.msra.gmra.mxu0 %vm322_vm2, %v3855_v59 }
 0x65f   :  { %v4855_v34 = vpop.permute.xlu0 %4854  ;;  %v4853_v19 = vpop.permute.xlu1 %4852  ;;  %7010 = vmatprep.mubr.msk.bf16.mxu0 %vm7863_vm3, %v10345_v52 }
 0x660   :  { %v4907_v25 = vsel %vm322_vm2, %v4855_v34, 0.0  ;;  %v4904_v51 = vsel %vm322_vm2, %v4853_v19, 0.0 }
 0x661   :  { %4908 = vadd.xlane.f32.xlu1 %v4907_v25  ;;  %4905 = vadd.xlane.f32.xlu0 %v4904_v51  ;;  %v4146_v51 = vpack.c.bf16 %v9162_v7, %v9158_v45  ;;  %v4151_v45 = vpack.c.bf16 %v9235_v16, %v9232_v6  ;;  %v4150_v7 = vpack.c.bf16 %v9223_v27, %v9220_v5 }
 0x662   :  { %7005 = vmatmul.mubr.msk.bf16.vlgmr.msra.gmra.mxu1 %vm322_vm2, %v3908_v32 }
 0x663   :  { %v4859_v37 = vpop.permute.xlu0 %4858  ;;  %v4857_v10 = vpop.permute.xlu1 %4856  ;;  %7016 = vmatprep.mubr.msk.bf16.mxu1 %vm7863_vm3, %v10345_v52 }
 0x664   :  { %v4913_v49 = vsel %vm322_vm2, %v4859_v37, 0.0  ;;  %v4910_v0 = vsel %vm322_vm2, %v4857_v10, 0.0  ;;  %v4147_v37 = vpack.c.bf16 %v9187_v12, %v9184_v57  ;;  %v4145_v10 = vpack.c.bf16 %v9172_v1, %v9169_v17 }
 0x665   :  { %4914 = vadd.xlane.f32.xlu1 %v4913_v49  ;;  %4911 = vadd.xlane.f32.xlu0 %v4910_v0  ;;  %v4149_v49 = vpack.c.bf16 %v9211_v22, %v9208_v38  ;;  %v4148_v0 = vpack.c.bf16 %v9199_v60, %v9196_v15  ;;  %v4152_v17 = vpack.c.bf16 %v9245_v44, %v9242_v24 }
 0x667   :  { %v4710_v2 = vpop.permute.xlu0 %4709  ;;  %v4708_v40 = vpop.permute.xlu1 %4707 }
 0x668   :  { %v4762_v18 = vsel %vm322_vm2, %v4710_v2, 0.0  ;;  %v4759_v33 = vsel %vm322_vm2, %v4708_v40, 0.0 }
 0x669   :  { %4763 = vadd.xlane.f32.xlu1 %v4762_v18  ;;  %4760 = vadd.xlane.f32.xlu0 %v4759_v33 }
 0x66b   :  { %v4714_v35 = vpop.permute.xlu0 %4713  ;;  %v4712_v46 = vpop.permute.xlu1 %4711 }
 0x66c   :  { %v4768_v42 = vsel %vm322_vm2, %v4714_v35, 0.0  ;;  %v4765_v11 = vsel %vm322_vm2, %v4712_v46, 0.0 }
 0x66d   :  { %4769 = vadd.xlane.f32.xlu1 %v4768_v42  ;;  %4766 = vadd.xlane.f32.xlu0 %v4765_v11 }
 0x66f   :  { %v4863_v53 = vpop.permute.xlu0 %4862  ;;  %v4861_v62 = vpop.permute.xlu1 %4860 }
 0x670   :  { %v4919_v31 = vsel %vm322_vm2, %v4863_v53, 0.0  ;;  %v4916_v30 = vsel %vm322_vm2, %v4861_v62, 0.0 }
 0x671   :  { %4920 = vadd.xlane.f32.xlu1 %v4919_v31  ;;  %4917 = vadd.xlane.f32.xlu0 %v4916_v30 }
 0x673   :  { %v4867_v8 = vpop.permute.xlu0 %4866  ;;  %v4865_v20 = vpop.permute.xlu1 %4864 }
 0x674   :  { %v4925_v9 = vsel %vm322_vm2, %v4867_v8, 0.0  ;;  %v4922_v32 = vsel %vm322_vm2, %v4865_v20, 0.0 }
 0x675   :  { %4926 = vadd.xlane.f32.xlu1 %v4925_v9  ;;  %4923 = vadd.xlane.f32.xlu0 %v4922_v32 }
 0x677   :  { %v4718_v59 = vpop.permute.xlu0 %4717  ;;  %v4716_v56 = vpop.permute.xlu1 %4715 }
 0x678   :  { %v4774_v63 = vsel %vm322_vm2, %v4718_v59, 0.0  ;;  %v4771_v54 = vsel %vm322_vm2, %v4716_v56, 0.0 }
 0x679   :  { %4775 = vadd.xlane.f32.xlu1 %v4774_v63  ;;  %4772 = vadd.xlane.f32.xlu0 %v4771_v54 }
 0x67b   :  { %v4722_v28 = vpop.permute.xlu0 %4721  ;;  %v4720_v23 = vpop.permute.xlu1 %4719 }
 0x67c   :  { %v4780_v39 = vsel %vm322_vm2, %v4722_v28, 0.0  ;;  %v4777_v50 = vsel %vm322_vm2, %v4720_v23, 0.0 }
 0x67d   :  { %4781 = vadd.xlane.f32.xlu1 %v4780_v39  ;;  %4778 = vadd.xlane.f32.xlu0 %v4777_v50 }
 0x67f   :  { %v4871_v48 = vpop.permute.xlu0 %4870  ;;  %v4869_v41 = vpop.permute.xlu1 %4868 }
 0x680   :  { %v4931_v13 = vsel %vm322_vm2, %v4871_v48, 0.0  ;;  %v4928_v55 = vsel %vm322_vm2, %v4869_v41, 0.0 }
 0x681   :  { %4932 = vadd.xlane.f32.xlu1 %v4931_v13  ;;  %4929 = vadd.xlane.f32.xlu0 %v4928_v55 }
 0x683   :  { %v4875_v21 = vpop.permute.xlu0 %4874  ;;  %v4873_v61 = vpop.permute.xlu1 %4872 }
 0x684   :  { %v4937_v47 = vsel %vm322_vm2, %v4875_v21, 0.0  ;;  %v4934_v58 = vsel %vm322_vm2, %v4873_v61, 0.0 }
 0x685   :  { %4938 = vadd.xlane.f32.xlu1 %v4937_v47  ;;  %4935 = vadd.xlane.f32.xlu0 %v4934_v58 }
 0x687   :  { %v4726_v26 = vpop.permute.xlu0 %4725  ;;  %v4724_v29 = vpop.permute.xlu1 %4723 }
 0x688   :  { %v4786_v3 = vsel %vm322_vm2, %v4726_v26, 0.0  ;;  %v4783_v4 = vsel %vm322_vm2, %v4724_v29, 0.0 }
 0x689   :  { %4787 = vadd.xlane.f32.xlu1 %v4786_v3  ;;  %4784 = vadd.xlane.f32.xlu0 %v4783_v4 }
 0x68b   :  { %v4730_v43 = vpop.permute.xlu0 %4729  ;;  %v4728_v34 = vpop.permute.xlu1 %4727 }
 0x68c   :  { %v4792_v19 = vsel %vm322_vm2, %v4730_v43, 0.0  ;;  %v4789_v25 = vsel %vm322_vm2, %v4728_v34, 0.0 }
 0x68d   :  { %4793 = vadd.xlane.f32.xlu1 %v4792_v19  ;;  %4790 = vadd.xlane.f32.xlu0 %v4789_v25 }
 0x69e   :  { %4202 = vrot.lane.b32.xlu1 %v4146_v51, %s7871_s14 }
 0x6a2   :  { %4250 = vrot.lane.b32.xlu1 %v4147_v37, %s7871_s14 }
 0x6a3   :  { %4154 = vrot.lane.b32.xlu0 %v4145_v10, %s7871_s14 }
 0x6a6   :  { %4346 = vrot.lane.b32.xlu1 %v4149_v49, %s7871_s14 }
 0x6a7   :  { %4298 = vrot.lane.b32.xlu0 %v4148_v0, %s7871_s14  ;;  %v9525_v0 = vld [vmem:[%s10323_s4 + $0x20] sm:$0xff] }
 0x6aa   :  { %4442 = vrot.lane.b32.xlu1 %v4151_v45, %s7871_s14 }
 0x6ab   :  { %4394 = vrot.lane.b32.xlu0 %v4150_v7, %s7871_s14 }
 0x6af   :  { %4490 = vrot.lane.b32.xlu0 %v4152_v17, %s7871_s14 }
 0x6d5   :  { %v9449_v1 = vpop.f32.mrf.mxu0 }
 0x6d7   :  { %v6916_v57 = vpop.f32.mrf.mxu0 }
 0x6d8   :  { %v3959_v57 = vld [vmem:[#allocation7] sm:$0xff] }
 0x6d9   :  { %v9451_v12 = vpop.f32.mrf.mxu0 }
 0x6da   :  { %v4897_v15 = vpop.xlane.xlu0 %4896  ;;  %v4894_v60 = vpop.xlane.xlu1 %4893 }
 0x6db   :  { %v4941_v38 = vmax.f32 %v4897_v15, 1e-24  ;;  %v4940_v22 = vmax.f32 %v4894_v60, 1e-24  ;;  %v6917_v2 = vpop.f32.mrf.mxu0 }
 0x6dd   :  { %7537 = vrsqrt.f32 %v4941_v38  ;;  %v9535_v38 = vstv %s3991_s17 }
 0x6de   :  { %7539 = vrsqrt.f32 %v4940_v22  ;;  %v9453_v6 = vpop.xlane.xlu0 %4899  ;;  %v9455_v5 = vpop.xlane.xlu1 %4902 }
 0x6e2   :  { %v9457_v27 = vpop.xlane.xlu0 %4748  ;;  %v9459_v16 = vpop.xlane.xlu1 %4751 }
 0x6e6   :  { %v9461_v24 = vpop.xlane.xlu0 %4754  ;;  %v9463_v44 = vpop.xlane.xlu1 %4757 }
 0x6e9   :  { %v9465_v18 = vpop.f32.mrf.mxu1 }
 0x6ea   :  { %v7538_v40 = vpop.eup %7537  ;;  %v9467_v33 = vpop.xlane.xlu0 %4905 }
 0x6eb   :  { %v7540_v35 = vpop.eup %7539  ;;  %v9469_v46 = vpop.xlane.xlu1 %4908  ;;  %v4997_v42 = vmul.f32 %v7538_v40, %v9261_v14  ;;  %v9540_v40 = vld [vmem:[%s10323_s4 + $0x28] sm:$0xff] }
 0x6ec   :  { %v6922_v11 = vpop.f32.mrf.mxu1  ;;  %v4996_v53 = vmul.f32 %v7540_v35, %v9252_v36 }
 0x6ed   :  { %v9477_v8 = vpop.f32.mrf.mxu0 }
 0x6ee   :  { %v9473_v62 = vpop.f32.mrf.mxu1  ;;  %v9475_v31 = vpop.xlane.xlu0 %4911  ;;  %v5012_v30 = vpack.c.bf16 %v4997_v42, %v4996_v53  ;;  %v3960_v53 = vld [vmem:[#allocation7 + $0x8] sm:$0xff] }
 0x6ef   :  { %v9479_v20 = vpop.xlane.xlu1 %4914  ;;  %v6928_v32 = vpop.f32.mrf.mxu0 }
 0x6f0   :  { %5027 = vrot.lane.b32.xlu1 %v5012_v30, %s7869_s12  ;;  %v6923_v9 = vpop.f32.mrf.mxu1 }
 0x6f1   :  { %v9484_v56 = vpop.f32.mrf.mxu0  ;;  %v3961_v9 = vld [vmem:[#allocation7 + $0x10] sm:$0xff] }
 0x6f2   :  { %v9482_v59 = vpop.xlane.xlu0 %4760  ;;  %10350 = vst [vmem:[#allocation13_spill] sm:$0xff] %v9484_v56  ;;  %v9486_v14 = vpop.f32.mrf.mxu1 }
 0x6f3   :  { %v9488_v36 = vpop.xlane.xlu1 %4763  ;;  %v6929_v63 = vpop.f32.mrf.mxu0 }
 0x6f4   :  { %v6934_v54 = vpop.f32.mrf.mxu1 }
 0x6f6   :  { %v9490_v28 = vpop.xlane.xlu0 %4766  ;;  %v9492_v23 = vpop.f32.mrf.mxu1 }
 0x6f7   :  { %10351 = vst [vmem:[#allocation19_spill] sm:$0xff] %v9492_v23  ;;  %v9494_v39 = vpop.f32.mrf.mxu0  ;;  %v9496_v50 = vpop.xlane.xlu1 %4769  ;;  %v3969_v23 = vld [vmem:[#allocation7 + $0x50] sm:$0xff] }
 0x6f8   :  { %10352 = vst [vmem:[#allocation14_spill] sm:$0xff] %v9494_v39  ;;  %v6935_v48 = vpop.f32.mrf.mxu1 }
 0x6f9   :  { %v6940_v41 = vpop.f32.mrf.mxu0 }
 0x6fa   :  { %v9498_v13 = vpop.xlane.xlu0 %4917  ;;  %v9502_v21 = vpop.f32.mrf.mxu1 }
 0x6fb   :  { %v9500_v55 = vpop.f32.mrf.mxu0  ;;  %10354 = vst [vmem:[#allocation18_spill] sm:$0xff] %v9502_v21  ;;  %v9504_v61 = vpop.xlane.xlu1 %4920  ;;  %v3967_v21 = vld [vmem:[#allocation7 + $0x40] sm:$0xff] }
 0x6fc   :  { %10353 = vst [vmem:[#allocation16_spill] sm:$0xff] %v9500_v55  ;;  %v6946_v58 = vpop.f32.mrf.mxu1 }
 0x6fd   :  { %v6941_v47 = vpop.f32.mrf.mxu0 }
 0x6fe   :  { %v9506_v26 = vpop.xlane.xlu0 %4923  ;;  %v9508_v29 = vpop.f32.mrf.mxu1 }
 0x6ff   :  { %10355 = vst [vmem:[#allocation17_spill] sm:$0xff] %v9508_v29  ;;  %v9510_v3 = vpop.f32.mrf.mxu0  ;;  %v9512_v4 = vpop.xlane.xlu1 %4926  ;;  %v3965_v29 = vld [vmem:[#allocation7 + $0x30] sm:$0xff] }
 0x700   :  { %10356 = vst [vmem:[#allocation15_spill] sm:$0xff] %v9510_v3  ;;  %v6947_v43 = vpop.f32.mrf.mxu1 }
 0x701   :  { %v6952_v34 = vpop.f32.mrf.mxu0 }
 0x702   :  { %v9514_v19 = vpop.xlane.xlu0 %4772  ;;  %v9518_v51 = vpop.f32.mrf.mxu1 }
 0x703   :  { %v9516_v25 = vpop.f32.mrf.mxu0  ;;  %10358 = vst [vmem:[#allocation21_spill] sm:$0xff] %v9518_v51  ;;  %v9520_v37 = vpop.xlane.xlu1 %4775 }
 0x704   :  { %10357 = vst [vmem:[#allocation20_spill] sm:$0xff] %v9516_v25  ;;  %v6958_v49 = vpop.f32.mrf.mxu1 }
 0x705   :  { %v6953_v10 = vpop.f32.mrf.mxu0 }
 0x706   :  { %v9528_v45 = vpop.xlane.xlu0 %4778  ;;  %v9530_v7 = vpop.f32.mrf.mxu1 }
 0x707   :  { %10359 = vst [vmem:[#allocation22_spill] sm:$0xff] %v9530_v7  ;;  %v3581_v17 = vpop.f32.mrf.mxu0  ;;  %v9533_v60 = vpop.xlane.xlu1 %4781 }
 0x708   :  { %v3582_v15 = vadd.f32 %v9525_v0, %v3581_v17  ;;  %v6959_v22 = vpop.f32.mrf.mxu1  ;;  %v3962_v17 = vld [vmem:[#allocation7 + $0x18] sm:$0xff] }
 0x709   :  { %v6964_v2 = vpop.f32.mrf.mxu0 }
 0x70a   :  { %v3975_v35 = vadd.f32 %v3959_v57, %v3582_v15  ;;  %v9542_v42 = vpop.xlane.xlu0 %4929  ;;  %v3634_v30 = vpop.f32.mrf.mxu1 }
 0x70b   :  { %v3584_v11 = vpop.f32.mrf.mxu0  ;;  %v3635_v54 = vadd.f32 %v9525_v0, %v3634_v30  ;;  %v9547_v48 = vpop.xlane.xlu1 %4932 }
 0x70c   :  { %v3993_v32 = vsub.f32 %v3975_v35, %v9535_v38  ;;  %v3585_v63 = vadd.f32 %v9540_v40, %v3584_v11  ;;  %v6970_v47 = vpop.f32.mrf.mxu1  ;;  %v3963_v11 = vld [vmem:[#allocation7 + $0x20] sm:$0xff] }
 0x70d   :  { %v6965_v41 = vpop.f32.mrf.mxu0  ;;  %v3977_v34 = vadd.f32 %v3961_v9, %v3635_v54 }
 0x70e   :  { %v4009_v58 = vmax.f32 %v3993_v32, -60.0  ;;  %v3976_v43 = vadd.f32 %v3960_v53, %v3585_v63  ;;  %v9549_v10 = vpop.xlane.xlu0 %4935  ;;  %v3637_v49 = vpop.f32.mrf.mxu1 }
 0x70f   :  { %v3687_v57 = vpop.f32.mrf.mxu0  ;;  %v3995_v2 = vsub.f32 %v3977_v34, %v9535_v38  ;;  %v3638_v35 = vadd.f32 %v9540_v40, %v3637_v49  ;;  %v9554_v30 = vpop.xlane.xlu1 %4938 }
 0x710   :  { %v4025_v15 = vmul.f32 1.442695, %v4009_v58  ;;  %v3994_v22 = vsub.f32 %v3976_v43, %v9535_v38  ;;  %v3688_v41 = vadd.f32 %v9525_v0, %v3687_v57  ;;  %v6971_v32 = vpop.f32.mrf.mxu1  ;;  %v3964_v43 = vld [vmem:[#allocation7 + $0x28] sm:$0xff] }
 0x711   :  { %v6976_v53 = vpop.f32.mrf.mxu0  ;;  %v4011_v63 = vmax.f32 %v3995_v2, -60.0  ;;  %v3978_v54 = vadd.f32 %v3962_v17, %v3638_v35 }
 0x712   :  { %7541 = vpow2.f32 %v4025_v15  ;;  %v4010_v9 = vmax.f32 %v3994_v22, -60.0  ;;  %v9557_v47 = vpop.xlane.xlu0 %4784  ;;  %v3979_v58 = vadd.f32 %v3963_v11, %v3688_v41  ;;  %v3740_v25 = vpop.f32.mrf.mxu1 }
 0x713   :  { %v3690_v7 = vpop.f32.mrf.mxu0  ;;  %v4029_v51 = vmul.f32 1.442695, %v4011_v63  ;;  %v3996_v49 = vsub.f32 %v3978_v54, %v9535_v38  ;;  %v9561_v57 = vpop.xlane.xlu1 %4787  ;;  %v3741_v22 = vadd.f32 %v9525_v0, %v3740_v25  ;;  %v3966_v63 = vld [vmem:[#allocation7 + $0x38] sm:$0xff] }
 0x714   :  { %v4027_v34 = vmul.f32 1.442695, %v4010_v9  ;;  %v3691_v3 = vadd.f32 %v9540_v40, %v3690_v7  ;;  %v3997_v15 = vsub.f32 %v3979_v58, %v9535_v38  ;;  %v6982_v2 = vpop.f32.mrf.mxu1 }
 0x715   :  { %v6977_v17 = vpop.f32.mrf.mxu0  ;;  %v4012_v35 = vmax.f32 %v3996_v49, -60.0  ;;  %v3981_v53 = vadd.f32 %v3965_v29, %v3741_v22 }
 0x716   :  { %7543 = vpow2.f32 %v4027_v34  ;;  %v3980_v11 = vadd.f32 %v3964_v43, %v3691_v3  ;;  %v9565_v41 = vpop.xlane.xlu0 %4790  ;;  %v4013_v32 = vmax.f32 %v3997_v15, -60.0  ;;  %v3743_v9 = vpop.f32.mrf.mxu1 }
 0x717   :  { %7545 = vpow2.f32 %v4029_v51  ;;  %v3793_v7 = vpop.f32.mrf.mxu0  ;;  %v4031_v54 = vmul.f32 1.442695, %v4012_v35  ;;  %v3744_v58 = vadd.f32 %v9540_v40, %v3743_v9  ;;  %v9569_v25 = vpop.xlane.xlu1 %4793  ;;  %v3999_v34 = vsub.f32 %v3981_v53, %v9535_v38 }
 0x718   :  { %v3998_v55 = vsub.f32 %v3980_v11, %v9535_v38  ;;  %v4033_v17 = vmul.f32 1.442695, %v4013_v32  ;;  %v3794_v3 = vadd.f32 %v9525_v0, %v3793_v7  ;;  %v6983_v43 = vpop.f32.mrf.mxu1  ;;  %v3968_v11 = vld [vmem:[#allocation7 + $0x48] sm:$0xff] }
 0x719   :  { %v6988_v51 = vpop.f32.mrf.mxu0  ;;  %7547 = vpow2.f32 %v4031_v54  ;;  %v3982_v49 = vadd.f32 %v3966_v63, %v3744_v58  ;;  %v4015_v22 = vmax.f32 %v3999_v34, -60.0 }
 0x71a   :  { %v4014_v29 = vmax.f32 %v3998_v55, -60.0  ;;  %v4155_v15 = vpop.permute.xlu0 %4154  ;;  %7549 = vpow2.f32 %v4033_v17  ;;  %v3983_v2 = vadd.f32 %v3967_v21, %v3794_v3  ;;  %v3846_v9 = vpop.f32.mrf.mxu1 }
 0x71b   :  { %v3796_v35 = vpop.f32.mrf.mxu0  ;;  %7009 = vmatpush3.bf16.msra.mxu0 %v4155_v15  ;;  %v4000_v32 = vsub.f32 %v3982_v49, %v9535_v38  ;;  %v4203_v7 = vpop.permute.xlu1 %4202  ;;  %v4037_v54 = vmul.f32 1.442695, %v4015_v22  ;;  %v3847_v63 = vadd.f32 %v9525_v0, %v3846_v9  ;;  %v3970_v49 = vld [vmem:[#allocation7 + $0x58] sm:$0xff]  ;;  %v3971_v22 = vld [vmem:[#allocation7 + $0x60] sm:$0xff] }
 0x71c   :  { %v4035_v39 = vmul.f32 1.442695, %v4014_v29  ;;  %v3797_v53 = vadd.f32 %v9540_v40, %v3796_v35  ;;  %7020 = vmatprep.subr.bf16.mxu0 %v10345_v52  ;;  %v4001_v55 = vsub.f32 %v3983_v2, %v9535_v38  ;;  %7015 = vmatpush3.bf16.msra.mxu1 %v4203_v7  ;;  %v6994_v58 = vpop.f32.mrf.mxu1 }
 0x71d   :  { %v6989_v21 = vpop.f32.mrf.mxu0  ;;  %v4016_v17 = vmax.f32 %v4000_v32, -60.0  ;;  %7026 = vmatprep.subr.bf16.mxu1 %v10345_v52  ;;  %v3985_v51 = vadd.f32 %v3969_v23, %v3847_v63 }
 0x71e   :  { %7551 = vpow2.f32 %v4035_v39  ;;  %v3984_v34 = vadd.f32 %v3968_v11, %v3797_v53  ;;  %v4017_v43 = vmax.f32 %v4001_v55, -60.0  ;;  %v3849_v29 = vpop.f32.mrf.mxu1 }
 0x71f   :  { %v9579_v3 = vpop.eup %7541  ;;  %7553 = vpow2.f32 %v4037_v54  ;;  %v3899_v15 = vpop.f32.mrf.mxu0  ;;  %v4039_v2 = vmul.f32 1.442695, %v4016_v17  ;;  %v3850_v9 = vadd.f32 %v9540_v40, %v3849_v29  ;;  %v4003_v11 = vsub.f32 %v3985_v51, %v9535_v38 }
 0x720   :  { %v4002_v35 = vsub.f32 %v3984_v34, %v9535_v38  ;;  %v3900_v39 = vadd.f32 %v9525_v0, %v3899_v15  ;;  %v4041_v32 = vmul.f32 1.442695, %v4017_v43  ;;  %v6995_v53 = vpop.f32.mrf.mxu1  ;;  %v4057_v54 = vsel %vm1112_vm4, %v9579_v3, 0.0  ;;  %v3972_v34 = vld [vmem:[#allocation7 + $0x68] sm:$0xff] }
 0x721   :  { %v7000_v7 = vpop.f32.mrf.mxu0  ;;  %7555 = vpow2.f32 %v4039_v2  ;;  %v3986_v55 = vadd.f32 %v3970_v49, %v3850_v9  ;;  %4058 = vadd.xlane.f32.xlu0 %v4057_v54  ;;  %v4019_v58 = vmax.f32 %v4003_v11, -60.0 }
 0x722   :  { %v4018_v23 = vmax.f32 %v4002_v35, -60.0  ;;  %v3987_v63 = vadd.f32 %v3971_v22, %v3900_v39  ;;  %7557 = vpow2.f32 %v4041_v32  ;;  %v3952_v29 = vpop.f32.mrf.mxu1  ;;  %v3973_v35 = vld [vmem:[#allocation7 + $0x70] sm:$0xff] }
 0x723   :  { %v9587_v21 = vpop.eup %7543  ;;  %v3902_v17 = vpop.f32.mrf.mxu0  ;;  %v4004_v15 = vsub.f32 %v3986_v55, %v9535_v38  ;;  %v4045_v49 = vmul.f32 1.442695, %v4019_v58  ;;  %v3953_v22 = vadd.f32 %v9525_v0, %v3952_v29  ;;  %v3974_v0 = vld [vmem:[#allocation7 + $0x78] sm:$0xff] }
 0x724   :  { %v9589_v43 = vpop.eup %7545  ;;  %v4043_v51 = vmul.f32 1.442695, %v4018_v23  ;;  %v4005_v53 = vsub.f32 %v3987_v63, %v9535_v38  ;;  %v3903_v2 = vadd.f32 %v9540_v40, %v3902_v17  ;;  %v7006_v39 = vpop.f32.mrf.mxu1  ;;  %v4060_v11 = vsel %vm1112_vm4, %v9587_v21, 0.0 }
 0x725   :  { %v7001_v9 = vpop.f32.mrf.mxu0  ;;  %v4063_v32 = vsel %vm1112_vm4, %v9589_v43, 0.0  ;;  %v4020_v7 = vmax.f32 %v4004_v15, -60.0  ;;  %4061 = vadd.xlane.f32.xlu1 %v4060_v11  ;;  %v3989_v63 = vadd.f32 %v3973_v35, %v3953_v22 }
 0x726   :  { %7559 = vpow2.f32 %v4043_v51  ;;  %v4021_v54 = vmax.f32 %v4005_v53, -60.0  ;;  %v3988_v23 = vadd.f32 %v3972_v34, %v3903_v2  ;;  %4064 = vadd.xlane.f32.xlu0 %v4063_v32  ;;  %v9599_v55 = vpop.eup %7547  ;;  %v3955_v58 = vpop.f32.mrf.mxu1 }
 0x727   :  { %7561 = vpow2.f32 %v4045_v49  ;;  %v9601_v17 = vpop.eup %7549  ;;  %v4047_v29 = vmul.f32 1.442695, %v4020_v7  ;;  %v3956_v56 = vadd.f32 %v9540_v40, %v3955_v58  ;;  %v4007_v51 = vsub.f32 %v3989_v63, %v9535_v38 }
 0x728   :  { %v4049_v9 = vmul.f32 1.442695, %v4021_v54  ;;  %v4006_v39 = vsub.f32 %v3988_v23, %v9535_v38  ;;  %v7007_v15 = vpop.f32.mrf.mxu1  ;;  %v4069_v34 = vsel %vm1112_vm4, %v9601_v17, 0.0  ;;  %v4066_v53 = vsel %vm1112_vm4, %v9599_v55, 0.0 }
 0x729   :  { %7563 = vpow2.f32 %v4047_v29  ;;  %v3990_v35 = vadd.f32 %v3974_v0, %v3956_v56  ;;  %4067 = vadd.xlane.f32.xlu1 %v4066_v53  ;;  %v4023_v22 = vmax.f32 %v4007_v51, -60.0  ;;  %v4795_v51 = vmax.f32 %v9457_v27, 1e-24 }
 0x72a   :  { %v4022_v2 = vmax.f32 %v4006_v39, -60.0  ;;  %4070 = vadd.xlane.f32.xlu0 %v4069_v34  ;;  %7565 = vpow2.f32 %v4049_v9  ;;  %v4796_v34 = vmax.f32 %v9459_v16, 1e-24  ;;  %v4798_v27 = vmax.f32 %v9463_v44, 1e-24 }
 0x72b   :  { %v9610_v49 = vpop.eup %7551  ;;  %v4008_v11 = vsub.f32 %v3990_v35, %v9535_v38  ;;  %v4053_v54 = vmul.f32 1.442695, %v4023_v22  ;;  %v4797_v22 = vmax.f32 %v9461_v24, 1e-24  ;;  %v4943_v16 = vmax.f32 %v9455_v5, 1e-24 }
 0x72c   :  { %v9612_v32 = vpop.eup %7553  ;;  %v4051_v40 = vmul.f32 1.442695, %v4022_v2  ;;  %v4072_v7 = vsel %vm1112_vm4, %v9610_v49, 0.0  ;;  %v4942_v2 = vmax.f32 %v9453_v6, 1e-24 }
 0x72d   :  { %v4075_v23 = vsel %vm1112_vm4, %v9612_v32, 0.0  ;;  %v4024_v56 = vmax.f32 %v4008_v11, -60.0  ;;  %4073 = vadd.xlane.f32.xlu1 %v4072_v7  ;;  %v4944_v7 = vmax.f32 %v9467_v33, 1e-24 }
 0x72e   :  { %7567 = vpow2.f32 %v4051_v40  ;;  %4076 = vadd.xlane.f32.xlu0 %v4075_v23  ;;  %v9619_v63 = vpop.eup %7555  ;;  %v4799_v23 = vmax.f32 %v9482_v59, 1e-24  ;;  %v4947_v59 = vmax.f32 %v9479_v20, 1e-24  ;;  %v4804_v20 = vmax.f32 %v9520_v37, 1e-24 }
 0x72f   :  { %7569 = vpow2.f32 %v4053_v54  ;;  %v9621_v58 = vpop.eup %7557  ;;  %v4055_v0 = vmul.f32 1.442695, %v4024_v56  ;;  %v4078_v38 = vsel %vm1112_vm4, %v9619_v63, 0.0  ;;  %v4945_v54 = vmax.f32 %v9469_v46, 1e-24 }
 0x730   :  { %v4081_v29 = vsel %vm1112_vm4, %v9621_v58, 0.0  ;;  %v4800_v56 = vmax.f32 %v9488_v36, 1e-24  ;;  %v4951_v37 = vmax.f32 %v9512_v4, 1e-24 }
 0x731   :  { %7571 = vpow2.f32 %v4055_v0  ;;  %4079 = vadd.xlane.f32.xlu1 %v4078_v38  ;;  %v4946_v0 = vmax.f32 %v9475_v31, 1e-24  ;;  %v4801_v38 = vmax.f32 %v9490_v28, 1e-24  ;;  %v4948_v31 = vmax.f32 %v9498_v13, 1e-24 }
 0x732   :  { %4082 = vadd.xlane.f32.xlu0 %v4081_v29  ;;  %7573 = vrsqrt.f32 %v4795_v51  ;;  %v4802_v29 = vmax.f32 %v9496_v50, 1e-24  ;;  %v4803_v51 = vmax.f32 %v9514_v19, 1e-24  ;;  %v4949_v28 = vmax.f32 %v9504_v61, 1e-24 }
 0x733   :  { %v9627_v9 = vpop.eup %7559  ;;  %7575 = vrsqrt.f32 %v4796_v34  ;;  %v4805_v13 = vmax.f32 %v9528_v45, 1e-24  ;;  %v4806_v19 = vmax.f32 %v9533_v60, 1e-24  ;;  %v4953_v45 = vmax.f32 %v9547_v48, 1e-24 }
 0x734   :  { %v9629_v39 = vpop.eup %7561  ;;  %v4084_v15 = vsel %vm1112_vm4, %v9627_v9, 0.0  ;;  %7577 = vrsqrt.f32 %v4942_v2  ;;  %v9677_v2 = vstv %s9662_s0  ;;  %v4807_v60 = vmax.f32 %v9557_v47, 1e-24 }
 0x735   :  { %v4087_v53 = vsel %vm1112_vm4, %v9629_v39, 0.0  ;;  %4085 = vadd.xlane.f32.xlu1 %v4084_v15  ;;  %7579 = vrsqrt.f32 %v4797_v22 }
 0x736   :  { %4088 = vadd.xlane.f32.xlu0 %v4087_v53  ;;  %v9638_v35 = vpop.eup %7563  ;;  %7581 = vrsqrt.f32 %v4798_v27  ;;  %v4950_v53 = vmax.f32 %v9506_v26, 1e-24  ;;  %v4952_v26 = vmax.f32 %v9542_v42, 1e-24 }
 0x737   :  { %v9641_v40 = vpop.eup %7565  ;;  %v4090_v11 = vsel %vm1112_vm4, %v9638_v35, 0.0  ;;  %7583 = vrsqrt.f32 %v4943_v16 }
 0x738   :  { %v4093_v6 = vsel %vm1112_vm4, %v9641_v40, 0.0  ;;  %7585 = vrsqrt.f32 %v4944_v7 }
 0x739   :  { %4091 = vadd.xlane.f32.xlu1 %v4090_v11  ;;  %7587 = vrsqrt.f32 %v4945_v54 }
 0x73a   :  { %4094 = vadd.xlane.f32.xlu0 %v4093_v6  ;;  %7589 = vrsqrt.f32 %v4799_v23 }
 0x73b   :  { %v9650_v24 = vpop.eup %7567  ;;  %7591 = vrsqrt.f32 %v4800_v56  ;;  %v9690_v56 = vld [vmem:[#allocation2] sm:$0xff] }
 0x73c   :  { %v9653_v44 = vpop.eup %7569  ;;  %v4096_v5 = vsel %vm1112_vm4, %v9650_v24, 0.0  ;;  %7593 = vrsqrt.f32 %v4946_v0 }
 0x73d   :  { %v4099_v33 = vsel %vm1112_vm4, %v9653_v44, 0.0  ;;  %4097 = vadd.xlane.f32.xlu1 %v4096_v5  ;;  %7595 = vrsqrt.f32 %v4947_v59  ;;  %v4808_v5 = vmax.f32 %v9561_v57, 1e-24  ;;  %v9696_v59 = vld [vmem:[#allocation2 + $0x10] sm:$0xff]  ;;  %v4954_v57 = vmax.f32 %v9549_v10, 1e-24 }
 0x73e   :  { %4100 = vadd.xlane.f32.xlu0 %v4099_v33  ;;  %v9664_v46 = vpop.eup %7571  ;;  %7597 = vrsqrt.f32 %v4801_v38  ;;  %v9693_v33 = vld [vmem:[#allocation2 + $0x8] sm:$0xff]  ;;  %v9699_v38 = vld [vmem:[#allocation2 + $0x18] sm:$0xff]  ;;  %v4810_v10 = vmax.f32 %v9569_v25, 1e-24 }
 0x73f   :  { %v4102_v36 = vsel %vm1112_vm4, %v9664_v46, 0.0  ;;  %v7574_v15 = vpop.eup %7573  ;;  %7599 = vrsqrt.f32 %v4802_v29 }
 0x740   :  { %v7576_v34 = vpop.eup %7575  ;;  %7601 = vrsqrt.f32 %v4948_v31  ;;  %v4828_v61 = vmul.f32 %v7574_v15, %v9677_v2 }
 0x741   :  { %4103 = vadd.xlane.f32.xlu1 %v4102_v36  ;;  %v7578_v50 = vpop.eup %7577  ;;  %7603 = vrsqrt.f32 %v4803_v51  ;;  %v4829_v11 = vmul.f32 %v7576_v34, %v9677_v2 }
 0x742   :  { %v7580_v22 = vpop.eup %7579  ;;  %7605 = vrsqrt.f32 %v4804_v20  ;;  %v4972_v42 = vmul.f32 %v9690_v56, %v4828_v61  ;;  %v4998_v47 = vmul.f32 %v9696_v59, %v7578_v50  ;;  %v4955_v20 = vmax.f32 %v9554_v30, 1e-24 }
 0x743   :  { %v7582_v27 = vpop.eup %7581  ;;  %7607 = vrsqrt.f32 %v4949_v28  ;;  %v4830_v7 = vmul.f32 %v7580_v22, %v9677_v2  ;;  %v4973_v48 = vmul.f32 %v9693_v33, %v4829_v11 }
 0x744   :  { %v7584_v16 = vpop.eup %7583  ;;  %7609 = vrsqrt.f32 %v4950_v53  ;;  %v4831_v4 = vmul.f32 %v7582_v27, %v9677_v2  ;;  %v4809_v53 = vmax.f32 %v9565_v41, 1e-24  ;;  %v9710_v27 = vld [vmem:[#allocation2 + $0x20] sm:$0xff] }
 0x745   :  { %v7586_v6 = vpop.eup %7585  ;;  %7611 = vrsqrt.f32 %v4805_v13  ;;  %v4999_v36 = vmul.f32 %v9699_v38, %v7584_v16  ;;  %v4974_v31 = vmul.f32 %v9696_v59, %v4830_v7  ;;  %v4988_v50 = vpack.c.bf16 %v4973_v48, %v4972_v42 }
 0x746   :  { %v7588_v54 = vpop.eup %7587  ;;  %7613 = vrsqrt.f32 %v4806_v19  ;;  %v4975_v15 = vmul.f32 %v9699_v38, %v4831_v4  ;;  %v5000_v30 = vmul.f32 %v9710_v27, %v7586_v6  ;;  %v9722_v4 = vld [vmem:[#allocation2 + $0x30] sm:$0xff] }
 0x747   :  { %v7590_v23 = vpop.eup %7589  ;;  %7615 = vrsqrt.f32 %v4951_v37  ;;  %v5013_v19 = vpack.c.bf16 %v4999_v36, %v4998_v47  ;;  %v9713_v37 = vld [vmem:[#allocation2 + $0x28] sm:$0xff] }
 0x748   :  { %v7592_v0 = vpop.eup %7591  ;;  %7617 = vrsqrt.f32 %v4952_v26  ;;  %v4832_v28 = vmul.f32 %v7590_v23, %v9677_v2  ;;  %v5001_v61 = vmul.f32 %v9713_v37, %v7588_v54  ;;  %v4989_v16 = vpack.c.bf16 %v4975_v15, %v4974_v31 }
 0x749   :  { %v7594_v29 = vpop.eup %7593  ;;  %7619 = vrsqrt.f32 %v4953_v45  ;;  %v4833_v13 = vmul.f32 %v7592_v0, %v9677_v2 }
 0x74a   :  { %v7596_v51 = vpop.eup %7595  ;;  %7621 = vrsqrt.f32 %v4807_v60  ;;  %v4976_v25 = vmul.f32 %v9710_v27, %v4832_v28  ;;  %v5014_v60 = vpack.c.bf16 %v5001_v61, %v5000_v30  ;;  %v5002_v23 = vmul.f32 %v9722_v4, %v7594_v29 }
 0x74b   :  { %v7598_v34 = vpop.eup %7597  ;;  %7623 = vrsqrt.f32 %v4808_v5  ;;  %v4977_v45 = vmul.f32 %v9713_v37, %v4833_v13  ;;  %v9725_v5 = vld [vmem:[#allocation2 + $0x38] sm:$0xff] }
 0x74c   :  { %v7600_v22 = vpop.eup %7599  ;;  %7625 = vrsqrt.f32 %v4954_v57  ;;  %v4834_v6 = vmul.f32 %v7598_v34, %v9677_v2  ;;  %v5003_v42 = vmul.f32 %v9725_v5, %v7596_v51  ;;  %v9734_v34 = vld [vmem:[#allocation2 + $0x40] sm:$0xff] }
 0x74d   :  { %v7602_v11 = vpop.eup %7601  ;;  %7627 = vrsqrt.f32 %v4955_v20  ;;  %v4835_v7 = vmul.f32 %v7600_v22, %v9677_v2  ;;  %v4990_v31 = vpack.c.bf16 %v4977_v45, %v4976_v25 }
 0x74e   :  { %v7604_v41 = vpop.eup %7603  ;;  %7629 = vrsqrt.f32 %v4809_v53  ;;  %v4978_v20 = vmul.f32 %v9722_v4, %v4834_v6  ;;  %v5015_v28 = vpack.c.bf16 %v5003_v42, %v5002_v23  ;;  %v5004_v51 = vmul.f32 %v9734_v34, %v7602_v11  ;;  %v9737_v53 = vld [vmem:[#allocation2 + $0x48] sm:$0xff]  ;;  %v7775_v6 = vld [vmem:[#allocation2 + $0x58] sm:$0xff] }
 0x74f   :  { %v7606_v26 = vpop.eup %7605  ;;  %7631 = vrsqrt.f32 %v4810_v10  ;;  %v4836_v47 = vmul.f32 %v7604_v41, %v9677_v2  ;;  %v4979_v29 = vmul.f32 %v9725_v5, %v4835_v7 }
 0x750   :  { %v7608_v54 = vpop.eup %7607  ;;  %v4837_v36 = vmul.f32 %v7606_v26, %v9677_v2  ;;  %v7774_v26 = vld [vmem:[#allocation2 + $0x50] sm:$0xff] }
 0x751   :  { %v7610_v48 = vpop.eup %7609  ;;  %v4980_v10 = vmul.f32 %v9734_v34, %v4836_v47  ;;  %v4991_v11 = vpack.c.bf16 %v4979_v29, %v4978_v20 }
 0x752   :  { %5024 = vrot.lane.b32.xlu1 %v4988_v50, %s7870_s3  ;;  %v7612_v0 = vpop.eup %7611  ;;  %v5005_v50 = vmul.f32 %v9737_v53, %v7608_v54  ;;  %v5006_v45 = vmul.f32 %v7774_v26, %v7610_v48 }
 0x753   :  { %v7614_v57 = vpop.eup %7613  ;;  %v4838_v30 = vmul.f32 %v7612_v0, %v9677_v2  ;;  %v9748_v0 = vld [vmem:[#allocation2 + $0x60] sm:$0xff] }
 0x754   :  { %5080 = vrot.lane.b32.xlu0 %v5013_v19, %s7869_s12  ;;  %v7616_v15 = vpop.eup %7615  ;;  %v4981_v19 = vmul.f32 %v9737_v53, %v4837_v36  ;;  %v4839_v61 = vmul.f32 %v7614_v57, %v9677_v2  ;;  %v5016_v25 = vpack.c.bf16 %v5005_v50, %v5004_v51  ;;  %v9751_v57 = vld [vmem:[#allocation2 + $0x68] sm:$0xff] }
 0x755   :  { %v7618_v13 = vpop.eup %7617  ;;  %v5007_v7 = vmul.f32 %v7775_v6, %v7616_v15  ;;  %v4982_v23 = vmul.f32 %v7774_v26, %v4838_v30  ;;  %v9763_v30 = vld [vmem:[#allocation2 + $0x78] sm:$0xff] }
 0x756   :  { %5077 = vrot.lane.b32.xlu1 %v4989_v16, %s7870_s3  ;;  %v7620_v22 = vpop.eup %7619  ;;  %v4983_v42 = vmul.f32 %v7775_v6, %v4839_v61  ;;  %v5008_v36 = vmul.f32 %v9748_v0, %v7618_v13 }
 0x757   :  { %v7622_v41 = vpop.eup %7621  ;;  %v5017_v15 = vpack.c.bf16 %v5007_v7, %v5006_v45 }
 0x758   :  { %5133 = vrot.lane.b32.xlu0 %v5014_v60, %s7869_s12  ;;  %v7624_v16 = vpop.eup %7623  ;;  %v4992_v60 = vpack.c.bf16 %v4981_v19, %v4980_v10  ;;  %v4840_v48 = vmul.f32 %v7622_v41, %v9677_v2  ;;  %v4993_v51 = vpack.c.bf16 %v4983_v42, %v4982_v23  ;;  %v9760_v19 = vld [vmem:[#allocation2 + $0x70] sm:$0xff]  ;;  %v5633_v23 = vpack.c.bf16 %v9693_v33, %v9690_v56 }
 0x759   :  { %v7626_v54 = vpop.eup %7625  ;;  %v4841_v20 = vmul.f32 %v7624_v16, %v9677_v2  ;;  %v5637_v42 = vpack.c.bf16 %v9737_v53, %v9734_v34 }
 0x75a   :  { %5130 = vrot.lane.b32.xlu1 %v4990_v31, %s7870_s3  ;;  %v7628_v47 = vpop.eup %7627  ;;  %v5009_v31 = vmul.f32 %v9751_v57, %v7620_v22  ;;  %v4984_v10 = vmul.f32 %v9748_v0, %v4840_v48  ;;  %v5010_v22 = vmul.f32 %v9760_v19, %v7626_v54  ;;  %v5634_v54 = vpack.c.bf16 %v9699_v38, %v9696_v59 }
 0x75b   :  { %v7630_v29 = vpop.eup %7629  ;;  %v4985_v13 = vmul.f32 %v9751_v57, %v4841_v20  ;;  %v5011_v61 = vmul.f32 %v9763_v30, %v7628_v47  ;;  %v5636_v59 = vpack.c.bf16 %v9725_v5, %v9722_v4  ;;  %v5638_v38 = vpack.c.bf16 %v7775_v6, %v7774_v26 }
 0x75c   :  { %5186 = vrot.lane.b32.xlu0 %v5015_v28, %s7869_s12  ;;  %v7632_v28 = vpop.eup %7631  ;;  %v5018_v50 = vpack.c.bf16 %v5009_v31, %v5008_v36  ;;  %v4842_v41 = vmul.f32 %v7630_v29, %v9677_v2 }
 0x75d   :  { %v4994_v16 = vpack.c.bf16 %v4985_v13, %v4984_v10 }
 0x75e   :  { %5183 = vrot.lane.b32.xlu1 %v4991_v11, %s7870_s3  ;;  %v4843_v11 = vmul.f32 %v7632_v28, %v9677_v2  ;;  %v4986_v45 = vmul.f32 %v9760_v19, %v4842_v41  ;;  %v5635_v2 = vpack.c.bf16 %v9713_v37, %v9710_v27  ;;  %v4299_v27 = vpop.permute.xlu0 %4298  ;;  %v4251_v37 = vpop.permute.xlu1 %4250 }
 0x760   :  { %5239 = vrot.lane.b32.xlu0 %v5016_v25, %s7869_s12  ;;  %v5019_v25 = vpack.c.bf16 %v5011_v61, %v5010_v22  ;;  %v4987_v7 = vmul.f32 %v9763_v30, %v4843_v11 }
 0x762   :  { %5236 = vrot.lane.b32.xlu1 %v4992_v60, %s7870_s3  ;;  %v4995_v60 = vpack.c.bf16 %v4987_v7, %v4986_v45  ;;  %v9791_v56 = vpop.permute.xlu0 %4394  ;;  %v9793_v33 = vpop.permute.xlu1 %4346 }
 0x764   :  { %5292 = vrot.lane.b32.xlu0 %v5017_v15, %s7869_s12 }
 0x766   :  { %5289 = vrot.lane.b32.xlu1 %v4993_v51, %s7870_s3  ;;  %v9795_v47 = vpop.permute.xlu0 %4490  ;;  %v9797_v36 = vpop.permute.xlu1 %4442 }
 0x768   :  { %5345 = vrot.lane.b32.xlu0 %v5018_v50, %s7869_s12 }
 0x76a   :  { %5342 = vrot.lane.b32.xlu1 %v4994_v16, %s7870_s3  ;;  %v9799_v34 = vpop.permute.xlu1 %5027 }
 0x76c   :  { %5398 = vrot.lane.b32.xlu0 %v5019_v25, %s7869_s12 }
 0x76e   :  { %5690 = vrot.lane.b32.xlu1 %v5634_v54, %s7872_s2 }
 0x770   :  { %5395 = vrot.lane.b32.xlu0 %v4995_v60, %s7870_s3 }
 0x772   :  { %5738 = vrot.lane.b32.xlu1 %v5635_v2, %s7872_s2 }
 0x774   :  { %5642 = vrot.lane.b32.xlu0 %v5633_v23, %s7872_s2 }
 0x776   :  { %5834 = vrot.lane.b32.xlu1 %v5637_v42, %s7872_s2 }
 0x778   :  { %5786 = vrot.lane.b32.xlu0 %v5636_v59, %s7872_s2 }
 0x77c   :  { %5882 = vrot.lane.b32.xlu0 %v5638_v38, %s7872_s2 }
 0x7aa   :  { %v4059_v4 = vpop.xlane.xlu0 %4058 }
 0x7ab   :  { %7633 = vrcp.f32 %v4059_v4 }
 0x7ae   :  { %v4062_v53 = vpop.xlane.xlu1 %4061 }
 0x7af   :  { %v4065_v5 = vpop.xlane.xlu0 %4064  ;;  %7635 = vrcp.f32 %v4062_v53 }
 0x7b0   :  { %7637 = vrcp.f32 %v4065_v5 }
 0x7b2   :  { %v4068_v6 = vpop.xlane.xlu1 %4067 }
 0x7b3   :  { %v4071_v26 = vpop.xlane.xlu0 %4070  ;;  %7639 = vrcp.f32 %v4068_v6 }
 0x7b4   :  { %7641 = vrcp.f32 %v4071_v26 }
 0x7b6   :  { %v4074_v48 = vpop.xlane.xlu1 %4073 }
 0x7b7   :  { %v4077_v31 = vpop.xlane.xlu0 %4076  ;;  %7643 = vrcp.f32 %v4074_v48 }
 0x7b8   :  { %7645 = vrcp.f32 %v4077_v31  ;;  %v7634_v15 = vpop.eup %7633 }
 0x7b9   :  { %v4121_v10 = vmul.f32 %v7634_v15, %v9579_v3 }
 0x7ba   :  { %v4080_v29 = vpop.xlane.xlu1 %4079 }
 0x7bb   :  { %v4083_v20 = vpop.xlane.xlu0 %4082  ;;  %7647 = vrcp.f32 %v4080_v29 }
 0x7bc   :  { %v7636_v28 = vpop.eup %7635  ;;  %7649 = vrcp.f32 %v4083_v20 }
 0x7bd   :  { %v4122_v13 = vmul.f32 %v7636_v28, %v9587_v21  ;;  %v7638_v22 = vpop.eup %7637 }
 0x7be   :  { %v4086_v50 = vpop.xlane.xlu1 %4085  ;;  %v4123_v25 = vmul.f32 %v7638_v22, %v9589_v43 }
 0x7bf   :  { %v4089_v51 = vpop.xlane.xlu0 %4088  ;;  %7651 = vrcp.f32 %v4086_v50  ;;  %v4137_v61 = vpack.c.bf16 %v4122_v13, %v4121_v10  ;;  %v5033_v50 = vsel %vm322_vm2, %v9799_v34, 0 }
 0x7c0   :  { %v7640_v41 = vpop.eup %7639  ;;  %7653 = vrcp.f32 %v4089_v51 }
 0x7c1   :  { %7011 = vmatmul.mubr.msk.bf16.vlgmr.msra.gmra.mxu0 %vm1112_vm4, %v4137_v61  ;;  %v4124_v45 = vmul.f32 %v7640_v41, %v9599_v55  ;;  %v7642_v7 = vpop.eup %7641 }
 0x7c2   :  { %v4092_v16 = vpop.xlane.xlu1 %4091  ;;  %7021 = vmatpush3.bf16.msra.mxu0 %v4251_v37  ;;  %7022 = vmatprep.mubr.msk.bf16.mxu0 %vm7863_vm3, %v10345_v52  ;;  %v4125_v2 = vmul.f32 %v7642_v7, %v9601_v17 }
 0x7c3   :  { %v4095_v11 = vpop.xlane.xlu0 %4094  ;;  %7655 = vrcp.f32 %v4092_v16  ;;  %v4138_v3 = vpack.c.bf16 %v4124_v45, %v4123_v25  ;;  %7032 = vmatprep.subr.bf16.mxu0 %v10345_v52 }
 0x7c4   :  { %v7644_v21 = vpop.eup %7643  ;;  %7657 = vrcp.f32 %v4095_v11 }
 0x7c5   :  { %7017 = vmatmul.mubr.msk.bf16.vlgmr.msra.gmra.mxu1 %vm1112_vm4, %v4138_v3  ;;  %v4126_v43 = vmul.f32 %v7644_v21, %v9610_v49  ;;  %v7646_v55 = vpop.eup %7645 }
 0x7c6   :  { %v4098_v60 = vpop.xlane.xlu1 %4097  ;;  %7027 = vmatpush3.bf16.msra.mxu1 %v4299_v27  ;;  %7028 = vmatprep.mubr.msk.bf16.mxu1 %vm7863_vm3, %v10345_v52  ;;  %v4127_v37 = vmul.f32 %v7646_v55, %v9612_v32 }
 0x7c7   :  { %v4101_v54 = vpop.xlane.xlu0 %4100  ;;  %7659 = vrcp.f32 %v4098_v60  ;;  %v4139_v23 = vpack.c.bf16 %v4126_v43, %v4125_v2  ;;  %7038 = vmatprep.subr.bf16.mxu1 %v10345_v52 }
 0x7c8   :  { %v7648_v42 = vpop.eup %7647  ;;  %7661 = vrcp.f32 %v4101_v54 }
 0x7c9   :  { %7023 = vmatmul.mubr.msk.bf16.vlgmr.msra.gmra.mxu0 %vm1112_vm4, %v4139_v23  ;;  %v4128_v17 = vmul.f32 %v7648_v42, %v9619_v63  ;;  %v7650_v49 = vpop.eup %7649 }
 0x7ca   :  { %v4104_v38 = vpop.xlane.xlu1 %4103  ;;  %7033 = vmatpush3.bf16.msra.mxu0 %v9793_v33  ;;  %7034 = vmatprep.mubr.msk.bf16.mxu0 %vm7863_vm3, %v10345_v52  ;;  %v4129_v5 = vmul.f32 %v7650_v49, %v9621_v58 }
 0x7cb   :  { %v5081_v59 = vpop.permute.xlu0 %5080  ;;  %7663 = vrcp.f32 %v4104_v38  ;;  %v4140_v27 = vpack.c.bf16 %v4128_v17, %v4127_v37  ;;  %7044 = vmatprep.subr.bf16.mxu0 %v10345_v52 }
 0x7cc   :  { %v7652_v4 = vpop.eup %7651 }
 0x7cd   :  { %7029 = vmatmul.mubr.msk.bf16.vlgmr.msra.gmra.mxu1 %vm1112_vm4, %v4140_v27  ;;  %v4130_v53 = vmul.f32 %v7652_v4, %v9627_v9  ;;  %v7654_v32 = vpop.eup %7653 }
 0x7ce   :  { %7039 = vmatpush3.bf16.msra.mxu1 %v9791_v56  ;;  %7040 = vmatprep.mubr.msk.bf16.mxu1 %vm7863_vm3, %v10345_v52  ;;  %v4131_v6 = vmul.f32 %v7654_v32, %v9629_v39  ;;  %v5025_v9 = vpop.permute.xlu1 %5024 }
 0x7cf   :  { %v5134_v63 = vpop.permute.xlu0 %5133  ;;  %v4141_v33 = vpack.c.bf16 %v4130_v53, %v4129_v5  ;;  %7050 = vmatprep.subr.bf16.mxu1 %v10345_v52 }
 0x7d0   :  { %v7656_v26 = vpop.eup %7655 }
 0x7d1   :  { %7035 = vmatmul.mubr.msk.bf16.vlgmr.msra.gmra.mxu0 %vm1112_vm4, %v4141_v33  ;;  %v4132_v31 = vmul.f32 %v7656_v26, %v9638_v35  ;;  %v7658_v58 = vpop.eup %7657 }
 0x7d2   :  { %7045 = vmatpush3.bf16.msra.mxu0 %v9797_v36  ;;  %7046 = vmatprep.mubr.msk.bf16.mxu0 %vm7863_vm3, %v10345_v52  ;;  %v4133_v15 = vmul.f32 %v7658_v58, %v9641_v40  ;;  %v5078_v10 = vpop.permute.xlu1 %5077 }
 0x7d3   :  { %v4142_v56 = vpack.c.bf16 %v4132_v31, %v4131_v6  ;;  %7056 = vmatprep.subr.bf16.mxu0 %v10345_v52  ;;  %v5187_v29 = vpop.permute.xlu0 %5186 }
 0x7d4   :  { %v7660_v48 = vpop.eup %7659  ;;  %v5192_v13 = vsel %vm322_vm2, %v5187_v29, 0 }
 0x7d5   :  { %v7662_v20 = vpop.eup %7661  ;;  %7041 = vmatmul.mubr.msk.bf16.vlgmr.msra.gmra.mxu1 %vm1112_vm4, %v4142_v56  ;;  %v4134_v39 = vmul.f32 %v7660_v48, %v9650_v24 }
 0x7d6   :  { %7051 = vmatpush3.bf16.msra.mxu1 %v9795_v47  ;;  %7052 = vmatprep.mubr.msk.bf16.mxu1 %vm7863_vm3, %v10345_v52  ;;  %v4135_v28 = vmul.f32 %v7662_v20, %v9653_v44  ;;  %v5086_v47 = vsel %vm322_vm2, %v5081_v59, 0  ;;  %v5131_v44 = vpop.permute.xlu1 %5130 }
 0x7d7   :  { %v4143_v36 = vpack.c.bf16 %v4134_v39, %v4133_v15  ;;  %7062 = vmatprep.subr.bf16.mxu1 %v10345_v52  ;;  %v5240_v24 = vpop.permute.xlu0 %5239 }
 0x7d8   :  { %v7664_v35 = vpop.eup %7663  ;;  %v5245_v41 = vsel %vm322_vm2, %v5240_v24, 0  ;;  %v9933_v24 = vstv %s5479_s5 }
 0x7d9   :  { %v4136_v51 = vmul.f32 %v7664_v35, %v9664_v46  ;;  %7047 = vmatmul.mubr.msk.bf16.vlgmr.msra.gmra.mxu0 %vm1112_vm4, %v4143_v36  ;;  %v5139_v46 = vsel %vm322_vm2, %v5134_v63, 0 }
 0x7da   :  { %7057 = vmatpush3.bf16.xpose.msra.mxu0 %v5033_v50  ;;  %7058 = vmatprep.mubr.msk.bf16.mxu0 %vm7863_vm3, %v10345_v52  ;;  %v5184_v22 = vpop.permute.xlu1 %5183 }
 0x7db   :  { %v4144_v40 = vpack.c.bf16 %v4136_v51, %v4135_v28  ;;  %7068 = vmatprep.subr.bf16.mxu0 %v10345_v52  ;;  %v5293_v34 = vpop.permute.xlu0 %5292  ;;  %v9927_v51 = vld [vmem:[%s10323_s4 + $0x30] sm:$0xff] }
 0x7dc   :  { %v5298_v16 = vsel %vm322_vm2, %v5293_v34, 0  ;;  %v7780_v34 = vld [vmem:[#allocation7] sm:$0xff] }
 0x7dd   :  { %7053 = vmatmul.mubr.msk.bf16.vlgmr.msra.gmra.mxu1 %vm1112_vm4, %v4144_v40 }
 0x7de   :  { %7063 = vmatpush3.bf16.xpose.msra.mxu1 %v5086_v47  ;;  %7064 = vmatprep.mubr.msk.bf16.mxu1 %vm7863_vm3, %v10345_v52  ;;  %v5237_v11 = vpop.permute.xlu1 %5236 }
 0x7df   :  { %7074 = vmatprep.subr.bf16.mxu1 %v10345_v52  ;;  %v5346_v61 = vpop.permute.xlu0 %5345 }
 0x7e0   :  { %v5351_v45 = vsel %vm322_vm2, %v5346_v61, 0 }
 0x7e1   :  { %7059 = vmatmul.mubr.msk.bf16.vlgmr.msra.gmra.mxu0 %vm322_vm2, %v5025_v9 }
 0x7e2   :  { %7069 = vmatpush3.bf16.xpose.msra.mxu0 %v5139_v46  ;;  %7070 = vmatprep.mubr.msk.bf16.mxu0 %vm7863_vm3, %v10345_v52  ;;  %v5290_v7 = vpop.permute.xlu1 %5289  ;;  %v9938_v46 = vld [vmem:[%s10323_s4 + $0x38] sm:$0xff]  ;;  %s7873_s4 = smov 16  }
 0x7e3   :  { %7080 = vmatprep.subr.bf16.mxu0 %v10345_v52  ;;  %v5399_v25 = vpop.permute.xlu0 %5398 }
 0x7e4   :  { %v5404_v21 = vsel %vm322_vm2, %v5399_v25, 0 }
 0x7e5   :  { %7065 = vmatmul.mubr.msk.bf16.vlgmr.msra.gmra.mxu1 %vm322_vm2, %v5078_v10 }
 0x7e6   :  { %7075 = vmatpush3.bf16.xpose.msra.mxu1 %v5192_v13  ;;  %7076 = vmatprep.mubr.msk.bf16.mxu1 %vm7863_vm3, %v10345_v52  ;;  %v5343_v54 = vpop.permute.xlu1 %5342 }
 0x7e7   :  { %7086 = vmatprep.subr.bf16.mxu1 %v10345_v52  ;;  %v5396_v3 = vpop.permute.xlu0 %5395 }
 0x7e9   :  { %7071 = vmatmul.mubr.msk.bf16.vlgmr.msra.gmra.mxu0 %vm322_vm2, %v5131_v44 }
 0x7ea   :  { %7081 = vmatpush3.bf16.xpose.msra.mxu0 %v5245_v41  ;;  %7082 = vmatprep.mubr.msk.bf16.mxu0 %vm7863_vm3, %v10345_v52  ;;  %v5691_v2 = vpop.permute.xlu1 %5690 }
 0x7eb   :  { %7092 = vmatprep.subr.bf16.mxu0 %v10345_v52  ;;  %v5643_v60 = vpop.permute.xlu0 %5642 }
 0x7ed   :  { %7077 = vmatmul.mubr.msk.bf16.vlgmr.msra.gmra.mxu1 %vm322_vm2, %v5184_v22 }
 0x7ee   :  { %7087 = vmatpush3.bf16.xpose.msra.mxu1 %v5298_v16  ;;  %7088 = vmatprep.mubr.msk.bf16.mxu1 %vm7863_vm3, %v10345_v52 }
 0x7ef   :  { %7098 = vmatprep.subr.bf16.mxu1 %v10345_v52 }
 0x7f1   :  { %7083 = vmatmul.mubr.msk.bf16.vlgmr.msra.gmra.mxu0 %vm322_vm2, %v5237_v11 }
 0x7f2   :  { %7093 = vmatpush3.bf16.xpose.msra.mxu0 %v5351_v45  ;;  %7094 = vmatprep.mubr.msk.bf16.mxu0 %vm7863_vm3, %v10345_v52 }
 0x7f3   :  { %7104 = vmatprep.subr.bf16.mxu0 %v10345_v52 }
 0x7f5   :  { %7089 = vmatmul.mubr.msk.bf16.vlgmr.msra.gmra.mxu1 %vm322_vm2, %v5290_v7 }
 0x7f6   :  { %7099 = vmatpush3.bf16.xpose.msra.mxu1 %v5404_v21  ;;  %7100 = vmatprep.mubr.msk.bf16.mxu1 %vm7863_vm3, %v10345_v52 }
 0x7f7   :  { %7110 = vmatprep.subr.bf16.mxu1 %v10345_v52 }
 0x7f9   :  { %7095 = vmatmul.mubr.msk.bf16.vlgmr.msra.gmra.mxu0 %vm322_vm2, %v5343_v54  ;;  %v7782_v54 = vld [vmem:[#allocation7 + $0x10] sm:$0xff] }
 0x7fa   :  { %7105 = vmatpush3.bf16.msra.mxu0 %v5643_v60  ;;  %7106 = vmatprep.mubr.msk.bf16.mxu0 %vm7863_vm3, %v10345_v52 }
 0x7fb   :  { %7116 = vmatprep.subr.bf16.mxu0 %v10345_v52 }
 0x7fd   :  { %7101 = vmatmul.mubr.msk.bf16.vlgmr.msra.gmra.mxu1 %vm322_vm2, %v5396_v3  ;;  %v7781_v3 = vld [vmem:[#allocation7 + $0x8] sm:$0xff] }
 0x7fe   :  { %7111 = vmatpush3.bf16.msra.mxu1 %v5691_v2  ;;  %7112 = vmatprep.mubr.msk.bf16.mxu1 %vm7863_vm3, %v10345_v52 }
 0x7ff   :  { %7122 = vmatprep.subr.bf16.mxu1 %v10345_v52 }
 0x881   :  { %v9894_v43 = vpop.f32.mrf.mxu0 }
 0x883   :  { %v7012_v55 = vpop.f32.mrf.mxu0 }
 0x885   :  { %v9896_v23 = vpop.f32.mrf.mxu0  ;;  %v9898_v42 = vpop.f32.mrf.mxu1 }
 0x887   :  { %v7013_v59 = vpop.f32.mrf.mxu0  ;;  %v7018_v38 = vpop.f32.mrf.mxu1 }
 0x889   :  { %v9900_v37 = vpop.f32.mrf.mxu1  ;;  %v9902_v17 = vpop.f32.mrf.mxu0 }
 0x88b   :  { %v7019_v49 = vpop.f32.mrf.mxu1  ;;  %v7024_v27 = vpop.f32.mrf.mxu0 }
 0x88d   :  { %v9904_v4 = vpop.f32.mrf.mxu0  ;;  %v9906_v5 = vpop.f32.mrf.mxu1 }
 0x88f   :  { %v7025_v53 = vpop.f32.mrf.mxu0  ;;  %v7030_v32 = vpop.f32.mrf.mxu1 }
 0x891   :  { %v9908_v63 = vpop.f32.mrf.mxu1  ;;  %v9910_v33 = vpop.f32.mrf.mxu0 }
 0x893   :  { %v7031_v26 = vpop.f32.mrf.mxu1  ;;  %v7036_v6 = vpop.f32.mrf.mxu0 }
 0x895   :  { %v9912_v31 = vpop.f32.mrf.mxu0  ;;  %v9914_v58 = vpop.f32.mrf.mxu1 }
 0x897   :  { %v7037_v9 = vpop.f32.mrf.mxu0  ;;  %v7042_v56 = vpop.f32.mrf.mxu1 }
 0x898   :  { %v7783_v56 = vld [vmem:[#allocation7 + $0x18] sm:$0xff] }
 0x899   :  { %v9916_v48 = vpop.f32.mrf.mxu1  ;;  %v9918_v20 = vpop.f32.mrf.mxu0 }
 0x89b   :  { %v7043_v29 = vpop.f32.mrf.mxu1  ;;  %v7048_v15 = vpop.f32.mrf.mxu0 }
 0x89c   :  { %v7784_v15 = vld [vmem:[#allocation7 + $0x20] sm:$0xff] }
 0x89d   :  { %v9920_v39 = vpop.f32.mrf.mxu0  ;;  %v9922_v35 = vpop.f32.mrf.mxu1 }
 0x89f   :  { %v7049_v36 = vpop.f32.mrf.mxu0  ;;  %v7054_v28 = vpop.f32.mrf.mxu1 }
 0x8a1   :  { %v9930_v50 = vpop.f32.mrf.mxu1  ;;  %v5069_v10 = vpop.f32.mrf.mxu0 }
 0x8a2   :  { %v5070_v40 = vadd.f32 %v9927_v51, %v5069_v10 }
 0x8a3   :  { %v7055_v47 = vpop.f32.mrf.mxu1  ;;  %v7060_v44 = vpop.f32.mrf.mxu0 }
 0x8a4   :  { %v5463_v13 = vadd.f32 %v7780_v34, %v5070_v40 }
 0x8a5   :  { %v5072_v22 = vpop.f32.mrf.mxu0  ;;  %v5122_v61 = vpop.f32.mrf.mxu1 }
 0x8a6   :  { %v5481_v41 = vsub.f32 %v5463_v13, %v9933_v24  ;;  %v5073_v11 = vadd.f32 %v9938_v46, %v5072_v22  ;;  %v5123_v16 = vadd.f32 %v9927_v51, %v5122_v61 }
 0x8a7   :  { %v7061_v25 = vpop.f32.mrf.mxu0  ;;  %v7066_v45 = vpop.f32.mrf.mxu1 }
 0x8a8   :  { %v5497_v7 = vmax.f32 %v5481_v41, -60.0  ;;  %v5464_v21 = vadd.f32 %v7781_v3, %v5073_v11  ;;  %v5465_v60 = vadd.f32 %v7782_v54, %v5123_v16  ;;  %v7785_v16 = vld [vmem:[#allocation7 + $0x28] sm:$0xff] }
 0x8a9   :  { %v5125_v2 = vpop.f32.mrf.mxu1  ;;  %v5175_v55 = vpop.f32.mrf.mxu0 }
 0x8aa   :  { %v5513_v59 = vmul.f32 1.442695, %v5497_v7  ;;  %v5482_v38 = vsub.f32 %v5464_v21, %v9933_v24  ;;  %v5483_v49 = vsub.f32 %v5465_v60, %v9933_v24  ;;  %v5126_v27 = vadd.f32 %v9938_v46, %v5125_v2  ;;  %v7786_v7 = vld [vmem:[#allocation7 + $0x30] sm:$0xff] }
 0x8ab   :  { %v5176_v53 = vadd.f32 %v9927_v51, %v5175_v55  ;;  %v7067_v32 = vpop.f32.mrf.mxu1  ;;  %v7072_v26 = vpop.f32.mrf.mxu0 }
 0x8ac   :  { %7665 = vpow2.f32 %v5513_v59  ;;  %v5498_v6 = vmax.f32 %v5482_v38, -60.0  ;;  %v5499_v9 = vmax.f32 %v5483_v49, -60.0  ;;  %v5466_v29 = vadd.f32 %v7783_v56, %v5126_v27  ;;  %v7787_v26 = vld [vmem:[#allocation7 + $0x38] sm:$0xff] }
 0x8ad   :  { %v5467_v36 = vadd.f32 %v7784_v15, %v5176_v53  ;;  %v5178_v28 = vpop.f32.mrf.mxu0  ;;  %v5228_v10 = vpop.f32.mrf.mxu1 }
 0x8ae   :  { %v5515_v40 = vmul.f32 1.442695, %v5498_v6  ;;  %v5484_v47 = vsub.f32 %v5466_v29, %v9933_v24  ;;  %v5179_v44 = vadd.f32 %v9938_v46, %v5178_v28  ;;  %v5517_v34 = vmul.f32 1.442695, %v5499_v9  ;;  %v7788_v9 = vld [vmem:[#allocation7 + $0x40] sm:$0xff] }
 0x8af   :  { %v5485_v13 = vsub.f32 %v5467_v36, %v9933_v24  ;;  %v5229_v22 = vadd.f32 %v9927_v51, %v5228_v10  ;;  %v7073_v61 = vpop.f32.mrf.mxu0  ;;  %v7078_v41 = vpop.f32.mrf.mxu1 }
 0x8b0   :  { %7667 = vpow2.f32 %v5515_v40  ;;  %v5500_v11 = vmax.f32 %v5484_v47, -60.0  ;;  %v5468_v25 = vadd.f32 %v7785_v16, %v5179_v44 }
 0x8b1   :  { %v5501_v45 = vmax.f32 %v5485_v13, -60.0  ;;  %v5469_v3 = vadd.f32 %v7786_v7, %v5229_v22  ;;  %v5231_v21 = vpop.f32.mrf.mxu1  ;;  %v5281_v54 = vpop.f32.mrf.mxu0  ;;  %7669 = vpow2.f32 %v5517_v34 }
 0x8b2   :  { %v5519_v60 = vmul.f32 1.442695, %v5500_v11  ;;  %v5486_v2 = vsub.f32 %v5468_v25, %v9933_v24  ;;  %v5232_v55 = vadd.f32 %v9938_v46, %v5231_v21  ;;  %v5282_v59 = vadd.f32 %v9927_v51, %v5281_v54  ;;  %v7789_v11 = vld [vmem:[#allocation7 + $0x48] sm:$0xff] }
 0x8b3   :  { %v5521_v38 = vmul.f32 1.442695, %v5501_v45  ;;  %v5487_v49 = vsub.f32 %v5469_v3, %v9933_v24  ;;  %v7079_v27 = vpop.f32.mrf.mxu1  ;;  %v7084_v53 = vpop.f32.mrf.mxu0  ;;  %v7790_v45 = vld [vmem:[#allocation7 + $0x50] sm:$0xff] }
 0x8b4   :  { %7671 = vpow2.f32 %v5519_v60  ;;  %v5502_v32 = vmax.f32 %v5486_v2, -60.0  ;;  %v5470_v6 = vadd.f32 %v7787_v26, %v5232_v55  ;;  %v5471_v56 = vadd.f32 %v7788_v9, %v5282_v59  ;;  %v7791_v26 = vld [vmem:[#allocation7 + $0x58] sm:$0xff] }
 0x8b5   :  { %v5503_v29 = vmax.f32 %v5487_v49, -60.0  ;;  %v5284_v15 = vpop.f32.mrf.mxu0  ;;  %v5334_v36 = vpop.f32.mrf.mxu1  ;;  %7673 = vpow2.f32 %v5521_v38 }
 0x8b6   :  { %v5523_v28 = vmul.f32 1.442695, %v5502_v32  ;;  %v5488_v10 = vsub.f32 %v5470_v6, %v9933_v24  ;;  %v5489_v40 = vsub.f32 %v5471_v56, %v9933_v24  ;;  %v5285_v47 = vadd.f32 %v9938_v46, %v5284_v15 }
 0x8b7   :  { %v5525_v44 = vmul.f32 1.442695, %v5503_v29  ;;  %v5335_v34 = vadd.f32 %v9927_v51, %v5334_v36  ;;  %v7085_v13 = vpop.f32.mrf.mxu0  ;;  %v7090_v22 = vpop.f32.mrf.mxu1  ;;  %v7792_v29 = vld [vmem:[#allocation7 + $0x60] sm:$0xff] }
 0x8b8   :  { %7675 = vpow2.f32 %v5523_v28  ;;  %v5504_v61 = vmax.f32 %v5488_v10, -60.0  ;;  %v5505_v41 = vmax.f32 %v5489_v40, -60.0  ;;  %v5472_v16 = vadd.f32 %v7789_v11, %v5285_v47 }
 0x8b9   :  { %v9959_v25 = vpop.eup %7665  ;;  %v5473_v7 = vadd.f32 %v7790_v45, %v5335_v34  ;;  %v5337_v3 = vpop.f32.mrf.mxu1  ;;  %7677 = vpow2.f32 %v5525_v44  ;;  %v7793_v45 = vld [vmem:[#allocation7 + $0x68] sm:$0xff] }
 0x8ba   :  { %v5387_v21 = vpop.f32.mrf.mxu0  ;;  %v5527_v54 = vmul.f32 1.442695, %v5504_v61  ;;  %v5490_v60 = vsub.f32 %v5472_v16, %v9933_v24  ;;  %v5338_v2 = vadd.f32 %v9938_v46, %v5337_v3  ;;  %v5529_v55 = vmul.f32 1.442695, %v5505_v41  ;;  %v7794_v3 = vld [vmem:[#allocation7 + $0x70] sm:$0xff] }
 0x8bb   :  { %v5491_v59 = vsub.f32 %v5473_v7, %v9933_v24  ;;  %v5388_v38 = vadd.f32 %v9927_v51, %v5387_v21  ;;  %v5545_v49 = vsel %vm1112_vm4, %v9959_v25, 0.0  ;;  %v7091_v27 = vpop.f32.mrf.mxu1 }
 0x8bc   :  { %v7096_v53 = vpop.f32.mrf.mxu0  ;;  %7679 = vpow2.f32 %v5527_v54  ;;  %v5506_v32 = vmax.f32 %v5490_v60, -60.0  ;;  %v5474_v6 = vadd.f32 %v7791_v26, %v5338_v2  ;;  %5546 = vadd.xlane.f32.xlu1 %v5545_v49 }
 0x8bd   :  { %v9967_v9 = vpop.eup %7667  ;;  %v5507_v56 = vmax.f32 %v5491_v59, -60.0  ;;  %v5475_v15 = vadd.f32 %v7792_v29, %v5388_v38  ;;  %v5440_v28 = vpop.f32.mrf.mxu1  ;;  %7681 = vpow2.f32 %v5529_v55  ;;  %v7795_v29 = vld [vmem:[#allocation7 + $0x78] sm:$0xff] }
 0x8be   :  { %v5390_v36 = vpop.f32.mrf.mxu0  ;;  %v5531_v10 = vmul.f32 1.442695, %v5506_v32  ;;  %v5492_v40 = vsub.f32 %v5474_v6, %v9933_v24  ;;  %v5441_v44 = vadd.f32 %v9927_v51, %v5440_v28  ;;  %v5548_v22 = vsel %vm1112_vm4, %v9967_v9, 0.0  ;;  %v9975_v11 = vpop.eup %7669 }
 0x8bf   :  { %v5391_v47 = vadd.f32 %v9938_v46, %v5390_v36  ;;  %v5533_v34 = vmul.f32 1.442695, %v5507_v56  ;;  %v5493_v13 = vsub.f32 %v5475_v15, %v9933_v24  ;;  %v7102_v41 = vpop.f32.mrf.mxu1  ;;  %5549 = vadd.xlane.f32.xlu0 %v5548_v22  ;;  %v5551_v27 = vsel %vm1112_vm4, %v9975_v11, 0.0 }
 0x8c0   :  { %v7097_v61 = vpop.f32.mrf.mxu0  ;;  %7683 = vpow2.f32 %v5531_v10  ;;  %v5508_v16 = vmax.f32 %v5492_v40, -60.0  ;;  %v5477_v21 = vadd.f32 %v7794_v3, %v5441_v44 }
 0x8c1   :  { %v5476_v7 = vadd.f32 %v7793_v45, %v5391_v47  ;;  %v9977_v54 = vpop.eup %7671  ;;  %v5509_v51 = vmax.f32 %v5493_v13, -60.0  ;;  %v5443_v60 = vpop.f32.mrf.mxu1  ;;  %7685 = vpow2.f32 %v5533_v34 }
 0x8c2   :  { %v5535_v2 = vmul.f32 1.442695, %v5508_v16  ;;  %v5495_v59 = vsub.f32 %v5477_v21, %v9933_v24  ;;  %v5444_v38 = vadd.f32 %v9938_v46, %v5443_v60  ;;  %v5554_v53 = vsel %vm1112_vm4, %v9977_v54, 0.0  ;;  %v9986_v26 = vpop.eup %7673 }
 0x8c3   :  { %v5494_v55 = vsub.f32 %v5476_v7, %v9933_v24  ;;  %v5537_v49 = vmul.f32 1.442695, %v5509_v51  ;;  %v7103_v32 = vpop.f32.mrf.mxu1  ;;  %5552 = vadd.xlane.f32.xlu0 %v5551_v27  ;;  %5555 = vadd.xlane.f32.xlu1 %v5554_v53  ;;  %v5557_v44 = vsel %vm1112_vm4, %v9986_v26, 0.0 }
 0x8c4   :  { %7687 = vpow2.f32 %v5535_v2  ;;  %v5511_v56 = vmax.f32 %v5495_v59, -60.0  ;;  %v5478_v15 = vadd.f32 %v7795_v29, %v5444_v38  ;;  %v5640_v29 = vpack.c.bf16 %v9763_v30, %v9760_v19  ;;  %v10360_v30 = vld [vmem:[#allocation13_spill] sm:$0xff] }
 0x8c5   :  { %v5510_v6 = vmax.f32 %v5494_v55, -60.0  ;;  %v9988_v36 = vpop.eup %7675  ;;  %7689 = vpow2.f32 %v5537_v49  ;;  %v6558_v19 = vpack.c.bf16 %v9486_v14, %v9486_v14  ;;  %v6574_v14 = vpack.c.bf16 %v9906_v5, %v9906_v5 }
 0x8c6   :  { %v5496_v28 = vsub.f32 %v5478_v15, %v9933_v24  ;;  %v5560_v10 = vsel %vm1112_vm4, %v9988_v36, 0.0  ;;  %v9993_v40 = vpop.eup %7677  ;;  %v5541_v47 = vmul.f32 1.442695, %v5511_v56  ;;  %v6552_v56 = vpack.c.bf16 %v9449_v1, %v9449_v1 }
 0x8c7   :  { %v5539_v46 = vmul.f32 1.442695, %v5510_v6  ;;  %5558 = vadd.xlane.f32.xlu0 %v5557_v44  ;;  %5561 = vadd.xlane.f32.xlu1 %v5560_v10  ;;  %v5563_v61 = vsel %vm1112_vm4, %v9993_v40, 0.0  ;;  %v5639_v6 = vpack.c.bf16 %v9751_v57, %v9748_v0  ;;  %v6554_v15 = vpack.c.bf16 %v9465_v18, %v9465_v18  ;;  %v10364_v44 = vld [vmem:[#allocation16_spill] sm:$0xff] }
 0x8c8   :  { %v5512_v34 = vmax.f32 %v5496_v28, -60.0  ;;  %v6568_v1 = vpack.c.bf16 %v9894_v43, %v9894_v43  ;;  %v6555_v0 = vpack.c.bf16 %v9473_v62, %v9473_v62  ;;  %v6570_v18 = vpack.c.bf16 %v9898_v42, %v9898_v42  ;;  %v10362_v28 = vld [vmem:[#allocation14_spill] sm:$0xff] }
 0x8c9   :  { %7691 = vpow2.f32 %v5539_v46  ;;  %v9997_v13 = vpop.eup %7679  ;;  %v6553_v46 = vpack.c.bf16 %v9451_v12, %v9451_v12  ;;  %v6569_v12 = vpack.c.bf16 %v9896_v23, %v9896_v23  ;;  %v6556_v57 = vpack.c.bf16 %v9477_v8, %v9477_v8  ;;  %v10361_v23 = vld [vmem:[#allocation19_spill] sm:$0xff] }
 0x8ca   :  { %v5543_v22 = vmul.f32 1.442695, %v5512_v34  ;;  %v5566_v24 = vsel %vm1112_vm4, %v9997_v13, 0.0  ;;  %7693 = vpow2.f32 %v5541_v47  ;;  %v10003_v41 = vpop.eup %7681  ;;  %v6571_v62 = vpack.c.bf16 %v9900_v37, %v9900_v37  ;;  %v10363_v47 = vld [vmem:[#allocation18_spill] sm:$0xff] }
 0x8cb   :  { %5564 = vadd.xlane.f32.xlu0 %v5563_v61  ;;  %5567 = vadd.xlane.f32.xlu1 %v5566_v24  ;;  %v5569_v7 = vsel %vm1112_vm4, %v10003_v41, 0.0  ;;  %v6557_v43 = vpack.c.bf16 %v10360_v30, %v10360_v30  ;;  %v6572_v8 = vpack.c.bf16 %v9902_v17, %v9902_v17  ;;  %v6559_v42 = vpack.c.bf16 %v10361_v23, %v10361_v23 }
 0x8cc   :  { %7695 = vpow2.f32 %v5543_v22  ;;  %v6573_v37 = vpack.c.bf16 %v9904_v4, %v9904_v4  ;;  %v6560_v17 = vpack.c.bf16 %v10362_v28, %v10362_v28  ;;  %v6575_v10 = vpack.c.bf16 %v9908_v63, %v9908_v63  ;;  %v10365_v22 = vld [vmem:[#allocation17_spill] sm:$0xff] }
 0x8cd   :  { %v10005_v16 = vpop.eup %7683  ;;  %v6562_v5 = vpack.c.bf16 %v10363_v47, %v10363_v47  ;;  %v6561_v4 = vpack.c.bf16 %v10364_v44, %v10364_v44  ;;  %v6576_v34 = vpack.c.bf16 %v9910_v33, %v9910_v33  ;;  %v6563_v63 = vpack.c.bf16 %v10365_v22, %v10365_v22 }
 0x8ce   :  { %v5572_v45 = vsel %vm1112_vm4, %v10005_v16, 0.0  ;;  %v10011_v3 = vpop.eup %7685  ;;  %v6578_v24 = vpack.c.bf16 %v9914_v58, %v9914_v58  ;;  %v6577_v61 = vpack.c.bf16 %v9912_v31, %v9912_v31 }
 0x8cf   :  { %5570 = vadd.xlane.f32.xlu0 %v5569_v7  ;;  %5573 = vadd.xlane.f32.xlu1 %v5572_v45  ;;  %v5575_v60 = vsel %vm1112_vm4, %v10011_v3, 0.0  ;;  %v10366_v45 = vld [vmem:[#allocation15_spill] sm:$0xff]  ;;  %v6579_v7 = vpack.c.bf16 %v9916_v48, %v9916_v48 }
 0x8d0   :  { %v6564_v33 = vpack.c.bf16 %v10366_v45, %v10366_v45 }
 0x8d1   :  { %v10013_v21 = vpop.eup %7687 }
 0x8d2   :  { %v5578_v51 = vsel %vm1112_vm4, %v10013_v21, 0.0  ;;  %v10019_v2 = vpop.eup %7689 }
 0x8d3   :  { %5576 = vadd.xlane.f32.xlu0 %v5575_v60  ;;  %5579 = vadd.xlane.f32.xlu1 %v5578_v51  ;;  %v5581_v38 = vsel %vm1112_vm4, %v10019_v2, 0.0  ;;  %v10367_v51 = vld [vmem:[#allocation21_spill] sm:$0xff]  ;;  %v10368_v60 = vld [vmem:[#allocation20_spill] sm:$0xff] }
 0x8d4   :  { %v6566_v58 = vpack.c.bf16 %v10367_v51, %v10367_v51  ;;  %v6565_v31 = vpack.c.bf16 %v10368_v60, %v10368_v60 }
 0x8d6   :  { %v10021_v55 = vpop.eup %7691 }
 0x8d7   :  { %v5584_v59 = vsel %vm1112_vm4, %v10021_v55, 0.0  ;;  %v10027_v49 = vpop.eup %7693  ;;  %5582 = vadd.xlane.f32.xlu0 %v5581_v38  ;;  %v10369_v38 = vld [vmem:[#allocation22_spill] sm:$0xff] }
 0x8d8   :  { %5585 = vadd.xlane.f32.xlu1 %v5584_v59  ;;  %v5587_v32 = vsel %vm1112_vm4, %v10027_v49, 0.0  ;;  %v6580_v59 = vpack.c.bf16 %v9918_v20, %v9918_v20  ;;  %v6567_v48 = vpack.c.bf16 %v10369_v38, %v10369_v38  ;;  %v6583_v20 = vpack.c.bf16 %v9930_v50, %v9930_v50 }
 0x8d9   :  { %v10029_v27 = vpop.eup %7695 }
 0x8da   :  { %v5590_v53 = vsel %vm1112_vm4, %v10029_v27, 0.0 }
 0x8db   :  { %5588 = vadd.xlane.f32.xlu0 %v5587_v32  ;;  %v6581_v32 = vpack.c.bf16 %v9920_v39, %v9920_v39 }
 0x8dc   :  { %5591 = vadd.xlane.f32.xlu1 %v5590_v53  ;;  %v6582_v53 = vpack.c.bf16 %v9922_v35, %v9922_v35 }
 0x8ed   :  { %5930 = vrot.lane.b32.xlu1 %v5639_v6, %s7872_s2  ;;  %v5739_v6 = vpop.permute.xlu1 %5738 }
 0x8f1   :  { %3097 = vrot.lane.b32.xlu1 %v6552_v56, %s7857_s13  ;;  %5978 = vrot.lane.b32.xlu0 %v5640_v29, %s7872_s2  ;;  %v5787_v56 = vpop.permute.xlu0 %5786  ;;  %v5835_v29 = vpop.permute.xlu1 %5834 }
 0x8f5   :  { %3101 = vrot.lane.b32.xlu1 %v6554_v15, %s7857_s13  ;;  %3099 = vrot.lane.b32.xlu0 %v6553_v46, %s7857_s13  ;;  %v10137_v15 = vpop.permute.xlu0 %5882 }
 0x8f9   :  { %4585 = vrot.lane.b32.xlu1 %v6568_v1, %s7873_s4  ;;  %3103 = vrot.lane.b32.xlu0 %v6555_v0, %s7857_s13 }
 0x8fd   :  { %4589 = vrot.lane.b32.xlu1 %v6570_v18, %s7873_s4  ;;  %4587 = vrot.lane.b32.xlu0 %v6569_v12, %s7873_s4 }
 0x901   :  { %3105 = vrot.lane.b32.xlu1 %v6556_v57, %s7857_s13  ;;  %4591 = vrot.lane.b32.xlu0 %v6571_v62, %s7873_s4 }
 0x905   :  { %3109 = vrot.lane.b32.xlu1 %v6558_v19, %s7857_s13  ;;  %3107 = vrot.lane.b32.xlu0 %v6557_v43, %s7857_s13 }
 0x909   :  { %4593 = vrot.lane.b32.xlu1 %v6572_v8, %s7873_s4  ;;  %3111 = vrot.lane.b32.xlu0 %v6559_v42, %s7857_s13 }
 0x90d   :  { %4597 = vrot.lane.b32.xlu1 %v6574_v14, %s7873_s4  ;;  %4595 = vrot.lane.b32.xlu0 %v6573_v37, %s7873_s4 }
 0x911   :  { %3113 = vrot.lane.b32.xlu1 %v6560_v17, %s7857_s13  ;;  %4599 = vrot.lane.b32.xlu0 %v6575_v10, %s7873_s4 }
 0x915   :  { %3117 = vrot.lane.b32.xlu1 %v6562_v5, %s7857_s13  ;;  %3115 = vrot.lane.b32.xlu0 %v6561_v4, %s7857_s13 }
 0x919   :  { %4601 = vrot.lane.b32.xlu1 %v6576_v34, %s7873_s4  ;;  %3119 = vrot.lane.b32.xlu0 %v6563_v63, %s7857_s13 }
 0x91d   :  { %4605 = vrot.lane.b32.xlu1 %v6578_v24, %s7873_s4  ;;  %4603 = vrot.lane.b32.xlu0 %v6577_v61, %s7873_s4 }
 0x921   :  { %3121 = vrot.lane.b32.xlu1 %v6564_v33, %s7857_s13  ;;  %4607 = vrot.lane.b32.xlu0 %v6579_v7, %s7873_s4 }
 0x925   :  { %3125 = vrot.lane.b32.xlu1 %v6566_v58, %s7857_s13  ;;  %3123 = vrot.lane.b32.xlu0 %v6565_v31, %s7857_s13 }
 0x929   :  { %4609 = vrot.lane.b32.xlu1 %v6580_v59, %s7873_s4  ;;  %3127 = vrot.lane.b32.xlu0 %v6567_v48, %s7857_s13  ;;  %s7874_s13 = smov 24  }
 0x92d   :  { %4613 = vrot.lane.b32.xlu1 %v6582_v53, %s7873_s4  ;;  %4611 = vrot.lane.b32.xlu0 %v6581_v32, %s7873_s4 }
 0x931   :  { %4615 = vrot.lane.b32.xlu0 %v6583_v20, %s7873_s4 }
 0x945   :  { %v5547_v46 = vpop.xlane.xlu1 %5546 }
 0x946   :  { %7697 = vrcp.f32 %v5547_v46 }
 0x948   :  { %v5550_v35 = vpop.xlane.xlu0 %5549 }
 0x949   :  { %7699 = vrcp.f32 %v5550_v35 }
 0x94c   :  { %v5553_v1 = vpop.xlane.xlu0 %5552  ;;  %v5556_v39 = vpop.xlane.xlu1 %5555 }
 0x94d   :  { %7701 = vrcp.f32 %v5553_v1 }
 0x94e   :  { %7703 = vrcp.f32 %v5556_v39 }
 0x950   :  { %v5559_v0 = vpop.xlane.xlu0 %5558  ;;  %v5562_v18 = vpop.xlane.xlu1 %5561 }
 0x951   :  { %7705 = vrcp.f32 %v5559_v0 }
 0x952   :  { %7707 = vrcp.f32 %v5562_v18 }
 0x953   :  { %v7698_v50 = vpop.eup %7697 }
 0x954   :  { %v5565_v12 = vpop.xlane.xlu0 %5564  ;;  %v5568_v57 = vpop.xlane.xlu1 %5567  ;;  %v5609_v19 = vmul.f32 %v7698_v50, %v9959_v25 }
 0x955   :  { %7709 = vrcp.f32 %v5565_v12 }
 0x956   :  { %v7700_v62 = vpop.eup %7699  ;;  %7711 = vrcp.f32 %v5568_v57 }
 0x957   :  { %v5610_v30 = vmul.f32 %v7700_v62, %v9967_v9 }
 0x958   :  { %v5571_v43 = vpop.xlane.xlu0 %5570  ;;  %v5574_v8 = vpop.xlane.xlu1 %5573 }
 0x959   :  { %v5625_v23 = vpack.c.bf16 %v5610_v30, %v5609_v19  ;;  %7713 = vrcp.f32 %v5571_v43 }
 0x95a   :  { %v7702_v42 = vpop.eup %7701  ;;  %7715 = vrcp.f32 %v5574_v8 }
 0x95b   :  { %v7704_v14 = vpop.eup %7703  ;;  %v5611_v37 = vmul.f32 %v7702_v42, %v9975_v11  ;;  %7107 = vmatmul.mubr.msk.bf16.vlgmr.msra.gmra.mxu0 %vm1112_vm4, %v5625_v23 }
 0x95c   :  { %v5612_v28 = vmul.f32 %v7704_v14, %v9977_v54  ;;  %7117 = vmatpush3.bf16.msra.mxu0 %v5739_v6  ;;  %v5577_v17 = vpop.xlane.xlu0 %5576  ;;  %v5580_v10 = vpop.xlane.xlu1 %5579  ;;  %7118 = vmatprep.mubr.msk.bf16.mxu0 %vm7863_vm3, %v10345_v52 }
 0x95d   :  { %7717 = vrcp.f32 %v5577_v17  ;;  %7128 = vmatprep.subr.bf16.mxu0 %v10345_v52 }
 0x95e   :  { %v7706_v25 = vpop.eup %7705  ;;  %v5626_v9 = vpack.c.bf16 %v5612_v28, %v5611_v37  ;;  %7719 = vrcp.f32 %v5580_v10 }
 0x95f   :  { %v7708_v47 = vpop.eup %7707  ;;  %v5613_v5 = vmul.f32 %v7706_v25, %v9986_v26 }
 0x960   :  { %v5614_v11 = vmul.f32 %v7708_v47, %v9988_v36  ;;  %7113 = vmatmul.mubr.msk.bf16.vlgmr.msra.gmra.mxu1 %vm1112_vm4, %v5626_v9  ;;  %v5583_v54 = vpop.xlane.xlu0 %5582 }
 0x961   :  { %v5586_v44 = vpop.xlane.xlu1 %5585  ;;  %7123 = vmatpush3.bf16.msra.mxu1 %v5787_v56  ;;  %7721 = vrcp.f32 %v5583_v54  ;;  %7124 = vmatprep.mubr.msk.bf16.mxu1 %vm7863_vm3, %v10345_v52  ;;  %v7207_v54 = vld [vmem:[#allocation8 + $0x8] sm:$0xff]  }
 0x962   :  { %v7710_v4 = vpop.eup %7709  ;;  %v5627_v34 = vpack.c.bf16 %v5614_v11, %v5613_v5  ;;  %7723 = vrcp.f32 %v5586_v44  ;;  %7134 = vmatprep.subr.bf16.mxu1 %v10345_v52 }
 0x963   :  { %v7712_v22 = vpop.eup %7711  ;;  %v5615_v63 = vmul.f32 %v7710_v4, %v9993_v40 }
 0x964   :  { %v5616_v26 = vmul.f32 %v7712_v22, %v9997_v13  ;;  %7119 = vmatmul.mubr.msk.bf16.vlgmr.msra.gmra.mxu0 %vm1112_vm4, %v5627_v34  ;;  %v5589_v36 = vpop.xlane.xlu0 %5588  ;;  %v7208_v22 = vld [vmem:[#allocation8] sm:$0xff]  }
 0x965   :  { %v5592_v24 = vpop.xlane.xlu1 %5591  ;;  %7129 = vmatpush3.bf16.msra.mxu0 %v5835_v29  ;;  %7725 = vrcp.f32 %v5589_v36  ;;  %7130 = vmatprep.mubr.msk.bf16.mxu0 %vm7863_vm3, %v10345_v52 }
 0x966   :  { %v7714_v61 = vpop.eup %7713  ;;  %v5628_v45 = vpack.c.bf16 %v5616_v26, %v5615_v63  ;;  %7727 = vrcp.f32 %v5592_v24  ;;  %7140 = vmatprep.subr.bf16.mxu0 %v10345_v52 }
 0x967   :  { %v7716_v33 = vpop.eup %7715  ;;  %v5617_v7 = vmul.f32 %v7714_v61, %v10003_v41 }
 0x968   :  { %v5618_v40 = vmul.f32 %v7716_v33, %v10005_v16  ;;  %7125 = vmatmul.mubr.msk.bf16.vlgmr.msra.gmra.mxu1 %vm1112_vm4, %v5628_v45  ;;  %v5979_v13 = vpop.permute.xlu0 %5978 }
 0x969   :  { %v5931_v51 = vpop.permute.xlu1 %5930  ;;  %7135 = vmatpush3.bf16.msra.mxu1 %v10137_v15  ;;  %7136 = vmatprep.mubr.msk.bf16.mxu1 %vm7863_vm3, %v10345_v52 }
 0x96a   :  { %v7718_v58 = vpop.eup %7717  ;;  %v5629_v60 = vpack.c.bf16 %v5618_v40, %v5617_v7  ;;  %7146 = vmatprep.subr.bf16.mxu1 %v10345_v52 }
 0x96b   :  { %v7720_v31 = vpop.eup %7719  ;;  %v5619_v59 = vmul.f32 %v7718_v58, %v10011_v3 }
 0x96c   :  { %v5620_v41 = vmul.f32 %v7720_v31, %v10013_v21  ;;  %7131 = vmatmul.mubr.msk.bf16.vlgmr.msra.gmra.mxu0 %vm1112_vm4, %v5629_v60  ;;  %v3100_v16 = vpop.permute.xlu0 %3099 }
 0x96d   :  { %v3098_v38 = vpop.permute.xlu1 %3097  ;;  %7141 = vmatpush3.bf16.msra.mxu0 %v5931_v51  ;;  %3147 = vst.msk [vmem:[#allocation3 + $0x4] sm:$0xf] %vm3145_vm6, %v3100_v16  ;;  %7142 = vmatprep.mubr.msk.bf16.mxu0 %vm7863_vm3, %v10345_v52 }
 0x96e   :  { %3146 = vst.msk [vmem:[#allocation3] sm:$0xf] %vm3145_vm6, %v3098_v38  ;;  %v7722_v48 = vpop.eup %7721  ;;  %v5630_v53 = vpack.c.bf16 %v5620_v41, %v5619_v59  ;;  %7152 = vmatprep.subr.bf16.mxu0 %v7207_v54 }
 0x96f   :  { %v7724_v32 = vpop.eup %7723  ;;  %v5621_v20 = vmul.f32 %v7722_v48, %v10019_v2 }
 0x970   :  { %v5622_v3 = vmul.f32 %v7724_v32, %v10021_v55  ;;  %7137 = vmatmul.mubr.msk.bf16.vlgmr.msra.gmra.mxu1 %vm1112_vm4, %v5630_v53  ;;  %v3104_v21 = vpop.permute.xlu0 %3103 }
 0x971   :  { %v3102_v6 = vpop.permute.xlu1 %3101  ;;  %7147 = vmatpush3.bf16.msra.mxu1 %v5979_v13  ;;  %3149 = vst.msk [vmem:[#allocation3 + $0xc] sm:$0xf] %vm3145_vm6, %v3104_v21  ;;  %7148 = vmatprep.mubr.msk.bf16.mxu1 %vm7863_vm3, %v10345_v52 }
 0x972   :  { %3148 = vst.msk [vmem:[#allocation3 + $0x8] sm:$0xf] %vm3145_vm6, %v3102_v6  ;;  %v7726_v56 = vpop.eup %7725  ;;  %v5631_v29 = vpack.c.bf16 %v5622_v3, %v5621_v20 }
 0x973   :  { %v7728_v15 = vpop.eup %7727  ;;  %v5623_v2 = vmul.f32 %v7726_v56, %v10027_v49 }
 0x974   :  { %v5624_v55 = vmul.f32 %v7728_v15, %v10029_v27  ;;  %7143 = vmatmul.mubr.msk.bf16.vlgmr.msra.gmra.mxu0 %vm1112_vm4, %v5631_v29  ;;  %v4588_v46 = vpop.permute.xlu0 %4587 }
 0x975   :  { %v4586_v35 = vpop.permute.xlu1 %4585  ;;  %4635 = vst.msk [vmem:[#allocation3 + $0x4] sm:$0xf] %vm4633_vm7, %v4588_v46  ;;  %7153 = vmatpush3.bf16.msra.mxu0 %v7207_v54 }
 0x976   :  { %4634 = vst.msk [vmem:[#allocation3] sm:$0xf] %vm4633_vm7, %v4586_v35  ;;  %v5632_v1 = vpack.c.bf16 %v5624_v55, %v5623_v2  ;;  %7154 = vmatprep.subr.bf16.mxu0 %v7208_v22 }
 0x978   :  { %7149 = vmatmul.mubr.msk.bf16.vlgmr.msra.gmra.mxu1 %vm1112_vm4, %v5632_v1  ;;  %v4592_v52 = vpop.permute.xlu0 %4591 }
 0x979   :  { %v4590_v39 = vpop.permute.xlu1 %4589  ;;  %4637 = vst.msk [vmem:[#allocation3 + $0xc] sm:$0xf] %vm4633_vm7, %v4592_v52  ;;  %7155 = vmatpush3.bf16.msra.mxu0 %v7208_v22 }
 0x97a   :  { %4636 = vst.msk [vmem:[#allocation3 + $0x8] sm:$0xf] %vm4633_vm7, %v4590_v39 }
 0x97c   :  { %v3108_v49 = vpop.permute.xlu0 %3107 }
 0x97d   :  { %v3106_v0 = vpop.permute.xlu1 %3105  ;;  %3151 = vst.msk [vmem:[#allocation3 + $0x14] sm:$0xf] %vm3145_vm6, %v3108_v49 }
 0x97e   :  { %3150 = vst.msk [vmem:[#allocation3 + $0x10] sm:$0xf] %vm3145_vm6, %v3106_v0 }
 0x980   :  { %v3112_v27 = vpop.permute.xlu0 %3111 }
 0x981   :  { %v3110_v18 = vpop.permute.xlu1 %3109  ;;  %3153 = vst.msk [vmem:[#allocation3 + $0x1c] sm:$0xf] %vm3145_vm6, %v3112_v27 }
 0x982   :  { %3152 = vst.msk [vmem:[#allocation3 + $0x18] sm:$0xf] %vm3145_vm6, %v3110_v18 }
 0x984   :  { %v4596_v50 = vpop.permute.xlu0 %4595 }
 0x985   :  { %v4594_v12 = vpop.permute.xlu1 %4593  ;;  %4639 = vst.msk [vmem:[#allocation3 + $0x14] sm:$0xf] %vm4633_vm7, %v4596_v50 }
 0x986   :  { %4638 = vst.msk [vmem:[#allocation3 + $0x10] sm:$0xf] %vm4633_vm7, %v4594_v12 }
 0x988   :  { %v4600_v57 = vpop.permute.xlu0 %4599 }
 0x989   :  { %v4598_v62 = vpop.permute.xlu1 %4597  ;;  %4641 = vst.msk [vmem:[#allocation3 + $0x1c] sm:$0xf] %vm4633_vm7, %v4600_v57 }
 0x98a   :  { %4640 = vst.msk [vmem:[#allocation3 + $0x18] sm:$0xf] %vm4633_vm7, %v4598_v62 }
 0x98c   :  { %v3116_v19 = vpop.permute.xlu0 %3115 }
 0x98d   :  { %v3114_v30 = vpop.permute.xlu1 %3113  ;;  %3155 = vst.msk [vmem:[#allocation3 + $0x24] sm:$0xf] %vm3145_vm6, %v3116_v19 }
 0x98e   :  { %3154 = vst.msk [vmem:[#allocation3 + $0x20] sm:$0xf] %vm3145_vm6, %v3114_v30 }
 0x990   :  { %v3120_v43 = vpop.permute.xlu0 %3119 }
 0x991   :  { %v3118_v8 = vpop.permute.xlu1 %3117  ;;  %3157 = vst.msk [vmem:[#allocation3 + $0x2c] sm:$0xf] %vm3145_vm6, %v3120_v43 }
 0x992   :  { %3156 = vst.msk [vmem:[#allocation3 + $0x28] sm:$0xf] %vm3145_vm6, %v3118_v8 }
 0x994   :  { %v4604_v23 = vpop.permute.xlu0 %4603 }
 0x995   :  { %v4602_v42 = vpop.permute.xlu1 %4601  ;;  %4643 = vst.msk [vmem:[#allocation3 + $0x24] sm:$0xf] %vm4633_vm7, %v4604_v23 }
 0x996   :  { %4642 = vst.msk [vmem:[#allocation3 + $0x20] sm:$0xf] %vm4633_vm7, %v4602_v42 }
 0x998   :  { %v4608_v14 = vpop.permute.xlu0 %4607 }
 0x999   :  { %v4606_v37 = vpop.permute.xlu1 %4605  ;;  %4645 = vst.msk [vmem:[#allocation3 + $0x2c] sm:$0xf] %vm4633_vm7, %v4608_v14 }
 0x99a   :  { %4644 = vst.msk [vmem:[#allocation3 + $0x28] sm:$0xf] %vm4633_vm7, %v4606_v37 }
 0x99c   :  { %v3124_v28 = vpop.permute.xlu0 %3123 }
 0x99d   :  { %v3122_v17 = vpop.permute.xlu1 %3121  ;;  %3159 = vst.msk [vmem:[#allocation3 + $0x34] sm:$0xf] %vm3145_vm6, %v3124_v28 }
 0x99e   :  { %3158 = vst.msk [vmem:[#allocation3 + $0x30] sm:$0xf] %vm3145_vm6, %v3122_v17 }
 0x9a0   :  { %v3128_v10 = vpop.permute.xlu0 %3127 }
 0x9a1   :  { %v3126_v25 = vpop.permute.xlu1 %3125  ;;  %3161 = vst.msk [vmem:[#allocation3 + $0x3c] sm:$0xf] %vm3145_vm6, %v3128_v10 }
 0x9a2   :  { %3160 = vst.msk [vmem:[#allocation3 + $0x38] sm:$0xf] %vm3145_vm6, %v3126_v25 }
 0x9a4   :  { %v4612_v9 = vpop.permute.xlu0 %4611 }
 0x9a5   :  { %v4610_v47 = vpop.permute.xlu1 %4609  ;;  %4647 = vst.msk [vmem:[#allocation3 + $0x34] sm:$0xf] %vm4633_vm7, %v4612_v9 }
 0x9a6   :  { %4646 = vst.msk [vmem:[#allocation3 + $0x30] sm:$0xf] %vm4633_vm7, %v4610_v47 }
 0x9a8   :  { %v4616_v5 = vpop.permute.xlu0 %4615 }
 0x9a9   :  { %v4614_v11 = vpop.permute.xlu1 %4613  ;;  %4649 = vst.msk [vmem:[#allocation3 + $0x3c] sm:$0xf] %vm4633_vm7, %v4616_v5 }
 0x9aa   :  { %4648 = vst.msk [vmem:[#allocation3 + $0x38] sm:$0xf] %vm4633_vm7, %v4614_v11 }
 0xa1b   :  { %v5682_v44 = vpop.f32.mrf.mxu0 }
 0xa1c   :  { %v6584_v4 = vpack.c.bf16 %v5682_v44, %v5682_v44 }
 0xa1d   :  { %v7108_v34 = vpop.f32.mrf.mxu0 }
 0xa1e   :  { %6073 = vrot.lane.b32.xlu1 %v6584_v4, %s7874_s13 }
 0xa1f   :  { %v5685_v63 = vpop.f32.mrf.mxu0 }
 0xa20   :  { %v6585_v26 = vpack.c.bf16 %v5685_v63, %v5685_v63  ;;  %v5730_v36 = vpop.f32.mrf.mxu1 }
 0xa21   :  { %v6586_v24 = vpack.c.bf16 %v5730_v36, %v5730_v36  ;;  %v7109_v61 = vpop.f32.mrf.mxu0 }
 0xa22   :  { %v7114_v45 = vpop.f32.mrf.mxu1  ;;  %6075 = vrot.lane.b32.xlu0 %v6585_v26, %s7874_s13 }
 0xa23   :  { %6077 = vrot.lane.b32.xlu1 %v6586_v24, %s7874_s13  ;;  %v6517_v45 = vld [vmem:[%s10326_s7] ss:$0 sm:$0xff] }
 0xa24   :  { %v5733_v33 = vpop.f32.mrf.mxu1  ;;  %v5778_v7 = vpop.f32.mrf.mxu0 }
 0xa25   :  { %v6587_v40 = vpack.c.bf16 %v5733_v33, %v5733_v33  ;;  %v6588_v13 = vpack.c.bf16 %v5778_v7, %v5778_v7 }
 0xa26   :  { %v7115_v51 = vpop.f32.mrf.mxu1  ;;  %v7120_v58 = vpop.f32.mrf.mxu0 }
 0xa27   :  { %6079 = vrot.lane.b32.xlu0 %v6587_v40, %s7874_s13  ;;  %6081 = vrot.lane.b32.xlu1 %v6588_v13, %s7874_s13 }
 0xa28   :  { %v5781_v60 = vpop.f32.mrf.mxu0  ;;  %v5826_v31 = vpop.f32.mrf.mxu1 }
 0xa29   :  { %v6589_v59 = vpack.c.bf16 %v5781_v60, %v5781_v60  ;;  %v6590_v41 = vpack.c.bf16 %v5826_v31, %v5826_v31 }
 0xa2a   :  { %v7121_v16 = vpop.f32.mrf.mxu0  ;;  %v7126_v38 = vpop.f32.mrf.mxu1 }
 0xa2b   :  { %6083 = vrot.lane.b32.xlu0 %v6589_v59, %s7874_s13  ;;  %6085 = vrot.lane.b32.xlu1 %v6590_v41, %s7874_s13 }
 0xa2c   :  { %v5829_v48 = vpop.f32.mrf.mxu1  ;;  %v5874_v53 = vpop.f32.mrf.mxu0 }
 0xa2d   :  { %v6591_v32 = vpack.c.bf16 %v5829_v48, %v5829_v48  ;;  %v6592_v20 = vpack.c.bf16 %v5874_v53, %v5874_v53 }
 0xa2e   :  { %v7127_v3 = vpop.f32.mrf.mxu1  ;;  %v7132_v21 = vpop.f32.mrf.mxu0 }
 0xa2f   :  { %6087 = vrot.lane.b32.xlu0 %v6591_v32, %s7874_s13  ;;  %6089 = vrot.lane.b32.xlu1 %v6592_v20, %s7874_s13 }
 0xa30   :  { %v5877_v6 = vpop.f32.mrf.mxu0  ;;  %v5922_v56 = vpop.f32.mrf.mxu1 }
 0xa31   :  { %v6593_v29 = vpack.c.bf16 %v5877_v6, %v5877_v6  ;;  %v6594_v15 = vpack.c.bf16 %v5922_v56, %v5922_v56 }
 0xa32   :  { %v7133_v2 = vpop.f32.mrf.mxu0  ;;  %v7138_v55 = vpop.f32.mrf.mxu1 }
 0xa33   :  { %6091 = vrot.lane.b32.xlu0 %v6593_v29, %s7874_s13  ;;  %6093 = vrot.lane.b32.xlu1 %v6594_v15, %s7874_s13 }
 0xa34   :  { %v5925_v46 = vpop.f32.mrf.mxu1  ;;  %v5970_v35 = vpop.f32.mrf.mxu0 }
 0xa35   :  { %v6595_v1 = vpack.c.bf16 %v5925_v46, %v5925_v46  ;;  %v6596_v52 = vpack.c.bf16 %v5970_v35, %v5970_v35 }
 0xa36   :  { %v7139_v39 = vpop.f32.mrf.mxu1  ;;  %v7144_v49 = vpop.f32.mrf.mxu0 }
 0xa37   :  { %6095 = vrot.lane.b32.xlu0 %v6595_v1, %s7874_s13  ;;  %6097 = vrot.lane.b32.xlu1 %v6596_v52, %s7874_s13 }
 0xa38   :  { %v5973_v0 = vpop.f32.mrf.mxu0  ;;  %v6018_v27 = vpop.f32.mrf.mxu1 }
 0xa39   :  { %v6597_v18 = vpack.c.bf16 %v5973_v0, %v5973_v0  ;;  %v6598_v50 = vpack.c.bf16 %v6018_v27, %v6018_v27 }
 0xa3a   :  { %v7145_v12 = vpop.f32.mrf.mxu0  ;;  %v7150_v57 = vpop.f32.mrf.mxu1 }
 0xa3b   :  { %6101 = vrot.lane.b32.xlu1 %v6598_v50, %s7874_s13  ;;  %6099 = vrot.lane.b32.xlu0 %v6597_v18, %s7874_s13 }
 0xa3c   :  { %v6021_v62 = vpop.f32.mrf.mxu1 }
 0xa3d   :  { %v6599_v19 = vpack.c.bf16 %v6021_v62, %v6021_v62 }
 0xa3e   :  { %v7151_v30 = vpop.f32.mrf.mxu1 }
 0xa3f   :  { %6103 = vrot.lane.b32.xlu0 %v6599_v19, %s7874_s13 }
 0xa90   :  { %v6074_v43 = vpop.permute.xlu1 %6073 }
 0xa91   :  { %6122 = vst.msk [vmem:[#allocation3] sm:$0xf] %vm6121_vm8, %v6074_v43 }
 0xa94   :  { %v6076_v8 = vpop.permute.xlu0 %6075 }
 0xa95   :  { %6123 = vst.msk [vmem:[#allocation3 + $0x4] sm:$0xf] %vm6121_vm8, %v6076_v8  ;;  %v6078_v23 = vpop.permute.xlu1 %6077 }
 0xa96   :  { %6124 = vst.msk [vmem:[#allocation3 + $0x8] sm:$0xf] %vm6121_vm8, %v6078_v23 }
 0xa99   :  { %v6080_v42 = vpop.permute.xlu0 %6079  ;;  %v6082_v14 = vpop.permute.xlu1 %6081 }
 0xa9a   :  { %6125 = vst.msk [vmem:[#allocation3 + $0xc] sm:$0xf] %vm6121_vm8, %v6080_v42  ;;  %6126 = vst.msk [vmem:[#allocation3 + $0x10] sm:$0xf] %vm6121_vm8, %v6082_v14 }
 0xa9c   :  { %v7209_v37 = vld [vmem:[#allocation3] sm:$0xff]  }
 0xa9d   :  { %v6084_v28 = vpop.permute.xlu0 %6083  ;;  %v6086_v17 = vpop.permute.xlu1 %6085  ;;  %7156 = vmatprep.mubr.msk.bf16.mxu0 %vm150_vm0, %v7209_v37 }
 0xa9e   :  { %6127 = vst.msk [vmem:[#allocation3 + $0x14] sm:$0xf] %vm6121_vm8, %v6084_v28  ;;  %6128 = vst.msk [vmem:[#allocation3 + $0x18] sm:$0xf] %vm6121_vm8, %v6086_v17 }
 0xaa1   :  { %v6088_v10 = vpop.permute.xlu0 %6087  ;;  %v6090_v25 = vpop.permute.xlu1 %6089  ;;  %v7210_v9 = vld [vmem:[#allocation3 + $0x8] sm:$0xff]  }
 0xaa2   :  { %6129 = vst.msk [vmem:[#allocation3 + $0x1c] sm:$0xf] %vm6121_vm8, %v6088_v10  ;;  %6130 = vst.msk [vmem:[#allocation3 + $0x20] sm:$0xf] %vm6121_vm8, %v6090_v25  ;;  %7157 = vmatmul.mubr.msk.bf16.vlgmr.msra.gmra.mxu0 %vm150_vm0, %v7210_v9 }
 0xaa5   :  { %v6092_v47 = vpop.permute.xlu0 %6091  ;;  %v6094_v5 = vpop.permute.xlu1 %6093  ;;  %v7211_v11 = vld [vmem:[#allocation3 + $0x10] sm:$0xff]  }
 0xaa6   :  { %6131 = vst.msk [vmem:[#allocation3 + $0x24] sm:$0xf] %vm6121_vm8, %v6092_v47  ;;  %6132 = vst.msk [vmem:[#allocation3 + $0x28] sm:$0xf] %vm6121_vm8, %v6094_v5  ;;  %7160 = vmatprep.mubr.msk.bf16.mxu0 %vm150_vm0, %v7211_v11 }
 0xaa9   :  { %v6096_v54 = vpop.permute.xlu0 %6095  ;;  %v6098_v44 = vpop.permute.xlu1 %6097  ;;  %v7212_v4 = vld [vmem:[#allocation3 + $0x18] sm:$0xff]  }
 0xaaa   :  { %6133 = vst.msk [vmem:[#allocation3 + $0x2c] sm:$0xf] %vm6121_vm8, %v6096_v54  ;;  %6134 = vst.msk [vmem:[#allocation3 + $0x30] sm:$0xf] %vm6121_vm8, %v6098_v44  ;;  %7161 = vmatmul.mubr.msk.bf16.gmra.mxu0 %vm150_vm0, %v7212_v4 }
 0xaad   :  { %v6100_v34 = vpop.permute.xlu0 %6099  ;;  %v6102_v22 = vpop.permute.xlu1 %6101  ;;  %v7213_v63 = vld [vmem:[#allocation3 + $0x20] sm:$0xff]  }
 0xaae   :  { %6135 = vst.msk [vmem:[#allocation3 + $0x34] sm:$0xf] %vm6121_vm8, %v6100_v34  ;;  %6136 = vst.msk [vmem:[#allocation3 + $0x38] sm:$0xf] %vm6121_vm8, %v6102_v22  ;;  %7164 = vmatprep.mubr.msk.bf16.mxu0 %vm150_vm0, %v7213_v63 }
 0xab1   :  { %v6104_v26 = vpop.permute.xlu0 %6103  ;;  %v7214_v36 = vld [vmem:[#allocation3 + $0x28] sm:$0xff]  }
 0xab2   :  { %6137 = vst.msk [vmem:[#allocation3 + $0x3c] sm:$0xf] %vm6121_vm8, %v6104_v26  ;;  %7165 = vmatmul.mubr.msk.bf16.gmra.mxu0 %vm150_vm0, %v7214_v36 }
 0xab5   :  { %v7215_v24 = vld [vmem:[#allocation3 + $0x30] sm:$0xff]  }
 0xab6   :  { %7168 = vmatprep.mubr.msk.bf16.mxu0 %vm150_vm0, %v7215_v24 }
 0xab9   :  { %v7216_v61 = vld [vmem:[#allocation3 + $0x38] sm:$0xff]  }
 0xaba   :  { %7169 = vmatmul.mubr.msk.bf16.gmra.mxu0 %vm150_vm0, %v7216_v61 }
 0xb62   :  { %v7158_v33 = vpop.f32.mrf.mxu0 }
 0xb63   :  { %v6284_v7 = vadd.f32 %v7158_v33, %v6517_v45 }
 0xb64   :  { %v6275_v40 = vpop.f32.mrf.mxu0 }
 0xb65   :  { %6340 = vst.msk [vmem:[%s10327_s8 + $0x10] sm:$0xff] %vm150_vm0, %v6284_v7  ;;  %v6276_v13 = vadd.f32 %v6517_v45, %v6275_v40 }
 0xb66   :  { %v7159_v51 = vpop.f32.mrf.mxu0 }
 0xb67   :  { %6338 = vst.msk [vmem:[%s10327_s8] sm:$0xff] %vm150_vm0, %v6276_v13  ;;  %v6287_v58 = vadd.f32 %v7159_v51, %v6517_v45 }
 0xb68   :  { %v6278_v60 = vpop.f32.mrf.mxu0 }
 0xb69   :  { %6341 = vst.msk [vmem:[%s10327_s8 + $0x18] sm:$0xff] %vm150_vm0, %v6287_v58  ;;  %v6279_v31 = vadd.f32 %v6517_v45, %v6278_v60 }
 0xb6a   :  { %v7162_v59 = vpop.f32.mrf.mxu0 }
 0xb6b   :  { %6339 = vst.msk [vmem:[%s10327_s8 + $0x8] sm:$0xff] %vm150_vm0, %v6279_v31  ;;  %v6300_v41 = vadd.f32 %v7162_v59, %v6517_v45 }
 0xb6c   :  { %v6291_v16 = vpop.f32.mrf.mxu0 }
 0xb6d   :  { %6344 = vst.msk [vmem:[%s10327_s8 + $0x30] sm:$0xff] %vm150_vm0, %v6300_v41  ;;  %v6292_v38 = vadd.f32 %v6517_v45, %v6291_v16 }
 0xb6e   :  { %v7163_v48 = vpop.f32.mrf.mxu0 }
 0xb6f   :  { %6342 = vst.msk [vmem:[%s10327_s8 + $0x20] sm:$0xff] %vm150_vm0, %v6292_v38  ;;  %v6303_v53 = vadd.f32 %v7163_v48, %v6517_v45 }
 0xb70   :  { %v6294_v32 = vpop.f32.mrf.mxu0 }
 0xb71   :  { %6345 = vst.msk [vmem:[%s10327_s8 + $0x38] sm:$0xff] %vm150_vm0, %v6303_v53  ;;  %v6295_v20 = vadd.f32 %v6517_v45, %v6294_v32 }
 0xb72   :  { %v7166_v3 = vpop.f32.mrf.mxu0 }
 0xb73   :  { %6343 = vst.msk [vmem:[%s10327_s8 + $0x28] sm:$0xff] %vm150_vm0, %v6295_v20  ;;  %v6316_v21 = vadd.f32 %v7166_v3, %v6517_v45 }
 0xb74   :  { %v6307_v6 = vpop.f32.mrf.mxu0 }
 0xb75   :  { %6348 = vst.msk [vmem:[%s10327_s8 + $0x50] sm:$0xff] %vm150_vm0, %v6316_v21  ;;  %v6308_v56 = vadd.f32 %v6517_v45, %v6307_v6 }
 0xb76   :  { %v7167_v29 = vpop.f32.mrf.mxu0 }
 0xb77   :  { %6346 = vst.msk [vmem:[%s10327_s8 + $0x40] sm:$0xff] %vm150_vm0, %v6308_v56  ;;  %v6319_v15 = vadd.f32 %v7167_v29, %v6517_v45 }
 0xb78   :  { %v6310_v2 = vpop.f32.mrf.mxu0 }
 0xb79   :  { %6349 = vst.msk [vmem:[%s10327_s8 + $0x58] sm:$0xff] %vm150_vm0, %v6319_v15  ;;  %v6311_v55 = vadd.f32 %v6517_v45, %v6310_v2 }
 0xb7a   :  { %v7170_v46 = vpop.f32.mrf.mxu0 }
 0xb7b   :  { %6347 = vst.msk [vmem:[%s10327_s8 + $0x48] sm:$0xff] %vm150_vm0, %v6311_v55  ;;  %v6332_v35 = vadd.f32 %v7170_v46, %v6517_v45 }
 0xb7c   :  { %v6323_v1 = vpop.f32.mrf.mxu0 }
 0xb7d   :  { %6352 = vst.msk [vmem:[%s10327_s8 + $0x70] sm:$0xff] %vm150_vm0, %v6332_v35  ;;  %v6324_v52 = vadd.f32 %v6517_v45, %v6323_v1 }
 0xb7e   :  { %v7171_v39 = vpop.f32.mrf.mxu0 }
 0xb7f   :  { %6350 = vst.msk [vmem:[%s10327_s8 + $0x60] sm:$0xff] %vm150_vm0, %v6324_v52  ;;  %v6335_v49 = vadd.f32 %v7171_v39, %v6517_v45 }
 0xb80   :  { %v6326_v0 = vpop.f32.mrf.mxu0 }
 0xb81   :  { %6353 = vst.msk [vmem:[%s10327_s8 + $0x78] sm:$0xff] %vm150_vm0, %v6335_v49  ;;  %v6327_v27 = vadd.f32 %v6517_v45, %v6326_v0 }
 0xb83   :  { %6351 = vst.msk [vmem:[%s10327_s8 + $0x68] sm:$0xff] %vm150_vm0, %v6327_v27 }
 0xb84   :  { %6358 = vsyncpa [#allocation5], 1 }
 0xb85   :  { %6359 = vsyncpa [#allocation9], 1 }
 0xb86   :  { %6360 = vsyncpa [#allocation6], 1 }

</bundles_post_ra>
